<compile_context>
chip_gen: v5e
topology: v5e:2x2
jax: 0.10.0
libtpu: 0.0.40
codegen_flags: <defaults>
</compile_context>

<pallas_src>
import functools

import jax
import jax.numpy as jnp
from jax.experimental import pallas as pl
from jax.experimental.pallas import tpu as pltpu


# --------------------- ConvTranspose2d(kernel=2, stride=2) -------------------
def _up_kernel(h_ref, wtp_ref, bt2_ref, o_ref):
    # h_ref  : (1, Hh, Wh, Cin)        bf16
    # wtp_ref: (1, Cin, 2*Cout)        bf16, packed taps (kw, co) for the current kh
    # bt2_ref: (1, 2*Cout)             f32, bias tiled for kw = 0, 1
    # o_ref  : (1, Hh, 1, Wh, 2*Cout)  bf16
    _, Hh, Wh, Cin = h_ref.shape
    two_cout = o_ref.shape[-1]
    h2 = h_ref[0].reshape(Hh * Wh, Cin)
    y = jnp.dot(h2, wtp_ref[0], preferred_element_type=jnp.float32) + bt2_ref[...]
    o_ref[...] = y.reshape(1, Hh, 1, Wh, two_cout).astype(o_ref.dtype)


def conv_transpose_2x2_s2(h, wtp, bt2):
    # h: (B, Hh, Wh, Cin) bf16 -> (B, 2*Hh, 2*Wh, Cout) bf16
    B, Hh, Wh, Cin = h.shape
    two_cout = wtp.shape[-1]
    cout = two_cout // 2
    out = pl.pallas_call(
        _up_kernel,
        out_shape=jax.ShapeDtypeStruct((B, Hh, 2, Wh, two_cout), jnp.bfloat16),
        grid=(B, 2),
        in_specs=[
            pl.BlockSpec((1, Hh, Wh, Cin), lambda b, kh: (b, 0, 0, 0)),
            pl.BlockSpec((1, Cin, two_cout), lambda b, kh: (kh, 0, 0)),
            pl.BlockSpec((1, two_cout), lambda b, kh: (0, 0)),
        ],
        out_specs=pl.BlockSpec((1, Hh, 1, Wh, two_cout),
                               lambda b, kh: (b, 0, kh, 0, 0)),
        compiler_params=pltpu.CompilerParams(
            dimension_semantics=("parallel", "parallel"),
            vmem_limit_bytes=48 * 1024 * 1024),
    )(h, wtp, bt2)
    # Row-major identity: (B, Hh, 2, Wh, 2*Cout) flattens to the interleaved image
    # up[b, 2i+kh, 2j+kw, c]; this reshape is a free metadata op (no HBM pass).
    return out.reshape(B, 2 * Hh, 2 * Wh, cout)


# --------- fused [pad shortcut + concat + Conv3x3/ReLU + Conv3x3/ReLU] --------
def _unet_conv_kernel(s_ref, u_ref, w1s_ref, w1u_ref, b1_ref, w2_ref, b2_ref,
                      o_ref, spad_ref, upad_ref, mid_ref, *, ps):
    # s_ref : (1, Hs, Ws, Cs)      bf16  raw (un-padded) shortcut
    # u_ref : (1, Hup, Wup, Cu)    bf16  up-conv output
    # w1s   : (3, 3, Cs, Cmid)     bf16  conv1 weights, shortcut channel slice
    # w1u   : (3, 3, Cu, Cmid)     bf16  conv1 weights, up-conv channel slice
    # b1    : (1, Cmid) f32 ; w2: (3, 3, Cmid, Co) bf16 ; b2: (1, Co) f32
    # o_ref : (1, Hup, Wup, Co)    f32
    # spad  : VMEM (Hup+2, Wup+2, Cs)   f32, zero border of width ps
    # upad  : VMEM (Hup+2, Wup+2, Cu)   f32, zero border of width 1
    # mid   : VMEM (Hup+2, Wup+2, Cmid) f32, zero border of width 1
    _, Hs, Ws, Cs = s_ref.shape
    _, Hup, Wup, Cu = u_ref.shape
    Cmid = mid_ref.shape[-1]
    Co = o_ref.shape[-1]

    def zero_border(ref, a, h, w):
        # Only the thin strips outside the data interior; the interior is fully
        # overwritten every grid step (cheap, and safe under megacore sharding).
        Hp, Wp, C = ref.shape
        ref[0:a, :, :] = jnp.zeros((a, Wp, C), jnp.float32)
        ref[a + h:Hp, :, :] = jnp.zeros((Hp - a - h, Wp, C), jnp.float32)
        ref[a:a + h, 0:a, :] = jnp.zeros((h, a, C), jnp.float32)
        ref[a:a + h, a + w:Wp, :] = jnp.zeros((h, Wp - a - w, C), jnp.float32)

    zero_border(spad_ref, ps, Hs, Ws)
    zero_border(upad_ref, 1, Hup, Wup)
    zero_border(mid_ref, 1, Hup, Wup)

    # Stage inputs.  This replaces the XLA-side F.pad + channel concat: conv1's
    # weights are split per input, so the concatenated tensor never materializes.
    spad_ref[ps:ps + Hs, ps:ps + Ws, :] = s_ref[0].astype(jnp.float32)
    upad_ref[1:Hup + 1, 1:Wup + 1, :] = u_ref[0].astype(jnp.float32)

    # conv1: 3x3, pad 1, ReLU    (bf16 operands, f32 accumulation)
    acc1 = jnp.zeros((Hup * Wup, Cmid), jnp.float32)
    for ki in range(3):
        for kj in range(3):
            psb = spad_ref[ki:ki + Hup, kj:kj + Wup, :].reshape(Hup * Wup, Cs)
            pub = upad_ref[ki:ki + Hup, kj:kj + Wup, :].reshape(Hup * Wup, Cu)
            acc1 += jnp.dot(psb.astype(jnp.bfloat16), w1s_ref[ki, kj],
                            preferred_element_type=jnp.float32)
            acc1 += jnp.dot(pub.astype(jnp.bfloat16), w1u_ref[ki, kj],
                            preferred_element_type=jnp.float32)
    act1 = jnp.maximum(acc1 + b1_ref[...], 0.0)
    mid_ref[1:Hup + 1, 1:Wup + 1, :] = act1.reshape(Hup, Wup, Cmid)

    # conv2: 3x3, pad 1, ReLU
    acc2 = jnp.zeros((Hup * Wup, Co), jnp.float32)
    for ki in range(3):
        for kj in range(3):
            pm = mid_ref[ki:ki + Hup, kj:kj + Wup, :].reshape(Hup * Wup, Cmid)
            acc2 += jnp.dot(pm.astype(jnp.bfloat16), w2_ref[ki, kj],
                            preferred_element_type=jnp.float32)
    o_ref[0] = jnp.maximum(acc2 + b2_ref[...], 0.0).reshape(Hup, Wup, Co)


def unet_conv_fused(s, up, w1s, w1u, b1, w2, b2, ps):
    # s: (B, Hs, Ws, Cs) bf16, up: (B, Hup, Wup, Cu) bf16 -> (B, Hup, Wup, Co) f32
    B, Hs, Ws, Cs = s.shape
    _, Hup, Wup, Cu = up.shape
    Cmid = w1s.shape[-1]
    Co = w2.shape[-1]
    kern = functools.partial(_unet_conv_kernel, ps=ps)
    return pl.pallas_call(
        kern,
        out_shape=jax.ShapeDtypeStruct((B, Hup, Wup, Co), jnp.float32),
        grid=(B,),
        in_specs=[
            pl.BlockSpec((1, Hs, Ws, Cs), lambda b: (b, 0, 0, 0)),
            pl.BlockSpec((1, Hup, Wup, Cu), lambda b: (b, 0, 0, 0)),
            pl.BlockSpec((3, 3, Cs, Cmid), lambda b: (0, 0, 0, 0)),
            pl.BlockSpec((3, 3, Cu, Cmid), lambda b: (0, 0, 0, 0)),
            pl.BlockSpec((1, Cmid), lambda b: (0, 0)),
            pl.BlockSpec((3, 3, Cmid, Co), lambda b: (0, 0, 0, 0)),
            pl.BlockSpec((1, Co), lambda b: (0, 0)),
        ],
        out_specs=pl.BlockSpec((1, Hup, Wup, Co), lambda b: (b, 0, 0, 0)),
        scratch_shapes=[
            pltpu.VMEM((Hup + 2, Wup + 2, Cs), jnp.float32),
            pltpu.VMEM((Hup + 2, Wup + 2, Cu), jnp.float32),
            pltpu.VMEM((Hup + 2, Wup + 2, Cmid), jnp.float32),
        ],
        compiler_params=pltpu.CompilerParams(
            dimension_semantics=("parallel",),
            vmem_limit_bytes=48 * 1024 * 1024),
    )(s, up, w1s, w1u, b1, w2, b2)


# --------------------------- UNetUp forward (NCHW) ---------------------------
def unet_up_forward(params, shortcut_nchw, h_nchw):
    shortcut = jnp.transpose(shortcut_nchw, (0, 2, 3, 1)).astype(jnp.bfloat16)
    h = jnp.transpose(h_nchw, (0, 2, 3, 1)).astype(jnp.bfloat16)
    B, Hh, Wh, Cin = h.shape
    _, Hs, Ws, Cs = shortcut.shape

    wt = params["wt"].astype(jnp.float32)                       # (kh, kw, ci, co)
    Cout = wt.shape[-1]
    # pack: wtp[kh, ci, kw*Cout + co] = wt[kh, kw, ci, co]
    wtp = jnp.transpose(wt, (0, 2, 1, 3)).reshape(2, Cin, 2 * Cout).astype(jnp.bfloat16)
    bt2 = jnp.tile(params["bt"].astype(jnp.float32), 2).reshape(1, 2 * Cout)

    up = conv_transpose_2x2_s2(h, wtp, bt2)                     # (B, 2Hh, 2Wh, Cout) bf16

    Hup, Wup = up.shape[1], up.shape[2]
    offset = Hup - Hs
    assert offset >= 0 and offset % 2 == 0 and (Wup - Ws) == offset, \
        "UNetUp: shortcut/up spatial mismatch must be even (F.pad(offset//2) semantics)"
    ps = offset // 2 + 1        # F.pad(offset//2) + conv zero-pad(1), fused in-kernel

    w1 = params["w1"]
    w1s = w1[:, :, :Cs, :].astype(jnp.bfloat16)                 # shortcut channel slice
    w1u = w1[:, :, Cs:, :].astype(jnp.bfloat16)                 # up-conv channel slice
    b1 = params["b1"].astype(jnp.float32).reshape(1, -1)
    w2 = params["w2"].astype(jnp.bfloat16)
    b2 = params["b2"].astype(jnp.float32).reshape(1, -1)

    y = unet_conv_fused(shortcut, up, w1s, w1u, b1, w2, b2, ps)
    return jnp.transpose(y, (0, 3, 1, 2))                       # back to NCHW, f32


# -------------------------------- reference ----------------------------------
def unet_up_reference(params, shortcut_nchw, h_nchw):
    shortcut = jnp.transpose(shortcut_nchw, (0, 2, 3, 1)).astype(jnp.float32)
    h = jnp.transpose(h_nchw, (0, 2, 3, 1)).astype(jnp.float32)
    B, Hh, Wh, _ = h.shape
    Cout = params["wt"].shape[-1]
    t = jnp.einsum('nijc,hwcd->nihjwd', h, params["wt"])
    h_up = t.reshape(B, 2 * Hh, 2 * Wh, Cout) + params["bt"]

    offset = h_up.shape[1] - shortcut.shape[1]
    p = offset // 2
    sp = jnp.pad(shortcut, ((0, 0), (p, p), (p, p), (0, 0)))
    x = jnp.concatenate([sp, h_up], axis=-1)

    def c3(z, w, b):
        y = jax.lax.conv_general_dilated(
            z, w, (1, 1), 'SAME', dimension_numbers=('NHWC', 'HWIO', 'NHWC'))
        return jax.nn.relu(y + b)

    y = c3(c3(x, params["w1"], params["b1"]), params["w2"], params["b2"])
    return jnp.transpose(y, (0, 3, 1, 2))


if __name__ == "__main__":
    in_size, out_size = 8, 4
    B, Hh, Wh = 2, 8, 8                    # h spatial; h_up / shortcut spatial = 16

    key = jax.random.PRNGKey(0)
    ks = jax.random.split(key, 8)
    params = {
        # ConvTranspose2d(in_size, out_size, 2, 2): weights stored as (kh, kw, ci, co)
        "wt": 0.1 * jax.random.normal(ks[0], (2, 2, in_size, out_size), jnp.float32),
        "bt": 0.1 * jax.random.normal(ks[1], (out_size,), jnp.float32),
        # UNetConv convs stored as HWIO
        "w1": 0.1 * jax.random.normal(ks[2], (3, 3, in_size, out_size), jnp.float32),
        "b1": 0.1 * jax.random.normal(ks[3], (out_size,), jnp.float32),
        "w2": 0.1 * jax.random.normal(ks[4], (3, 3, out_size, out_size), jnp.float32),
        "b2": 0.1 * jax.random.normal(ks[5], (out_size,), jnp.float32),
    }

    # PyTorch-style NCHW inputs
    shortcut = jax.random.normal(ks[6], (B, in_size - out_size, 2 * Hh, 2 * Wh), jnp.float32)
    h = jax.random.normal(ks[7], (B, in_size, Hh, Wh), jnp.float32)

    fwd = jax.jit(unet_up_forward)
    out = fwd(params, shortcut, h)
    out = jax.block_until_ready(out)

    ref = unet_up_reference(params, shortcut, h)
    assert out.shape == (B, out_size, 2 * Hh, 2 * Wh), out.shape
    # bf16 MXU operands (f32 accumulation) -> tolerance relaxed vs. the pure-f32 path.
    err = float(jnp.max(jnp.abs(out - ref)))
    assert jnp.allclose(out, ref, atol=5e-2, rtol=5e-2), err

    print("KERNEL_OK")
</pallas_src>

<mosaic_0001>
module attributes {stable_mosaic.version = 11 : i64} {
  func.func @_unet_conv_kernel(%arg0: i32, %arg1: memref<1x16x16x4xbf16, #tpu.memory_space<vmem>>, %arg2: memref<1x16x16x4xbf16, #tpu.memory_space<vmem>>, %arg3: memref<3x3x4x4xbf16, #tpu.memory_space<vmem>>, %arg4: memref<3x3x4x4xbf16, #tpu.memory_space<vmem>>, %arg5: memref<1x4xf32, #tpu.memory_space<vmem>>, %arg6: memref<3x3x4x4xbf16, #tpu.memory_space<vmem>>, %arg7: memref<1x4xf32, #tpu.memory_space<vmem>>, %arg8: memref<1x16x16x4xf32, #tpu.memory_space<vmem>>, %arg9: memref<18x18x4xf32, #tpu.memory_space<vmem>>, %arg10: memref<18x18x4xf32, #tpu.memory_space<vmem>>, %arg11: memref<18x18x4xf32, #tpu.memory_space<vmem>>) attributes {dimension_semantics = [#tpu.dimension_semantics<parallel>], iteration_bounds = array<i64: 2>, scalar_prefetch = 0 : i64, scratch_operands = 3 : i64, tpu.core_type = #tpu.core_type<tc>, window_params = [{transform_indices = @transform_0, window_bounds = array<i64: 1, 16, 16, 4>}, {transform_indices = @transform_1, window_bounds = array<i64: 1, 16, 16, 4>}, {pipeline_mode = #tpu.pipeline_mode<synchronous>, transform_indices = @transform_2, window_bounds = array<i64: 3, 3, 4, 4>}, {pipeline_mode = #tpu.pipeline_mode<synchronous>, transform_indices = @transform_3, window_bounds = array<i64: 3, 3, 4, 4>}, {pipeline_mode = #tpu.pipeline_mode<synchronous>, transform_indices = @transform_4, window_bounds = array<i64: 1, 4>}, {pipeline_mode = #tpu.pipeline_mode<synchronous>, transform_indices = @transform_5, window_bounds = array<i64: 3, 3, 4, 4>}, {pipeline_mode = #tpu.pipeline_mode<synchronous>, transform_indices = @transform_6, window_bounds = array<i64: 1, 4>}, {transform_indices = @transform_7, window_bounds = array<i64: 1, 16, 16, 4>}]} {
    %cst = arith.constant 0.000000e+00 : f32
    %0 = vector.broadcast %cst : f32 to vector<1x18x4xf32>
    %c0 = arith.constant 0 : index
    %c0_0 = arith.constant 0 : index
    %c0_1 = arith.constant 0 : index
    %1 = vector.load %arg9[%c0, %c0_0, %c0_1] : memref<18x18x4xf32, #tpu.memory_space<vmem>>, vector<1x18x4xf32>
    tpu.vector_store %arg9[%c0, %c0_0, %c0_1], %0 {strides = array<i32>} : memref<18x18x4xf32, #tpu.memory_space<vmem>>, vector<1x18x4xf32>,
    %cst_2 = arith.constant 0.000000e+00 : f32
    %2 = vector.broadcast %cst_2 : f32 to vector<1x18x4xf32>
    %c17 = arith.constant 17 : index
    %c0_3 = arith.constant 0 : index
    %c0_4 = arith.constant 0 : index
    %3 = vector.load %arg9[%c17, %c0_3, %c0_4] : memref<18x18x4xf32, #tpu.memory_space<vmem>>, vector<1x18x4xf32>
    tpu.vector_store %arg9[%c17, %c0_3, %c0_4], %2 {strides = array<i32>} : memref<18x18x4xf32, #tpu.memory_space<vmem>>, vector<1x18x4xf32>,
    %cst_5 = arith.constant 0.000000e+00 : f32
    %4 = vector.broadcast %cst_5 : f32 to vector<16x1x4xf32>
    %c1 = arith.constant 1 : index
    %c0_6 = arith.constant 0 : index
    %c0_7 = arith.constant 0 : index
    %5 = vector.load %arg9[%c1, %c0_6, %c0_7] : memref<18x18x4xf32, #tpu.memory_space<vmem>>, vector<16x1x4xf32>
    tpu.vector_store %arg9[%c1, %c0_6, %c0_7], %4 {strides = array<i32>} : memref<18x18x4xf32, #tpu.memory_space<vmem>>, vector<16x1x4xf32>,
    %cst_8 = arith.constant 0.000000e+00 : f32
    %6 = vector.broadcast %cst_8 : f32 to vector<16x1x4xf32>
    %c1_9 = arith.constant 1 : index
    %c17_10 = arith.constant 17 : index
    %c0_11 = arith.constant 0 : index
    %7 = vector.load %arg9[%c1_9, %c17_10, %c0_11] : memref<18x18x4xf32, #tpu.memory_space<vmem>>, vector<16x1x4xf32>
    tpu.vector_store %arg9[%c1_9, %c17_10, %c0_11], %6 {strides = array<i32>} : memref<18x18x4xf32, #tpu.memory_space<vmem>>, vector<16x1x4xf32>,
    %cst_12 = arith.constant 0.000000e+00 : f32
    %8 = vector.broadcast %cst_12 : f32 to vector<1x18x4xf32>
    %c0_13 = arith.constant 0 : index
    %c0_14 = arith.constant 0 : index
    %c0_15 = arith.constant 0 : index
    %9 = vector.load %arg10[%c0_13, %c0_14, %c0_15] : memref<18x18x4xf32, #tpu.memory_space<vmem>>, vector<1x18x4xf32>
    tpu.vector_store %arg10[%c0_13, %c0_14, %c0_15], %8 {strides = array<i32>} : memref<18x18x4xf32, #tpu.memory_space<vmem>>, vector<1x18x4xf32>,
    %cst_16 = arith.constant 0.000000e+00 : f32
    %10 = vector.broadcast %cst_16 : f32 to vector<1x18x4xf32>
    %c17_17 = arith.constant 17 : index
    %c0_18 = arith.constant 0 : index
    %c0_19 = arith.constant 0 : index
    %11 = vector.load %arg10[%c17_17, %c0_18, %c0_19] : memref<18x18x4xf32, #tpu.memory_space<vmem>>, vector<1x18x4xf32>
    tpu.vector_store %arg10[%c17_17, %c0_18, %c0_19], %10 {strides = array<i32>} : memref<18x18x4xf32, #tpu.memory_space<vmem>>, vector<1x18x4xf32>,
    %cst_20 = arith.constant 0.000000e+00 : f32
    %12 = vector.broadcast %cst_20 : f32 to vector<16x1x4xf32>
    %c1_21 = arith.constant 1 : index
    %c0_22 = arith.constant 0 : index
    %c0_23 = arith.constant 0 : index
    %13 = vector.load %arg10[%c1_21, %c0_22, %c0_23] : memref<18x18x4xf32, #tpu.memory_space<vmem>>, vector<16x1x4xf32>
    tpu.vector_store %arg10[%c1_21, %c0_22, %c0_23], %12 {strides = array<i32>} : memref<18x18x4xf32, #tpu.memory_space<vmem>>, vector<16x1x4xf32>,
    %cst_24 = arith.constant 0.000000e+00 : f32
    %14 = vector.broadcast %cst_24 : f32 to vector<16x1x4xf32>
    %c1_25 = arith.constant 1 : index
    %c17_26 = arith.constant 17 : index
    %c0_27 = arith.constant 0 : index
    %15 = vector.load %arg10[%c1_25, %c17_26, %c0_27] : memref<18x18x4xf32, #tpu.memory_space<vmem>>, vector<16x1x4xf32>
    tpu.vector_store %arg10[%c1_25, %c17_26, %c0_27], %14 {strides = array<i32>} : memref<18x18x4xf32, #tpu.memory_space<vmem>>, vector<16x1x4xf32>,
    %cst_28 = arith.constant 0.000000e+00 : f32
    %16 = vector.broadcast %cst_28 : f32 to vector<1x18x4xf32>
    %c0_29 = arith.constant 0 : index
    %c0_30 = arith.constant 0 : index
    %c0_31 = arith.constant 0 : index
    %17 = vector.load %arg11[%c0_29, %c0_30, %c0_31] : memref<18x18x4xf32, #tpu.memory_space<vmem>>, vector<1x18x4xf32>
    tpu.vector_store %arg11[%c0_29, %c0_30, %c0_31], %16 {strides = array<i32>} : memref<18x18x4xf32, #tpu.memory_space<vmem>>, vector<1x18x4xf32>,
    %cst_32 = arith.constant 0.000000e+00 : f32
    %18 = vector.broadcast %cst_32 : f32 to vector<1x18x4xf32>
    %c17_33 = arith.constant 17 : index
    %c0_34 = arith.constant 0 : index
    %c0_35 = arith.constant 0 : index
    %19 = vector.load %arg11[%c17_33, %c0_34, %c0_35] : memref<18x18x4xf32, #tpu.memory_space<vmem>>, vector<1x18x4xf32>
    tpu.vector_store %arg11[%c17_33, %c0_34, %c0_35], %18 {strides = array<i32>} : memref<18x18x4xf32, #tpu.memory_space<vmem>>, vector<1x18x4xf32>,
    %cst_36 = arith.constant 0.000000e+00 : f32
    %20 = vector.broadcast %cst_36 : f32 to vector<16x1x4xf32>
    %c1_37 = arith.constant 1 : index
    %c0_38 = arith.constant 0 : index
    %c0_39 = arith.constant 0 : index
    %21 = vector.load %arg11[%c1_37, %c0_38, %c0_39] : memref<18x18x4xf32, #tpu.memory_space<vmem>>, vector<16x1x4xf32>
    tpu.vector_store %arg11[%c1_37, %c0_38, %c0_39], %20 {strides = array<i32>} : memref<18x18x4xf32, #tpu.memory_space<vmem>>, vector<16x1x4xf32>,
    %cst_40 = arith.constant 0.000000e+00 : f32
    %22 = vector.broadcast %cst_40 : f32 to vector<16x1x4xf32>
    %c1_41 = arith.constant 1 : index
    %c17_42 = arith.constant 17 : index
    %c0_43 = arith.constant 0 : index
    %23 = vector.load %arg11[%c1_41, %c17_42, %c0_43] : memref<18x18x4xf32, #tpu.memory_space<vmem>>, vector<16x1x4xf32>
    tpu.vector_store %arg11[%c1_41, %c17_42, %c0_43], %22 {strides = array<i32>} : memref<18x18x4xf32, #tpu.memory_space<vmem>>, vector<16x1x4xf32>,
    %c0_44 = arith.constant 0 : index
    %c0_45 = arith.constant 0 : index
    %c0_46 = arith.constant 0 : index
    %c0_47 = arith.constant 0 : index
    %24 = vector.load %arg1[%c0_44, %c0_45, %c0_46, %c0_47] : memref<1x16x16x4xbf16, #tpu.memory_space<vmem>>, vector<1x16x16x4xbf16>
    %25 = vector.shape_cast %24 : vector<1x16x16x4xbf16> to vector<16x16x4xbf16>
    %26 = arith.extf %25 : vector<16x16x4xbf16> to vector<16x16x4xf32>
    %c1_48 = arith.constant 1 : index
    %c1_49 = arith.constant 1 : index
    %c0_50 = arith.constant 0 : index
    %27 = vector.load %arg9[%c1_48, %c1_49, %c0_50] : memref<18x18x4xf32, #tpu.memory_space<vmem>>, vector<16x16x4xf32>
    tpu.vector_store %arg9[%c1_48, %c1_49, %c0_50], %26 {strides = array<i32>} : memref<18x18x4xf32, #tpu.memory_space<vmem>>, vector<16x16x4xf32>,
    %c0_51 = arith.constant 0 : index
    %c0_52 = arith.constant 0 : index
    %c0_53 = arith.constant 0 : index
    %c0_54 = arith.constant 0 : index
    %28 = vector.load %arg2[%c0_51, %c0_52, %c0_53, %c0_54] : memref<1x16x16x4xbf16, #tpu.memory_space<vmem>>, vector<1x16x16x4xbf16>
    %29 = vector.shape_cast %28 : vector<1x16x16x4xbf16> to vector<16x16x4xbf16>
    %30 = arith.extf %29 : vector<16x16x4xbf16> to vector<16x16x4xf32>
    %c1_55 = arith.constant 1 : index
    %c1_56 = arith.constant 1 : index
    %c0_57 = arith.constant 0 : index
    %31 = vector.load %arg10[%c1_55, %c1_56, %c0_57] : memref<18x18x4xf32, #tpu.memory_space<vmem>>, vector<16x16x4xf32>
    tpu.vector_store %arg10[%c1_55, %c1_56, %c0_57], %30 {strides = array<i32>} : memref<18x18x4xf32, #tpu.memory_space<vmem>>, vector<16x16x4xf32>,
    %cst_58 = arith.constant 0.000000e+00 : f32
    %32 = vector.broadcast %cst_58 : f32 to vector<256x4xf32>
    %c0_59 = arith.constant 0 : index
    %c0_60 = arith.constant 0 : index
    %c0_61 = arith.constant 0 : index
    %33 = vector.load %arg9[%c0_59, %c0_60, %c0_61] : memref<18x18x4xf32, #tpu.memory_space<vmem>>, vector<16x16x4xf32>
    %34 = vector.shape_cast %33 : vector<16x16x4xf32> to vector<256x4xf32>
    %c0_62 = arith.constant 0 : index
    %c0_63 = arith.constant 0 : index
    %c0_64 = arith.constant 0 : index
    %35 = vector.load %arg10[%c0_62, %c0_63, %c0_64] : memref<18x18x4xf32, #tpu.memory_space<vmem>>, vector<16x16x4xf32>
    %36 = vector.shape_cast %35 : vector<16x16x4xf32> to vector<256x4xf32>
    %37 = arith.truncf %34 : vector<256x4xf32> to vector<256x4xbf16>
    %c0_65 = arith.constant 0 : index
    %c0_66 = arith.constant 0 : index
    %c0_67 = arith.constant 0 : index
    %c0_68 = arith.constant 0 : index
    %38 = vector.load %arg3[%c0_65, %c0_66, %c0_67, %c0_68] : memref<3x3x4x4xbf16, #tpu.memory_space<vmem>>, vector<1x1x4x4xbf16>
    %39 = vector.shape_cast %38 : vector<1x1x4x4xbf16> to vector<4x4xbf16>
    %cst_69 = arith.constant dense<0.000000e+00> : vector<256x4xf32>
    %40 = tpu.matmul %37, %39, %cst_69 {dimension_numbers = #tpu.dot_dimension_numbers<[1], [0], [0], [1], [0, 0, 1, 1], [], []>} : vector<256x4xbf16>, vector<4x4xbf16>, vector<256x4xf32> -> vector<256x4xf32>
    %41 = arith.addf %32, %40 : vector<256x4xf32>
    %42 = arith.truncf %36 : vector<256x4xf32> to vector<256x4xbf16>
    %c0_70 = arith.constant 0 : index
    %c0_71 = arith.constant 0 : index
    %c0_72 = arith.constant 0 : index
    %c0_73 = arith.constant 0 : index
    %43 = vector.load %arg4[%c0_70, %c0_71, %c0_72, %c0_73] : memref<3x3x4x4xbf16, #tpu.memory_space<vmem>>, vector<1x1x4x4xbf16>
    %44 = vector.shape_cast %43 : vector<1x1x4x4xbf16> to vector<4x4xbf16>
    %cst_74 = arith.constant dense<0.000000e+00> : vector<256x4xf32>
    %45 = tpu.matmul %42, %44, %cst_74 {dimension_numbers = #tpu.dot_dimension_numbers<[1], [0], [0], [1], [0, 0, 1, 1], [], []>} : vector<256x4xbf16>, vector<4x4xbf16>, vector<256x4xf32> -> vector<256x4xf32>
    %46 = arith.addf %41, %45 : vector<256x4xf32>
    %c0_75 = arith.constant 0 : index
    %c1_76 = arith.constant 1 : index
    %c0_77 = arith.constant 0 : index
    %47 = vector.load %arg9[%c0_75, %c1_76, %c0_77] : memref<18x18x4xf32, #tpu.memory_space<vmem>>, vector<16x16x4xf32>
    %48 = vector.shape_cast %47 : vector<16x16x4xf32> to vector<256x4xf32>
    %c0_78 = arith.constant 0 : index
    %c1_79 = arith.constant 1 : index
    %c0_80 = arith.constant 0 : index
    %49 = vector.load %arg10[%c0_78, %c1_79, %c0_80] : memref<18x18x4xf32, #tpu.memory_space<vmem>>, vector<16x16x4xf32>
    %50 = vector.shape_cast %49 : vector<16x16x4xf32> to vector<256x4xf32>
    %51 = arith.truncf %48 : vector<256x4xf32> to vector<256x4xbf16>
    %c0_81 = arith.constant 0 : index
    %c1_82 = arith.constant 1 : index
    %c0_83 = arith.constant 0 : index
    %c0_84 = arith.constant 0 : index
    %52 = vector.load %arg3[%c0_81, %c1_82, %c0_83, %c0_84] : memref<3x3x4x4xbf16, #tpu.memory_space<vmem>>, vector<1x1x4x4xbf16>
    %53 = vector.shape_cast %52 : vector<1x1x4x4xbf16> to vector<4x4xbf16>
    %cst_85 = arith.constant dense<0.000000e+00> : vector<256x4xf32>
    %54 = tpu.matmul %51, %53, %cst_85 {dimension_numbers = #tpu.dot_dimension_numbers<[1], [0], [0], [1], [0, 0, 1, 1], [], []>} : vector<256x4xbf16>, vector<4x4xbf16>, vector<256x4xf32> -> vector<256x4xf32>
    %55 = arith.addf %46, %54 : vector<256x4xf32>
    %56 = arith.truncf %50 : vector<256x4xf32> to vector<256x4xbf16>
    %c0_86 = arith.constant 0 : index
    %c1_87 = arith.constant 1 : index
    %c0_88 = arith.constant 0 : index
    %c0_89 = arith.constant 0 : index
    %57 = vector.load %arg4[%c0_86, %c1_87, %c0_88, %c0_89] : memref<3x3x4x4xbf16, #tpu.memory_space<vmem>>, vector<1x1x4x4xbf16>
    %58 = vector.shape_cast %57 : vector<1x1x4x4xbf16> to vector<4x4xbf16>
    %cst_90 = arith.constant dense<0.000000e+00> : vector<256x4xf32>
    %59 = tpu.matmul %56, %58, %cst_90 {dimension_numbers = #tpu.dot_dimension_numbers<[1], [0], [0], [1], [0, 0, 1, 1], [], []>} : vector<256x4xbf16>, vector<4x4xbf16>, vector<256x4xf32> -> vector<256x4xf32>
    %60 = arith.addf %55, %59 : vector<256x4xf32>
    %c0_91 = arith.constant 0 : index
    %c2 = arith.constant 2 : index
    %c0_92 = arith.constant 0 : index
    %61 = vector.load %arg9[%c0_91, %c2, %c0_92] : memref<18x18x4xf32, #tpu.memory_space<vmem>>, vector<16x16x4xf32>
    %62 = vector.shape_cast %61 : vector<16x16x4xf32> to vector<256x4xf32>
    %c0_93 = arith.constant 0 : index
    %c2_94 = arith.constant 2 : index
    %c0_95 = arith.constant 0 : index
    %63 = vector.load %arg10[%c0_93, %c2_94, %c0_95] : memref<18x18x4xf32, #tpu.memory_space<vmem>>, vector<16x16x4xf32>
    %64 = vector.shape_cast %63 : vector<16x16x4xf32> to vector<256x4xf32>
    %65 = arith.truncf %62 : vector<256x4xf32> to vector<256x4xbf16>
    %c0_96 = arith.constant 0 : index
    %c2_97 = arith.constant 2 : index
    %c0_98 = arith.constant 0 : index
    %c0_99 = arith.constant 0 : index
    %66 = vector.load %arg3[%c0_96, %c2_97, %c0_98, %c0_99] : memref<3x3x4x4xbf16, #tpu.memory_space<vmem>>, vector<1x1x4x4xbf16>
    %67 = vector.shape_cast %66 : vector<1x1x4x4xbf16> to vector<4x4xbf16>
    %cst_100 = arith.constant dense<0.000000e+00> : vector<256x4xf32>
    %68 = tpu.matmul %65, %67, %cst_100 {dimension_numbers = #tpu.dot_dimension_numbers<[1], [0], [0], [1], [0, 0, 1, 1], [], []>} : vector<256x4xbf16>, vector<4x4xbf16>, vector<256x4xf32> -> vector<256x4xf32>
    %69 = arith.addf %60, %68 : vector<256x4xf32>
    %70 = arith.truncf %64 : vector<256x4xf32> to vector<256x4xbf16>
    %c0_101 = arith.constant 0 : index
    %c2_102 = arith.constant 2 : index
    %c0_103 = arith.constant 0 : index
    %c0_104 = arith.constant 0 : index
    %71 = vector.load %arg4[%c0_101, %c2_102, %c0_103, %c0_104] : memref<3x3x4x4xbf16, #tpu.memory_space<vmem>>, vector<1x1x4x4xbf16>
    %72 = vector.shape_cast %71 : vector<1x1x4x4xbf16> to vector<4x4xbf16>
    %cst_105 = arith.constant dense<0.000000e+00> : vector<256x4xf32>
    %73 = tpu.matmul %70, %72, %cst_105 {dimension_numbers = #tpu.dot_dimension_numbers<[1], [0], [0], [1], [0, 0, 1, 1], [], []>} : vector<256x4xbf16>, vector<4x4xbf16>, vector<256x4xf32> -> vector<256x4xf32>
    %74 = arith.addf %69, %73 : vector<256x4xf32>
    %c1_106 = arith.constant 1 : index
    %c0_107 = arith.constant 0 : index
    %c0_108 = arith.constant 0 : index
    %75 = vector.load %arg9[%c1_106, %c0_107, %c0_108] : memref<18x18x4xf32, #tpu.memory_space<vmem>>, vector<16x16x4xf32>
    %76 = vector.shape_cast %75 : vector<16x16x4xf32> to vector<256x4xf32>
    %c1_109 = arith.constant 1 : index
    %c0_110 = arith.constant 0 : index
    %c0_111 = arith.constant 0 : index
    %77 = vector.load %arg10[%c1_109, %c0_110, %c0_111] : memref<18x18x4xf32, #tpu.memory_space<vmem>>, vector<16x16x4xf32>
    %78 = vector.shape_cast %77 : vector<16x16x4xf32> to vector<256x4xf32>
    %79 = arith.truncf %76 : vector<256x4xf32> to vector<256x4xbf16>
    %c1_112 = arith.constant 1 : index
    %c0_113 = arith.constant 0 : index
    %c0_114 = arith.constant 0 : index
    %c0_115 = arith.constant 0 : index
    %80 = vector.load %arg3[%c1_112, %c0_113, %c0_114, %c0_115] : memref<3x3x4x4xbf16, #tpu.memory_space<vmem>>, vector<1x1x4x4xbf16>
    %81 = vector.shape_cast %80 : vector<1x1x4x4xbf16> to vector<4x4xbf16>
    %cst_116 = arith.constant dense<0.000000e+00> : vector<256x4xf32>
    %82 = tpu.matmul %79, %81, %cst_116 {dimension_numbers = #tpu.dot_dimension_numbers<[1], [0], [0], [1], [0, 0, 1, 1], [], []>} : vector<256x4xbf16>, vector<4x4xbf16>, vector<256x4xf32> -> vector<256x4xf32>
    %83 = arith.addf %74, %82 : vector<256x4xf32>
    %84 = arith.truncf %78 : vector<256x4xf32> to vector<256x4xbf16>
    %c1_117 = arith.constant 1 : index
    %c0_118 = arith.constant 0 : index
    %c0_119 = arith.constant 0 : index
    %c0_120 = arith.constant 0 : index
    %85 = vector.load %arg4[%c1_117, %c0_118, %c0_119, %c0_120] : memref<3x3x4x4xbf16, #tpu.memory_space<vmem>>, vector<1x1x4x4xbf16>
    %86 = vector.shape_cast %85 : vector<1x1x4x4xbf16> to vector<4x4xbf16>
    %cst_121 = arith.constant dense<0.000000e+00> : vector<256x4xf32>
    %87 = tpu.matmul %84, %86, %cst_121 {dimension_numbers = #tpu.dot_dimension_numbers<[1], [0], [0], [1], [0, 0, 1, 1], [], []>} : vector<256x4xbf16>, vector<4x4xbf16>, vector<256x4xf32> -> vector<256x4xf32>
    %88 = arith.addf %83, %87 : vector<256x4xf32>
    %c1_122 = arith.constant 1 : index
    %c1_123 = arith.constant 1 : index
    %c0_124 = arith.constant 0 : index
    %89 = vector.load %arg9[%c1_122, %c1_123, %c0_124] : memref<18x18x4xf32, #tpu.memory_space<vmem>>, vector<16x16x4xf32>
    %90 = vector.shape_cast %89 : vector<16x16x4xf32> to vector<256x4xf32>
    %c1_125 = arith.constant 1 : index
    %c1_126 = arith.constant 1 : index
    %c0_127 = arith.constant 0 : index
    %91 = vector.load %arg10[%c1_125, %c1_126, %c0_127] : memref<18x18x4xf32, #tpu.memory_space<vmem>>, vector<16x16x4xf32>
    %92 = vector.shape_cast %91 : vector<16x16x4xf32> to vector<256x4xf32>
    %93 = arith.truncf %90 : vector<256x4xf32> to vector<256x4xbf16>
    %c1_128 = arith.constant 1 : index
    %c1_129 = arith.constant 1 : index
    %c0_130 = arith.constant 0 : index
    %c0_131 = arith.constant 0 : index
    %94 = vector.load %arg3[%c1_128, %c1_129, %c0_130, %c0_131] : memref<3x3x4x4xbf16, #tpu.memory_space<vmem>>, vector<1x1x4x4xbf16>
    %95 = vector.shape_cast %94 : vector<1x1x4x4xbf16> to vector<4x4xbf16>
    %cst_132 = arith.constant dense<0.000000e+00> : vector<256x4xf32>
    %96 = tpu.matmul %93, %95, %cst_132 {dimension_numbers = #tpu.dot_dimension_numbers<[1], [0], [0], [1], [0, 0, 1, 1], [], []>} : vector<256x4xbf16>, vector<4x4xbf16>, vector<256x4xf32> -> vector<256x4xf32>
    %97 = arith.addf %88, %96 : vector<256x4xf32>
    %98 = arith.truncf %92 : vector<256x4xf32> to vector<256x4xbf16>
    %c1_133 = arith.constant 1 : index
    %c1_134 = arith.constant 1 : index
    %c0_135 = arith.constant 0 : index
    %c0_136 = arith.constant 0 : index
    %99 = vector.load %arg4[%c1_133, %c1_134, %c0_135, %c0_136] : memref<3x3x4x4xbf16, #tpu.memory_space<vmem>>, vector<1x1x4x4xbf16>
    %100 = vector.shape_cast %99 : vector<1x1x4x4xbf16> to vector<4x4xbf16>
    %cst_137 = arith.constant dense<0.000000e+00> : vector<256x4xf32>
    %101 = tpu.matmul %98, %100, %cst_137 {dimension_numbers = #tpu.dot_dimension_numbers<[1], [0], [0], [1], [0, 0, 1, 1], [], []>} : vector<256x4xbf16>, vector<4x4xbf16>, vector<256x4xf32> -> vector<256x4xf32>
    %102 = arith.addf %97, %101 : vector<256x4xf32>
    %c1_138 = arith.constant 1 : index
    %c2_139 = arith.constant 2 : index
    %c0_140 = arith.constant 0 : index
    %103 = vector.load %arg9[%c1_138, %c2_139, %c0_140] : memref<18x18x4xf32, #tpu.memory_space<vmem>>, vector<16x16x4xf32>
    %104 = vector.shape_cast %103 : vector<16x16x4xf32> to vector<256x4xf32>
    %c1_141 = arith.constant 1 : index
    %c2_142 = arith.constant 2 : index
    %c0_143 = arith.constant 0 : index
    %105 = vector.load %arg10[%c1_141, %c2_142, %c0_143] : memref<18x18x4xf32, #tpu.memory_space<vmem>>, vector<16x16x4xf32>
    %106 = vector.shape_cast %105 : vector<16x16x4xf32> to vector<256x4xf32>
    %107 = arith.truncf %104 : vector<256x4xf32> to vector<256x4xbf16>
    %c1_144 = arith.constant 1 : index
    %c2_145 = arith.constant 2 : index
    %c0_146 = arith.constant 0 : index
    %c0_147 = arith.constant 0 : index
    %108 = vector.load %arg3[%c1_144, %c2_145, %c0_146, %c0_147] : memref<3x3x4x4xbf16, #tpu.memory_space<vmem>>, vector<1x1x4x4xbf16>
    %109 = vector.shape_cast %108 : vector<1x1x4x4xbf16> to vector<4x4xbf16>
    %cst_148 = arith.constant dense<0.000000e+00> : vector<256x4xf32>
    %110 = tpu.matmul %107, %109, %cst_148 {dimension_numbers = #tpu.dot_dimension_numbers<[1], [0], [0], [1], [0, 0, 1, 1], [], []>} : vector<256x4xbf16>, vector<4x4xbf16>, vector<256x4xf32> -> vector<256x4xf32>
    %111 = arith.addf %102, %110 : vector<256x4xf32>
    %112 = arith.truncf %106 : vector<256x4xf32> to vector<256x4xbf16>
    %c1_149 = arith.constant 1 : index
    %c2_150 = arith.constant 2 : index
    %c0_151 = arith.constant 0 : index
    %c0_152 = arith.constant 0 : index
    %113 = vector.load %arg4[%c1_149, %c2_150, %c0_151, %c0_152] : memref<3x3x4x4xbf16, #tpu.memory_space<vmem>>, vector<1x1x4x4xbf16>
    %114 = vector.shape_cast %113 : vector<1x1x4x4xbf16> to vector<4x4xbf16>
    %cst_153 = arith.constant dense<0.000000e+00> : vector<256x4xf32>
    %115 = tpu.matmul %112, %114, %cst_153 {dimension_numbers = #tpu.dot_dimension_numbers<[1], [0], [0], [1], [0, 0, 1, 1], [], []>} : vector<256x4xbf16>, vector<4x4xbf16>, vector<256x4xf32> -> vector<256x4xf32>
    %116 = arith.addf %111, %115 : vector<256x4xf32>
    %c2_154 = arith.constant 2 : index
    %c0_155 = arith.constant 0 : index
    %c0_156 = arith.constant 0 : index
    %117 = vector.load %arg9[%c2_154, %c0_155, %c0_156] : memref<18x18x4xf32, #tpu.memory_space<vmem>>, vector<16x16x4xf32>
    %118 = vector.shape_cast %117 : vector<16x16x4xf32> to vector<256x4xf32>
    %c2_157 = arith.constant 2 : index
    %c0_158 = arith.constant 0 : index
    %c0_159 = arith.constant 0 : index
    %119 = vector.load %arg10[%c2_157, %c0_158, %c0_159] : memref<18x18x4xf32, #tpu.memory_space<vmem>>, vector<16x16x4xf32>
    %120 = vector.shape_cast %119 : vector<16x16x4xf32> to vector<256x4xf32>
    %121 = arith.truncf %118 : vector<256x4xf32> to vector<256x4xbf16>
    %c2_160 = arith.constant 2 : index
    %c0_161 = arith.constant 0 : index
    %c0_162 = arith.constant 0 : index
    %c0_163 = arith.constant 0 : index
    %122 = vector.load %arg3[%c2_160, %c0_161, %c0_162, %c0_163] : memref<3x3x4x4xbf16, #tpu.memory_space<vmem>>, vector<1x1x4x4xbf16>
    %123 = vector.shape_cast %122 : vector<1x1x4x4xbf16> to vector<4x4xbf16>
    %cst_164 = arith.constant dense<0.000000e+00> : vector<256x4xf32>
    %124 = tpu.matmul %121, %123, %cst_164 {dimension_numbers = #tpu.dot_dimension_numbers<[1], [0], [0], [1], [0, 0, 1, 1], [], []>} : vector<256x4xbf16>, vector<4x4xbf16>, vector<256x4xf32> -> vector<256x4xf32>
    %125 = arith.addf %116, %124 : vector<256x4xf32>
    %126 = arith.truncf %120 : vector<256x4xf32> to vector<256x4xbf16>
    %c2_165 = arith.constant 2 : index
    %c0_166 = arith.constant 0 : index
    %c0_167 = arith.constant 0 : index
    %c0_168 = arith.constant 0 : index
    %127 = vector.load %arg4[%c2_165, %c0_166, %c0_167, %c0_168] : memref<3x3x4x4xbf16, #tpu.memory_space<vmem>>, vector<1x1x4x4xbf16>
    %128 = vector.shape_cast %127 : vector<1x1x4x4xbf16> to vector<4x4xbf16>
    %cst_169 = arith.constant dense<0.000000e+00> : vector<256x4xf32>
    %129 = tpu.matmul %126, %128, %cst_169 {dimension_numbers = #tpu.dot_dimension_numbers<[1], [0], [0], [1], [0, 0, 1, 1], [], []>} : vector<256x4xbf16>, vector<4x4xbf16>, vector<256x4xf32> -> vector<256x4xf32>
    %130 = arith.addf %125, %129 : vector<256x4xf32>
    %c2_170 = arith.constant 2 : index
    %c1_171 = arith.constant 1 : index
    %c0_172 = arith.constant 0 : index
    %131 = vector.load %arg9[%c2_170, %c1_171, %c0_172] : memref<18x18x4xf32, #tpu.memory_space<vmem>>, vector<16x16x4xf32>
    %132 = vector.shape_cast %131 : vector<16x16x4xf32> to vector<256x4xf32>
    %c2_173 = arith.constant 2 : index
    %c1_174 = arith.constant 1 : index
    %c0_175 = arith.constant 0 : index
    %133 = vector.load %arg10[%c2_173, %c1_174, %c0_175] : memref<18x18x4xf32, #tpu.memory_space<vmem>>, vector<16x16x4xf32>
    %134 = vector.shape_cast %133 : vector<16x16x4xf32> to vector<256x4xf32>
    %135 = arith.truncf %132 : vector<256x4xf32> to vector<256x4xbf16>
    %c2_176 = arith.constant 2 : index
    %c1_177 = arith.constant 1 : index
    %c0_178 = arith.constant 0 : index
    %c0_179 = arith.constant 0 : index
    %136 = vector.load %arg3[%c2_176, %c1_177, %c0_178, %c0_179] : memref<3x3x4x4xbf16, #tpu.memory_space<vmem>>, vector<1x1x4x4xbf16>
    %137 = vector.shape_cast %136 : vector<1x1x4x4xbf16> to vector<4x4xbf16>
    %cst_180 = arith.constant dense<0.000000e+00> : vector<256x4xf32>
    %138 = tpu.matmul %135, %137, %cst_180 {dimension_numbers = #tpu.dot_dimension_numbers<[1], [0], [0], [1], [0, 0, 1, 1], [], []>} : vector<256x4xbf16>, vector<4x4xbf16>, vector<256x4xf32> -> vector<256x4xf32>
    %139 = arith.addf %130, %138 : vector<256x4xf32>
    %140 = arith.truncf %134 : vector<256x4xf32> to vector<256x4xbf16>
    %c2_181 = arith.constant 2 : index
    %c1_182 = arith.constant 1 : index
    %c0_183 = arith.constant 0 : index
    %c0_184 = arith.constant 0 : index
    %141 = vector.load %arg4[%c2_181, %c1_182, %c0_183, %c0_184] : memref<3x3x4x4xbf16, #tpu.memory_space<vmem>>, vector<1x1x4x4xbf16>
    %142 = vector.shape_cast %141 : vector<1x1x4x4xbf16> to vector<4x4xbf16>
    %cst_185 = arith.constant dense<0.000000e+00> : vector<256x4xf32>
    %143 = tpu.matmul %140, %142, %cst_185 {dimension_numbers = #tpu.dot_dimension_numbers<[1], [0], [0], [1], [0, 0, 1, 1], [], []>} : vector<256x4xbf16>, vector<4x4xbf16>, vector<256x4xf32> -> vector<256x4xf32>
    %144 = arith.addf %139, %143 : vector<256x4xf32>
    %c2_186 = arith.constant 2 : index
    %c2_187 = arith.constant 2 : index
    %c0_188 = arith.constant 0 : index
    %145 = vector.load %arg9[%c2_186, %c2_187, %c0_188] : memref<18x18x4xf32, #tpu.memory_space<vmem>>, vector<16x16x4xf32>
    %146 = vector.shape_cast %145 : vector<16x16x4xf32> to vector<256x4xf32>
    %c2_189 = arith.constant 2 : index
    %c2_190 = arith.constant 2 : index
    %c0_191 = arith.constant 0 : index
    %147 = vector.load %arg10[%c2_189, %c2_190, %c0_191] : memref<18x18x4xf32, #tpu.memory_space<vmem>>, vector<16x16x4xf32>
    %148 = vector.shape_cast %147 : vector<16x16x4xf32> to vector<256x4xf32>
    %149 = arith.truncf %146 : vector<256x4xf32> to vector<256x4xbf16>
    %c2_192 = arith.constant 2 : index
    %c2_193 = arith.constant 2 : index
    %c0_194 = arith.constant 0 : index
    %c0_195 = arith.constant 0 : index
    %150 = vector.load %arg3[%c2_192, %c2_193, %c0_194, %c0_195] : memref<3x3x4x4xbf16, #tpu.memory_space<vmem>>, vector<1x1x4x4xbf16>
    %151 = vector.shape_cast %150 : vector<1x1x4x4xbf16> to vector<4x4xbf16>
    %cst_196 = arith.constant dense<0.000000e+00> : vector<256x4xf32>
    %152 = tpu.matmul %149, %151, %cst_196 {dimension_numbers = #tpu.dot_dimension_numbers<[1], [0], [0], [1], [0, 0, 1, 1], [], []>} : vector<256x4xbf16>, vector<4x4xbf16>, vector<256x4xf32> -> vector<256x4xf32>
    %153 = arith.addf %144, %152 : vector<256x4xf32>
    %154 = arith.truncf %148 : vector<256x4xf32> to vector<256x4xbf16>
    %c2_197 = arith.constant 2 : index
    %c2_198 = arith.constant 2 : index
    %c0_199 = arith.constant 0 : index
    %c0_200 = arith.constant 0 : index
    %155 = vector.load %arg4[%c2_197, %c2_198, %c0_199, %c0_200] : memref<3x3x4x4xbf16, #tpu.memory_space<vmem>>, vector<1x1x4x4xbf16>
    %156 = vector.shape_cast %155 : vector<1x1x4x4xbf16> to vector<4x4xbf16>
    %cst_201 = arith.constant dense<0.000000e+00> : vector<256x4xf32>
    %157 = tpu.matmul %154, %156, %cst_201 {dimension_numbers = #tpu.dot_dimension_numbers<[1], [0], [0], [1], [0, 0, 1, 1], [], []>} : vector<256x4xbf16>, vector<4x4xbf16>, vector<256x4xf32> -> vector<256x4xf32>
    %158 = arith.addf %153, %157 : vector<256x4xf32>
    %c0_202 = arith.constant 0 : index
    %c0_203 = arith.constant 0 : index
    %159 = vector.load %arg5[%c0_202, %c0_203] : memref<1x4xf32, #tpu.memory_space<vmem>>, vector<1x4xf32>
    %160 = vector.broadcast %159 : vector<1x4xf32> to vector<256x4xf32>
    %161 = arith.addf %158, %160 : vector<256x4xf32>
    %cst_204 = arith.constant 0.000000e+00 : f32
    %162 = vector.broadcast %cst_204 : f32 to vector<256x4xf32>
    %163 = arith.maximumf %161, %162 : vector<256x4xf32>
    %164 = vector.shape_cast %163 : vector<256x4xf32> to vector<16x16x4xf32>
    %c1_205 = arith.constant 1 : index
    %c1_206 = arith.constant 1 : index
    %c0_207 = arith.constant 0 : index
    %165 = vector.load %arg11[%c1_205, %c1_206, %c0_207] : memref<18x18x4xf32, #tpu.memory_space<vmem>>, vector<16x16x4xf32>
    tpu.vector_store %arg11[%c1_205, %c1_206, %c0_207], %164 {strides = array<i32>} : memref<18x18x4xf32, #tpu.memory_space<vmem>>, vector<16x16x4xf32>,
    %cst_208 = arith.constant 0.000000e+00 : f32
    %166 = vector.broadcast %cst_208 : f32 to vector<256x4xf32>
    %c0_209 = arith.constant 0 : index
    %c0_210 = arith.constant 0 : index
    %c0_211 = arith.constant 0 : index
    %167 = vector.load %arg11[%c0_209, %c0_210, %c0_211] : memref<18x18x4xf32, #tpu.memory_space<vmem>>, vector<16x16x4xf32>
    %168 = vector.shape_cast %167 : vector<16x16x4xf32> to vector<256x4xf32>
    %169 = arith.truncf %168 : vector<256x4xf32> to vector<256x4xbf16>
    %c0_212 = arith.constant 0 : index
    %c0_213 = arith.constant 0 : index
    %c0_214 = arith.constant 0 : index
    %c0_215 = arith.constant 0 : index
    %170 = vector.load %arg6[%c0_212, %c0_213, %c0_214, %c0_215] : memref<3x3x4x4xbf16, #tpu.memory_space<vmem>>, vector<1x1x4x4xbf16>
    %171 = vector.shape_cast %170 : vector<1x1x4x4xbf16> to vector<4x4xbf16>
    %cst_216 = arith.constant dense<0.000000e+00> : vector<256x4xf32>
    %172 = tpu.matmul %169, %171, %cst_216 {dimension_numbers = #tpu.dot_dimension_numbers<[1], [0], [0], [1], [0, 0, 1, 1], [], []>} : vector<256x4xbf16>, vector<4x4xbf16>, vector<256x4xf32> -> vector<256x4xf32>
    %173 = arith.addf %166, %172 : vector<256x4xf32>
    %c0_217 = arith.constant 0 : index
    %c1_218 = arith.constant 1 : index
    %c0_219 = arith.constant 0 : index
    %174 = vector.load %arg11[%c0_217, %c1_218, %c0_219] : memref<18x18x4xf32, #tpu.memory_space<vmem>>, vector<16x16x4xf32>
    %175 = vector.shape_cast %174 : vector<16x16x4xf32> to vector<256x4xf32>
    %176 = arith.truncf %175 : vector<256x4xf32> to vector<256x4xbf16>
    %c0_220 = arith.constant 0 : index
    %c1_221 = arith.constant 1 : index
    %c0_222 = arith.constant 0 : index
    %c0_223 = arith.constant 0 : index
    %177 = vector.load %arg6[%c0_220, %c1_221, %c0_222, %c0_223] : memref<3x3x4x4xbf16, #tpu.memory_space<vmem>>, vector<1x1x4x4xbf16>
    %178 = vector.shape_cast %177 : vector<1x1x4x4xbf16> to vector<4x4xbf16>
    %cst_224 = arith.constant dense<0.000000e+00> : vector<256x4xf32>
    %179 = tpu.matmul %176, %178, %cst_224 {dimension_numbers = #tpu.dot_dimension_numbers<[1], [0], [0], [1], [0, 0, 1, 1], [], []>} : vector<256x4xbf16>, vector<4x4xbf16>, vector<256x4xf32> -> vector<256x4xf32>
    %180 = arith.addf %173, %179 : vector<256x4xf32>
    %c0_225 = arith.constant 0 : index
    %c2_226 = arith.constant 2 : index
    %c0_227 = arith.constant 0 : index
    %181 = vector.load %arg11[%c0_225, %c2_226, %c0_227] : memref<18x18x4xf32, #tpu.memory_space<vmem>>, vector<16x16x4xf32>
    %182 = vector.shape_cast %181 : vector<16x16x4xf32> to vector<256x4xf32>
    %183 = arith.truncf %182 : vector<256x4xf32> to vector<256x4xbf16>
    %c0_228 = arith.constant 0 : index
    %c2_229 = arith.constant 2 : index
    %c0_230 = arith.constant 0 : index
    %c0_231 = arith.constant 0 : index
    %184 = vector.load %arg6[%c0_228, %c2_229, %c0_230, %c0_231] : memref<3x3x4x4xbf16, #tpu.memory_space<vmem>>, vector<1x1x4x4xbf16>
    %185 = vector.shape_cast %184 : vector<1x1x4x4xbf16> to vector<4x4xbf16>
    %cst_232 = arith.constant dense<0.000000e+00> : vector<256x4xf32>
    %186 = tpu.matmul %183, %185, %cst_232 {dimension_numbers = #tpu.dot_dimension_numbers<[1], [0], [0], [1], [0, 0, 1, 1], [], []>} : vector<256x4xbf16>, vector<4x4xbf16>, vector<256x4xf32> -> vector<256x4xf32>
    %187 = arith.addf %180, %186 : vector<256x4xf32>
    %c1_233 = arith.constant 1 : index
    %c0_234 = arith.constant 0 : index
    %c0_235 = arith.constant 0 : index
    %188 = vector.load %arg11[%c1_233, %c0_234, %c0_235] : memref<18x18x4xf32, #tpu.memory_space<vmem>>, vector<16x16x4xf32>
    %189 = vector.shape_cast %188 : vector<16x16x4xf32> to vector<256x4xf32>
    %190 = arith.truncf %189 : vector<256x4xf32> to vector<256x4xbf16>
    %c1_236 = arith.constant 1 : index
    %c0_237 = arith.constant 0 : index
    %c0_238 = arith.constant 0 : index
    %c0_239 = arith.constant 0 : index
    %191 = vector.load %arg6[%c1_236, %c0_237, %c0_238, %c0_239] : memref<3x3x4x4xbf16, #tpu.memory_space<vmem>>, vector<1x1x4x4xbf16>
    %192 = vector.shape_cast %191 : vector<1x1x4x4xbf16> to vector<4x4xbf16>
    %cst_240 = arith.constant dense<0.000000e+00> : vector<256x4xf32>
    %193 = tpu.matmul %190, %192, %cst_240 {dimension_numbers = #tpu.dot_dimension_numbers<[1], [0], [0], [1], [0, 0, 1, 1], [], []>} : vector<256x4xbf16>, vector<4x4xbf16>, vector<256x4xf32> -> vector<256x4xf32>
    %194 = arith.addf %187, %193 : vector<256x4xf32>
    %c1_241 = arith.constant 1 : index
    %c1_242 = arith.constant 1 : index
    %c0_243 = arith.constant 0 : index
    %195 = vector.load %arg11[%c1_241, %c1_242, %c0_243] : memref<18x18x4xf32, #tpu.memory_space<vmem>>, vector<16x16x4xf32>
    %196 = vector.shape_cast %195 : vector<16x16x4xf32> to vector<256x4xf32>
    %197 = arith.truncf %196 : vector<256x4xf32> to vector<256x4xbf16>
    %c1_244 = arith.constant 1 : index
    %c1_245 = arith.constant 1 : index
    %c0_246 = arith.constant 0 : index
    %c0_247 = arith.constant 0 : index
    %198 = vector.load %arg6[%c1_244, %c1_245, %c0_246, %c0_247] : memref<3x3x4x4xbf16, #tpu.memory_space<vmem>>, vector<1x1x4x4xbf16>
    %199 = vector.shape_cast %198 : vector<1x1x4x4xbf16> to vector<4x4xbf16>
    %cst_248 = arith.constant dense<0.000000e+00> : vector<256x4xf32>
    %200 = tpu.matmul %197, %199, %cst_248 {dimension_numbers = #tpu.dot_dimension_numbers<[1], [0], [0], [1], [0, 0, 1, 1], [], []>} : vector<256x4xbf16>, vector<4x4xbf16>, vector<256x4xf32> -> vector<256x4xf32>
    %201 = arith.addf %194, %200 : vector<256x4xf32>
    %c1_249 = arith.constant 1 : index
    %c2_250 = arith.constant 2 : index
    %c0_251 = arith.constant 0 : index
    %202 = vector.load %arg11[%c1_249, %c2_250, %c0_251] : memref<18x18x4xf32, #tpu.memory_space<vmem>>, vector<16x16x4xf32>
    %203 = vector.shape_cast %202 : vector<16x16x4xf32> to vector<256x4xf32>
    %204 = arith.truncf %203 : vector<256x4xf32> to vector<256x4xbf16>
    %c1_252 = arith.constant 1 : index
    %c2_253 = arith.constant 2 : index
    %c0_254 = arith.constant 0 : index
    %c0_255 = arith.constant 0 : index
    %205 = vector.load %arg6[%c1_252, %c2_253, %c0_254, %c0_255] : memref<3x3x4x4xbf16, #tpu.memory_space<vmem>>, vector<1x1x4x4xbf16>
    %206 = vector.shape_cast %205 : vector<1x1x4x4xbf16> to vector<4x4xbf16>
    %cst_256 = arith.constant dense<0.000000e+00> : vector<256x4xf32>
    %207 = tpu.matmul %204, %206, %cst_256 {dimension_numbers = #tpu.dot_dimension_numbers<[1], [0], [0], [1], [0, 0, 1, 1], [], []>} : vector<256x4xbf16>, vector<4x4xbf16>, vector<256x4xf32> -> vector<256x4xf32>
    %208 = arith.addf %201, %207 : vector<256x4xf32>
    %c2_257 = arith.constant 2 : index
    %c0_258 = arith.constant 0 : index
    %c0_259 = arith.constant 0 : index
    %209 = vector.load %arg11[%c2_257, %c0_258, %c0_259] : memref<18x18x4xf32, #tpu.memory_space<vmem>>, vector<16x16x4xf32>
    %210 = vector.shape_cast %209 : vector<16x16x4xf32> to vector<256x4xf32>
    %211 = arith.truncf %210 : vector<256x4xf32> to vector<256x4xbf16>
    %c2_260 = arith.constant 2 : index
    %c0_261 = arith.constant 0 : index
    %c0_262 = arith.constant 0 : index
    %c0_263 = arith.constant 0 : index
    %212 = vector.load %arg6[%c2_260, %c0_261, %c0_262, %c0_263] : memref<3x3x4x4xbf16, #tpu.memory_space<vmem>>, vector<1x1x4x4xbf16>
    %213 = vector.shape_cast %212 : vector<1x1x4x4xbf16> to vector<4x4xbf16>
    %cst_264 = arith.constant dense<0.000000e+00> : vector<256x4xf32>
    %214 = tpu.matmul %211, %213, %cst_264 {dimension_numbers = #tpu.dot_dimension_numbers<[1], [0], [0], [1], [0, 0, 1, 1], [], []>} : vector<256x4xbf16>, vector<4x4xbf16>, vector<256x4xf32> -> vector<256x4xf32>
    %215 = arith.addf %208, %214 : vector<256x4xf32>
    %c2_265 = arith.constant 2 : index
    %c1_266 = arith.constant 1 : index
    %c0_267 = arith.constant 0 : index
    %216 = vector.load %arg11[%c2_265, %c1_266, %c0_267] : memref<18x18x4xf32, #tpu.memory_space<vmem>>, vector<16x16x4xf32>
    %217 = vector.shape_cast %216 : vector<16x16x4xf32> to vector<256x4xf32>
    %218 = arith.truncf %217 : vector<256x4xf32> to vector<256x4xbf16>
    %c2_268 = arith.constant 2 : index
    %c1_269 = arith.constant 1 : index
    %c0_270 = arith.constant 0 : index
    %c0_271 = arith.constant 0 : index
    %219 = vector.load %arg6[%c2_268, %c1_269, %c0_270, %c0_271] : memref<3x3x4x4xbf16, #tpu.memory_space<vmem>>, vector<1x1x4x4xbf16>
    %220 = vector.shape_cast %219 : vector<1x1x4x4xbf16> to vector<4x4xbf16>
    %cst_272 = arith.constant dense<0.000000e+00> : vector<256x4xf32>
    %221 = tpu.matmul %218, %220, %cst_272 {dimension_numbers = #tpu.dot_dimension_numbers<[1], [0], [0], [1], [0, 0, 1, 1], [], []>} : vector<256x4xbf16>, vector<4x4xbf16>, vector<256x4xf32> -> vector<256x4xf32>
    %222 = arith.addf %215, %221 : vector<256x4xf32>
    %c2_273 = arith.constant 2 : index
    %c2_274 = arith.constant 2 : index
    %c0_275 = arith.constant 0 : index
    %223 = vector.load %arg11[%c2_273, %c2_274, %c0_275] : memref<18x18x4xf32, #tpu.memory_space<vmem>>, vector<16x16x4xf32>
    %224 = vector.shape_cast %223 : vector<16x16x4xf32> to vector<256x4xf32>
    %225 = arith.truncf %224 : vector<256x4xf32> to vector<256x4xbf16>
    %c2_276 = arith.constant 2 : index
    %c2_277 = arith.constant 2 : index
    %c0_278 = arith.constant 0 : index
    %c0_279 = arith.constant 0 : index
    %226 = vector.load %arg6[%c2_276, %c2_277, %c0_278, %c0_279] : memref<3x3x4x4xbf16, #tpu.memory_space<vmem>>, vector<1x1x4x4xbf16>
    %227 = vector.shape_cast %226 : vector<1x1x4x4xbf16> to vector<4x4xbf16>
    %cst_280 = arith.constant dense<0.000000e+00> : vector<256x4xf32>
    %228 = tpu.matmul %225, %227, %cst_280 {dimension_numbers = #tpu.dot_dimension_numbers<[1], [0], [0], [1], [0, 0, 1, 1], [], []>} : vector<256x4xbf16>, vector<4x4xbf16>, vector<256x4xf32> -> vector<256x4xf32>
    %229 = arith.addf %222, %228 : vector<256x4xf32>
    %c0_281 = arith.constant 0 : index
    %c0_282 = arith.constant 0 : index
    %230 = vector.load %arg7[%c0_281, %c0_282] : memref<1x4xf32, #tpu.memory_space<vmem>>, vector<1x4xf32>
    %231 = vector.broadcast %230 : vector<1x4xf32> to vector<256x4xf32>
    %232 = arith.addf %229, %231 : vector<256x4xf32>
    %cst_283 = arith.constant 0.000000e+00 : f32
    %233 = vector.broadcast %cst_283 : f32 to vector<256x4xf32>
    %234 = arith.maximumf %232, %233 : vector<256x4xf32>
    %235 = vector.shape_cast %234 : vector<256x4xf32> to vector<16x16x4xf32>
    %c0_284 = arith.constant 0 : index
    %c0_285 = arith.constant 0 : index
    %c0_286 = arith.constant 0 : index
    %c0_287 = arith.constant 0 : index
    %236 = vector.load %arg8[%c0_284, %c0_285, %c0_286, %c0_287] : memref<1x16x16x4xf32, #tpu.memory_space<vmem>>, vector<1x16x16x4xf32>
    %237 = vector.shape_cast %236 : vector<1x16x16x4xf32> to vector<16x16x4xf32>
    %238 = vector.shape_cast %235 : vector<16x16x4xf32> to vector<1x16x16x4xf32>
    tpu.vector_store %arg8[%c0_284, %c0_285, %c0_286, %c0_287], %238 {strides = array<i32>} : memref<1x16x16x4xf32, #tpu.memory_space<vmem>>, vector<1x16x16x4xf32>,
    return
  }
  func.func @transform_0(%arg0: i32) -> (i32, i32, i32, i32) {
    %c0_i32 = arith.constant 0 : i32
    %c0_i32_0 = arith.constant 0 : i32
    %c0_i32_1 = arith.constant 0 : i32
    %c0_i32_2 = arith.constant 0 : i32
    return %arg0, %c0_i32, %c0_i32_0, %c0_i32_1 : i32, i32, i32, i32
  }
  func.func @transform_1(%arg0: i32) -> (i32, i32, i32, i32) {
    %c0_i32 = arith.constant 0 : i32
    %c0_i32_0 = arith.constant 0 : i32
    %c0_i32_1 = arith.constant 0 : i32
    %c0_i32_2 = arith.constant 0 : i32
    return %arg0, %c0_i32, %c0_i32_0, %c0_i32_1 : i32, i32, i32, i32
  }
  func.func @transform_2(%arg0: i32) -> (i32, i32, i32, i32) {
    %c0_i32 = arith.constant 0 : i32
    %c0_i32_0 = arith.constant 0 : i32
    %c0_i32_1 = arith.constant 0 : i32
    %c0_i32_2 = arith.constant 0 : i32
    %c0_i32_3 = arith.constant 0 : i32
    return %c0_i32, %c0_i32_0, %c0_i32_1, %c0_i32_2 : i32, i32, i32, i32
  }
  func.func @transform_3(%arg0: i32) -> (i32, i32, i32, i32) {
    %c0_i32 = arith.constant 0 : i32
    %c0_i32_0 = arith.constant 0 : i32
    %c0_i32_1 = arith.constant 0 : i32
    %c0_i32_2 = arith.constant 0 : i32
    %c0_i32_3 = arith.constant 0 : i32
    return %c0_i32, %c0_i32_0, %c0_i32_1, %c0_i32_2 : i32, i32, i32, i32
  }
  func.func @transform_4(%arg0: i32) -> (i32, i32) {
    %c0_i32 = arith.constant 0 : i32
    %c0_i32_0 = arith.constant 0 : i32
    %c0_i32_1 = arith.constant 0 : i32
    return %c0_i32, %c0_i32_0 : i32, i32
  }
  func.func @transform_5(%arg0: i32) -> (i32, i32, i32, i32) {
    %c0_i32 = arith.constant 0 : i32
    %c0_i32_0 = arith.constant 0 : i32
    %c0_i32_1 = arith.constant 0 : i32
    %c0_i32_2 = arith.constant 0 : i32
    %c0_i32_3 = arith.constant 0 : i32
    return %c0_i32, %c0_i32_0, %c0_i32_1, %c0_i32_2 : i32, i32, i32, i32
  }
  func.func @transform_6(%arg0: i32) -> (i32, i32) {
    %c0_i32 = arith.constant 0 : i32
    %c0_i32_0 = arith.constant 0 : i32
    %c0_i32_1 = arith.constant 0 : i32
    return %c0_i32, %c0_i32_0 : i32, i32
  }
  func.func @transform_7(%arg0: i32) -> (i32, i32, i32, i32) {
    %c0_i32 = arith.constant 0 : i32
    %c0_i32_0 = arith.constant 0 : i32
    %c0_i32_1 = arith.constant 0 : i32
    %c0_i32_2 = arith.constant 0 : i32
    return %arg0, %c0_i32, %c0_i32_0, %c0_i32_1 : i32, i32, i32, i32
  }
}

module attributes {stable_mosaic.version = 11 : i64} {
  func.func @_up_kernel(%arg0: i32, %arg1: i32, %arg2: memref<1x8x8x8xbf16, #tpu.memory_space<vmem>>, %arg3: memref<1x8x8xbf16, #tpu.memory_space<vmem>>, %arg4: memref<1x8xf32, #tpu.memory_space<vmem>>, %arg5: memref<1x8x1x8x8xbf16, #tpu.memory_space<vmem>>) attributes {dimension_semantics = [#tpu.dimension_semantics<parallel>, #tpu.dimension_semantics<parallel>], iteration_bounds = array<i64: 2, 2>, scalar_prefetch = 0 : i64, scratch_operands = 0 : i64, tpu.core_type = #tpu.core_type<tc>, window_params = [{transform_indices = @transform_0, window_bounds = array<i64: 1, 8, 8, 8>}, {transform_indices = @transform_1, window_bounds = array<i64: 1, 8, 8>}, {pipeline_mode = #tpu.pipeline_mode<synchronous>, transform_indices = @transform_2, window_bounds = array<i64: 1, 8>}, {transform_indices = @transform_3, window_bounds = array<i64: 1, 8, 1, 8, 8>}]} {
    %c0 = arith.constant 0 : index
    %c0_0 = arith.constant 0 : index
    %c0_1 = arith.constant 0 : index
    %c0_2 = arith.constant 0 : index
    %0 = vector.load %arg2[%c0, %c0_0, %c0_1, %c0_2] : memref<1x8x8x8xbf16, #tpu.memory_space<vmem>>, vector<1x8x8x8xbf16>
    %1 = vector.shape_cast %0 : vector<1x8x8x8xbf16> to vector<8x8x8xbf16>
    %2 = vector.shape_cast %1 : vector<8x8x8xbf16> to vector<64x8xbf16>
    %c0_3 = arith.constant 0 : index
    %c0_4 = arith.constant 0 : index
    %c0_5 = arith.constant 0 : index
    %3 = vector.load %arg3[%c0_3, %c0_4, %c0_5] : memref<1x8x8xbf16, #tpu.memory_space<vmem>>, vector<1x8x8xbf16>
    %4 = vector.shape_cast %3 : vector<1x8x8xbf16> to vector<8x8xbf16>
    %cst = arith.constant dense<0.000000e+00> : vector<64x8xf32>
    %5 = tpu.matmul %2, %4, %cst {dimension_numbers = #tpu.dot_dimension_numbers<[1], [0], [0], [1], [0, 0, 1, 1], [], []>} : vector<64x8xbf16>, vector<8x8xbf16>, vector<64x8xf32> -> vector<64x8xf32>
    %c0_6 = arith.constant 0 : index
    %c0_7 = arith.constant 0 : index
    %6 = vector.load %arg4[%c0_6, %c0_7] : memref<1x8xf32, #tpu.memory_space<vmem>>, vector<1x8xf32>
    %7 = vector.broadcast %6 : vector<1x8xf32> to vector<64x8xf32>
    %8 = arith.addf %5, %7 : vector<64x8xf32>
    %9 = vector.shape_cast %8 : vector<64x8xf32> to vector<1x8x1x8x8xf32>
    %10 = arith.truncf %9 : vector<1x8x1x8x8xf32> to vector<1x8x1x8x8xbf16>
    %c0_8 = arith.constant 0 : index
    %c0_9 = arith.constant 0 : index
    %c0_10 = arith.constant 0 : index
    %c0_11 = arith.constant 0 : index
    %c0_12 = arith.constant 0 : index
    %11 = vector.load %arg5[%c0_8, %c0_9, %c0_10, %c0_11, %c0_12] : memref<1x8x1x8x8xbf16, #tpu.memory_space<vmem>>, vector<1x8x1x8x8xbf16>
    tpu.vector_store %arg5[%c0_8, %c0_9, %c0_10, %c0_11, %c0_12], %10 {strides = array<i32>} : memref<1x8x1x8x8xbf16, #tpu.memory_space<vmem>>, vector<1x8x1x8x8xbf16>,
    return
  }
  func.func @transform_0(%arg0: i32, %arg1: i32) -> (i32, i32, i32, i32) {
    %c0_i32 = arith.constant 0 : i32
    %c0_i32_0 = arith.constant 0 : i32
    %c0_i32_1 = arith.constant 0 : i32
    %c0_i32_2 = arith.constant 0 : i32
    return %arg0, %c0_i32, %c0_i32_0, %c0_i32_1 : i32, i32, i32, i32
  }
  func.func @transform_1(%arg0: i32, %arg1: i32) -> (i32, i32, i32) {
    %c0_i32 = arith.constant 0 : i32
    %c0_i32_0 = arith.constant 0 : i32
    %c0_i32_1 = arith.constant 0 : i32
    return %arg1, %c0_i32, %c0_i32_0 : i32, i32, i32
  }
  func.func @transform_2(%arg0: i32, %arg1: i32) -> (i32, i32) {
    %c0_i32 = arith.constant 0 : i32
    %c0_i32_0 = arith.constant 0 : i32
    %c0_i32_1 = arith.constant 0 : i32
    return %c0_i32, %c0_i32_0 : i32, i32
  }
  func.func @transform_3(%arg0: i32, %arg1: i32) -> (i32, i32, i32, i32, i32) {
    %c0_i32 = arith.constant 0 : i32
    %c0_i32_0 = arith.constant 0 : i32
    %c0_i32_1 = arith.constant 0 : i32
    %c0_i32_2 = arith.constant 0 : i32
    return %arg0, %c0_i32, %arg1, %c0_i32_0, %c0_i32_1 : i32, i32, i32, i32, i32
  }
}

</mosaic_0001>

<bundles_post_ra>
// kernel: tile.8
= control target key start
LH: loop header
LB: loop body
LE: loop exit
PB: predicated region body
PF: predicated region fallthrough
CT: control target
= control target key end

     0   :  { %2 = vsyncpa [#allocation1], 0  ;;  %s48_s8 = smov [#allocation0]   ;;  %s65_s0 = inlined_call_operand.hbm [shape: f32[4], index: 0, kind: input, shape index: {}]   ;;  %s66_s1 = inlined_call_operand.vmem [shape: f32[2,4], index: 1, kind: output, shape index: {}]  }
   0x1   :  { %s8_s0 = sshll.u32 %s65_s0, 4  ;;  %s10_s9 = sshll.u32 %s48_s8, 4  ;;  %s9_s0 = int_to_ptr.hbm [resolvable:$true] %s8_s0  ;;  %s11_s9 = int_to_ptr.vmem [resolvable:$true] %s10_s9 }
   0x2   :  { %13 = dma.hbm_to_vmem [thread:$0]  %s9_s0, 16, %s11_s9, [#allocation1]  }
   0x3   :  { %46 = dma.done.wait [#allocation1], 16  }
   0x4   :  { %47 = vsyncadd [#allocation1], 4294967280  ;;  %v18_v0 = vld [vmem:[#allocation0] ss:$0 sm:$0xff] }
   0x5   :  { %19 = vst [vmem:[%s66_s1] sm:$0x3] %v18_v0 }
   0x6   :  { %20 = vsyncpa [#allocation1], 1 }

// kernel: tile.9
= control target key start
LH: loop header
LB: loop body
LE: loop exit
PB: predicated region body
PF: predicated region fallthrough
CT: control target
= control target key end

     0   :  { %vm7_vm0 = vcmask 31744   ;;  %vm13_vm1 = vcmask 64544   ;;  %s39_s0 = inlined_call_operand.vmem [shape: f32[2,4], index: 0, kind: input, shape index: {}]   ;;  %s40_s1 = inlined_call_operand.vmem [shape: f32[1,8], index: 1, kind: output, shape index: {}]  }
   0x1   :  { %v4_v0 = vld [vmem:[%s39_s0] sm:$0x3]  ;;  %s22_s0 = smov 4  }
   0x2   :  { %5 = vst [vmem:[#allocation1] sm:$0x3] %v4_v0 }
   0x9   :  { %v10_v1 = vld [vmem:[#allocation1 + $0x1] sm:$0x1]   ;;  %v6_v2 = vld [vmem:[#allocation1] sm:$0x1]  }
   0xa   :  { %11 = vrot.lane.b32.xlu0 %v10_v1, %s22_s0  ;;  %8 = vst.msk [vmem:[#allocation0] sm:$0x1] %vm7_vm0, %v6_v2  }
  0x7c   :  { %v12_v3 = vpop.permute.xlu0 %11  }
  0x7d   :  { %14 = vst.msk [vmem:[#allocation0] sm:$0x1] %vm13_vm1, %v12_v3  }
  0x84   :  { %v17_v4 = vld [vmem:[#allocation0] sm:$0x1] }
  0x85   :  { %20 = vst [vmem:[%s40_s1] sm:$0x1] %v17_v4 }

// kernel: unet_up_forward.2
= control target key start
LH: loop header
LB: loop body
LE: loop exit
PB: predicated region body
PF: predicated region fallthrough
CT: control target
= control target key end

     0   :  { %s624_s12 = smov 0   ;;  %s626_s13 = smov 0   ;;  %s751_s0 = inlined_call_operand.vmem [shape: bf16[2,8,8,8], index: 0, kind: input, shape index: {}]   ;;  %s752_s1 = inlined_call_operand.vmem [shape: bf16[2,8,8], index: 1, kind: input, shape index: {}]   ;;  %s753_s2 = inlined_call_operand.vmem [shape: f32[1,8], index: 2, kind: input, shape index: {}]   ;;  %s754_s3 = inlined_call_operand.vmem [shape: bf16[2,8,2,8,8], index: 3, kind: output, shape index: {}]  }
   0x1   :  { %s628_s14 = smov 0   ;;  %s630_s15 = smov 0  }
   0x2   :  { %s632_s16 = smov 0   ;;  %s634_s17 = smov 0  }
   0x3   :  { %s636_s18 = smov 0  }
   0x4 LB: > { %s22_s19 = sadd.s32 1, %s594_s16  ;;  %s25_s20 = sadd.s32 1, %s598_s17  ;;  %s602_s18 = sphi %s636_s18, %s13_s18   ;;  %s598_s17 = sphi %s634_s17, %s761_s17   ;;  %s594_s16 = sphi %s632_s16, %s760_s16   ;;  %s590_s15 = sphi %s630_s15, %s759_s15   ;;  %s586_s14 = sphi %s628_s14, %s758_s14   ;;  %s582_s13 = sphi %s626_s13, %s757_s13   ;;  %s578_s12 = sphi %s624_s12, %s756_s12  }
   0x5   : > { %p23_p0 = scmp.ge.s32.totalorder %s22_s19, 2  ;;  %s449_s21 = sadd.s32 4294967295, %s602_s18  }
   0x6   : > { %p117_p1 = scmp.ne.s32.totalorder %s582_s13, %s578_s12  ;;  %p118_p2 = scmp.eq.s32.totalorder %s449_s21, 3 }
   0x7   : > { %s763_s19 = smov (%p23_p0, %s22_s19), 0  ;;  %s765_s20 = smov (!%p23_p0, %s25_s20), %s598_s17 }
   0x8   : > { %s103_s22 = ssub.s32 %s594_s16, %s763_s19  ;;  %p27_p3 = scmp.ge.s32.totalorder %s765_s20, 2 }
   0x9   : > { %p453_p4 = scmp.ge.s32.totalorder %s602_s18, 1  ;;  %p670_p5 = por %p118_p2, %p117_p1 }
   0xa   : > { %p160_p6 = scmp.lt.s32.totalorder %s602_s18, 5  ;;  %s767_s20 = smov (%p27_p3, %s765_s20), 0 }
   0xb   : > { %s102_s24 = ssub.s32 %s598_s17, %s767_s20  ;;  %s107_s26 = sadd.s32 1, %s582_s13 }
   0xc   : > { %p161_p7 = pnand %p453_p4, %p160_p6  ;;  %s104_s25 = sor.u32 %s103_s22, %s102_s24 }
   0xd   : > { %p105_p8 = scmp.eq.s32.totalorder %s104_s25, 0  ;;  %p192_p9 = scmp.lt.s32.totalorder (!%p161_p7), %s586_s14, 1 }
   0xe   : > { %164 = sbr.rel (%p161_p7) target bundleno = 183 (0xb7), region = 32  ;;  %p187_p10 = scmp.lt.s32.totalorder (!%p161_p7), %s590_s15, 1 }
   0xf   : > { %s681_s27 = scalar_select %p105_p8, %s582_s13, %s107_s26  }
  0x10   : > { %s184_s11 = sand.u32 (!%p161_p7), 1, %s578_s12  }
  0x11   : > { %s454_s24 = sshll.u32 (!%p161_p7), %s184_s11, 5 }
  0x12   : > { %s697_s25 = scalar_lea.vmem (!%p161_p7), [#allocation2], %s454_s24 }
  0x13   : > { %s193_s28 = scalar_select %p192_p9, %s586_s14, 1  ;;  %vm243_vm0 = vcmask 1043456   ;;  %vm230_vm1 = vcmask 64512   ;;  %v547_v6 = vld [vmem:[%s753_s2] ss:$0 sm:$0xff]  ;;  %vm284_vm2 = vcmask 60416  }
  0x14   : > { %s188_s29 = scalar_select %p187_p10, %s590_s15, 1 }
  0x15   : > { %s457_s30 = sshll.u32 %s193_s28, 2  ;;  %s479_s12 = sshll.u32 (%p670_p5), %s590_s15, 4 }
  0x16   : > { %s195_s6 = scalar_lea.vmem %s752_s1, %s457_s30  ;;  %s483_s7 = sshll.u32 %s188_s29, 5 }
  0x17   : > { %v205_v0 = vld [vmem:[%s195_s6] sm:$0xf]  ;;  %s191_s10 = scalar_lea.vmem %s751_s0, %s483_s7  ;;  %s301_s26 = sadd.s32 (%p670_p5), %s586_s14, %s479_s12 }
  0x18   : > { %v245_v1 = vsel %vm243_vm0, %v205_v0, 0  ;;  %v484_v2 = vld [vmem:[%s191_s10] sm:$0xff]  ;;  %v485_v3 = vld [vmem:[%s191_s10 + $0x8] sm:$0xff]  ;;  %v486_v4 = vld [vmem:[%s191_s10 + $0x10] sm:$0xff]  ;;  %s480_s28 = sshll.u32 (%p670_p5), %s301_s26, 2 }
  0x19   : > { %254 = vmatpush.bf16.msra.mxu0 %v245_v1  ;;  %488 = vmatpush.bf16.msra.mxu1 %v245_v1  ;;  %v487_v5 = vld [vmem:[%s191_s10 + $0x18] sm:$0xff]  ;;  %s303_s23 = scalar_lea.vmem (%p670_p5), %s754_s3, %s480_s28 }
  0x1a   : > { %489 = vmatpush.bf16.msra.mxu2 %v245_v1  ;;  %490 = vmatpush.bf16.msra.mxu3 %v245_v1 }
  0x1c   : > { %474 = vmatmul.msk.bf16.vlgmr.msra.gmra.mxu0 %vm230_vm1, %v484_v2  ;;  %475 = vmatmul.msk.bf16.vlgmr.msra.gmra.mxu1 %vm230_vm1, %v485_v3 }
  0x1d   : > { %476 = vmatmul.msk.bf16.vlgmr.msra.gmra.mxu2 %vm230_vm1, %v486_v4  ;;  %477 = vmatmul.msk.bf16.vlgmr.msra.gmra.mxu3 %vm230_vm1, %v487_v5 }
  0x99   : > { %v256_v7 = vpop.f32.mrf.mxu0  ;;  %v261_v8 = vpop.f32.mrf.mxu1 }
  0x9a   : > { %v257_v9 = vadd.f32 %v547_v6, %v256_v7  ;;  %v262_v10 = vadd.f32 %v547_v6, %v261_v8 }
  0x9c   : > { %v276_v11 = vpack.c.bf16 %v257_v9, %v257_v9  ;;  %v278_v12 = vpack.c.bf16 %v262_v10, %v262_v10 }
  0x9e   : > { %285 = vst.msk [vmem:[%s697_s25] sm:$0xf] %vm284_vm2, %v276_v11 }
  0x9f   : > { %287 = vst.msk [vmem:[%s697_s25 + $0x8] sm:$0xf] %vm284_vm2, %v278_v12 }
  0xa0   : > { %v266_v13 = vpop.f32.mrf.mxu2  ;;  %v271_v14 = vpop.f32.mrf.mxu3 }
  0xa1   : > { %v267_v15 = vadd.f32 %v547_v6, %v266_v13  ;;  %v272_v16 = vadd.f32 %v547_v6, %v271_v14  ;;  %v258_v17 = vpop.f32.mrf.mxu0  ;;  %v263_v18 = vpop.f32.mrf.mxu1 }
  0xa2   : > { %v259_v19 = vadd.f32 %v547_v6, %v258_v17  ;;  %v264_v20 = vadd.f32 %v547_v6, %v263_v18 }
  0xa3   : > { %v280_v21 = vpack.c.bf16 %v267_v15, %v267_v15  ;;  %v282_v22 = vpack.c.bf16 %v272_v16, %v272_v16 }
  0xa4   : > { %v277_v23 = vpack.c.bf16 %v259_v19, %v259_v19  ;;  %v279_v24 = vpack.c.bf16 %v264_v20, %v264_v20 }
  0xa5   : > { %289 = vst.msk [vmem:[%s697_s25 + $0x10] sm:$0xf] %vm284_vm2, %v280_v21  ;;  %v320_v31 = vld [vmem:[%s697_s25] sm:$0xf] (%p670_p5) }
  0xa6   : > { %291 = vst.msk [vmem:[%s697_s25 + $0x18] sm:$0xf] %vm284_vm2, %v282_v22  ;;  %v324_v33 = vld [vmem:[%s697_s25 + $0x8] sm:$0xf] (%p670_p5) }
  0xa7   : > { %286 = vst.msk [vmem:[%s697_s25 + $0x4] sm:$0xf] %vm284_vm2, %v277_v23 }
  0xa8   : > { %288 = vst.msk [vmem:[%s697_s25 + $0xc] sm:$0xf] %vm284_vm2, %v279_v24  ;;  %v268_v25 = vpop.f32.mrf.mxu2  ;;  %v273_v26 = vpop.f32.mrf.mxu3 }
  0xa9   : > { %v269_v27 = vadd.f32 %v547_v6, %v268_v25  ;;  %v274_v28 = vadd.f32 %v547_v6, %v273_v26  ;;  %321 = vst [vmem:[%s303_s23] sm:$0xf] (%p670_p5), %v320_v31 }
  0xaa   : > { %299 = sbr.rel (!%p670_p5) target bundleno = 183 (0xb7), region = 36  ;;  %325 = vst [vmem:[%s303_s23 + $0x10] sm:$0xf] (%p670_p5), %v324_v33 }
  0xab   : > { %v281_v29 = vpack.c.bf16 %v269_v27, %v269_v27  ;;  %v283_v30 = vpack.c.bf16 %v274_v28, %v274_v28 }
  0xac   : > { %v328_v35 = vld [vmem:[%s697_s25 + $0x10] sm:$0xf] (%p670_p5) }
  0xad   : > { %290 = vst.msk [vmem:[%s697_s25 + $0x14] sm:$0xf] %vm284_vm2, %v281_v29  ;;  %v332_v37 = vld [vmem:[%s697_s25 + $0x18] sm:$0xf] (%p670_p5) }
  0xae   : > { %292 = vst.msk [vmem:[%s697_s25 + $0x1c] sm:$0xf] %vm284_vm2, %v283_v30  ;;  %v322_v32 = vld [vmem:[%s697_s25 + $0x4] sm:$0xf] (%p670_p5) }
  0xaf   : > { %v326_v34 = vld [vmem:[%s697_s25 + $0xc] sm:$0xf]  ;;  %323 = vst [vmem:[%s303_s23 + $0x8] sm:$0xf] %v322_v32 }
  0xb0   : > { %327 = vst [vmem:[%s303_s23 + $0x18] sm:$0xf] %v326_v34 }
  0xb1   : > { %329 = vst [vmem:[%s303_s23 + $0x20] sm:$0xf] %v328_v35 }
  0xb2   : > { %333 = vst [vmem:[%s303_s23 + $0x30] sm:$0xf] %v332_v37 }
  0xb4   : > { %v330_v36 = vld [vmem:[%s697_s25 + $0x14] sm:$0xf] }
  0xb5   : > { %v334_v38 = vld [vmem:[%s697_s25 + $0x1c] sm:$0xf]  ;;  %331 = vst [vmem:[%s303_s23 + $0x28] sm:$0xf] %v330_v36 }
  0xb6   : > { %335 = vst [vmem:[%s303_s23 + $0x38] sm:$0xf] %v334_v38 }
  0xb7 PF: > { %s13_s18 = sadd.s32 1, %s602_s18   ;;  %s756_s12 = smov %s582_s13 }
  0xb8   : > { %p10_p11 = scmp.ge.s32.totalorder %s13_s18, 6   ;;  %s757_s13 = smov %s681_s27 }
  0xb9   : > { %s758_s14 = smov %s594_s16  ;;  %s759_s15 = smov %s598_s17 }
  0xba   : > { %s760_s16 = smov %s763_s19  ;;  %s761_s17 = smov %s767_s20 }
  0xbb   :  { %12 = sbr.rel (!%p10_p11) target bundleno = 4 (0x4), region = 106 }

// kernel: unet_up_forward.3
= control target key start
LH: loop header
LB: loop body
LE: loop exit
PB: predicated region body
PF: predicated region fallthrough
CT: control target
= control target key end

     0   :  { %s7443_s24 = smov 0   ;;  %s9744_s0 = inlined_call_operand.vmem [shape: bf16[2,16,16,4], index: 0, kind: input, shape index: {}]   ;;  %s9745_s1 = inlined_call_operand.vmem [shape: bf16[2,16,16,4], index: 1, kind: input, shape index: {}]   ;;  %s9746_s2 = inlined_call_operand.vmem [shape: bf16[3,3,4,4], index: 2, kind: input, shape index: {}]   ;;  %s9747_s3 = inlined_call_operand.vmem [shape: bf16[3,3,4,4], index: 3, kind: input, shape index: {}]   ;;  %s9748_s4 = inlined_call_operand.vmem [shape: f32[1,4], index: 4, kind: input, shape index: {}]   ;;  %s9749_s5 = inlined_call_operand.vmem [shape: bf16[3,3,4,4], index: 5, kind: input, shape index: {}]   ;;  %s9750_s6 = inlined_call_operand.vmem [shape: f32[1,4], index: 6, kind: input, shape index: {}]   ;;  %s9751_s7 = inlined_call_operand.vmem [shape: f32[2,16,16,4], index: 7, kind: output, shape index: {}]  }
   0x1 LB: > { %s6749_s25 = sadd.s32 4294967295, %s7400_s24   ;;  %p6753_p0 = scmp.ge.s32.totalorder %s7400_s24, 1  ;;  %s7400_s24 = sphi %s7443_s24, %s17_s24  }
   0x2   : > { %p247_p1 = scmp.lt.s32.totalorder %s7400_s24, 3 }
   0x4   : > { %p248_p2 = pnand %p6753_p0, %p247_p1 }
   0x6   : > { %251 = sbr.rel (%p248_p2) target bundleno = 2131 (0x853), region = 48 }
   0xb   : > { %v712_v0 = vld [vmem:[%s9747_s3] sm:$0x3]  ;;  %vm761_vm0 = vcmask 1041408   ;;  %vm300_vm1 = vcmask 31744   ;;  %v6792_v4 = vld [vmem:[%s9746_s2 + $0x2] sm:$0x3] }
   0xc   : > { %v695_v1 = vld [vmem:[%s9746_s2] sm:$0x3]  ;;  %v763_v2 = vsel %vm761_vm0, %v712_v0, 0  ;;  %v7402_v5 = vmov 0.0   ;;  %v1125_v6 = vsel %vm761_vm0, %v6792_v4, 0  ;;  %p284_p3 = scmp.lt.s32.totalorder %s6749_s25, 1 }
   0xd   : > { %v903_v3 = vsel %vm761_vm0, %v695_v1, 0  ;;  %772 = vmatpush.bf16.msra.mxu0 %v763_v2  ;;  %343 = vst.msk [vmem:[#allocation3] sm:$0xff] %vm300_vm1, %v7402_v5  ;;  %1134 = vmatpush.bf16.msra.mxu2 %v1125_v6  ;;  %vm303_vm2 = vcmask 25600   ;;  %vm310_vm3 = vcmask 24576   ;;  %v6826_v22 = vld [vmem:[%s9746_s2 + $0x4] sm:$0x3] }
   0xe   : > { %912 = vmatpush.bf16.msra.mxu1 %v903_v3  ;;  %344 = vst.msk [vmem:[#allocation3 + $0x8] sm:$0xff] %vm300_vm1, %v7402_v5  ;;  %7379 = vmatpush.bf16.msra.mxu3 %v763_v2  ;;  %s9868_s25 = smov (!%p284_p3, %s6749_s25), 1  ;;  %v6843_v23 = vld [vmem:[%s9747_s3 + $0x4] sm:$0x3]  ;;  %v1569_v24 = vsel %vm761_vm0, %v6826_v22, 0 }
   0xf   : > { %301 = vst.msk [vmem:[#allocation2] sm:$0xff] %vm300_vm1, %v7402_v5  ;;  %s7218_s9 = sshll.u32 %s9868_s25, 7  ;;  %v1759_v25 = vsel %vm761_vm0, %v6843_v23, 0  ;;  %s7220_s30 = sshll.u32 %s9868_s25, 8 }
  0x10   : > { %302 = vst.msk [vmem:[#allocation2 + $0x8] sm:$0xff] %vm300_vm1, %v7402_v5  ;;  %s7491_s12 = scalar_lea.vmem %s9745_s1, %s7218_s9  ;;  %s7707_s19 = scalar_lea.vmem %s9744_s0, %s7218_s9 }
  0x11   : > { %306 = vst.msk [vmem:[#allocation2 + $0x198] sm:$0xff] %vm300_vm1, %v7402_v5  ;;  %v7374_v13 = vld [vmem:[%s7491_s12 + $0x58] sm:$0xff]   ;;  %1578 = vmatpush.bf16.msrb.mxu0 %v1569_v24  ;;  %v7286_v26 = vld [vmem:[%s7491_s12] sm:$0xff]   ;;  %v7364_v33 = vld [vmem:[%s7491_s12 + $0x8] sm:$0xff]   ;;  %s9602_s10 = scalar_lea.vmem %s9751_s7, %s7220_s30 }
  0x12   : > { %7380 = vmatpush.bf16.msrb.mxu3 %v903_v3  ;;  %307 = vst.msk [vmem:[#allocation2 + $0x1a0] sm:$0xff] %vm300_vm1, %v7402_v5  ;;  %v7331_v14 = vunpack.c.l.bf16 %v7374_v13  ;;  %v7332_v15 = vunpack.c.h.bf16 %v7374_v13  ;;  %1768 = vmatpush.bf16.msrb.mxu1 %v1759_v25  ;;  %v7222_v27 = vld [vmem:[%s7707_s19] sm:$0xff]   ;;  %v7287_v28 = vunpack.c.l.bf16 %v7286_v26  ;;  %v7288_v29 = vunpack.c.h.bf16 %v7286_v26  ;;  %v7349_v36 = vld [vmem:[%s7707_s19 + $0x8] sm:$0xff]   ;;  %v7365_v42 = vld [vmem:[%s7491_s12 + $0x10] sm:$0xff]  }
  0x13   : > { %347 = vst.msk [vmem:[#allocation3 + $0x198] sm:$0xff] %vm300_vm1, %v7402_v5  ;;  %v7375_v30 = vld [vmem:[%s7491_s12 + $0x60] sm:$0xff]   ;;  %v7223_v31 = vunpack.c.l.bf16 %v7222_v27  ;;  %v7224_v32 = vunpack.c.h.bf16 %v7222_v27  ;;  %v7291_v37 = vunpack.c.l.bf16 %v7364_v33  ;;  %v7292_v38 = vunpack.c.h.bf16 %v7364_v33  ;;  %v7376_v39 = vld [vmem:[%s7491_s12 + $0x68] sm:$0xff]   ;;  %v7350_v46 = vld [vmem:[%s7707_s19 + $0x10] sm:$0xff]  }
  0x14   : > { %v647_v7 = vld [vmem:[#allocation3] sm:$0xff]  ;;  %348 = vst.msk [vmem:[#allocation3 + $0x1a0] sm:$0xff] %vm300_vm1, %v7402_v5  ;;  %v7335_v34 = vunpack.c.l.bf16 %v7375_v30  ;;  %v7336_v35 = vunpack.c.h.bf16 %v7375_v30  ;;  %v7227_v40 = vunpack.c.l.bf16 %v7349_v36  ;;  %v7228_v41 = vunpack.c.h.bf16 %v7349_v36  ;;  %v7366_v1 = vld [vmem:[%s7491_s12 + $0x18] sm:$0xff]   ;;  %v7367_v22 = vld [vmem:[%s7491_s12 + $0x20] sm:$0xff]  }
  0x15   : > { %v648_v8 = vld [vmem:[#allocation3 + $0x8] sm:$0xff]  ;;  %383 = vst.msk [vmem:[#allocation4] sm:$0xff] %vm300_vm1, %v7402_v5  ;;  %v7339_v43 = vunpack.c.l.bf16 %v7376_v39  ;;  %v7340_v45 = vunpack.c.h.bf16 %v7376_v39  ;;  %v7295_v48 = vunpack.c.l.bf16 %v7365_v42  ;;  %v7296_v52 = vunpack.c.h.bf16 %v7365_v42  ;;  %v7377_v53 = vld [vmem:[%s7491_s12 + $0x70] sm:$0xff]   ;;  %v7352_v25 = vld [vmem:[%s7707_s19 + $0x20] sm:$0xff]  }
  0x16   : > { %v696_v9 = vpack.c.bf16 %v648_v8, %v647_v7  ;;  %384 = vst.msk [vmem:[#allocation4 + $0x8] sm:$0xff] %vm300_vm1, %v7402_v5  ;;  %v615_v10 = vld [vmem:[#allocation2] sm:$0xff]  ;;  %v7231_v56 = vunpack.c.l.bf16 %v7350_v46  ;;  %v7232_v60 = vunpack.c.h.bf16 %v7350_v46  ;;  %v7343_v62 = vunpack.c.l.bf16 %v7377_v53  ;;  %v7351_v4 = vld [vmem:[%s7707_s19 + $0x18] sm:$0xff]   ;;  %v7353_v46 = vld [vmem:[%s7707_s19 + $0x28] sm:$0xff]  }
  0x17   : > { %387 = vst.msk [vmem:[#allocation4 + $0x198] sm:$0xff] %vm300_vm1, %v7402_v5  ;;  %v616_v11 = vld [vmem:[#allocation2 + $0x8] sm:$0xff]  ;;  %v7344_v0 = vunpack.c.h.bf16 %v7377_v53  ;;  %v7299_v2 = vunpack.c.l.bf16 %v7366_v1  ;;  %v7300_v3 = vunpack.c.h.bf16 %v7366_v1  ;;  %v7303_v23 = vunpack.c.l.bf16 %v7367_v22  ;;  %v7369_v1 = vld [vmem:[%s7491_s12 + $0x30] sm:$0xff]  }
  0x18   : > { %6760 = vmatmul.msk.bf16.vlgmr.msra.gmra.mxu0 %vm300_vm1, %v696_v9  ;;  %388 = vst.msk [vmem:[#allocation4 + $0x1a0] sm:$0xff] %vm300_vm1, %v7402_v5  ;;  %v679_v12 = vpack.c.bf16 %v616_v11, %v615_v10  ;;  %v994_v16 = vld [vmem:[#allocation2 + $0x1] sm:$0xff]  ;;  %v7304_v24 = vunpack.c.h.bf16 %v7367_v22  ;;  %v7239_v26 = vunpack.c.l.bf16 %v7352_v25  ;;  %v7240_v27 = vunpack.c.h.bf16 %v7352_v25  ;;  %v7370_v25 = vld [vmem:[%s7491_s12 + $0x38] sm:$0xff]  }
  0x19   : > { %304 = vst.msk [vmem:[#allocation2 + $0x10] sm:$0x3] %vm303_vm2, %v7402_v5 }
  0x1a   : > { %6776 = vmatmul.msk.bf16.vlgmr.msra.gmra.mxu1 %vm300_vm1, %v679_v12  ;;  %308 = vst.msk [vmem:[#allocation2 + $0x1a8] sm:$0x3] %vm303_vm2, %v7402_v5 }
  0x1b   : > { %345 = vst.msk [vmem:[#allocation3 + $0x10] sm:$0x3] %vm303_vm2, %v7402_v5 }
  0x1c   : > { %349 = vst.msk [vmem:[#allocation3 + $0x1a8] sm:$0x3] %vm303_vm2, %v7402_v5 }
  0x1d   : > { %385 = vst.msk [vmem:[#allocation4 + $0x10] sm:$0x3] %vm303_vm2, %v7402_v5 }
  0x1e   : > { %389 = vst.msk [vmem:[#allocation4 + $0x1a8] sm:$0x3] %vm303_vm2, %v7402_v5 }
  0x1f   : > { %362 = vst.msk [vmem:[#allocation3 + $0x120] sm:$0x1] %vm310_vm3, %v7402_v5 }
  0x20   : > { %v995_v17 = vld [vmem:[#allocation2 + $0x9] sm:$0xff]  ;;  %605 = vst.msk [vmem:[#allocation3 + $0x121] sm:$0xff] %vm300_vm1, %v7331_v14 }
  0x21   : > { %v1058_v18 = vpack.c.bf16 %v995_v17, %v994_v16  ;;  %606 = vst.msk [vmem:[#allocation3 + $0x129] sm:$0xff] %vm300_vm1, %v7332_v15  ;;  %v7359_v16 = vld [vmem:[%s7707_s19 + $0x58] sm:$0xff]  }
  0x22   : > { %311 = vst.msk [vmem:[#allocation2 + $0x18] sm:$0x1] %vm310_vm3, %v7402_v5 }
  0x23   : > { %6793 = vmatmul.msk.bf16.vlgmr.msra.gmra.mxu2 %vm300_vm1, %v1058_v18  ;;  %312 = vst.msk [vmem:[#allocation2 + $0x30] sm:$0x1] %vm310_vm3, %v7402_v5 }
  0x24   : > { %313 = vst.msk [vmem:[#allocation2 + $0x48] sm:$0x1] %vm310_vm3, %v7402_v5 }
  0x25   : > { %314 = vst.msk [vmem:[#allocation2 + $0x60] sm:$0x1] %vm310_vm3, %v7402_v5 }
  0x26   : > { %315 = vst.msk [vmem:[#allocation2 + $0x78] sm:$0x1] %vm310_vm3, %v7402_v5 }
  0x27   : > { %v671_v19 = vld [vmem:[#allocation3 + $0x120] sm:$0xff]  ;;  %316 = vst.msk [vmem:[#allocation2 + $0x90] sm:$0x1] %vm310_vm3, %v7402_v5 }
  0x28   : > { %v672_v20 = vld [vmem:[#allocation3 + $0x128] sm:$0xff]  ;;  %317 = vst.msk [vmem:[#allocation2 + $0xa8] sm:$0x1] %vm310_vm3, %v7402_v5 }
  0x29   : > { %v708_v21 = vpack.c.bf16 %v672_v20, %v671_v19  ;;  %318 = vst.msk [vmem:[#allocation2 + $0xc0] sm:$0x1] %vm310_vm3, %v7402_v5  ;;  %v7267_v19 = vunpack.c.l.bf16 %v7359_v16  ;;  %v7268_v20 = vunpack.c.h.bf16 %v7359_v16  ;;  %v7362_v16 = vld [vmem:[%s7707_s19 + $0x70] sm:$0xff]  }
  0x2a   : > { %319 = vst.msk [vmem:[#allocation2 + $0xd8] sm:$0x1] %vm310_vm3, %v7402_v5 }
  0x2b   : > { %6772 = vmatmul.msk.bf16.vlgmr.msra.gmra.mxu3 %vm300_vm1, %v708_v21  ;;  %320 = vst.msk [vmem:[#allocation2 + $0xf0] sm:$0x1] %vm310_vm3, %v7402_v5 }
  0x2c   : > { %321 = vst.msk [vmem:[#allocation2 + $0x108] sm:$0x1] %vm310_vm3, %v7402_v5  ;;  %7381 = vmatpush.bf16.msra.mxu3 %v1125_v6  ;;  %v7236_v6 = vunpack.c.h.bf16 %v7351_v4 }
  0x2d   : > { %322 = vst.msk [vmem:[#allocation2 + $0x120] sm:$0x1] %vm310_vm3, %v7402_v5 }
  0x2e   : > { %323 = vst.msk [vmem:[#allocation2 + $0x138] sm:$0x1] %vm310_vm3, %v7402_v5 }
  0x2f   : > { %324 = vst.msk [vmem:[#allocation2 + $0x150] sm:$0x1] %vm310_vm3, %v7402_v5 }
  0x30   : > { %325 = vst.msk [vmem:[#allocation2 + $0x168] sm:$0x1] %vm310_vm3, %v7402_v5 }
  0x31   : > { %326 = vst.msk [vmem:[#allocation2 + $0x180] sm:$0x1] %vm310_vm3, %v7402_v5 }
  0x32   : > { %327 = vst.msk [vmem:[#allocation2 + $0x29] sm:$0x1] %vm310_vm3, %v7402_v5 }
  0x33   : > { %328 = vst.msk [vmem:[#allocation2 + $0x41] sm:$0x1] %vm310_vm3, %v7402_v5 }
  0x34   : > { %329 = vst.msk [vmem:[#allocation2 + $0x59] sm:$0x1] %vm310_vm3, %v7402_v5 }
  0x35   : > { %330 = vst.msk [vmem:[#allocation2 + $0x71] sm:$0x1] %vm310_vm3, %v7402_v5 }
  0x36   : > { %331 = vst.msk [vmem:[#allocation2 + $0x89] sm:$0x1] %vm310_vm3, %v7402_v5 }
  0x37   : > { %332 = vst.msk [vmem:[#allocation2 + $0xa1] sm:$0x1] %vm310_vm3, %v7402_v5 }
  0x38   : > { %333 = vst.msk [vmem:[#allocation2 + $0xb9] sm:$0x1] %vm310_vm3, %v7402_v5 }
  0x39   : > { %334 = vst.msk [vmem:[#allocation2 + $0xd1] sm:$0x1] %vm310_vm3, %v7402_v5 }
  0x3a   : > { %335 = vst.msk [vmem:[#allocation2 + $0xe9] sm:$0x1] %vm310_vm3, %v7402_v5 }
  0x3b   : > { %336 = vst.msk [vmem:[#allocation2 + $0x101] sm:$0x1] %vm310_vm3, %v7402_v5 }
  0x3c   : > { %337 = vst.msk [vmem:[#allocation2 + $0x119] sm:$0x1] %vm310_vm3, %v7402_v5 }
  0x3d   : > { %338 = vst.msk [vmem:[#allocation2 + $0x131] sm:$0x1] %vm310_vm3, %v7402_v5 }
  0x3e   : > { %339 = vst.msk [vmem:[#allocation2 + $0x149] sm:$0x1] %vm310_vm3, %v7402_v5 }
  0x3f   : > { %340 = vst.msk [vmem:[#allocation2 + $0x161] sm:$0x1] %vm310_vm3, %v7402_v5 }
  0x40   : > { %341 = vst.msk [vmem:[#allocation2 + $0x179] sm:$0x1] %vm310_vm3, %v7402_v5 }
  0x41   : > { %342 = vst.msk [vmem:[#allocation2 + $0x191] sm:$0x1] %vm310_vm3, %v7402_v5 }
  0x42   : > { %351 = vst.msk [vmem:[#allocation3 + $0x18] sm:$0x1] %vm310_vm3, %v7402_v5 }
  0x43   : > { %352 = vst.msk [vmem:[#allocation3 + $0x30] sm:$0x1] %vm310_vm3, %v7402_v5 }
  0x44   : > { %353 = vst.msk [vmem:[#allocation3 + $0x48] sm:$0x1] %vm310_vm3, %v7402_v5 }
  0x45   : > { %354 = vst.msk [vmem:[#allocation3 + $0x60] sm:$0x1] %vm310_vm3, %v7402_v5 }
  0x46   : > { %355 = vst.msk [vmem:[#allocation3 + $0x78] sm:$0x1] %vm310_vm3, %v7402_v5 }
  0x47   : > { %356 = vst.msk [vmem:[#allocation3 + $0x90] sm:$0x1] %vm310_vm3, %v7402_v5 }
  0x48   : > { %357 = vst.msk [vmem:[#allocation3 + $0xa8] sm:$0x1] %vm310_vm3, %v7402_v5 }
  0x49   : > { %358 = vst.msk [vmem:[#allocation3 + $0xc0] sm:$0x1] %vm310_vm3, %v7402_v5 }
  0x4a   : > { %359 = vst.msk [vmem:[#allocation3 + $0xd8] sm:$0x1] %vm310_vm3, %v7402_v5 }
  0x4b   : > { %360 = vst.msk [vmem:[#allocation3 + $0xf0] sm:$0x1] %vm310_vm3, %v7402_v5 }
  0x4c   : > { %361 = vst.msk [vmem:[#allocation3 + $0x108] sm:$0x1] %vm310_vm3, %v7402_v5 }
  0x4d   : > { %363 = vst.msk [vmem:[#allocation3 + $0x138] sm:$0x1] %vm310_vm3, %v7402_v5 }
  0x4e   : > { %364 = vst.msk [vmem:[#allocation3 + $0x150] sm:$0x1] %vm310_vm3, %v7402_v5 }
  0x4f   : > { %365 = vst.msk [vmem:[#allocation3 + $0x168] sm:$0x1] %vm310_vm3, %v7402_v5 }
  0x50   : > { %366 = vst.msk [vmem:[#allocation3 + $0x180] sm:$0x1] %vm310_vm3, %v7402_v5 }
  0x51   : > { %367 = vst.msk [vmem:[#allocation3 + $0x29] sm:$0x1] %vm310_vm3, %v7402_v5 }
  0x52   : > { %368 = vst.msk [vmem:[#allocation3 + $0x41] sm:$0x1] %vm310_vm3, %v7402_v5 }
  0x53   : > { %369 = vst.msk [vmem:[#allocation3 + $0x59] sm:$0x1] %vm310_vm3, %v7402_v5 }
  0x54   : > { %370 = vst.msk [vmem:[#allocation3 + $0x71] sm:$0x1] %vm310_vm3, %v7402_v5 }
  0x55   : > { %371 = vst.msk [vmem:[#allocation3 + $0x89] sm:$0x1] %vm310_vm3, %v7402_v5 }
  0x56   : > { %372 = vst.msk [vmem:[#allocation3 + $0xa1] sm:$0x1] %vm310_vm3, %v7402_v5 }
  0x57   : > { %373 = vst.msk [vmem:[#allocation3 + $0xb9] sm:$0x1] %vm310_vm3, %v7402_v5 }
  0x58   : > { %374 = vst.msk [vmem:[#allocation3 + $0xd1] sm:$0x1] %vm310_vm3, %v7402_v5 }
  0x59   : > { %375 = vst.msk [vmem:[#allocation3 + $0xe9] sm:$0x1] %vm310_vm3, %v7402_v5 }
  0x5a   : > { %376 = vst.msk [vmem:[#allocation3 + $0x101] sm:$0x1] %vm310_vm3, %v7402_v5 }
  0x5b   : > { %377 = vst.msk [vmem:[#allocation3 + $0x119] sm:$0x1] %vm310_vm3, %v7402_v5 }
  0x5c   : > { %378 = vst.msk [vmem:[#allocation3 + $0x131] sm:$0x1] %vm310_vm3, %v7402_v5 }
  0x5d   : > { %379 = vst.msk [vmem:[#allocation3 + $0x149] sm:$0x1] %vm310_vm3, %v7402_v5 }
  0x5e   : > { %380 = vst.msk [vmem:[#allocation3 + $0x161] sm:$0x1] %vm310_vm3, %v7402_v5 }
  0x5f   : > { %381 = vst.msk [vmem:[#allocation3 + $0x179] sm:$0x1] %vm310_vm3, %v7402_v5 }
  0x60   : > { %382 = vst.msk [vmem:[#allocation3 + $0x191] sm:$0x1] %vm310_vm3, %v7402_v5 }
  0x61   : > { %391 = vst.msk [vmem:[#allocation4 + $0x18] sm:$0x1] %vm310_vm3, %v7402_v5 }
  0x62   : > { %392 = vst.msk [vmem:[#allocation4 + $0x30] sm:$0x1] %vm310_vm3, %v7402_v5 }
  0x63   : > { %393 = vst.msk [vmem:[#allocation4 + $0x48] sm:$0x1] %vm310_vm3, %v7402_v5 }
  0x64   : > { %394 = vst.msk [vmem:[#allocation4 + $0x60] sm:$0x1] %vm310_vm3, %v7402_v5 }
  0x65   : > { %395 = vst.msk [vmem:[#allocation4 + $0x78] sm:$0x1] %vm310_vm3, %v7402_v5 }
  0x66   : > { %396 = vst.msk [vmem:[#allocation4 + $0x90] sm:$0x1] %vm310_vm3, %v7402_v5 }
  0x67   : > { %397 = vst.msk [vmem:[#allocation4 + $0xa8] sm:$0x1] %vm310_vm3, %v7402_v5 }
  0x68   : > { %398 = vst.msk [vmem:[#allocation4 + $0xc0] sm:$0x1] %vm310_vm3, %v7402_v5 }
  0x69   : > { %399 = vst.msk [vmem:[#allocation4 + $0xd8] sm:$0x1] %vm310_vm3, %v7402_v5 }
  0x6a   : > { %400 = vst.msk [vmem:[#allocation4 + $0xf0] sm:$0x1] %vm310_vm3, %v7402_v5 }
  0x6b   : > { %401 = vst.msk [vmem:[#allocation4 + $0x108] sm:$0x1] %vm310_vm3, %v7402_v5 }
  0x6c   : > { %402 = vst.msk [vmem:[#allocation4 + $0x120] sm:$0x1] %vm310_vm3, %v7402_v5 }
  0x6d   : > { %403 = vst.msk [vmem:[#allocation4 + $0x138] sm:$0x1] %vm310_vm3, %v7402_v5 }
  0x6e   : > { %404 = vst.msk [vmem:[#allocation4 + $0x150] sm:$0x1] %vm310_vm3, %v7402_v5 }
  0x6f   : > { %405 = vst.msk [vmem:[#allocation4 + $0x168] sm:$0x1] %vm310_vm3, %v7402_v5 }
  0x70   : > { %406 = vst.msk [vmem:[#allocation4 + $0x180] sm:$0x1] %vm310_vm3, %v7402_v5 }
  0x71   : > { %407 = vst.msk [vmem:[#allocation4 + $0x29] sm:$0x1] %vm310_vm3, %v7402_v5 }
  0x72   : > { %408 = vst.msk [vmem:[#allocation4 + $0x41] sm:$0x1] %vm310_vm3, %v7402_v5 }
  0x73   : > { %409 = vst.msk [vmem:[#allocation4 + $0x59] sm:$0x1] %vm310_vm3, %v7402_v5 }
  0x74   : > { %410 = vst.msk [vmem:[#allocation4 + $0x71] sm:$0x1] %vm310_vm3, %v7402_v5 }
  0x75   : > { %411 = vst.msk [vmem:[#allocation4 + $0x89] sm:$0x1] %vm310_vm3, %v7402_v5 }
  0x76   : > { %412 = vst.msk [vmem:[#allocation4 + $0xa1] sm:$0x1] %vm310_vm3, %v7402_v5 }
  0x77   : > { %413 = vst.msk [vmem:[#allocation4 + $0xb9] sm:$0x1] %vm310_vm3, %v7402_v5 }
  0x78   : > { %414 = vst.msk [vmem:[#allocation4 + $0xd1] sm:$0x1] %vm310_vm3, %v7402_v5 }
  0x79   : > { %415 = vst.msk [vmem:[#allocation4 + $0xe9] sm:$0x1] %vm310_vm3, %v7402_v5 }
  0x7a   : > { %416 = vst.msk [vmem:[#allocation4 + $0x101] sm:$0x1] %vm310_vm3, %v7402_v5 }
  0x7b   : > { %417 = vst.msk [vmem:[#allocation4 + $0x119] sm:$0x1] %vm310_vm3, %v7402_v5 }
  0x7c   : > { %418 = vst.msk [vmem:[#allocation4 + $0x131] sm:$0x1] %vm310_vm3, %v7402_v5 }
  0x7d   : > { %419 = vst.msk [vmem:[#allocation4 + $0x149] sm:$0x1] %vm310_vm3, %v7402_v5 }
  0x7e   : > { %420 = vst.msk [vmem:[#allocation4 + $0x161] sm:$0x1] %vm310_vm3, %v7402_v5 }
  0x7f   : > { %421 = vst.msk [vmem:[#allocation4 + $0x179] sm:$0x1] %vm310_vm3, %v7402_v5 }
  0x80   : > { %422 = vst.msk [vmem:[#allocation4 + $0x191] sm:$0x1] %vm310_vm3, %v7402_v5  ;;  %v7235_v5 = vunpack.c.l.bf16 %v7351_v4  ;;  %v7354_v4 = vld [vmem:[%s7707_s19 + $0x30] sm:$0xff]  }
  0x81   : > { %583 = vst.msk [vmem:[#allocation3 + $0x19] sm:$0xff] %vm300_vm1, %v7287_v28 }
  0x82   : > { %584 = vst.msk [vmem:[#allocation3 + $0x21] sm:$0xff] %vm300_vm1, %v7288_v29 }
  0x83   : > { %487 = vst.msk [vmem:[#allocation2 + $0x19] sm:$0xff] %vm300_vm1, %v7223_v31 }
  0x84   : > { %488 = vst.msk [vmem:[#allocation2 + $0x21] sm:$0xff] %vm300_vm1, %v7224_v32 }
  0x85   : > { %607 = vst.msk [vmem:[#allocation3 + $0x139] sm:$0xff] %vm300_vm1, %v7335_v34 }
  0x86   : > { %608 = vst.msk [vmem:[#allocation3 + $0x141] sm:$0xff] %vm300_vm1, %v7336_v35 }
  0x87   : > { %585 = vst.msk [vmem:[#allocation3 + $0x31] sm:$0xff] %vm300_vm1, %v7291_v37  ;;  %v7360_v37 = vld [vmem:[%s7707_s19 + $0x60] sm:$0xff]  }
  0x88   : > { %v649_v44 = vld [vmem:[#allocation3 + $0x18] sm:$0xff]  ;;  %586 = vst.msk [vmem:[#allocation3 + $0x39] sm:$0xff] %vm300_vm1, %v7292_v38 }
  0x89   : > { %v650_v47 = vld [vmem:[#allocation3 + $0x20] sm:$0xff]  ;;  %489 = vst.msk [vmem:[#allocation2 + $0x31] sm:$0xff] %vm300_vm1, %v7227_v40  ;;  %v7271_v40 = vunpack.c.l.bf16 %v7360_v37 }
  0x8a   : > { %v697_v49 = vpack.c.bf16 %v650_v47, %v649_v44  ;;  %v617_v50 = vld [vmem:[#allocation2 + $0x18] sm:$0xff]  ;;  %490 = vst.msk [vmem:[#allocation2 + $0x39] sm:$0xff] %vm300_vm1, %v7228_v41  ;;  %v7272_v41 = vunpack.c.h.bf16 %v7360_v37  ;;  %v7243_v47 = vunpack.c.l.bf16 %v7353_v46 }
  0x8b   : > { %v996_v51 = vld [vmem:[#allocation2 + $0x19] sm:$0xff]  ;;  %v997_v55 = vld [vmem:[#allocation2 + $0x21] sm:$0xff]  ;;  %609 = vst.msk [vmem:[#allocation3 + $0x151] sm:$0xff] %vm300_vm1, %v7339_v43 }
  0x8c   : > { %v618_v54 = vld [vmem:[#allocation2 + $0x20] sm:$0xff]  ;;  %6761 = vmatmul.msk.bf16.gmra.mxu0 %vm300_vm1, %v697_v49  ;;  %v1059_v58 = vpack.c.bf16 %v997_v55, %v996_v51  ;;  %v673_v59 = vld [vmem:[#allocation3 + $0x138] sm:$0xff]  ;;  %610 = vst.msk [vmem:[#allocation3 + $0x159] sm:$0xff] %vm300_vm1, %v7340_v45 }
  0x8d   : > { %v7744_v57 = vpack.c.bf16 %v618_v54, %v617_v50  ;;  %v674_v61 = vld [vmem:[#allocation3 + $0x140] sm:$0xff]  ;;  %587 = vst.msk [vmem:[#allocation3 + $0x49] sm:$0xff] %vm300_vm1, %v7295_v48  ;;  %v7368_v43 = vld [vmem:[%s7491_s12 + $0x28] sm:$0xff]   ;;  %v7244_v48 = vunpack.c.h.bf16 %v7353_v46 }
  0x8e   : > { %6794 = vmatmul.msk.bf16.gmra.mxu2 %vm300_vm1, %v1059_v58  ;;  %v709_v63 = vpack.c.bf16 %v674_v61, %v673_v59  ;;  %588 = vst.msk [vmem:[#allocation3 + $0x51] sm:$0xff] %vm300_vm1, %v7296_v52  ;;  %v651_v7 = vld [vmem:[#allocation3 + $0x30] sm:$0xff]  ;;  %v7307_v44 = vunpack.c.l.bf16 %v7368_v43  ;;  %v7308_v45 = vunpack.c.h.bf16 %v7368_v43  ;;  %v7361_v59 = vld [vmem:[%s7707_s19 + $0x68] sm:$0xff]  }
  0x8f   : > { %6777 = vmatmul.msk.bf16.gmra.mxu1 %vm300_vm1, %v7744_v57  ;;  %491 = vst.msk [vmem:[#allocation2 + $0x49] sm:$0xff] %vm300_vm1, %v7231_v56  ;;  %v652_v8 = vld [vmem:[#allocation3 + $0x38] sm:$0xff] }
  0x90   : > { %6773 = vmatmul.msk.bf16.gmra.mxu3 %vm300_vm1, %v709_v63  ;;  %492 = vst.msk [vmem:[#allocation2 + $0x51] sm:$0xff] %vm300_vm1, %v7232_v60  ;;  %v619_v9 = vld [vmem:[#allocation2 + $0x30] sm:$0xff]  ;;  %v698_v13 = vpack.c.bf16 %v652_v8, %v651_v7  ;;  %v7276_v63 = vunpack.c.h.bf16 %v7361_v59 }
  0x91   : > { %611 = vst.msk [vmem:[#allocation3 + $0x169] sm:$0xff] %vm300_vm1, %v7343_v62  ;;  %v620_v10 = vld [vmem:[#allocation2 + $0x38] sm:$0xff]  ;;  %v7275_v62 = vunpack.c.l.bf16 %v7361_v59 }
  0x92   : > { %612 = vst.msk [vmem:[#allocation3 + $0x171] sm:$0xff] %vm300_vm1, %v7344_v0  ;;  %v998_v11 = vld [vmem:[#allocation2 + $0x31] sm:$0xff]  ;;  %v999_v12 = vld [vmem:[#allocation2 + $0x39] sm:$0xff]  ;;  %v7764_v17 = vpack.c.bf16 %v620_v10, %v619_v9 }
  0x93   : > { %589 = vst.msk [vmem:[#allocation3 + $0x61] sm:$0xff] %vm300_vm1, %v7299_v2  ;;  %v675_v14 = vld [vmem:[#allocation3 + $0x150] sm:$0xff]  ;;  %v676_v15 = vld [vmem:[#allocation3 + $0x158] sm:$0xff]  ;;  %v1060_v18 = vpack.c.bf16 %v999_v12, %v998_v11  ;;  %v7311_v2 = vunpack.c.l.bf16 %v7369_v1 }
  0x94   : > { %590 = vst.msk [vmem:[#allocation3 + $0x69] sm:$0xff] %vm300_vm1, %v7300_v3  ;;  %v710_v21 = vpack.c.bf16 %v676_v15, %v675_v14  ;;  %v653_v28 = vld [vmem:[#allocation3 + $0x48] sm:$0xff]  ;;  %v7312_v3 = vunpack.c.h.bf16 %v7369_v1 }
  0x95   : > { %493 = vst.msk [vmem:[#allocation2 + $0x61] sm:$0xff] %vm300_vm1, %v7235_v5  ;;  %v654_v29 = vld [vmem:[#allocation3 + $0x50] sm:$0xff]  ;;  %v7247_v5 = vunpack.c.l.bf16 %v7354_v4 }
  0x96   : > { %494 = vst.msk [vmem:[#allocation2 + $0x69] sm:$0xff] %vm300_vm1, %v7236_v6  ;;  %v621_v30 = vld [vmem:[#allocation2 + $0x48] sm:$0xff]  ;;  %v699_v34 = vpack.c.bf16 %v654_v29, %v653_v28  ;;  %v7248_v6 = vunpack.c.h.bf16 %v7354_v4  ;;  %v7316_v28 = vunpack.c.h.bf16 %v7370_v25  ;;  %v7355_v29 = vld [vmem:[%s7707_s19 + $0x38] sm:$0xff]  }
  0x97   : > { %509 = vst.msk [vmem:[#allocation2 + $0x121] sm:$0xff] %vm300_vm1, %v7267_v19  ;;  %v622_v31 = vld [vmem:[#allocation2 + $0x50] sm:$0xff] }
  0x98   : > { %510 = vst.msk [vmem:[#allocation2 + $0x129] sm:$0xff] %vm300_vm1, %v7268_v20  ;;  %v1000_v32 = vld [vmem:[#allocation2 + $0x49] sm:$0xff]  ;;  %v1001_v33 = vld [vmem:[#allocation2 + $0x51] sm:$0xff]  ;;  %v7780_v38 = vpack.c.bf16 %v622_v31, %v621_v30  ;;  %v7279_v20 = vunpack.c.l.bf16 %v7362_v16  ;;  %v7251_v30 = vunpack.c.l.bf16 %v7355_v29  ;;  %v7252_v31 = vunpack.c.h.bf16 %v7355_v29 }
  0x99   : > { %591 = vst.msk [vmem:[#allocation3 + $0x79] sm:$0xff] %vm300_vm1, %v7303_v23  ;;  %v677_v35 = vld [vmem:[#allocation3 + $0x168] sm:$0xff]  ;;  %v678_v36 = vld [vmem:[#allocation3 + $0x170] sm:$0xff]  ;;  %v1061_v39 = vpack.c.bf16 %v1001_v33, %v1000_v32  ;;  %v774_v23 = vpop.f32.mrf.mxu0 }
  0x9a   : > { %592 = vst.msk [vmem:[#allocation3 + $0x81] sm:$0xff] %vm300_vm1, %v7304_v24  ;;  %v711_v42 = vpack.c.bf16 %v678_v36, %v677_v35  ;;  %v655_v49 = vld [vmem:[#allocation3 + $0x60] sm:$0xff]  ;;  %v914_v24 = vpop.f32.mrf.mxu1 }
  0x9b   : > { %495 = vst.msk [vmem:[#allocation2 + $0x79] sm:$0xff] %vm300_vm1, %v7239_v26  ;;  %v656_v50 = vld [vmem:[#allocation3 + $0x68] sm:$0xff]  ;;  %v915_v26 = vadd.f32 %v914_v24, %v774_v23 }
  0x9c   : > { %6762 = vmatmul.msk.bf16.gmra.mxu0 %vm300_vm1, %v698_v13  ;;  %496 = vst.msk [vmem:[#allocation2 + $0x81] sm:$0xff] %vm300_vm1, %v7240_v27  ;;  %v623_v51 = vld [vmem:[#allocation2 + $0x60] sm:$0xff]  ;;  %v700_v55 = vpack.c.bf16 %v656_v50, %v655_v49  ;;  %v7315_v27 = vunpack.c.l.bf16 %v7370_v25 }
  0x9d   : > { %511 = vst.msk [vmem:[#allocation2 + $0x139] sm:$0xff] %vm300_vm1, %v7271_v40  ;;  %v624_v52 = vld [vmem:[#allocation2 + $0x68] sm:$0xff]  ;;  %v7371_v49 = vld [vmem:[%s7491_s12 + $0x40] sm:$0xff]  }
  0x9e   : > { %6795 = vmatmul.msk.bf16.gmra.mxu2 %vm300_vm1, %v1060_v18  ;;  %512 = vst.msk [vmem:[#allocation2 + $0x141] sm:$0xff] %vm300_vm1, %v7272_v41  ;;  %v1002_v53 = vld [vmem:[#allocation2 + $0x61] sm:$0xff]  ;;  %v1003_v54 = vld [vmem:[#allocation2 + $0x69] sm:$0xff]  ;;  %v7796_v60 = vpack.c.bf16 %v624_v52, %v623_v51  ;;  %v7319_v51 = vunpack.c.l.bf16 %v7371_v49  ;;  %v7320_v52 = vunpack.c.h.bf16 %v7371_v49 }
  0x9f   : > { %6778 = vmatmul.msk.bf16.gmra.mxu1 %vm300_vm1, %v7764_v17  ;;  %593 = vst.msk [vmem:[#allocation3 + $0x91] sm:$0xff] %vm300_vm1, %v7307_v44  ;;  %v639_v56 = vld [vmem:[#allocation2 + $0x120] sm:$0xff]  ;;  %v640_v58 = vld [vmem:[#allocation2 + $0x128] sm:$0xff]  ;;  %v1062_v61 = vpack.c.bf16 %v1003_v54, %v1002_v53 }
  0xa0   : > { %6774 = vmatmul.msk.bf16.gmra.mxu3 %vm300_vm1, %v710_v21  ;;  %594 = vst.msk [vmem:[#allocation3 + $0x99] sm:$0xff] %vm300_vm1, %v7308_v45  ;;  %v691_v0 = vpack.c.bf16 %v640_v58, %v639_v56  ;;  %v657_v7 = vld [vmem:[#allocation3 + $0x78] sm:$0xff]  ;;  %v7280_v21 = vunpack.c.h.bf16 %v7362_v16  ;;  %v7356_v50 = vld [vmem:[%s7707_s19 + $0x40] sm:$0xff]  }
  0xa1   : > { %497 = vst.msk [vmem:[#allocation2 + $0x91] sm:$0xff] %vm300_vm1, %v7243_v47  ;;  %v658_v8 = vld [vmem:[#allocation3 + $0x80] sm:$0xff]  ;;  %v6809_v47 = vld [vmem:[%s9747_s3 + $0x2] sm:$0x3]  ;;  %v7255_v53 = vunpack.c.l.bf16 %v7356_v50  ;;  %v7256_v54 = vunpack.c.h.bf16 %v7356_v50 }
  0xa2   : > { %498 = vst.msk [vmem:[#allocation2 + $0x99] sm:$0xff] %vm300_vm1, %v7244_v48  ;;  %v625_v9 = vld [vmem:[#allocation2 + $0x78] sm:$0xff]  ;;  %v701_v13 = vpack.c.bf16 %v658_v8, %v657_v7  ;;  %v1315_v48 = vsel %vm761_vm0, %v6809_v47, 0  ;;  %v1019_v23 = vld [vmem:[#allocation2 + $0x129] sm:$0xff]  ;;  %v7874_v29 = vpop.f32.mrf.mxu1 }
  0xa3   : > { %513 = vst.msk [vmem:[#allocation2 + $0x151] sm:$0xff] %vm300_vm1, %v7275_v62  ;;  %v626_v10 = vld [vmem:[#allocation2 + $0x80] sm:$0xff] }
  0xa4   : > { %514 = vst.msk [vmem:[#allocation2 + $0x159] sm:$0xff] %vm300_vm1, %v7276_v63  ;;  %v1004_v11 = vld [vmem:[#allocation2 + $0x79] sm:$0xff]  ;;  %v1005_v12 = vld [vmem:[#allocation2 + $0x81] sm:$0xff]  ;;  %v7812_v18 = vpack.c.bf16 %v626_v10, %v625_v9 }
  0xa5   : > { %595 = vst.msk [vmem:[#allocation3 + $0xa9] sm:$0xff] %vm300_vm1, %v7311_v2  ;;  %v641_v14 = vld [vmem:[#allocation2 + $0x138] sm:$0xff]  ;;  %v642_v15 = vld [vmem:[#allocation2 + $0x140] sm:$0xff]  ;;  %v1063_v19 = vpack.c.bf16 %v1005_v12, %v1004_v11 }
  0xa6   : > { %596 = vst.msk [vmem:[#allocation3 + $0xb1] sm:$0xff] %vm300_vm1, %v7312_v3  ;;  %v692_v22 = vpack.c.bf16 %v642_v15, %v641_v14  ;;  %v659_v32 = vld [vmem:[#allocation3 + $0x90] sm:$0xff]  ;;  %v1136_v45 = vpop.f32.mrf.mxu2 }
  0xa7   : > { %499 = vst.msk [vmem:[#allocation2 + $0xa9] sm:$0xff] %vm300_vm1, %v7247_v5  ;;  %v660_v33 = vld [vmem:[#allocation3 + $0x98] sm:$0xff]  ;;  %v7834_v46 = vadd.f32 %v1136_v45, %v915_v26  ;;  %v6860_v11 = vld [vmem:[%s9746_s2 + $0x6] sm:$0x3]  ;;  %v1020_v49 = vld [vmem:[#allocation2 + $0x139] sm:$0xff] }
  0xa8   : > { %500 = vst.msk [vmem:[#allocation2 + $0xb1] sm:$0xff] %vm300_vm1, %v7248_v6  ;;  %v1006_v36 = vld [vmem:[#allocation2 + $0x91] sm:$0xff]  ;;  %v7372_v5 = vld [vmem:[%s7491_s12 + $0x48] sm:$0xff]   ;;  %v2013_v14 = vsel %vm761_vm0, %v6860_v11, 0 }
  0xa9   : > { %515 = vst.msk [vmem:[#allocation2 + $0x169] sm:$0xff] %vm300_vm1, %v7279_v20  ;;  %v628_v35 = vld [vmem:[#allocation2 + $0x98] sm:$0xff]  ;;  %v7357_v6 = vld [vmem:[%s7707_s19 + $0x48] sm:$0xff]   ;;  %v7323_v7 = vunpack.c.l.bf16 %v7372_v5  ;;  %v7324_v8 = vunpack.c.h.bf16 %v7372_v5  ;;  %2022 = vmatpush.bf16.msrb.mxu2 %v2013_v14 }
  0xaa   : > { %516 = vst.msk [vmem:[#allocation2 + $0x171] sm:$0xff] %vm300_vm1, %v7280_v21  ;;  %v1007_v37 = vld [vmem:[#allocation2 + $0x99] sm:$0xff]  ;;  %v643_v40 = vld [vmem:[#allocation2 + $0x150] sm:$0xff]  ;;  %v7259_v9 = vunpack.c.l.bf16 %v7357_v6  ;;  %v7260_v10 = vunpack.c.h.bf16 %v7357_v6  ;;  %v1021_v50 = vld [vmem:[#allocation2 + $0x141] sm:$0xff] }
  0xab   : > { %597 = vst.msk [vmem:[#allocation3 + $0xc1] sm:$0xff] %vm300_vm1, %v7315_v27  ;;  %v644_v41 = vld [vmem:[#allocation2 + $0x158] sm:$0xff]  ;;  %v1064_v43 = vpack.c.bf16 %v1007_v37, %v1006_v36  ;;  %v7869_v27 = vpop.f32.mrf.mxu0 }
  0xac   : > { %6763 = vmatmul.msk.bf16.gmra.mxu0 %vm300_vm1, %v699_v34  ;;  %598 = vst.msk [vmem:[#allocation3 + $0xc9] sm:$0xff] %vm300_vm1, %v7316_v28  ;;  %v627_v34 = vld [vmem:[#allocation2 + $0x90] sm:$0xff]  ;;  %v693_v44 = vpack.c.bf16 %v644_v41, %v643_v40  ;;  %v1023_v11 = vld [vmem:[#allocation2 + $0x159] sm:$0xff] }
  0xad   : > { %501 = vst.msk [vmem:[#allocation2 + $0xc1] sm:$0xff] %vm300_vm1, %v7251_v30  ;;  %v662_v56 = vld [vmem:[#allocation3 + $0xb0] sm:$0xff]  ;;  %v7373_v30 = vld [vmem:[%s7491_s12 + $0x50] sm:$0xff]  }
  0xae   : > { %6796 = vmatmul.msk.bf16.gmra.mxu2 %vm300_vm1, %v1061_v39  ;;  %502 = vst.msk [vmem:[#allocation2 + $0xc9] sm:$0xff] %vm300_vm1, %v7252_v31  ;;  %v702_v39 = vpack.c.bf16 %v660_v33, %v659_v32  ;;  %v629_v58 = vld [vmem:[#allocation2 + $0xa8] sm:$0xff]  ;;  %v7871_v28 = vpop.f32.mrf.mxu3  ;;  %v7358_v31 = vld [vmem:[%s7707_s19 + $0x50] sm:$0xff]   ;;  %v7327_v32 = vunpack.c.l.bf16 %v7373_v30  ;;  %v7328_v33 = vunpack.c.h.bf16 %v7373_v30  ;;  %v7881_v40 = vpop.f32.mrf.mxu2 }
  0xaf   : > { %6779 = vmatmul.msk.bf16.gmra.mxu1 %vm300_vm1, %v7780_v38  ;;  %599 = vst.msk [vmem:[#allocation3 + $0xd9] sm:$0xff] %vm300_vm1, %v7319_v51  ;;  %v630_v59 = vld [vmem:[#allocation2 + $0xb0] sm:$0xff] }
  0xb0   : > { %6775 = vmatmul.msk.bf16.gmra.mxu3 %vm300_vm1, %v711_v42  ;;  %v7827_v42 = vpack.c.bf16 %v628_v35, %v627_v34  ;;  %600 = vst.msk [vmem:[#allocation3 + $0xe1] sm:$0xff] %vm300_vm1, %v7320_v52  ;;  %v1009_v62 = vld [vmem:[#allocation2 + $0xb1] sm:$0xff]  ;;  %v7846_v2 = vpack.c.bf16 %v630_v59, %v629_v58  ;;  %v7263_v34 = vunpack.c.l.bf16 %v7358_v31  ;;  %v7264_v35 = vunpack.c.h.bf16 %v7358_v31  ;;  %v6877_v31 = vld [vmem:[%s9747_s3 + $0x6] sm:$0x3] }
  0xb1   : > { %503 = vst.msk [vmem:[#allocation2 + $0xd9] sm:$0xff] %vm300_vm1, %v7255_v53  ;;  %v646_v1 = vld [vmem:[#allocation2 + $0x170] sm:$0xff] }
  0xb2   : > { %504 = vst.msk [vmem:[#allocation2 + $0xe1] sm:$0xff] %vm300_vm1, %v7256_v54  ;;  %v663_v12 = vld [vmem:[#allocation3 + $0xc0] sm:$0xff] }
  0xb3   : > { %601 = vst.msk [vmem:[#allocation3 + $0xf1] sm:$0xff] %vm300_vm1, %v7323_v7 }
  0xb4   : > { %602 = vst.msk [vmem:[#allocation3 + $0xf9] sm:$0xff] %vm300_vm1, %v7324_v8  ;;  %v631_v15 = vld [vmem:[#allocation2 + $0xc0] sm:$0xff] }
  0xb5   : > { %505 = vst.msk [vmem:[#allocation2 + $0xf1] sm:$0xff] %vm300_vm1, %v7259_v9  ;;  %v632_v16 = vld [vmem:[#allocation2 + $0xc8] sm:$0xff] }
  0xb6   : > { %v1011_v20 = vld [vmem:[#allocation2 + $0xc9] sm:$0xff]  ;;  %506 = vst.msk [vmem:[#allocation2 + $0xf9] sm:$0xff] %vm300_vm1, %v7260_v10  ;;  %v7863_v24 = vpack.c.bf16 %v632_v16, %v631_v15  ;;  %v1022_v10 = vld [vmem:[#allocation2 + $0x151] sm:$0xff] }
  0xb7   : > { %603 = vst.msk [vmem:[#allocation3 + $0x109] sm:$0xff] %vm300_vm1, %v7327_v32  ;;  %v665_v36 = vld [vmem:[#allocation3 + $0xd8] sm:$0xff]  ;;  %v666_v37 = vld [vmem:[#allocation3 + $0xe0] sm:$0xff] }
  0xb8   : > { %604 = vst.msk [vmem:[#allocation3 + $0x111] sm:$0xff] %vm300_vm1, %v7328_v33  ;;  %v705_v45 = vpack.c.bf16 %v666_v37, %v665_v36 }
  0xb9   : > { %507 = vst.msk [vmem:[#allocation2 + $0x109] sm:$0xff] %vm300_vm1, %v7263_v34  ;;  %v634_v41 = vld [vmem:[#allocation2 + $0xe0] sm:$0xff]  ;;  %v2203_v34 = vsel %vm761_vm0, %v6877_v31, 0 }
  0xba   : > { %508 = vst.msk [vmem:[#allocation2 + $0x111] sm:$0xff] %vm300_vm1, %v7264_v35 }
  0xbc   : > { %6764 = vmatmul.msk.bf16.gmra.mxu0 %vm300_vm1, %v700_v55  ;;  %v661_v55 = vld [vmem:[#allocation3 + $0xa8] sm:$0xff] }
  0xbd   : > { %v703_v63 = vpack.c.bf16 %v662_v56, %v661_v55  ;;  %v1071_v55 = vpack.c.bf16 %v1021_v50, %v1020_v49  ;;  %v1014_v5 = vld [vmem:[#allocation2 + $0xf1] sm:$0xff]  ;;  %v1015_v6 = vld [vmem:[#allocation2 + $0xf9] sm:$0xff] }
  0xbe   : > { %6797 = vmatmul.msk.bf16.gmra.mxu2 %vm300_vm1, %v1062_v61  ;;  %v1008_v61 = vld [vmem:[#allocation2 + $0xa9] sm:$0xff]  ;;  %v1068_v14 = vpack.c.bf16 %v1015_v6, %v1014_v5  ;;  %v669_v32 = vld [vmem:[#allocation3 + $0x108] sm:$0xff] }
  0xbf   : > { %6780 = vmatmul.msk.bf16.gmra.mxu1 %vm300_vm1, %v7796_v60  ;;  %v1065_v3 = vpack.c.bf16 %v1009_v62, %v1008_v61  ;;  %v670_v33 = vld [vmem:[#allocation3 + $0x110] sm:$0xff] }
  0xc0   : > { %6788 = vmatmul.msk.bf16.vlgmr.msrb.gmra.mxu3 %vm300_vm1, %v691_v0  ;;  %v645_v0 = vld [vmem:[#allocation2 + $0x168] sm:$0xff] }
  0xc1   : > { %1324 = vmatpush.bf16.msrb.mxu3 %v1315_v48  ;;  %v694_v4 = vpack.c.bf16 %v646_v1, %v645_v0  ;;  %v7884_v48 = vpop.f32.mrf.mxu3  ;;  %v667_v0 = vld [vmem:[#allocation3 + $0xf0] sm:$0xff]  ;;  %v668_v1 = vld [vmem:[#allocation3 + $0xf8] sm:$0xff]  ;;  %v638_v36 = vld [vmem:[#allocation2 + $0x110] sm:$0xff] }
  0xc2   : > { %v706_v7 = vpack.c.bf16 %v668_v1, %v667_v0  ;;  %v637_v35 = vld [vmem:[#allocation2 + $0x108] sm:$0xff] }
  0xc3   : > { %v1016_v37 = vld [vmem:[#allocation2 + $0x109] sm:$0xff]  ;;  %v7918_v50 = vpack.c.bf16 %v638_v36, %v637_v35 }
  0xcc   : > { %6765 = vmatmul.msk.bf16.gmra.mxu0 %vm300_vm1, %v701_v13  ;;  %v664_v13 = vld [vmem:[#allocation3 + $0xc8] sm:$0xff] }
  0xcd   : > { %v704_v21 = vpack.c.bf16 %v664_v13, %v663_v12 }
  0xce   : > { %6798 = vmatmul.msk.bf16.gmra.mxu2 %vm300_vm1, %v1063_v19  ;;  %v1010_v19 = vld [vmem:[#allocation2 + $0xc1] sm:$0xff] }
  0xcf   : > { %6781 = vmatmul.msk.bf16.gmra.mxu1 %vm300_vm1, %v7812_v18  ;;  %v1066_v25 = vpack.c.bf16 %v1011_v20, %v1010_v19  ;;  %v1072_v20 = vpack.c.bf16 %v1023_v11, %v1022_v10  ;;  %v1470_v10 = vld [vmem:[#allocation3 + $0x2] sm:$0xff]  ;;  %v1471_v11 = vld [vmem:[#allocation3 + $0xa] sm:$0xff] }
  0xd0   : > { %6789 = vmatmul.msk.bf16.gmra.mxu3 %vm300_vm1, %v692_v22  ;;  %v1018_v22 = vld [vmem:[#allocation2 + $0x121] sm:$0xff] }
  0xd1   : > { %v1070_v26 = vpack.c.bf16 %v1019_v23, %v1018_v22 }
  0xdc   : > { %6766 = vmatmul.msk.bf16.gmra.mxu0 %vm300_vm1, %v702_v39  ;;  %v633_v39 = vld [vmem:[#allocation2 + $0xd8] sm:$0xff] }
  0xdd   : > { %v7886_v51 = vpack.c.bf16 %v634_v41, %v633_v39  ;;  %v1017_v39 = vld [vmem:[#allocation2 + $0x111] sm:$0xff]  ;;  %v707_v41 = vpack.c.bf16 %v670_v33, %v669_v32 }
  0xde   : > { %6799 = vmatmul.msk.bf16.gmra.mxu2 %vm300_vm1, %v1064_v43  ;;  %v1012_v43 = vld [vmem:[#allocation2 + $0xd9] sm:$0xff] }
  0xdf   : > { %6782 = vmatmul.msk.bf16.gmra.mxu1 %vm300_vm1, %v7827_v42 }
  0xe0   : > { %6790 = vmatmul.msk.bf16.gmra.mxu3 %vm300_vm1, %v693_v44  ;;  %v1013_v44 = vld [vmem:[#allocation2 + $0xe1] sm:$0xff] }
  0xe1   : > { %v1067_v52 = vpack.c.bf16 %v1013_v44, %v1012_v43 }
  0xec   : > { %6767 = vmatmul.msk.bf16.gmra.mxu0 %vm300_vm1, %v703_v63 }
  0xee   : > { %6800 = vmatmul.msk.bf16.gmra.mxu2 %vm300_vm1, %v1065_v3  ;;  %v635_v3 = vld [vmem:[#allocation2 + $0xf0] sm:$0xff] }
  0xef   : > { %6783 = vmatmul.msk.bf16.gmra.mxu1 %vm300_vm1, %v7846_v2 }
  0xf0   : > { %6791 = vmatmul.msk.bf16.gmra.mxu3 %vm300_vm1, %v694_v4  ;;  %v636_v4 = vld [vmem:[#allocation2 + $0xf8] sm:$0xff] }
  0xf1   : > { %v7899_v13 = vpack.c.bf16 %v636_v4, %v635_v3 }
  0xfc   : > { %6768 = vmatmul.msk.bf16.gmra.mxu0 %vm300_vm1, %v704_v21 }
  0xfe   : > { %6801 = vmatmul.msk.bf16.gmra.mxu2 %vm300_vm1, %v1066_v25 }
  0xff   : > { %6784 = vmatmul.msk.bf16.gmra.mxu1 %vm300_vm1, %v7863_v24 }
 0x100   : > { %6805 = vmatmul.msk.bf16.vlgmr.msra.gmra.mxu3 %vm300_vm1, %v1070_v26 }
 0x101   : > { %2212 = vmatpush.bf16.msra.mxu3 %v2203_v34 }
 0x109   : > { %v779_v47 = vpop.f32.mrf.mxu0 }
 0x10c   : > { %v919_v53 = vpop.f32.mrf.mxu1  ;;  %6769 = vmatmul.msk.bf16.gmra.mxu0 %vm300_vm1, %v705_v45  ;;  %v1024_v45 = vld [vmem:[#allocation2 + $0x169] sm:$0xff] }
 0x10d   : > { %v920_v54 = vadd.f32 %v919_v53, %v779_v47  ;;  %v1025_v47 = vld [vmem:[#allocation2 + $0x171] sm:$0xff] }
 0x10e   : > { %6802 = vmatmul.msk.bf16.gmra.mxu2 %vm300_vm1, %v1067_v52  ;;  %v1069_v52 = vpack.c.bf16 %v1017_v39, %v1016_v37 }
 0x10f   : > { %6785 = vmatmul.msk.bf16.gmra.mxu1 %vm300_vm1, %v7886_v51 }
 0x110   : > { %6806 = vmatmul.msk.bf16.gmra.mxu3 %vm300_vm1, %v1071_v55 }
 0x111   : > { %v781_v56 = vpop.f32.mrf.mxu0  ;;  %v1141_v58 = vpop.f32.mrf.mxu2 }
 0x112   : > { %v7893_v59 = vadd.f32 %v1141_v58, %v920_v54  ;;  %v6894_v58 = vld [vmem:[%s9746_s2 + $0x8] sm:$0x3] }
 0x113   : > { %v7895_v62 = vpop.f32.mrf.mxu3 }
 0x114   : > { %v921_v61 = vpop.f32.mrf.mxu1 }
 0x115   : > { %v922_v63 = vadd.f32 %v921_v61, %v781_v56  ;;  %v1073_v56 = vpack.c.bf16 %v1025_v47, %v1024_v45  ;;  %v6911_v61 = vld [vmem:[%s9747_s3 + $0x8] sm:$0x3]  ;;  %v1472_v45 = vld [vmem:[#allocation3 + $0x1a] sm:$0xff]  ;;  %v1473_v47 = vld [vmem:[#allocation3 + $0x22] sm:$0xff] }
 0x116   : > { %v2647_v0 = vsel %vm761_vm0, %v6911_v61, 0  ;;  %v1693_v61 = vpack.c.bf16 %v1473_v47, %v1472_v45 }
 0x117   : > { %2656 = vmatpush.bf16.msra.mxu1 %v2647_v0 }
 0x119   : > { %v784_v8 = vpop.f32.mrf.mxu0  ;;  %v1143_v9 = vpop.f32.mrf.mxu2 }
 0x11a   : > { %v7897_v12 = vadd.f32 %v1143_v9, %v922_v63  ;;  %v2457_v63 = vsel %vm761_vm0, %v6894_v58, 0  ;;  %v1439_v9 = vld [vmem:[#allocation2 + $0xa] sm:$0xff] }
 0x11b   : > { %v7901_v16 = vpop.f32.mrf.mxu3  ;;  %2466 = vmatpush.bf16.msra.mxu0 %v2457_v63 }
 0x11c   : > { %v924_v15 = vpop.f32.mrf.mxu1  ;;  %6770 = vmatmul.msk.bf16.gmra.mxu0 %vm300_vm1, %v706_v7 }
 0x11d   : > { %v925_v19 = vadd.f32 %v924_v15, %v784_v8  ;;  %v1438_v8 = vld [vmem:[#allocation2 + $0x2] sm:$0xff] }
 0x11e   : > { %6803 = vmatmul.msk.bf16.gmra.mxu2 %vm300_vm1, %v1068_v14  ;;  %v1502_v14 = vpack.c.bf16 %v1439_v9, %v1438_v8 }
 0x11f   : > { %6786 = vmatmul.msk.bf16.gmra.mxu1 %vm300_vm1, %v7899_v13 }
 0x120   : > { %6807 = vmatmul.msk.bf16.gmra.mxu3 %vm300_vm1, %v1072_v20  ;;  %v1026_v20 = vld [vmem:[#allocation3 + $0x1] sm:$0xff] }
 0x121   : > { %v786_v21 = vpop.f32.mrf.mxu0  ;;  %v1146_v22 = vpop.f32.mrf.mxu2 }
 0x122   : > { %v7908_v23 = vadd.f32 %v1146_v22, %v925_v19 }
 0x123   : > { %v7910_v26 = vpop.f32.mrf.mxu3 }
 0x124   : > { %v926_v25 = vpop.f32.mrf.mxu1 }
 0x125   : > { %v927_v30 = vadd.f32 %v926_v25, %v786_v21  ;;  %v1027_v21 = vld [vmem:[#allocation3 + $0x9] sm:$0xff]  ;;  %v1692_v25 = vpack.c.bf16 %v1471_v11, %v1470_v10 }
 0x126   : > { %v1248_v33 = vpack.c.bf16 %v1027_v21, %v1026_v20  ;;  %v1474_v20 = vld [vmem:[#allocation3 + $0x32] sm:$0xff]  ;;  %v1475_v21 = vld [vmem:[#allocation3 + $0x3a] sm:$0xff] }
 0x129   : > { %v789_v43 = vpop.f32.mrf.mxu0  ;;  %v1148_v44 = vpop.f32.mrf.mxu2 }
 0x12a   : > { %v7916_v49 = vadd.f32 %v1148_v44, %v927_v30  ;;  %v1441_v44 = vld [vmem:[#allocation2 + $0x22] sm:$0xff] }
 0x12b   : > { %v7920_v54 = vpop.f32.mrf.mxu3 }
 0x12c   : > { %v929_v53 = vpop.f32.mrf.mxu1  ;;  %6771 = vmatmul.msk.bf16.gmra.mxu0 %vm300_vm1, %v707_v41 }
 0x12d   : > { %v930_v55 = vadd.f32 %v929_v53, %v789_v43  ;;  %v1440_v43 = vld [vmem:[#allocation2 + $0x1a] sm:$0xff] }
 0x12e   : > { %6804 = vmatmul.msk.bf16.gmra.mxu2 %vm300_vm1, %v1069_v52  ;;  %v7952_v52 = vpack.c.bf16 %v1441_v44, %v1440_v43 }
 0x12f   : > { %6787 = vmatmul.msk.bf16.gmra.mxu1 %vm300_vm1, %v7918_v50 }
 0x130   : > { %6808 = vmatmul.msk.bf16.gmra.mxu3 %vm300_vm1, %v1073_v56  ;;  %v1028_v56 = vld [vmem:[#allocation3 + $0x19] sm:$0xff] }
 0x131   : > { %v791_v1 = vpop.f32.mrf.mxu0  ;;  %v1151_v3 = vpop.f32.mrf.mxu2 }
 0x132   : > { %v7935_v4 = vadd.f32 %v1151_v3, %v930_v55 }
 0x133   : > { %v7937_v6 = vpop.f32.mrf.mxu3 }
 0x134   : > { %v931_v5 = vpop.f32.mrf.mxu1 }
 0x135   : > { %v932_v7 = vadd.f32 %v931_v5, %v791_v1 }
 0x139   : > { %v794_v15 = vpop.f32.mrf.mxu0  ;;  %v1153_v19 = vpop.f32.mrf.mxu2 }
 0x13a   : > { %v7939_v22 = vadd.f32 %v1153_v19, %v932_v7  ;;  %v1443_v19 = vld [vmem:[#allocation2 + $0x3a] sm:$0xff] }
 0x13b   : > { %v7941_v31 = vpop.f32.mrf.mxu3 }
 0x13c   : > { %v934_v30 = vpop.f32.mrf.mxu1  ;;  %6827 = vmatmul.msk.bf16.vlgmr.msrb.gmra.mxu0 %vm300_vm1, %v1502_v14 }
 0x13d   : > { %v935_v32 = vadd.f32 %v934_v30, %v794_v15  ;;  %v1442_v15 = vld [vmem:[#allocation2 + $0x32] sm:$0xff] }
 0x13e   : > { %6861 = vmatmul.msk.bf16.vlgmr.msrb.gmra.mxu2 %vm300_vm1, %v7744_v57  ;;  %v1029_v57 = vld [vmem:[#allocation3 + $0x21] sm:$0xff] }
 0x13f   : > { %6844 = vmatmul.msk.bf16.vlgmr.msrb.gmra.mxu1 %vm300_vm1, %v1692_v25  ;;  %v7961_v5 = vpack.c.bf16 %v1029_v57, %v1028_v56  ;;  %v7973_v25 = vpack.c.bf16 %v1443_v19, %v1442_v15 }
 0x140   : > { %6810 = vmatmul.msk.bf16.vlgmr.msrb.gmra.mxu3 %vm300_vm1, %v1248_v33  ;;  %v1031_v33 = vld [vmem:[#allocation3 + $0x39] sm:$0xff] }
 0x141   : > { %v796_v34 = vpop.f32.mrf.mxu0  ;;  %v1156_v35 = vpop.f32.mrf.mxu2 }
 0x142   : > { %v7948_v36 = vadd.f32 %v1156_v35, %v935_v32  ;;  %v1030_v32 = vld [vmem:[#allocation3 + $0x31] sm:$0xff]  ;;  %v1694_v35 = vpack.c.bf16 %v1475_v21, %v1474_v20 }
 0x143   : > { %v7950_v39 = vpop.f32.mrf.mxu3  ;;  %v7982_v44 = vpack.c.bf16 %v1031_v33, %v1030_v32 }
 0x144   : > { %v936_v37 = vpop.f32.mrf.mxu1 }
 0x145   : > { %v937_v41 = vadd.f32 %v936_v37, %v796_v34 }
 0x149   : > { %v799_v53 = vpop.f32.mrf.mxu0  ;;  %v1158_v55 = vpop.f32.mrf.mxu2 }
 0x14a   : > { %v7954_v58 = vadd.f32 %v1158_v55, %v937_v41 }
 0x14b   : > { %v976_v0 = vpop.f32.mrf.mxu3 }
 0x14c   : > { %v939_v63 = vpop.f32.mrf.mxu1  ;;  %6828 = vmatmul.msk.bf16.gmra.mxu0 %vm300_vm1, %v7952_v52  ;;  %v7959_v3 = vadd.f32 %v976_v0, %v7884_v48  ;;  %v1476_v0 = vld [vmem:[#allocation3 + $0x4a] sm:$0xff] }
 0x14d   : > { %v940_v1 = vadd.f32 %v939_v63, %v799_v53  ;;  %v1445_v63 = vld [vmem:[#allocation2 + $0x52] sm:$0xff] }
 0x14e   : > { %6862 = vmatmul.msk.bf16.gmra.mxu2 %vm300_vm1, %v7764_v17 }
 0x14f   : > { %6845 = vmatmul.msk.bf16.gmra.mxu1 %vm300_vm1, %v1693_v61  ;;  %v1444_v61 = vld [vmem:[#allocation2 + $0x4a] sm:$0xff] }
 0x150   : > { %6811 = vmatmul.msk.bf16.gmra.mxu3 %vm300_vm1, %v7961_v5 }
 0x151   : > { %v801_v7 = vpop.f32.mrf.mxu0  ;;  %v1161_v8 = vpop.f32.mrf.mxu2 }
 0x152   : > { %v7968_v9 = vadd.f32 %v1161_v8, %v940_v1  ;;  %v1477_v1 = vld [vmem:[#allocation3 + $0x52] sm:$0xff] }
 0x153   : > { %v979_v11 = vpop.f32.mrf.mxu3  ;;  %v1695_v15 = vpack.c.bf16 %v1477_v1, %v1476_v0 }
 0x154   : > { %v941_v10 = vpop.f32.mrf.mxu1  ;;  %v7971_v48 = vadd.f32 %v979_v11, %v7895_v62  ;;  %v1033_v11 = vld [vmem:[#allocation3 + $0x51] sm:$0xff] }
 0x155   : > { %v942_v14 = vadd.f32 %v941_v10, %v801_v7  ;;  %v7994_v7 = vpack.c.bf16 %v1445_v63, %v1444_v61  ;;  %v1032_v10 = vld [vmem:[#allocation3 + $0x49] sm:$0xff]  ;;  %v1034_v61 = vld [vmem:[#allocation3 + $0x61] sm:$0xff] }
 0x156   : > { %v1035_v63 = vld [vmem:[#allocation3 + $0x69] sm:$0xff] }
 0x159   : > { %v804_v17 = vpop.f32.mrf.mxu0  ;;  %v1163_v30 = vpop.f32.mrf.mxu2 }
 0x15a   : > { %v7975_v34 = vadd.f32 %v1163_v30, %v942_v14 }
 0x15b   : > { %v981_v41 = vpop.f32.mrf.mxu3 }
 0x15c   : > { %v944_v37 = vpop.f32.mrf.mxu1  ;;  %6829 = vmatmul.msk.bf16.gmra.mxu0 %vm300_vm1, %v7973_v25  ;;  %v7980_v62 = vadd.f32 %v981_v41, %v7901_v16 }
 0x15d   : > { %v945_v43 = vadd.f32 %v944_v37, %v804_v17  ;;  %v8003_v17 = vpack.c.bf16 %v1033_v11, %v1032_v10  ;;  %v8024_v11 = vpack.c.bf16 %v1035_v63, %v1034_v61 }
 0x15e   : > { %6863 = vmatmul.msk.bf16.gmra.mxu2 %vm300_vm1, %v7780_v38 }
 0x15f   : > { %6846 = vmatmul.msk.bf16.gmra.mxu1 %vm300_vm1, %v1694_v35 }
 0x160   : > { %6812 = vmatmul.msk.bf16.gmra.mxu3 %vm300_vm1, %v7982_v44 }
 0x161   : > { %v806_v45 = vpop.f32.mrf.mxu0  ;;  %v1166_v47 = vpop.f32.mrf.mxu2 }
 0x162   : > { %v7989_v53 = vadd.f32 %v1166_v47, %v945_v43  ;;  %v1446_v43 = vld [vmem:[#allocation2 + $0x62] sm:$0xff]  ;;  %v1478_v47 = vld [vmem:[#allocation3 + $0x62] sm:$0xff] }
 0x163   : > { %v984_v56 = vpop.f32.mrf.mxu3 }
 0x164   : > { %v946_v55 = vpop.f32.mrf.mxu1  ;;  %v7992_v16 = vadd.f32 %v984_v56, %v7910_v26 }
 0x165   : > { %v947_v57 = vadd.f32 %v946_v55, %v806_v45  ;;  %v1447_v45 = vld [vmem:[#allocation2 + $0x6a] sm:$0xff]  ;;  %v1479_v55 = vld [vmem:[#allocation3 + $0x6a] sm:$0xff] }
 0x166   : > { %v8015_v56 = vpack.c.bf16 %v1447_v45, %v1446_v43  ;;  %v1696_v1 = vpack.c.bf16 %v1479_v55, %v1478_v47  ;;  %v1480_v43 = vld [vmem:[#allocation3 + $0x7a] sm:$0xff]  ;;  %v1481_v45 = vld [vmem:[#allocation3 + $0x82] sm:$0xff] }
 0x169   : > { %v809_v38 = vpop.f32.mrf.mxu0  ;;  %v1168_v8 = vpop.f32.mrf.mxu2 }
 0x16a   : > { %v7996_v14 = vadd.f32 %v1168_v8, %v947_v57 }
 0x16b   : > { %v986_v20 = vpop.f32.mrf.mxu3 }
 0x16c   : > { %v949_v19 = vpop.f32.mrf.mxu1  ;;  %6830 = vmatmul.msk.bf16.gmra.mxu0 %vm300_vm1, %v7994_v7  ;;  %v8001_v26 = vadd.f32 %v986_v20, %v7920_v54  ;;  %v975_v20 = vadd.f32 %v7950_v39, %v7871_v28  ;;  %v1697_v28 = vpack.c.bf16 %v1481_v45, %v1480_v43  ;;  %v1483_v43 = vld [vmem:[#allocation3 + $0x9a] sm:$0xff] }
 0x16d   : > { %v950_v21 = vadd.f32 %v949_v19, %v809_v38 }
 0x16e   : > { %6864 = vmatmul.msk.bf16.gmra.mxu2 %vm300_vm1, %v7796_v60 }
 0x16f   : > { %6847 = vmatmul.msk.bf16.gmra.mxu1 %vm300_vm1, %v1695_v15 }
 0x170   : > { %6813 = vmatmul.msk.bf16.gmra.mxu3 %vm300_vm1, %v8003_v17 }
 0x171   : > { %v811_v30 = vpop.f32.mrf.mxu0  ;;  %v1171_v32 = vpop.f32.mrf.mxu2 }
 0x172   : > { %v8010_v33 = vadd.f32 %v1171_v32, %v950_v21 }
 0x173   : > { %v989_v37 = vpop.f32.mrf.mxu3 }
 0x174   : > { %v951_v35 = vpop.f32.mrf.mxu1  ;;  %v8013_v54 = vadd.f32 %v989_v37, %v7937_v6  ;;  %v1448_v37 = vld [vmem:[#allocation2 + $0x7a] sm:$0xff] }
 0x175   : > { %v952_v41 = vadd.f32 %v951_v35, %v811_v30 }
 0x179   : > { %v814_v60 = vpop.f32.mrf.mxu0  ;;  %v1173_v57 = vpop.f32.mrf.mxu2 }
 0x17a   : > { %v8017_v0 = vadd.f32 %v1173_v57, %v952_v41  ;;  %v1449_v41 = vld [vmem:[#allocation2 + $0x82] sm:$0xff]  ;;  %v1037_v57 = vld [vmem:[#allocation3 + $0x81] sm:$0xff] }
 0x17b   : > { %v991_v8 = vpop.f32.mrf.mxu3 }
 0x17c   : > { %v954_v38 = vpop.f32.mrf.mxu1  ;;  %6831 = vmatmul.msk.bf16.gmra.mxu0 %vm300_vm1, %v8015_v56  ;;  %v8022_v6 = vadd.f32 %v991_v8, %v7941_v31 }
 0x17d   : > { %v955_v10 = vadd.f32 %v954_v38, %v814_v60  ;;  %v1036_v60 = vld [vmem:[#allocation3 + $0x79] sm:$0xff] }
 0x17e   : > { %6865 = vmatmul.msk.bf16.gmra.mxu2 %vm300_vm1, %v7812_v18  ;;  %v8037_v18 = vpack.c.bf16 %v1449_v41, %v1448_v37  ;;  %v8046_v8 = vpack.c.bf16 %v1037_v57, %v1036_v60  ;;  %v1451_v37 = vld [vmem:[#allocation2 + $0x9a] sm:$0xff]  ;;  %v1482_v41 = vld [vmem:[#allocation3 + $0x92] sm:$0xff] }
 0x17f   : > { %6848 = vmatmul.msk.bf16.gmra.mxu1 %vm300_vm1, %v1696_v1  ;;  %v1039_v60 = vld [vmem:[#allocation3 + $0x99] sm:$0xff] }
 0x180   : > { %6814 = vmatmul.msk.bf16.gmra.mxu3 %vm300_vm1, %v8024_v11 }
 0x181   : > { %v816_v15 = vpop.f32.mrf.mxu0  ;;  %v1176_v19 = vpop.f32.mrf.mxu2 }
 0x182   : > { %v8033_v21 = vadd.f32 %v1176_v19, %v955_v10 }
 0x183   : > { %v1196_v31 = vpop.f32.mrf.mxu3 }
 0x184   : > { %v956_v30 = vpop.f32.mrf.mxu1  ;;  %v8035_v35 = vadd.f32 %v1196_v31, %v975_v20 }
 0x185   : > { %v957_v32 = vadd.f32 %v956_v30, %v816_v15 }
 0x189   : > { %v819_v47 = vpop.f32.mrf.mxu0  ;;  %v1178_v55 = vpop.f32.mrf.mxu2 }
 0x18a   : > { %v8039_v61 = vadd.f32 %v1178_v55, %v957_v32  ;;  %v1450_v32 = vld [vmem:[#allocation2 + $0x92] sm:$0xff]  ;;  %v1038_v55 = vld [vmem:[#allocation3 + $0x91] sm:$0xff] }
 0x18b   : > { %v1198_v63 = vpop.f32.mrf.mxu3  ;;  %v1508_v45 = vpack.c.bf16 %v1451_v37, %v1450_v32 }
 0x18c   : > { %v959_v39 = vpop.f32.mrf.mxu1  ;;  %6832 = vmatmul.msk.bf16.gmra.mxu0 %vm300_vm1, %v8037_v18  ;;  %v8044_v38 = vadd.f32 %v1198_v63, %v7959_v3 }
 0x18d   : > { %v960_v1 = vadd.f32 %v959_v39, %v819_v47 }
 0x18e   : > { %6866 = vmatmul.msk.bf16.gmra.mxu2 %vm300_vm1, %v7827_v42 }
 0x18f   : > { %6849 = vmatmul.msk.bf16.gmra.mxu1 %vm300_vm1, %v1697_v28  ;;  %v1698_v28 = vpack.c.bf16 %v1483_v43, %v1482_v41  ;;  %v1452_v41 = vld [vmem:[#allocation2 + $0xaa] sm:$0xff]  ;;  %v1453_v43 = vld [vmem:[#allocation2 + $0xb2] sm:$0xff] }
 0x190   : > { %6815 = vmatmul.msk.bf16.gmra.mxu3 %vm300_vm1, %v8046_v8 }
 0x191   : > { %v821_v10 = vpop.f32.mrf.mxu0  ;;  %v1181_v15 = vpop.f32.mrf.mxu2 }
 0x192   : > { %v8053_v19 = vadd.f32 %v1181_v15, %v960_v1 }
 0x193   : > { %v1201_v30 = vpop.f32.mrf.mxu3 }
 0x194   : > { %v961_v20 = vpop.f32.mrf.mxu1  ;;  %v8056_v3 = vadd.f32 %v1201_v30, %v7971_v48 }
 0x195   : > { %v962_v31 = vadd.f32 %v961_v20, %v821_v10  ;;  %v8064_v10 = vpack.c.bf16 %v1039_v60, %v1038_v55  ;;  %v1040_v60 = vld [vmem:[#allocation3 + $0xa9] sm:$0xff] }
 0x196   : > { %9773 = vst [vmem:[#allocation5_spill] sm:$0xff] %v8056_v3 }
 0x199   : > { %v824_v47 = vpop.f32.mrf.mxu0  ;;  %v1183_v42 = vpop.f32.mrf.mxu2 }
 0x19a   : > { %v8058_v57 = vadd.f32 %v1183_v42, %v962_v31  ;;  %v1509_v42 = vpack.c.bf16 %v1453_v43, %v1452_v41 }
 0x19b   : > { %v1203_v63 = vpop.f32.mrf.mxu3 }
 0x19c   : > { %v964_v39 = vpop.f32.mrf.mxu1  ;;  %6833 = vmatmul.msk.bf16.gmra.mxu0 %vm300_vm1, %v1508_v45  ;;  %v8062_v48 = vadd.f32 %v1203_v63, %v7980_v62  ;;  %v1484_v45 = vld [vmem:[#allocation3 + $0xaa] sm:$0xff] }
 0x19d   : > { %v965_v1 = vadd.f32 %v964_v39, %v824_v47  ;;  %v1485_v47 = vld [vmem:[#allocation3 + $0xb2] sm:$0xff] }
 0x19e   : > { %9774 = vst [vmem:[#allocation6_spill] sm:$0xff] %v8062_v48  ;;  %6867 = vmatmul.msk.bf16.gmra.mxu2 %vm300_vm1, %v7846_v2  ;;  %v1699_v63 = vpack.c.bf16 %v1485_v47, %v1484_v45 }
 0x19f   : > { %6850 = vmatmul.msk.bf16.gmra.mxu1 %vm300_vm1, %v1698_v28  ;;  %v1041_v28 = vld [vmem:[#allocation3 + $0xb1] sm:$0xff] }
 0x1a0   : > { %6816 = vmatmul.msk.bf16.gmra.mxu3 %vm300_vm1, %v8064_v10 }
 0x1a1   : > { %v826_v15 = vpop.f32.mrf.mxu0  ;;  %v1186_v20 = vpop.f32.mrf.mxu2 }
 0x1a2   : > { %v8071_v30 = vadd.f32 %v1186_v20, %v965_v1 }
 0x1a3   : > { %v1206_v32 = vpop.f32.mrf.mxu3 }
 0x1a4   : > { %v966_v31 = vpop.f32.mrf.mxu1  ;;  %v8074_v62 = vadd.f32 %v1206_v32, %v7992_v16 }
 0x1a5   : > { %v967_v37 = vadd.f32 %v966_v31, %v826_v15  ;;  %v8082_v15 = vpack.c.bf16 %v1041_v28, %v1040_v60  ;;  %v1487_v60 = vld [vmem:[#allocation3 + $0xca] sm:$0xff] }
 0x1a6   : > { %9775 = vst [vmem:[#allocation7_spill] sm:$0xff] %v8074_v62 }
 0x1a7   : > { %9777 = vst [vmem:[#allocation9_spill] sm:$0xff] %v8082_v15 }
 0x1a9   : > { %v829_v55 = vpop.f32.mrf.mxu0  ;;  %v1188_v2 = vpop.f32.mrf.mxu2 }
 0x1aa   : > { %v8076_v39 = vadd.f32 %v1188_v2, %v967_v37  ;;  %v1486_v2 = vld [vmem:[#allocation3 + $0xc2] sm:$0xff] }
 0x1ab   : > { %v1208_v20 = vpop.f32.mrf.mxu3 }
 0x1ac   : > { %v969_v1 = vpop.f32.mrf.mxu1  ;;  %6834 = vmatmul.msk.bf16.gmra.mxu0 %vm300_vm1, %v1509_v42  ;;  %v8080_v16 = vadd.f32 %v1208_v20, %v8001_v26  ;;  %v6928_v26 = vld [vmem:[%s9746_s2 + $0xa] sm:$0x3]  ;;  %v1043_v20 = vld [vmem:[#allocation3 + $0xc9] sm:$0xff] }
 0x1ad   : > { %v970_v48 = vadd.f32 %v969_v1, %v829_v55  ;;  %v2901_v42 = vsel %vm761_vm0, %v6928_v26, 0  ;;  %v1455_v55 = vld [vmem:[#allocation2 + $0xca] sm:$0xff] }
 0x1ae   : > { %9776 = vst [vmem:[#allocation8_spill] sm:$0xff] %v8080_v16  ;;  %6868 = vmatmul.msk.bf16.gmra.mxu2 %vm300_vm1, %v7863_v24  ;;  %v1454_v24 = vld [vmem:[#allocation2 + $0xc2] sm:$0xff]  ;;  %v1042_v1 = vld [vmem:[#allocation3 + $0xc1] sm:$0xff]  ;;  %v1700_v16 = vpack.c.bf16 %v1487_v60, %v1486_v2 }
 0x1af   : > { %6851 = vmatmul.msk.bf16.gmra.mxu1 %vm300_vm1, %v1699_v63  ;;  %2910 = vmatpush.bf16.msra.mxu2 %v2901_v42  ;;  %v1510_v28 = vpack.c.bf16 %v1455_v55, %v1454_v24  ;;  %v1456_v55 = vld [vmem:[#allocation2 + $0xda] sm:$0xff]  ;;  %v1457_v2 = vld [vmem:[#allocation2 + $0xe2] sm:$0xff] }
 0x1b0   : > { %6817 = vmatmul.msk.bf16.gmra.mxu3 %vm300_vm1, %v8082_v15 }
 0x1b1   : > { %v831_v31 = vpop.f32.mrf.mxu0  ;;  %v1191_v32 = vpop.f32.mrf.mxu2 }
 0x1b2   : > { %v8089_v37 = vadd.f32 %v1191_v32, %v970_v48 }
 0x1b3   : > { %v1211_v43 = vpop.f32.mrf.mxu3 }
 0x1b4   : > { %v971_v41 = vpop.f32.mrf.mxu1  ;;  %v8095_v47 = vadd.f32 %v1211_v43, %v8013_v54 }
 0x1b5   : > { %v972_v45 = vadd.f32 %v971_v41, %v831_v31  ;;  %v8104_v41 = vpack.c.bf16 %v1043_v20, %v1042_v1  ;;  %v1044_v20 = vld [vmem:[#allocation3 + $0xd9] sm:$0xff] }
 0x1b6   : > { %9778 = vst [vmem:[#allocation10_spill] sm:$0xff] %v8095_v47 }
 0x1b7   : > { %9780 = vst [vmem:[#allocation12_spill] sm:$0xff] %v8104_v41 }
 0x1b9   : > { %v1580_v48 = vpop.f32.mrf.mxu0  ;;  %v1193_v63 = vpop.f32.mrf.mxu2 }
 0x1ba   : > { %v8098_v32 = vadd.f32 %v1193_v63, %v972_v45  ;;  %v1511_v63 = vpack.c.bf16 %v1457_v2, %v1456_v55  ;;  %v1458_v2 = vld [vmem:[#allocation2 + $0xf2] sm:$0xff] }
 0x1bb   : > { %v1213_v31 = vpop.f32.mrf.mxu3 }
 0x1bc   : > { %v1770_v62 = vpop.f32.mrf.mxu1  ;;  %6835 = vmatmul.msk.bf16.gmra.mxu0 %vm300_vm1, %v1510_v28  ;;  %v8102_v54 = vadd.f32 %v1213_v31, %v8022_v6  ;;  %v917_v6 = vadd.f32 %v7874_v29, %v7869_v27  ;;  %v1488_v28 = vld [vmem:[#allocation3 + $0xda] sm:$0xff] }
 0x1bd   : > { %v1045_v31 = vld [vmem:[#allocation3 + $0xe1] sm:$0xff] }
 0x1be   : > { %9779 = vst [vmem:[#allocation11_spill] sm:$0xff] %v8102_v54  ;;  %6869 = vmatmul.msk.bf16.gmra.mxu2 %vm300_vm1, %v7886_v51  ;;  %v1217_v47 = vadd.f32 %v7881_v40, %v917_v6  ;;  %v8118_v27 = vpack.c.bf16 %v1045_v31, %v1044_v20  ;;  %v1459_v6 = vld [vmem:[#allocation2 + $0xfa] sm:$0xff] }
 0x1bf   : > { %6852 = vmatmul.msk.bf16.gmra.mxu1 %vm300_vm1, %v1700_v16  ;;  %v1489_v16 = vld [vmem:[#allocation3 + $0xe2] sm:$0xff] }
 0x1c0   : > { %6818 = vmatmul.msk.bf16.gmra.mxu3 %vm300_vm1, %v8104_v41  ;;  %v1701_v41 = vpack.c.bf16 %v1489_v16, %v1488_v28  ;;  %v1046_v16 = vld [vmem:[#allocation3 + $0xf1] sm:$0xff] }
 0x1c1   : > { %v1582_v43 = vpop.f32.mrf.mxu0  ;;  %v2024_v26 = vpop.f32.mrf.mxu2 }
 0x1c3   : > { %v1326_v42 = vpop.f32.mrf.mxu3 }
 0x1c4   : > { %v1772_v45 = vpop.f32.mrf.mxu1  ;;  %v1406_v24 = vadd.f32 %v1326_v42, %v7834_v46 }
 0x1c6   : > { %v1660_v60 = vadd.f32 %v1580_v48, %v1406_v24 }
 0x1c8   : > { %v1850_v1 = vadd.f32 %v1770_v62, %v1660_v60 }
 0x1c9   : > { %v1585_v51 = vpop.f32.mrf.mxu0  ;;  %v2026_v54 = vpop.f32.mrf.mxu2 }
 0x1ca   : > { %v8115_v15 = vadd.f32 %v2024_v26, %v1850_v1 }
 0x1cb   : > { %v1328_v42 = vpop.f32.mrf.mxu3 }
 0x1cc   : > { %v1775_v46 = vpop.f32.mrf.mxu1  ;;  %6836 = vmatmul.msk.bf16.gmra.mxu0 %vm300_vm1, %v1511_v63  ;;  %v1407_v3 = vadd.f32 %v1328_v42, %v1217_v47  ;;  %v1047_v63 = vld [vmem:[#allocation3 + $0xf9] sm:$0xff] }
 0x1cd   : > { %v8132_v42 = vpack.c.bf16 %v1047_v63, %v1046_v16  ;;  %v1048_v63 = vld [vmem:[#allocation3 + $0x109] sm:$0xff] }
 0x1ce   : > { %v1661_v29 = vadd.f32 %v1582_v43, %v1407_v3  ;;  %6870 = vmatmul.msk.bf16.gmra.mxu2 %vm300_vm1, %v7899_v13  ;;  %v1491_v3 = vld [vmem:[#allocation3 + $0xfa] sm:$0xff]  ;;  %v1512_v43 = vpack.c.bf16 %v1459_v6, %v1458_v2  ;;  %v1461_v6 = vld [vmem:[#allocation2 + $0x112] sm:$0xff] }
 0x1cf   : > { %6853 = vmatmul.msk.bf16.gmra.mxu1 %vm300_vm1, %v1701_v41  ;;  %v1490_v41 = vld [vmem:[#allocation3 + $0xf2] sm:$0xff]  ;;  %v1460_v2 = vld [vmem:[#allocation2 + $0x10a] sm:$0xff] }
 0x1d0   : > { %6819 = vmatmul.msk.bf16.gmra.mxu3 %vm300_vm1, %v8118_v27  ;;  %v1851_v40 = vadd.f32 %v1772_v45, %v1661_v29  ;;  %v1702_v45 = vpack.c.bf16 %v1491_v3, %v1490_v41  ;;  %v1492_v41 = vld [vmem:[#allocation3 + $0x10a] sm:$0xff] }
 0x1d1   : > { %v1587_v62 = vpop.f32.mrf.mxu0  ;;  %v2029_v48 = vpop.f32.mrf.mxu2  ;;  %v1904_v3 = vld [vmem:[#allocation2 + $0x120] sm:$0xff] }
 0x1d2   : > { %v8125_v26 = vadd.f32 %v2026_v54, %v1851_v40 }
 0x1d3   : > { %v1331_v55 = vpop.f32.mrf.mxu3 }
 0x1d4   : > { %v1777_v24 = vpop.f32.mrf.mxu1  ;;  %v1408_v47 = vadd.f32 %v1331_v55, %v7893_v59 }
 0x1d6   : > { %v1662_v60 = vadd.f32 %v1585_v51, %v1408_v47 }
 0x1d8   : > { %v1852_v28 = vadd.f32 %v1775_v46, %v1662_v60 }
 0x1d9   : > { %v1590_v13 = vpop.f32.mrf.mxu0  ;;  %v2031_v1 = vpop.f32.mrf.mxu2 }
 0x1da   : > { %v8128_v20 = vadd.f32 %v2029_v48, %v1852_v28 }
 0x1db   : > { %v1333_v31 = vpop.f32.mrf.mxu3 }
 0x1dc   : > { %v1780_v54 = vpop.f32.mrf.mxu1  ;;  %6837 = vmatmul.msk.bf16.gmra.mxu0 %vm300_vm1, %v1512_v43  ;;  %v1409_v59 = vadd.f32 %v1333_v31, %v7897_v12  ;;  %v1905_v43 = vld [vmem:[#allocation2 + $0x128] sm:$0xff] }
 0x1de   : > { %v1663_v51 = vadd.f32 %v1587_v62, %v1409_v59  ;;  %6871 = vmatmul.msk.bf16.gmra.mxu2 %vm300_vm1, %v7918_v50  ;;  %v1493_v62 = vld [vmem:[#allocation3 + $0x112] sm:$0xff]  ;;  %v1513_v50 = vpack.c.bf16 %v1461_v6, %v1460_v2  ;;  %v1957_v59 = vpack.c.bf16 %v1905_v43, %v1904_v3  ;;  %v1494_v43 = vld [vmem:[#allocation3 + $0x122] sm:$0xff] }
 0x1df   : > { %6854 = vmatmul.msk.bf16.gmra.mxu1 %vm300_vm1, %v1702_v45  ;;  %v1703_v31 = vpack.c.bf16 %v1493_v62, %v1492_v41  ;;  %v1463_v62 = vld [vmem:[#allocation2 + $0x12a] sm:$0xff] }
 0x1e0   : > { %6820 = vmatmul.msk.bf16.gmra.mxu3 %vm300_vm1, %v8132_v42  ;;  %v1853_v46 = vadd.f32 %v1777_v24, %v1663_v51  ;;  %v1049_v24 = vld [vmem:[#allocation3 + $0x111] sm:$0xff] }
 0x1e1   : > { %v1592_v29 = vpop.f32.mrf.mxu0  ;;  %v2034_v40 = vpop.f32.mrf.mxu2 }
 0x1e2   : > { %v8139_v48 = vadd.f32 %v2031_v1, %v1853_v46 }
 0x1e3   : > { %v1336_v47 = vpop.f32.mrf.mxu3 }
 0x1e4   : > { %v1782_v55 = vpop.f32.mrf.mxu1  ;;  %v1410_v12 = vadd.f32 %v1336_v47, %v7908_v23 }
 0x1e6   : > { %v1664_v60 = vadd.f32 %v1590_v13, %v1410_v12  ;;  %v8146_v13 = vpack.c.bf16 %v1049_v24, %v1048_v63 }
 0x1e8   : > { %v1854_v28 = vadd.f32 %v1780_v54, %v1664_v60 }
 0x1e9   : > { %v1595_v16 = vpop.f32.mrf.mxu0  ;;  %v2036_v45 = vpop.f32.mrf.mxu2 }
 0x1ea   : > { %v8142_v1 = vadd.f32 %v2034_v40, %v1854_v28  ;;  %v1907_v28 = vld [vmem:[#allocation2 + $0x140] sm:$0xff] }
 0x1eb   : > { %v1338_v46 = vpop.f32.mrf.mxu3 }
 0x1ec   : > { %v1785_v51 = vpop.f32.mrf.mxu1  ;;  %6838 = vmatmul.msk.bf16.gmra.mxu0 %vm300_vm1, %v1513_v50  ;;  %v1411_v23 = vadd.f32 %v1338_v46, %v7916_v49  ;;  %v1462_v49 = vld [vmem:[#allocation2 + $0x122] sm:$0xff]  ;;  %v1495_v50 = vld [vmem:[#allocation3 + $0x12a] sm:$0xff] }
 0x1ed   : > { %v1514_v63 = vpack.c.bf16 %v1463_v62, %v1462_v49 }
 0x1ee   : > { %v1665_v47 = vadd.f32 %v1592_v29, %v1411_v23  ;;  %6872 = vmatmul.msk.bf16.gmra.mxu2 %vm300_vm1, %v1957_v59  ;;  %v1906_v29 = vld [vmem:[#allocation2 + $0x138] sm:$0xff]  ;;  %v1704_v23 = vpack.c.bf16 %v1495_v50, %v1494_v43 }
 0x1ef   : > { %6855 = vmatmul.msk.bf16.gmra.mxu1 %vm300_vm1, %v1703_v31  ;;  %v1050_v59 = vld [vmem:[#allocation3 + $0x121] sm:$0xff] }
 0x1f0   : > { %6821 = vmatmul.msk.bf16.gmra.mxu3 %vm300_vm1, %v8146_v13  ;;  %v1855_v54 = vadd.f32 %v1782_v55, %v1665_v47  ;;  %v1051_v55 = vld [vmem:[#allocation3 + $0x129] sm:$0xff]  ;;  %v1958_v47 = vpack.c.bf16 %v1907_v28, %v1906_v29  ;;  %v1496_v29 = vld [vmem:[#allocation3 + $0x13a] sm:$0xff] }
 0x1f1   : > { %v1597_v40 = vpop.f32.mrf.mxu0  ;;  %v2039_v12 = vpop.f32.mrf.mxu2  ;;  %v1497_v28 = vld [vmem:[#allocation3 + $0x142] sm:$0xff] }
 0x1f2   : > { %v8152_v2 = vadd.f32 %v2036_v45, %v1855_v54 }
 0x1f3   : > { %v1341_v60 = vpop.f32.mrf.mxu3 }
 0x1f4   : > { %9781 = vst [vmem:[#allocation13_spill] sm:$0xff] %v8152_v2  ;;  %v1787_v6 = vpop.f32.mrf.mxu1  ;;  %v1412_v41 = vadd.f32 %v1341_v60, %v7935_v4 }
 0x1f6   : > { %v1666_v3 = vadd.f32 %v1595_v16, %v1412_v41  ;;  %v8159_v16 = vpack.c.bf16 %v1051_v55, %v1050_v59 }
 0x1f8   : > { %v1856_v24 = vadd.f32 %v1785_v51, %v1666_v3 }
 0x1f9   : > { %v1600_v31 = vpop.f32.mrf.mxu0  ;;  %v2041_v46 = vpop.f32.mrf.mxu2 }
 0x1fa   : > { %v8155_v45 = vadd.f32 %v2039_v12, %v1856_v24 }
 0x1fb   : > { %v1343_v2 = vpop.f32.mrf.mxu3 }
 0x1fc   : > { %v1790_v54 = vpop.f32.mrf.mxu1  ;;  %6839 = vmatmul.msk.bf16.gmra.mxu0 %vm300_vm1, %v1514_v63  ;;  %v1413_v4 = vadd.f32 %v1343_v2, %v7939_v22  ;;  %v1464_v22 = vld [vmem:[#allocation2 + $0x13a] sm:$0xff]  ;;  %v1465_v2 = vld [vmem:[#allocation2 + $0x142] sm:$0xff] }
 0x1fd   : > { %v1909_v63 = vld [vmem:[#allocation2 + $0x158] sm:$0xff]  ;;  %v1515_v24 = vpack.c.bf16 %v1465_v2, %v1464_v22 }
 0x1fe   : > { %v1667_v60 = vadd.f32 %v1597_v40, %v1413_v4  ;;  %6873 = vmatmul.msk.bf16.gmra.mxu2 %vm300_vm1, %v1958_v47  ;;  %v1908_v40 = vld [vmem:[#allocation2 + $0x150] sm:$0xff] }
 0x1ff   : > { %6856 = vmatmul.msk.bf16.gmra.mxu1 %vm300_vm1, %v1704_v23  ;;  %v1053_v23 = vld [vmem:[#allocation3 + $0x141] sm:$0xff] }
 0x200   : > { %6822 = vmatmul.msk.bf16.gmra.mxu3 %vm300_vm1, %v8159_v16  ;;  %v1857_v51 = vadd.f32 %v1787_v6, %v1667_v60  ;;  %v1052_v6 = vld [vmem:[#allocation3 + $0x139] sm:$0xff]  ;;  %v1959_v60 = vpack.c.bf16 %v1909_v63, %v1908_v40  ;;  %v1466_v63 = vld [vmem:[#allocation2 + $0x152] sm:$0xff] }
 0x201   : > { %v1602_v12 = vpop.f32.mrf.mxu0  ;;  %v2044_v41 = vpop.f32.mrf.mxu2 }
 0x202   : > { %v8165_v49 = vadd.f32 %v2041_v46, %v1857_v51  ;;  %v1705_v46 = vpack.c.bf16 %v1497_v28, %v1496_v29 }
 0x203   : > { %v1346_v3 = vpop.f32.mrf.mxu3 }
 0x204   : > { %v1792_v62 = vpop.f32.mrf.mxu1  ;;  %v1414_v43 = vadd.f32 %v1346_v3, %v7948_v36  ;;  %v8172_v3 = vpack.c.bf16 %v1053_v23, %v1052_v6  ;;  %v1498_v6 = vld [vmem:[#allocation3 + $0x152] sm:$0xff]  ;;  %v1499_v23 = vld [vmem:[#allocation3 + $0x15a] sm:$0xff] }
 0x206   : > { %v1668_v50 = vadd.f32 %v1600_v31, %v1414_v43  ;;  %v7363_v43 = vld [vmem:[%s7707_s19 + $0x78] sm:$0xff]  }
 0x207   : > { %v7283_v22 = vunpack.c.l.bf16 %v7363_v43  ;;  %v7284_v2 = vunpack.c.h.bf16 %v7363_v43 }
 0x208   : > { %v1858_v59 = vadd.f32 %v1790_v54, %v1668_v50 }
 0x209   : > { %v1605_v55 = vpop.f32.mrf.mxu0  ;;  %v2046_v47 = vpop.f32.mrf.mxu2  ;;  %517 = vst.msk [vmem:[#allocation2 + $0x181] sm:$0xff] %vm300_vm1, %v7283_v22 }
 0x20a   : > { %v8168_v4 = vadd.f32 %v2044_v41, %v1858_v59  ;;  %518 = vst.msk [vmem:[#allocation2 + $0x189] sm:$0xff] %vm300_vm1, %v7284_v2 }
 0x20b   : > { %v1348_v36 = vpop.f32.mrf.mxu3 }
 0x20c   : > { %9782 = vst [vmem:[#allocation14_spill] sm:$0xff] %v8168_v4  ;;  %v1795_v51 = vpop.f32.mrf.mxu1  ;;  %6840 = vmatmul.msk.bf16.gmra.mxu0 %vm300_vm1, %v1515_v24  ;;  %v1415_v31 = vadd.f32 %v1348_v36, %v7954_v58  ;;  %v1467_v24 = vld [vmem:[#allocation2 + $0x15a] sm:$0xff] }
 0x20e   : > { %v1669_v54 = vadd.f32 %v1602_v12, %v1415_v31  ;;  %6874 = vmatmul.msk.bf16.gmra.mxu2 %vm300_vm1, %v1959_v60  ;;  %v1516_v60 = vpack.c.bf16 %v1467_v24, %v1466_v63 }
 0x20f   : > { %6857 = vmatmul.msk.bf16.gmra.mxu1 %vm300_vm1, %v1705_v46  ;;  %v1911_v46 = vld [vmem:[#allocation2 + $0x170] sm:$0xff] }
 0x210   : > { %6823 = vmatmul.msk.bf16.gmra.mxu3 %vm300_vm1, %v8172_v3  ;;  %v1859_v41 = vadd.f32 %v1792_v62, %v1669_v54  ;;  %v1910_v62 = vld [vmem:[#allocation2 + $0x168] sm:$0xff] }
 0x211   : > { %v1607_v50 = vpop.f32.mrf.mxu0  ;;  %v2049_v29 = vpop.f32.mrf.mxu2  ;;  %v1055_v54 = vld [vmem:[#allocation3 + $0x159] sm:$0xff] }
 0x212   : > { %v8179_v28 = vadd.f32 %v2046_v47, %v1859_v41  ;;  %v1054_v47 = vld [vmem:[#allocation3 + $0x151] sm:$0xff]  ;;  %v1706_v41 = vpack.c.bf16 %v1499_v23, %v1498_v6  ;;  %v1468_v6 = vld [vmem:[#allocation2 + $0x16a] sm:$0xff] }
 0x213   : > { %v1351_v40 = vpop.f32.mrf.mxu3 }
 0x214   : > { %9783 = vst [vmem:[#allocation15_spill] sm:$0xff] %v8179_v28  ;;  %v1797_v58 = vpop.f32.mrf.mxu1  ;;  %v1416_v12 = vadd.f32 %v1351_v40, %v7968_v9  ;;  %v1960_v28 = vpack.c.bf16 %v1911_v46, %v1910_v62  ;;  %v1500_v62 = vld [vmem:[#allocation3 + $0x16a] sm:$0xff] }
 0x215   : > { %v1912_v46 = vld [vmem:[#allocation2 + $0x180] sm:$0xff] }
 0x216   : > { %v1670_v59 = vadd.f32 %v1605_v55, %v1416_v12  ;;  %v8188_v55 = vpack.c.bf16 %v1055_v54, %v1054_v47 }
 0x218   : > { %v1860_v36 = vadd.f32 %v1795_v51, %v1670_v59 }
 0x219   : > { %v1610_v31 = vpop.f32.mrf.mxu0  ;;  %v2051_v43 = vpop.f32.mrf.mxu2 }
 0x21a   : > { %v8184_v22 = vadd.f32 %v2049_v29, %v1860_v36 }
 0x21b   : > { %v1353_v4 = vpop.f32.mrf.mxu3 }
 0x21c   : > { %v1800_v2 = vpop.f32.mrf.mxu1  ;;  %6841 = vmatmul.msk.bf16.gmra.mxu0 %vm300_vm1, %v1516_v60  ;;  %v1417_v9 = vadd.f32 %v1353_v4, %v7975_v34  ;;  %v6945_v34 = vld [vmem:[%s9747_s3 + $0xa] sm:$0x3] }
 0x21d   : > { %v1913_v60 = vld [vmem:[#allocation2 + $0x188] sm:$0xff] }
 0x21e   : > { %v1671_v40 = vadd.f32 %v1607_v50, %v1417_v9  ;;  %6875 = vmatmul.msk.bf16.gmra.mxu2 %vm300_vm1, %v1960_v28  ;;  %v3091_v50 = vsel %vm761_vm0, %v6945_v34, 0  ;;  %v1469_v28 = vld [vmem:[#allocation2 + $0x172] sm:$0xff] }
 0x21f   : > { %6858 = vmatmul.msk.bf16.gmra.mxu1 %vm300_vm1, %v1706_v41  ;;  %3100 = vmatpush.bf16.msrb.mxu3 %v3091_v50  ;;  %v1517_v36 = vpack.c.bf16 %v1469_v28, %v1468_v6  ;;  %v1057_v41 = vld [vmem:[#allocation3 + $0x171] sm:$0xff] }
 0x220   : > { %6824 = vmatmul.msk.bf16.gmra.mxu3 %vm300_vm1, %v8188_v55  ;;  %v1861_v51 = vadd.f32 %v1797_v58, %v1671_v40  ;;  %v1501_v58 = vld [vmem:[#allocation3 + $0x172] sm:$0xff] }
 0x221   : > { %v1612_v29 = vpop.f32.mrf.mxu0  ;;  %v2054_v12 = vpop.f32.mrf.mxu2  ;;  %v1707_v40 = vpack.c.bf16 %v1501_v58, %v1500_v62 }
 0x222   : > { %v8194_v63 = vadd.f32 %v2051_v43, %v1861_v51  ;;  %v1056_v43 = vld [vmem:[#allocation3 + $0x169] sm:$0xff] }
 0x223   : > { %v1356_v59 = vpop.f32.mrf.mxu3 }
 0x224   : > { %v1802_v24 = vpop.f32.mrf.mxu1  ;;  %v1418_v4 = vadd.f32 %v1356_v59, %v7989_v53  ;;  %v1961_v53 = vpack.c.bf16 %v1913_v60, %v1912_v46 }
 0x226   : > { %v1672_v23 = vadd.f32 %v1610_v31, %v1418_v4  ;;  %v8205_v4 = vpack.c.bf16 %v1057_v41, %v1056_v43 }
 0x228   : > { %v1862_v47 = vadd.f32 %v1800_v2, %v1672_v23  ;;  %v6962_v2 = vld [vmem:[%s9746_s2 + $0xc] sm:$0x3] }
 0x229   : > { %v1615_v54 = vpop.f32.mrf.mxu0  ;;  %v2056_v9 = vpop.f32.mrf.mxu2  ;;  %v3347_v6 = vsel %vm761_vm0, %v6962_v2, 0 }
 0x22a   : > { %v8201_v51 = vadd.f32 %v2054_v12, %v1862_v47  ;;  %v6979_v12 = vld [vmem:[%s9747_s3 + $0xc] sm:$0x3]  ;;  %3356 = vmatpush.bf16.msrb.mxu0 %v3347_v6  ;;  %v2327_v47 = vld [vmem:[#allocation2 + $0x21] sm:$0xff] }
 0x22b   : > { %v1358_v34 = vpop.f32.mrf.mxu3  ;;  %v3537_v28 = vsel %vm761_vm0, %v6979_v12, 0 }
 0x22c   : > { %v1805_v59 = vpop.f32.mrf.mxu1  ;;  %6842 = vmatmul.msk.bf16.gmra.mxu0 %vm300_vm1, %v1517_v36  ;;  %v1419_v31 = vadd.f32 %v1358_v34, %v7996_v14  ;;  %3546 = vmatpush.bf16.msrb.mxu1 %v3537_v28  ;;  %v2326_v36 = vld [vmem:[#allocation2 + $0x19] sm:$0xff]  ;;  %v1914_v34 = vld [vmem:[#allocation3 + $0x18] sm:$0xff] }
 0x22d   : > { %v2390_v41 = vpack.c.bf16 %v2327_v47, %v2326_v36  ;;  %v2329_v36 = vld [vmem:[#allocation2 + $0x39] sm:$0xff] }
 0x22e   : > { %v1673_v50 = vadd.f32 %v1612_v29, %v1419_v31  ;;  %6876 = vmatmul.msk.bf16.gmra.mxu2 %vm300_vm1, %v1961_v53  ;;  %v1915_v31 = vld [vmem:[#allocation3 + $0x20] sm:$0xff] }
 0x22f   : > { %6859 = vmatmul.msk.bf16.gmra.mxu1 %vm300_vm1, %v1707_v40  ;;  %v2136_v6 = vpack.c.bf16 %v1915_v31, %v1914_v34 }
 0x230   : > { %6825 = vmatmul.msk.bf16.gmra.mxu3 %vm300_vm1, %v8205_v4  ;;  %v1863_v14 = vadd.f32 %v1802_v24, %v1673_v50 }
 0x231   : > { %v1617_v29 = vpop.f32.mrf.mxu0  ;;  %v2059_v23 = vpop.f32.mrf.mxu2 }
 0x232   : > { %v8219_v62 = vadd.f32 %v2056_v9, %v1863_v14 }
 0x233   : > { %v1361_v46 = vpop.f32.mrf.mxu3 }
 0x234   : > { %v1807_v58 = vpop.f32.mrf.mxu1  ;;  %v1420_v60 = vadd.f32 %v1361_v46, %v8010_v33 }
 0x236   : > { %v1674_v43 = vadd.f32 %v1615_v54, %v1420_v60 }
 0x238   : > { %v1864_v40 = vadd.f32 %v1805_v59, %v1674_v43 }
 0x239   : > { %v1620_v53 = vpop.f32.mrf.mxu0  ;;  %v2061_v2 = vpop.f32.mrf.mxu2 }
 0x23a   : > { %v8222_v24 = vadd.f32 %v2059_v23, %v1864_v40  ;;  %v1917_v40 = vld [vmem:[#allocation3 + $0x38] sm:$0xff] }
 0x23b   : > { %v1363_v12 = vpop.f32.mrf.mxu3 }
 0x23c   : > { %v1810_v50 = vpop.f32.mrf.mxu1  ;;  %6895 = vmatmul.msk.bf16.vlgmr.msra.gmra.mxu0 %vm300_vm1, %v2390_v41  ;;  %v1421_v9 = vadd.f32 %v1363_v12, %v8017_v0  ;;  %v2328_v0 = vld [vmem:[#allocation2 + $0x31] sm:$0xff]  ;;  %v1916_v41 = vld [vmem:[#allocation3 + $0x30] sm:$0xff] }
 0x23d   : > { %v2391_v43 = vpack.c.bf16 %v2329_v36, %v2328_v0  ;;  %v8238_v12 = vpack.c.bf16 %v1917_v40, %v1916_v41  ;;  %v1918_v36 = vld [vmem:[#allocation3 + $0x48] sm:$0xff] }
 0x23e   : > { %v1675_v33 = vadd.f32 %v1617_v29, %v1421_v9  ;;  %6929 = vmatmul.msk.bf16.vlgmr.msra.gmra.mxu2 %vm300_vm1, %v7952_v52 }
 0x23f   : > { %6912 = vmatmul.msk.bf16.vlgmr.msra.gmra.mxu1 %vm300_vm1, %v7961_v5 }
 0x240   : > { %6878 = vmatmul.msk.bf16.vlgmr.msra.gmra.mxu3 %vm300_vm1, %v2136_v6  ;;  %v1865_v54 = vadd.f32 %v1807_v58, %v1675_v33 }
 0x241   : > { %v1622_v59 = vpop.f32.mrf.mxu0  ;;  %v2064_v28 = vpop.f32.mrf.mxu2 }
 0x242   : > { %v8231_v14 = vadd.f32 %v2061_v2, %v1865_v54 }
 0x243   : > { %v1366_v46 = vpop.f32.mrf.mxu3 }
 0x244   : > { %v1812_v23 = vpop.f32.mrf.mxu1  ;;  %v1422_v60 = vadd.f32 %v1366_v46, %v8033_v21  ;;  %v2331_v46 = vld [vmem:[#allocation2 + $0x51] sm:$0xff] }
 0x246   : > { %v1676_v47 = vadd.f32 %v1620_v53, %v1422_v60 }
 0x248   : > { %v1866_v5 = vadd.f32 %v1810_v50, %v1676_v47 }
 0x249   : > { %v1625_v29 = vpop.f32.mrf.mxu0  ;;  %v2066_v52 = vpop.f32.mrf.mxu2 }
 0x24a   : > { %v8234_v34 = vadd.f32 %v2064_v28, %v1866_v5  ;;  %v2330_v28 = vld [vmem:[#allocation2 + $0x49] sm:$0xff] }
 0x24b   : > { %v1368_v31 = vpop.f32.mrf.mxu3 }
 0x24c   : > { %v1815_v58 = vpop.f32.mrf.mxu1  ;;  %6896 = vmatmul.msk.bf16.gmra.mxu0 %vm300_vm1, %v2391_v43  ;;  %v1423_v2 = vadd.f32 %v1368_v31, %v8039_v61 }
 0x24e   : > { %v1677_v21 = vadd.f32 %v1622_v59, %v1423_v2  ;;  %6930 = vmatmul.msk.bf16.gmra.mxu2 %vm300_vm1, %v7973_v25  ;;  %v1919_v25 = vld [vmem:[#allocation3 + $0x50] sm:$0xff] }
 0x24f   : > { %6913 = vmatmul.msk.bf16.gmra.mxu1 %vm300_vm1, %v7982_v44  ;;  %v2392_v44 = vpack.c.bf16 %v2331_v46, %v2330_v28  ;;  %v8253_v40 = vpack.c.bf16 %v1919_v25, %v1918_v36  ;;  %v1920_v28 = vld [vmem:[#allocation3 + $0x60] sm:$0xff] }
 0x250   : > { %6879 = vmatmul.msk.bf16.gmra.mxu3 %vm300_vm1, %v8238_v12  ;;  %v1867_v53 = vadd.f32 %v1812_v23, %v1677_v21 }
 0x251   : > { %v1627_v50 = vpop.f32.mrf.mxu0  ;;  %v2069_v9 = vpop.f32.mrf.mxu2 }
 0x252   : > { %v8246_v6 = vadd.f32 %v2066_v52, %v1867_v53  ;;  %v2332_v53 = vld [vmem:[#allocation2 + $0x61] sm:$0xff] }
 0x253   : > { %v1371_v54 = vpop.f32.mrf.mxu3 }
 0x254   : > { %v1817_v33 = vpop.f32.mrf.mxu1  ;;  %v1424_v61 = vadd.f32 %v1371_v54, %v8053_v19 }
 0x256   : > { %v1678_v60 = vadd.f32 %v1625_v29, %v1424_v61 }
 0x258   : > { %v1868_v59 = vadd.f32 %v1815_v58, %v1678_v60 }
 0x259   : > { %v1630_v0 = vpop.f32.mrf.mxu0  ;;  %v2071_v47 = vpop.f32.mrf.mxu2 }
 0x25a   : > { %v8249_v43 = vadd.f32 %v2069_v9, %v1868_v59  ;;  %v2333_v9 = vld [vmem:[#allocation2 + $0x69] sm:$0xff] }
 0x25b   : > { %v1373_v5 = vpop.f32.mrf.mxu3 }
 0x25c   : > { %v1820_v23 = vpop.f32.mrf.mxu1  ;;  %6897 = vmatmul.msk.bf16.gmra.mxu0 %vm300_vm1, %v2392_v44  ;;  %v1425_v41 = vadd.f32 %v1373_v5, %v8058_v57 }
 0x25e   : > { %v1679_v19 = vadd.f32 %v1627_v50, %v1425_v41  ;;  %6931 = vmatmul.msk.bf16.gmra.mxu2 %vm300_vm1, %v7994_v7  ;;  %v1921_v7 = vld [vmem:[#allocation3 + $0x68] sm:$0xff] }
 0x25f   : > { %6914 = vmatmul.msk.bf16.gmra.mxu1 %vm300_vm1, %v8003_v17  ;;  %v2393_v17 = vpack.c.bf16 %v2333_v9, %v2332_v53  ;;  %v8268_v36 = vpack.c.bf16 %v1921_v7, %v1920_v28 }
 0x260   : > { %6880 = vmatmul.msk.bf16.gmra.mxu3 %vm300_vm1, %v8253_v40  ;;  %v1869_v29 = vadd.f32 %v1817_v33, %v1679_v19  ;;  %v2334_v19 = vld [vmem:[#allocation2 + $0x79] sm:$0xff] }
 0x261   : > { %v1632_v52 = vpop.f32.mrf.mxu0  ;;  %v2074_v58 = vpop.f32.mrf.mxu2 }
 0x262   : > { %v8261_v31 = vadd.f32 %v2071_v47, %v1869_v29  ;;  %v2335_v29 = vld [vmem:[#allocation2 + $0x81] sm:$0xff] }
 0x263   : > { %v1376_v21 = vpop.f32.mrf.mxu3 }
 0x264   : > { %v1822_v2 = vpop.f32.mrf.mxu1  ;;  %v1426_v57 = vadd.f32 %v1376_v21, %v8071_v30 }
 0x266   : > { %v1680_v54 = vadd.f32 %v1630_v0, %v1426_v57  ;;  %v1922_v57 = vld [vmem:[#allocation3 + $0x78] sm:$0xff] }
 0x268   : > { %v1870_v50 = vadd.f32 %v1820_v23, %v1680_v54 }
 0x269   : > { %v1635_v61 = vpop.f32.mrf.mxu0  ;;  %v2076_v46 = vpop.f32.mrf.mxu2 }
 0x26a   : > { %v8264_v60 = vadd.f32 %v2074_v58, %v1870_v50 }
 0x26b   : > { %v1378_v44 = vpop.f32.mrf.mxu3 }
 0x26c   : > { %v1825_v33 = vpop.f32.mrf.mxu1  ;;  %6898 = vmatmul.msk.bf16.gmra.mxu0 %vm300_vm1, %v2393_v17  ;;  %v1427_v59 = vadd.f32 %v1378_v44, %v8076_v39 }
 0x26e   : > { %v1681_v30 = vadd.f32 %v1632_v52, %v1427_v59  ;;  %6932 = vmatmul.msk.bf16.gmra.mxu2 %vm300_vm1, %v8015_v56  ;;  %v1923_v56 = vld [vmem:[#allocation3 + $0x80] sm:$0xff] }
 0x26f   : > { %6915 = vmatmul.msk.bf16.gmra.mxu1 %vm300_vm1, %v8024_v11  ;;  %v2394_v11 = vpack.c.bf16 %v2335_v29, %v2334_v19  ;;  %v8283_v50 = vpack.c.bf16 %v1923_v56, %v1922_v57  ;;  %v2336_v59 = vld [vmem:[#allocation2 + $0x91] sm:$0xff]  ;;  %v1925_v19 = vld [vmem:[#allocation3 + $0x98] sm:$0xff] }
 0x270   : > { %6881 = vmatmul.msk.bf16.gmra.mxu3 %vm300_vm1, %v8268_v36  ;;  %v1871_v0 = vadd.f32 %v1822_v2, %v1681_v30  ;;  %v2337_v30 = vld [vmem:[#allocation2 + $0x99] sm:$0xff] }
 0x271   : > { %v1637_v25 = vpop.f32.mrf.mxu0  ;;  %v2079_v47 = vpop.f32.mrf.mxu2 }
 0x272   : > { %v8276_v23 = vadd.f32 %v2076_v46, %v1871_v0 }
 0x273   : > { %v1381_v41 = vpop.f32.mrf.mxu3 }
 0x274   : > { %v1827_v5 = vpop.f32.mrf.mxu1  ;;  %v1428_v39 = vadd.f32 %v1381_v41, %v8089_v37 }
 0x276   : > { %v1682_v58 = vadd.f32 %v1635_v61, %v1428_v39  ;;  %v1924_v39 = vld [vmem:[#allocation3 + $0x90] sm:$0xff] }
 0x277   : > { %v8298_v57 = vpack.c.bf16 %v1925_v19, %v1924_v39 }
 0x278   : > { %v1872_v52 = vadd.f32 %v1825_v33, %v1682_v58 }
 0x279   : > { %v1640_v21 = vpop.f32.mrf.mxu0  ;;  %v2081_v53 = vpop.f32.mrf.mxu2 }
 0x27a   : > { %v8279_v9 = vadd.f32 %v2079_v47, %v1872_v52  ;;  %v2395_v47 = vpack.c.bf16 %v2337_v30, %v2336_v59  ;;  %v2782_v59 = vld [vmem:[#allocation2 + $0xaa] sm:$0xff] }
 0x27b   : > { %v1383_v54 = vpop.f32.mrf.mxu3 }
 0x27c   : > { %v1830_v2 = vpop.f32.mrf.mxu1  ;;  %6899 = vmatmul.msk.bf16.gmra.mxu0 %vm300_vm1, %v2394_v11  ;;  %v1429_v17 = vadd.f32 %v1383_v54, %v8098_v32 }
 0x27e   : > { %v1683_v37 = vadd.f32 %v1637_v25, %v1429_v17  ;;  %6933 = vmatmul.msk.bf16.gmra.mxu2 %vm300_vm1, %v8037_v18  ;;  %v2781_v25 = vld [vmem:[#allocation2 + $0x9a] sm:$0xff] }
 0x27f   : > { %6916 = vmatmul.msk.bf16.gmra.mxu1 %vm300_vm1, %v8046_v8  ;;  %v2780_v8 = vld [vmem:[#allocation2 + $0x92] sm:$0xff] }
 0x280   : > { %6882 = vmatmul.msk.bf16.gmra.mxu3 %vm300_vm1, %v8283_v50  ;;  %v1873_v61 = vadd.f32 %v1827_v5, %v1683_v37  ;;  %v2839_v58 = vpack.c.bf16 %v2781_v25, %v2780_v8  ;;  %v1926_v8 = vld [vmem:[#allocation3 + $0xa8] sm:$0xff]  ;;  %v1927_v25 = vld [vmem:[#allocation3 + $0xb0] sm:$0xff] }
 0x281   : > { %v1642_v28 = vpop.f32.mrf.mxu0  ;;  %v2084_v7 = vpop.f32.mrf.mxu2 }
 0x282   : > { %v8291_v46 = vadd.f32 %v2081_v53, %v1873_v61  ;;  %v9784_v61 = vld [vmem:[#allocation5_spill] sm:$0xff] }
 0x283   : > { %v1386_v44 = vpop.f32.mrf.mxu3 }
 0x284   : > { %v1832_v33 = vpop.f32.mrf.mxu1  ;;  %v1430_v32 = vadd.f32 %v1386_v44, %v8035_v35  ;;  %v2339_v44 = vld [vmem:[#allocation2 + $0xb1] sm:$0xff] }
 0x286   : > { %v1684_v0 = vadd.f32 %v1640_v21, %v1430_v32 }
 0x288   : > { %v1874_v41 = vadd.f32 %v1830_v2, %v1684_v0 }
 0x289   : > { %v1645_v18 = vpop.f32.mrf.mxu0  ;;  %v2086_v29 = vpop.f32.mrf.mxu2 }
 0x28a   : > { %v8294_v5 = vadd.f32 %v2084_v7, %v1874_v41  ;;  %v2338_v7 = vld [vmem:[#allocation2 + $0xa9] sm:$0xff] }
 0x28b   : > { %v1388_v52 = vpop.f32.mrf.mxu3 }
 0x28c   : > { %v1835_v11 = vpop.f32.mrf.mxu1  ;;  %6900 = vmatmul.msk.bf16.gmra.mxu0 %vm300_vm1, %v2395_v47  ;;  %v1431_v35 = vadd.f32 %v1388_v52, %v8044_v38  ;;  %v8312_v52 = vpack.c.bf16 %v1927_v25, %v1926_v8  ;;  %v1928_v25 = vld [vmem:[#allocation3 + $0xc0] sm:$0xff] }
 0x28e   : > { %v1685_v21 = vadd.f32 %v1642_v28, %v1431_v35  ;;  %6934 = vmatmul.msk.bf16.gmra.mxu2 %vm300_vm1, %v2839_v58  ;;  %v2396_v28 = vpack.c.bf16 %v2339_v44, %v2338_v7  ;;  %v2340_v44 = vld [vmem:[#allocation2 + $0xc1] sm:$0xff] }
 0x28f   : > { %6917 = vmatmul.msk.bf16.gmra.mxu1 %vm300_vm1, %v8064_v10  ;;  %v2783_v10 = vld [vmem:[#allocation2 + $0xb2] sm:$0xff] }
 0x290   : > { %6883 = vmatmul.msk.bf16.gmra.mxu3 %vm300_vm1, %v8298_v57  ;;  %v1875_v56 = vadd.f32 %v1832_v33, %v1685_v21  ;;  %v2840_v41 = vpack.c.bf16 %v2783_v10, %v2782_v59  ;;  %v2784_v10 = vld [vmem:[#allocation2 + $0xc2] sm:$0xff] }
 0x291   : > { %v1647_v53 = vpop.f32.mrf.mxu0  ;;  %v2089_v2 = vpop.f32.mrf.mxu2 }
 0x292   : > { %v8305_v54 = vadd.f32 %v2086_v29, %v1875_v56  ;;  %v9785_v29 = vld [vmem:[#allocation6_spill] sm:$0xff] }
 0x293   : > { %v1391_v37 = vpop.f32.mrf.mxu3 }
 0x294   : > { %v1837_v17 = vpop.f32.mrf.mxu1  ;;  %v1432_v38 = vadd.f32 %v1391_v37, %v9784_v61 }
 0x296   : > { %v1686_v32 = vadd.f32 %v1645_v18, %v1432_v38  ;;  %v9786_v18 = vld [vmem:[#allocation9_spill] sm:$0xff]  ;;  %v9787_v38 = vld [vmem:[#allocation7_spill] sm:$0xff] }
 0x298   : > { %v1876_v30 = vadd.f32 %v1835_v11, %v1686_v32  ;;  %v2341_v32 = vld [vmem:[#allocation2 + $0xc9] sm:$0xff] }
 0x299   : > { %v1650_v0 = vpop.f32.mrf.mxu0  ;;  %v2091_v47 = vpop.f32.mrf.mxu2 }
 0x29a   : > { %v8308_v33 = vadd.f32 %v2089_v2, %v1876_v30 }
 0x29b   : > { %v1393_v19 = vpop.f32.mrf.mxu3 }
 0x29c   : > { %v1840_v39 = vpop.f32.mrf.mxu1  ;;  %6901 = vmatmul.msk.bf16.gmra.mxu0 %vm300_vm1, %v2396_v28  ;;  %v1433_v58 = vadd.f32 %v1393_v19, %v9785_v29  ;;  %v2785_v28 = vld [vmem:[#allocation2 + $0xca] sm:$0xff] }
 0x29d   : > { %v2841_v29 = vpack.c.bf16 %v2785_v28, %v2784_v10  ;;  %v9792_v10 = vld [vmem:[#allocation10_spill] sm:$0xff] }
 0x29e   : > { %v1687_v35 = vadd.f32 %v1647_v53, %v1433_v58  ;;  %6935 = vmatmul.msk.bf16.gmra.mxu2 %vm300_vm1, %v2840_v41  ;;  %v2397_v53 = vpack.c.bf16 %v2341_v32, %v2340_v44  ;;  %v1929_v41 = vld [vmem:[#allocation3 + $0xc8] sm:$0xff] }
 0x29f   : > { %6918 = vmatmul.msk.bf16.gmra.mxu1 %vm300_vm1, %v9786_v18  ;;  %v9789_v18 = vld [vmem:[#allocation8_spill] sm:$0xff] }
 0x2a0   : > { %6884 = vmatmul.msk.bf16.gmra.mxu3 %vm300_vm1, %v8312_v52  ;;  %v1877_v11 = vadd.f32 %v1837_v17, %v1687_v35 }
 0x2a1   : > { %v1652_v21 = vpop.f32.mrf.mxu0  ;;  %v2094_v56 = vpop.f32.mrf.mxu2 }
 0x2a2   : > { %v8319_v2 = vadd.f32 %v2091_v47, %v1877_v11  ;;  %v8326_v11 = vpack.c.bf16 %v1929_v41, %v1928_v25  ;;  %v2786_v41 = vld [vmem:[#allocation2 + $0xda] sm:$0xff] }
 0x2a3   : > { %v1396_v61 = vpop.f32.mrf.mxu3 }
 0x2a4   : > { %v1842_v37 = vpop.f32.mrf.mxu1  ;;  %v1434_v7 = vadd.f32 %v1396_v61, %v9787_v38 }
 0x2a6   : > { %v1688_v59 = vadd.f32 %v1650_v0, %v1434_v7  ;;  %v9790_v0 = vld [vmem:[#allocation12_spill] sm:$0xff] }
 0x2a8   : > { %v1878_v30 = vadd.f32 %v1840_v39, %v1688_v59  ;;  %v6996_v59 = vld [vmem:[%s9746_s2 + $0xe] sm:$0x3] }
 0x2a9   : > { %v1655_v8 = vpop.f32.mrf.mxu0  ;;  %v2096_v19 = vpop.f32.mrf.mxu2 }
 0x2aa   : > { %v8322_v17 = vadd.f32 %v2094_v56, %v1878_v30  ;;  %v2343_v30 = vld [vmem:[#allocation2 + $0xe1] sm:$0xff] }
 0x2ab   : > { %v1398_v58 = vpop.f32.mrf.mxu3 }
 0x2ac   : > { %9788 = vst [vmem:[#allocation5_spill] sm:$0xff] %v8322_v17  ;;  %v1845_v47 = vpop.f32.mrf.mxu1  ;;  %6902 = vmatmul.msk.bf16.gmra.mxu0 %vm300_vm1, %v2397_v53  ;;  %v1435_v35 = vadd.f32 %v1398_v58, %v9789_v18  ;;  %v2342_v53 = vld [vmem:[#allocation2 + $0xd9] sm:$0xff]  ;;  %v1930_v18 = vld [vmem:[#allocation3 + $0xd8] sm:$0xff] }
 0x2ae   : > { %v1689_v61 = vadd.f32 %v1652_v21, %v1435_v35  ;;  %6936 = vmatmul.msk.bf16.gmra.mxu2 %vm300_vm1, %v2841_v29  ;;  %v3791_v21 = vsel %vm761_vm0, %v6996_v59, 0  ;;  %v2398_v29 = vpack.c.bf16 %v2343_v30, %v2342_v53  ;;  %v1931_v35 = vld [vmem:[#allocation3 + $0xe0] sm:$0xff] }
 0x2af   : > { %6919 = vmatmul.msk.bf16.gmra.mxu1 %vm300_vm1, %v9790_v0  ;;  %3800 = vmatpush.bf16.msrb.mxu2 %v3791_v21 }
 0x2b0   : > { %6885 = vmatmul.msk.bf16.gmra.mxu3 %vm300_vm1, %v8326_v11  ;;  %v1879_v39 = vadd.f32 %v1842_v37, %v1689_v61  ;;  %v2787_v37 = vld [vmem:[#allocation2 + $0xe2] sm:$0xff] }
 0x2b1   : > { %v1657_v56 = vpop.f32.mrf.mxu0  ;;  %v2099_v38 = vpop.f32.mrf.mxu2 }
 0x2b2   : > { %v8333_v7 = vadd.f32 %v2096_v19, %v1879_v39  ;;  %v2842_v39 = vpack.c.bf16 %v2787_v37, %v2786_v41  ;;  %v2345_v41 = vld [vmem:[#allocation2 + $0xf9] sm:$0xff] }
 0x2b3   : > { %v1401_v32 = vpop.f32.mrf.mxu3 }
 0x2b4   : > { %9791 = vst [vmem:[#allocation6_spill] sm:$0xff] %v8333_v7  ;;  %v1847_v44 = vpop.f32.mrf.mxu1  ;;  %v1436_v28 = vadd.f32 %v1401_v32, %v9792_v10  ;;  %v9793_v32 = vld [vmem:[#allocation11_spill] sm:$0xff]  ;;  %v8344_v10 = vpack.c.bf16 %v1931_v35, %v1930_v18 }
 0x2b5   : > { %v1932_v35 = vld [vmem:[#allocation3 + $0xf0] sm:$0xff] }
 0x2b6   : > { %v1690_v25 = vadd.f32 %v1655_v8, %v1436_v28 }
 0x2b8   : > { %v1880_v58 = vadd.f32 %v1845_v47, %v1690_v25  ;;  %v2344_v25 = vld [vmem:[#allocation2 + $0xf1] sm:$0xff] }
 0x2b9   : > { %v2468_v19 = vpop.f32.mrf.mxu0  ;;  %v2101_v0 = vpop.f32.mrf.mxu2 }
 0x2ba   : > { %v8340_v61 = vadd.f32 %v2099_v38, %v1880_v58 }
 0x2bb   : > { %v1403_v17 = vpop.f32.mrf.mxu3 }
 0x2bc   : > { %v2658_v7 = vpop.f32.mrf.mxu1  ;;  %6903 = vmatmul.msk.bf16.gmra.mxu0 %vm300_vm1, %v2398_v29  ;;  %v1437_v59 = vadd.f32 %v1403_v17, %v9793_v32  ;;  %v2788_v29 = vld [vmem:[#allocation2 + $0xf2] sm:$0xff] }
 0x2be   : > { %v1691_v8 = vadd.f32 %v1657_v56, %v1437_v59  ;;  %6937 = vmatmul.msk.bf16.gmra.mxu2 %vm300_vm1, %v2842_v39  ;;  %v2399_v56 = vpack.c.bf16 %v2345_v41, %v2344_v25  ;;  %v1933_v39 = vld [vmem:[#allocation3 + $0xf8] sm:$0xff] }
 0x2bf   : > { %6920 = vmatmul.msk.bf16.gmra.mxu1 %vm300_vm1, %v8118_v27  ;;  %v2789_v27 = vld [vmem:[#allocation2 + $0xfa] sm:$0xff] }
 0x2c0   : > { %6886 = vmatmul.msk.bf16.gmra.mxu3 %vm300_vm1, %v8344_v10  ;;  %v1881_v47 = vadd.f32 %v1847_v44, %v1691_v8  ;;  %v2843_v59 = vpack.c.bf16 %v2789_v27, %v2788_v29  ;;  %v2347_v29 = vld [vmem:[#allocation2 + $0x111] sm:$0xff] }
 0x2c1   : > { %v2470_v38 = vpop.f32.mrf.mxu0  ;;  %v2912_v28 = vpop.f32.mrf.mxu2 }
 0x2c2   : > { %v8351_v21 = vadd.f32 %v2101_v0, %v1881_v47  ;;  %v8358_v47 = vpack.c.bf16 %v1933_v39, %v1932_v35  ;;  %v1934_v39 = vld [vmem:[#allocation3 + $0x108] sm:$0xff] }
 0x2c3   : > { %v2214_v30 = vpop.f32.mrf.mxu3 }
 0x2c4   : > { %v2660_v53 = vpop.f32.mrf.mxu1  ;;  %v2294_v17 = vadd.f32 %v2214_v30, %v8115_v15 }
 0x2c6   : > { %v2548_v37 = vadd.f32 %v2468_v19, %v2294_v17 }
 0x2c8   : > { %v2738_v58 = vadd.f32 %v2658_v7, %v2548_v37  ;;  %v2346_v37 = vld [vmem:[#allocation2 + $0x109] sm:$0xff] }
 0x2c9   : > { %v2473_v18 = vpop.f32.mrf.mxu0  ;;  %v2914_v32 = vpop.f32.mrf.mxu2 }
 0x2ca   : > { %v8354_v44 = vadd.f32 %v2912_v28, %v2738_v58 }
 0x2cb   : > { %v2216_v8 = vpop.f32.mrf.mxu3 }
 0x2cc   : > { %v2663_v0 = vpop.f32.mrf.mxu1  ;;  %6904 = vmatmul.msk.bf16.gmra.mxu0 %vm300_vm1, %v2399_v56  ;;  %v2295_v15 = vadd.f32 %v2216_v8, %v8125_v26  ;;  %v2790_v56 = vld [vmem:[#allocation2 + $0x10a] sm:$0xff] }
 0x2ce   : > { %v2549_v19 = vadd.f32 %v2470_v38, %v2295_v15  ;;  %6938 = vmatmul.msk.bf16.gmra.mxu2 %vm300_vm1, %v2843_v59  ;;  %v2400_v38 = vpack.c.bf16 %v2347_v29, %v2346_v37  ;;  %v1935_v59 = vld [vmem:[#allocation3 + $0x110] sm:$0xff] }
 0x2cf   : > { %6921 = vmatmul.msk.bf16.gmra.mxu1 %vm300_vm1, %v8132_v42  ;;  %v2791_v42 = vld [vmem:[#allocation2 + $0x112] sm:$0xff] }
 0x2d0   : > { %6887 = vmatmul.msk.bf16.gmra.mxu3 %vm300_vm1, %v8358_v47  ;;  %v2739_v7 = vadd.f32 %v2660_v53, %v2549_v19  ;;  %v2844_v15 = vpack.c.bf16 %v2791_v42, %v2790_v56  ;;  %v2349_v56 = vld [vmem:[#allocation2 + $0x129] sm:$0xff] }
 0x2d1   : > { %v2475_v28 = vpop.f32.mrf.mxu0  ;;  %v2917_v30 = vpop.f32.mrf.mxu2 }
 0x2d2   : > { %v8365_v17 = vadd.f32 %v2914_v32, %v2739_v7  ;;  %v8372_v7 = vpack.c.bf16 %v1935_v59, %v1934_v39  ;;  %v1936_v59 = vld [vmem:[#allocation3 + $0x120] sm:$0xff] }
 0x2d3   : > { %v2219_v41 = vpop.f32.mrf.mxu3 }
 0x2d4   : > { %v2665_v25 = vpop.f32.mrf.mxu1  ;;  %v2296_v26 = vadd.f32 %v2219_v41, %v8128_v20 }
 0x2d6   : > { %v2550_v27 = vadd.f32 %v2473_v18, %v2296_v26 }
 0x2d8   : > { %v2740_v58 = vadd.f32 %v2663_v0, %v2550_v27  ;;  %v2348_v27 = vld [vmem:[#allocation2 + $0x121] sm:$0xff] }
 0x2d9   : > { %v2478_v35 = vpop.f32.mrf.mxu0  ;;  %v2919_v8 = vpop.f32.mrf.mxu2 }
 0x2da   : > { %v8368_v53 = vadd.f32 %v2917_v30, %v2740_v58 }
 0x2db   : > { %v2221_v19 = vpop.f32.mrf.mxu3 }
 0x2dc   : > { %v2668_v32 = vpop.f32.mrf.mxu1  ;;  %6905 = vmatmul.msk.bf16.gmra.mxu0 %vm300_vm1, %v2400_v38  ;;  %v2297_v20 = vadd.f32 %v2221_v19, %v8139_v48  ;;  %v2792_v38 = vld [vmem:[#allocation2 + $0x122] sm:$0xff] }
 0x2de   : > { %v2551_v18 = vadd.f32 %v2475_v28, %v2297_v20  ;;  %6939 = vmatmul.msk.bf16.gmra.mxu2 %vm300_vm1, %v2844_v15  ;;  %v2401_v28 = vpack.c.bf16 %v2349_v56, %v2348_v27  ;;  %v1937_v15 = vld [vmem:[#allocation3 + $0x128] sm:$0xff] }
 0x2df   : > { %6922 = vmatmul.msk.bf16.gmra.mxu1 %vm300_vm1, %v8146_v13  ;;  %v2793_v13 = vld [vmem:[#allocation2 + $0x12a] sm:$0xff] }
 0x2e0   : > { %6888 = vmatmul.msk.bf16.gmra.mxu3 %vm300_vm1, %v8372_v7  ;;  %v2741_v0 = vadd.f32 %v2665_v25, %v2551_v18  ;;  %v2845_v20 = vpack.c.bf16 %v2793_v13, %v2792_v38  ;;  %v2350_v13 = vld [vmem:[#allocation2 + $0x139] sm:$0xff] }
 0x2e1   : > { %v2480_v30 = vpop.f32.mrf.mxu0  ;;  %v2922_v41 = vpop.f32.mrf.mxu2 }
 0x2e2   : > { %v8379_v26 = vadd.f32 %v2919_v8, %v2741_v0  ;;  %v9794_v0 = vld [vmem:[#allocation13_spill] sm:$0xff] }
 0x2e3   : > { %v2224_v29 = vpop.f32.mrf.mxu3 }
 0x2e4   : > { %v2670_v37 = vpop.f32.mrf.mxu1  ;;  %v2298_v48 = vadd.f32 %v2224_v29, %v8142_v1  ;;  %v8386_v29 = vpack.c.bf16 %v1937_v15, %v1936_v59  ;;  %v2794_v59 = vld [vmem:[#allocation2 + $0x13a] sm:$0xff] }
 0x2e6   : > { %v2552_v42 = vadd.f32 %v2478_v35, %v2298_v48 }
 0x2e8   : > { %v2742_v58 = vadd.f32 %v2668_v32, %v2552_v42 }
 0x2e9   : > { %v2483_v39 = vpop.f32.mrf.mxu0  ;;  %v2924_v19 = vpop.f32.mrf.mxu2 }
 0x2ea   : > { %v8382_v25 = vadd.f32 %v2922_v41, %v2742_v58 }
 0x2eb   : > { %v2226_v18 = vpop.f32.mrf.mxu3 }
 0x2ec   : > { %v2673_v8 = vpop.f32.mrf.mxu1  ;;  %6906 = vmatmul.msk.bf16.gmra.mxu0 %vm300_vm1, %v2401_v28  ;;  %v2299_v1 = vadd.f32 %v2226_v18, %v9794_v0  ;;  %v2351_v28 = vld [vmem:[#allocation2 + $0x141] sm:$0xff]  ;;  %v1939_v0 = vld [vmem:[#allocation3 + $0x140] sm:$0xff] }
 0x2ed   : > { %v1938_v18 = vld [vmem:[#allocation3 + $0x138] sm:$0xff] }
 0x2ee   : > { %v2553_v35 = vadd.f32 %v2480_v30, %v2299_v1  ;;  %6940 = vmatmul.msk.bf16.gmra.mxu2 %vm300_vm1, %v2845_v20  ;;  %v2402_v30 = vpack.c.bf16 %v2351_v28, %v2350_v13  ;;  %v7378_v13 = vld [vmem:[%s7491_s12 + $0x78] sm:$0xff]  }
 0x2ef   : > { %6923 = vmatmul.msk.bf16.gmra.mxu1 %vm300_vm1, %v8159_v16  ;;  %v2795_v16 = vld [vmem:[#allocation2 + $0x142] sm:$0xff] }
 0x2f0   : > { %6889 = vmatmul.msk.bf16.gmra.mxu3 %vm300_vm1, %v8386_v29  ;;  %v2743_v32 = vadd.f32 %v2670_v37, %v2553_v35 }
 0x2f1   : > { %v2485_v41 = vpop.f32.mrf.mxu0  ;;  %v2927_v48 = vpop.f32.mrf.mxu2 }
 0x2f2   : > { %v8393_v27 = vadd.f32 %v2924_v19, %v2743_v32  ;;  %v2846_v19 = vpack.c.bf16 %v2795_v16, %v2794_v59  ;;  %v7348_v59 = vunpack.c.h.bf16 %v7378_v13 }
 0x2f3   : > { %v2229_v42 = vpop.f32.mrf.mxu3 }
 0x2f4   : > { %v2675_v56 = vpop.f32.mrf.mxu1  ;;  %v2300_v38 = vadd.f32 %v2229_v42, %v8155_v45  ;;  %v8400_v42 = vpack.c.bf16 %v1939_v0, %v1938_v18  ;;  %614 = vst.msk [vmem:[#allocation3 + $0x189] sm:$0xff] %vm300_vm1, %v7348_v59  ;;  %v2796_v0 = vld [vmem:[#allocation2 + $0x152] sm:$0xff] }
 0x2f6   : > { %v2554_v58 = vadd.f32 %v2483_v39, %v2300_v38  ;;  %9796 = vst [vmem:[#allocation7_spill] sm:$0xff] %v8400_v42 }
 0x2f8   : > { %v2744_v15 = vadd.f32 %v2673_v8, %v2554_v58  ;;  %v7347_v58 = vunpack.c.l.bf16 %v7378_v13 }
 0x2f9   : > { %v2488_v20 = vpop.f32.mrf.mxu0  ;;  %v2929_v37 = vpop.f32.mrf.mxu2 }
 0x2fa   : > { %v8396_v1 = vadd.f32 %v2927_v48, %v2744_v15  ;;  %613 = vst.msk [vmem:[#allocation3 + $0x181] sm:$0xff] %vm300_vm1, %v7347_v58  ;;  %v9799_v58 = vld [vmem:[#allocation15_spill] sm:$0xff] }
 0x2fb   : > { %v2231_v32 = vpop.f32.mrf.mxu3 }
 0x2fc   : > { %9795 = vst [vmem:[#allocation9_spill] sm:$0xff] %v8396_v1  ;;  %v2678_v35 = vpop.f32.mrf.mxu1  ;;  %6907 = vmatmul.msk.bf16.gmra.mxu0 %vm300_vm1, %v2402_v30  ;;  %v2301_v45 = vadd.f32 %v2231_v32, %v8165_v49  ;;  %v9798_v30 = vld [vmem:[#allocation14_spill] sm:$0xff] }
 0x2fe   : > { %v2555_v39 = vadd.f32 %v2485_v41, %v2301_v45  ;;  %6941 = vmatmul.msk.bf16.gmra.mxu2 %vm300_vm1, %v2846_v19  ;;  %v2353_v41 = vld [vmem:[#allocation2 + $0x159] sm:$0xff] }
 0x2ff   : > { %6924 = vmatmul.msk.bf16.gmra.mxu1 %vm300_vm1, %v8172_v3  ;;  %v2352_v3 = vld [vmem:[#allocation2 + $0x151] sm:$0xff] }
 0x300   : > { %6890 = vmatmul.msk.bf16.gmra.mxu3 %vm300_vm1, %v8400_v42  ;;  %v2745_v8 = vadd.f32 %v2675_v56, %v2555_v39  ;;  %v2797_v56 = vld [vmem:[#allocation2 + $0x15a] sm:$0xff]  ;;  %v2403_v19 = vpack.c.bf16 %v2353_v41, %v2352_v3  ;;  %v1941_v39 = vld [vmem:[#allocation3 + $0x158] sm:$0xff] }
 0x301   : > { %v2490_v48 = vpop.f32.mrf.mxu0  ;;  %v2932_v38 = vpop.f32.mrf.mxu2 }
 0x302   : > { %v8408_v28 = vadd.f32 %v2929_v37, %v2745_v8  ;;  %v1940_v37 = vld [vmem:[#allocation3 + $0x150] sm:$0xff] }
 0x303   : > { %v2234_v16 = vpop.f32.mrf.mxu3  ;;  %v8417_v42 = vpack.c.bf16 %v1941_v39, %v1940_v37  ;;  %v1942_v39 = vld [vmem:[#allocation3 + $0x168] sm:$0xff] }
 0x304   : > { %9797 = vst [vmem:[#allocation8_spill] sm:$0xff] %v8408_v28  ;;  %v2680_v49 = vpop.f32.mrf.mxu1  ;;  %v2302_v15 = vadd.f32 %v2234_v16, %v9798_v30  ;;  %v2847_v28 = vpack.c.bf16 %v2797_v56, %v2796_v0  ;;  %v2354_v0 = vld [vmem:[#allocation2 + $0x169] sm:$0xff]  ;;  %v2355_v56 = vld [vmem:[#allocation2 + $0x171] sm:$0xff] }
 0x306   : > { %v2556_v18 = vadd.f32 %v2488_v20, %v2302_v15 }
 0x308   : > { %v2746_v32 = vadd.f32 %v2678_v35, %v2556_v18 }
 0x309   : > { %v2493_v45 = vpop.f32.mrf.mxu0  ;;  %v2934_v8 = vpop.f32.mrf.mxu2 }
 0x30a   : > { %v8413_v13 = vadd.f32 %v2932_v38, %v2746_v32  ;;  %v2798_v32 = vld [vmem:[#allocation2 + $0x16a] sm:$0xff] }
 0x30b   : > { %v2236_v16 = vpop.f32.mrf.mxu3 }
 0x30c   : > { %v2683_v1 = vpop.f32.mrf.mxu1  ;;  %6908 = vmatmul.msk.bf16.gmra.mxu0 %vm300_vm1, %v2403_v19  ;;  %v2303_v30 = vadd.f32 %v2236_v16, %v9799_v58  ;;  %v1943_v16 = vld [vmem:[#allocation3 + $0x170] sm:$0xff] }
 0x30e   : > { %v2557_v20 = vadd.f32 %v2490_v48, %v2303_v30  ;;  %6942 = vmatmul.msk.bf16.gmra.mxu2 %vm300_vm1, %v2847_v28  ;;  %v2404_v48 = vpack.c.bf16 %v2355_v56, %v2354_v0 }
 0x30f   : > { %6925 = vmatmul.msk.bf16.gmra.mxu1 %vm300_vm1, %v8188_v55  ;;  %v2799_v55 = vld [vmem:[#allocation2 + $0x172] sm:$0xff] }
 0x310   : > { %6891 = vmatmul.msk.bf16.gmra.mxu3 %vm300_vm1, %v8417_v42  ;;  %v2747_v35 = vadd.f32 %v2680_v49, %v2557_v20  ;;  %v2848_v30 = vpack.c.bf16 %v2799_v55, %v2798_v32  ;;  %v2357_v32 = vld [vmem:[#allocation2 + $0x189] sm:$0xff] }
 0x311   : > { %v2495_v38 = vpop.f32.mrf.mxu0  ;;  %v2937_v59 = vpop.f32.mrf.mxu2 }
 0x312   : > { %v8424_v15 = vadd.f32 %v2934_v8, %v2747_v35  ;;  %v8431_v35 = vpack.c.bf16 %v1943_v16, %v1942_v39  ;;  %v2801_v39 = vld [vmem:[#allocation2 + $0x18a] sm:$0xff] }
 0x313   : > { %v2239_v41 = vpop.f32.mrf.mxu3 }
 0x314   : > { %v2685_v3 = vpop.f32.mrf.mxu1  ;;  %v2304_v18 = vadd.f32 %v2239_v41, %v8184_v22 }
 0x316   : > { %v2558_v19 = vadd.f32 %v2493_v45, %v2304_v18 }
 0x318   : > { %v2748_v37 = vadd.f32 %v2683_v1, %v2558_v19 }
 0x319   : > { %v2498_v28 = vpop.f32.mrf.mxu0  ;;  %v2939_v58 = vpop.f32.mrf.mxu2 }
 0x31a   : > { %v8427_v49 = vadd.f32 %v2937_v59, %v2748_v37  ;;  %v2800_v37 = vld [vmem:[#allocation2 + $0x182] sm:$0xff] }
 0x31b   : > { %v2241_v20 = vpop.f32.mrf.mxu3 }
 0x31c   : > { %v2688_v8 = vpop.f32.mrf.mxu1  ;;  %6909 = vmatmul.msk.bf16.gmra.mxu0 %vm300_vm1, %v2404_v48  ;;  %v2305_v22 = vadd.f32 %v2241_v20, %v8194_v63  ;;  %v7013_v63 = vld [vmem:[%s9747_s3 + $0xe] sm:$0x3]  ;;  %v2388_v48 = vld [vmem:[#allocation3 + $0x181] sm:$0xff] }
 0x31d   : > { %v1944_v20 = vld [vmem:[#allocation3 + $0x180] sm:$0xff] }
 0x31e   : > { %v2559_v45 = vadd.f32 %v2495_v38, %v2305_v22  ;;  %6943 = vmatmul.msk.bf16.gmra.mxu2 %vm300_vm1, %v2848_v30  ;;  %v2356_v38 = vld [vmem:[#allocation2 + $0x181] sm:$0xff]  ;;  %v1945_v22 = vld [vmem:[#allocation3 + $0x188] sm:$0xff] }
 0x31f   : > { %6926 = vmatmul.msk.bf16.gmra.mxu1 %vm300_vm1, %v8205_v4  ;;  %v3981_v4 = vsel %vm761_vm0, %v7013_v63, 0  ;;  %v2405_v16 = vpack.c.bf16 %v2357_v32, %v2356_v38 }
 0x320   : > { %6892 = vmatmul.msk.bf16.gmra.mxu3 %vm300_vm1, %v8431_v35  ;;  %v2749_v1 = vadd.f32 %v2685_v3, %v2559_v45  ;;  %v2389_v3 = vld [vmem:[#allocation3 + $0x189] sm:$0xff] }
 0x321   : > { %v2500_v59 = vpop.f32.mrf.mxu0  ;;  %v2942_v41 = vpop.f32.mrf.mxu2  ;;  %3990 = vmatpush.bf16.msra.mxu3 %v3981_v4 }
 0x322   : > { %v8438_v18 = vadd.f32 %v2939_v58, %v2749_v1  ;;  %v2595_v1 = vpack.c.bf16 %v2389_v3, %v2388_v48 }
 0x323   : > { %v2244_v56 = vpop.f32.mrf.mxu3 }
 0x324   : > { %9800 = vst [vmem:[#allocation12_spill] sm:$0xff] %v8438_v18  ;;  %v2690_v0 = vpop.f32.mrf.mxu1  ;;  %v2306_v19 = vadd.f32 %v2244_v56, %v8201_v51  ;;  %v2849_v51 = vpack.c.bf16 %v2801_v39, %v2800_v37 }
 0x326   : > { %v2560_v55 = vadd.f32 %v2498_v28, %v2306_v19  ;;  %v8449_v19 = vpack.c.bf16 %v1945_v22, %v1944_v20  ;;  %v3660_v22 = vld [vmem:[#allocation2 + $0x31] sm:$0xff] }
 0x328   : > { %v2750_v58 = vadd.f32 %v2688_v8, %v2560_v55  ;;  %v7030_v8 = vld [vmem:[%s9746_s2 + $0x10] sm:$0x3] }
 0x329   : > { %v2503_v30 = vpop.f32.mrf.mxu0  ;;  %v2944_v45 = vpop.f32.mrf.mxu2  ;;  %v4235_v38 = vsel %vm761_vm0, %v7030_v8, 0  ;;  %v2802_v8 = vld [vmem:[#allocation3 + $0x1a] sm:$0xff] }
 0x32a   : > { %v8445_v18 = vadd.f32 %v2942_v41, %v2750_v58  ;;  %v7047_v41 = vld [vmem:[%s9747_s3 + $0x10] sm:$0x3]  ;;  %4244 = vmatpush.bf16.msra.mxu0 %v4235_v38  ;;  %v3216_v58 = vld [vmem:[#allocation2 + $0x38] sm:$0xff] }
 0x32b   : > { %v2246_v63 = vpop.f32.mrf.mxu3  ;;  %v4425_v32 = vsel %vm761_vm0, %v7047_v41, 0 }
 0x32c   : > { %v2693_v56 = vpop.f32.mrf.mxu1  ;;  %6910 = vmatmul.msk.bf16.gmra.mxu0 %vm300_vm1, %v2405_v16  ;;  %v2307_v28 = vadd.f32 %v2246_v63, %v8219_v62  ;;  %4434 = vmatpush.bf16.msra.mxu1 %v4425_v32  ;;  %v3215_v16 = vld [vmem:[#allocation2 + $0x30] sm:$0xff] }
 0x32e   : > { %v2561_v4 = vadd.f32 %v2500_v59, %v2307_v28  ;;  %6944 = vmatmul.msk.bf16.gmra.mxu2 %vm300_vm1, %v2849_v51  ;;  %v3280_v51 = vpack.c.bf16 %v3216_v58, %v3215_v16 }
 0x32f   : > { %6927 = vmatmul.msk.bf16.gmra.mxu1 %vm300_vm1, %v2595_v1  ;;  %v3661_v1 = vld [vmem:[#allocation2 + $0x39] sm:$0xff] }
 0x330   : > { %6893 = vmatmul.msk.bf16.gmra.mxu3 %vm300_vm1, %v8449_v19  ;;  %v2751_v62 = vadd.f32 %v2690_v0, %v2561_v4  ;;  %v2803_v0 = vld [vmem:[#allocation3 + $0x22] sm:$0xff]  ;;  %v3724_v38 = vpack.c.bf16 %v3661_v1, %v3660_v22  ;;  %v3217_v22 = vld [vmem:[#allocation2 + $0x48] sm:$0xff] }
 0x331   : > { %v2505_v59 = vpop.f32.mrf.mxu0  ;;  %v2947_v55 = vpop.f32.mrf.mxu2 }
 0x332   : > { %v8463_v48 = vadd.f32 %v2944_v45, %v2751_v62  ;;  %v3024_v62 = vpack.c.bf16 %v2803_v0, %v2802_v8  ;;  %v2804_v0 = vld [vmem:[#allocation3 + $0x32] sm:$0xff] }
 0x333   : > { %v2249_v37 = vpop.f32.mrf.mxu3 }
 0x334   : > { %v2695_v3 = vpop.f32.mrf.mxu1  ;;  %v2308_v39 = vadd.f32 %v2249_v37, %v8222_v24 }
 0x336   : > { %v2562_v20 = vadd.f32 %v2503_v30, %v2308_v39 }
 0x338   : > { %v2752_v63 = vadd.f32 %v2693_v56, %v2562_v20 }
 0x339   : > { %v2508_v28 = vpop.f32.mrf.mxu0  ;;  %v2949_v4 = vpop.f32.mrf.mxu2 }
 0x33a   : > { %v8466_v41 = vadd.f32 %v2947_v55, %v2752_v63  ;;  %v3663_v63 = vld [vmem:[#allocation2 + $0x51] sm:$0xff] }
 0x33b   : > { %v2251_v32 = vpop.f32.mrf.mxu3 }
 0x33c   : > { %v2698_v45 = vpop.f32.mrf.mxu1  ;;  %6963 = vmatmul.msk.bf16.vlgmr.msrb.gmra.mxu0 %vm300_vm1, %v3280_v51  ;;  %v2309_v24 = vadd.f32 %v2251_v32, %v8231_v14  ;;  %v3218_v14 = vld [vmem:[#allocation2 + $0x50] sm:$0xff] }
 0x33d   : > { %v3662_v51 = vld [vmem:[#allocation2 + $0x49] sm:$0xff] }
 0x33e   : > { %v2563_v30 = vadd.f32 %v2505_v59, %v2309_v24  ;;  %6997 = vmatmul.msk.bf16.vlgmr.msrb.gmra.mxu2 %vm300_vm1, %v3724_v38  ;;  %v2805_v38 = vld [vmem:[#allocation3 + $0x3a] sm:$0xff]  ;;  %v3725_v24 = vpack.c.bf16 %v3663_v63, %v3662_v51  ;;  %v3664_v63 = vld [vmem:[#allocation2 + $0x61] sm:$0xff] }
 0x33f   : > { %6980 = vmatmul.msk.bf16.vlgmr.msrb.gmra.mxu1 %vm300_vm1, %v8238_v12  ;;  %v3281_v12 = vpack.c.bf16 %v3218_v14, %v3217_v22  ;;  %v3219_v14 = vld [vmem:[#allocation2 + $0x60] sm:$0xff] }
 0x340   : > { %6946 = vmatmul.msk.bf16.vlgmr.msrb.gmra.mxu3 %vm300_vm1, %v3024_v62  ;;  %v2753_v56 = vadd.f32 %v2695_v3, %v2563_v30  ;;  %v8481_v30 = vpack.c.bf16 %v2805_v38, %v2804_v0  ;;  %v2806_v0 = vld [vmem:[#allocation3 + $0x4a] sm:$0xff]  ;;  %v2807_v38 = vld [vmem:[#allocation3 + $0x52] sm:$0xff] }
 0x341   : > { %v2510_v37 = vpop.f32.mrf.mxu0  ;;  %v2952_v55 = vpop.f32.mrf.mxu2 }
 0x342   : > { %v8474_v39 = vadd.f32 %v2949_v4, %v2753_v56 }
 0x343   : > { %v2254_v58 = vpop.f32.mrf.mxu3 }
 0x344   : > { %v2700_v16 = vpop.f32.mrf.mxu1  ;;  %v2310_v20 = vadd.f32 %v2254_v58, %v8234_v34 }
 0x346   : > { %v2564_v1 = vadd.f32 %v2508_v28, %v2310_v20 }
 0x348   : > { %v2754_v59 = vadd.f32 %v2698_v45, %v2564_v1  ;;  %v3220_v1 = vld [vmem:[#allocation2 + $0x68] sm:$0xff] }
 0x349   : > { %v2513_v8 = vpop.f32.mrf.mxu0  ;;  %v2954_v32 = vpop.f32.mrf.mxu2 }
 0x34a   : > { %v8477_v3 = vadd.f32 %v2952_v55, %v2754_v59 }
 0x34b   : > { %v2256_v62 = vpop.f32.mrf.mxu3 }
 0x34c   : > { %v2703_v4 = vpop.f32.mrf.mxu1  ;;  %6964 = vmatmul.msk.bf16.gmra.mxu0 %vm300_vm1, %v3281_v12  ;;  %v2311_v34 = vadd.f32 %v2256_v62, %v8246_v6 }
 0x34e   : > { %v2565_v28 = vadd.f32 %v2510_v37, %v2311_v34  ;;  %6998 = vmatmul.msk.bf16.gmra.mxu2 %vm300_vm1, %v3725_v24  ;;  %v3282_v37 = vpack.c.bf16 %v3220_v1, %v3219_v14  ;;  %v3221_v1 = vld [vmem:[#allocation2 + $0x78] sm:$0xff] }
 0x34f   : > { %6981 = vmatmul.msk.bf16.gmra.mxu1 %vm300_vm1, %v8253_v40  ;;  %v3665_v40 = vld [vmem:[#allocation2 + $0x69] sm:$0xff] }
 0x350   : > { %6947 = vmatmul.msk.bf16.gmra.mxu3 %vm300_vm1, %v8481_v30  ;;  %v2755_v45 = vadd.f32 %v2700_v16, %v2565_v28  ;;  %v3726_v62 = vpack.c.bf16 %v3665_v40, %v3664_v63  ;;  %v8495_v28 = vpack.c.bf16 %v2807_v38, %v2806_v0  ;;  %v3666_v40 = vld [vmem:[#allocation2 + $0x79] sm:$0xff] }
 0x351   : > { %v2515_v56 = vpop.f32.mrf.mxu0  ;;  %v2957_v55 = vpop.f32.mrf.mxu2  ;;  %v2808_v0 = vld [vmem:[#allocation3 + $0x62] sm:$0xff]  ;;  %v2809_v38 = vld [vmem:[#allocation3 + $0x6a] sm:$0xff] }
 0x352   : > { %v8488_v58 = vadd.f32 %v2954_v32, %v2755_v45 }
 0x353   : > { %v2259_v22 = vpop.f32.mrf.mxu3 }
 0x354   : > { %v2705_v20 = vpop.f32.mrf.mxu1  ;;  %v2312_v6 = vadd.f32 %v2259_v22, %v8249_v43 }
 0x356   : > { %v2566_v51 = vadd.f32 %v2513_v8, %v2312_v6 }
 0x358   : > { %v2756_v12 = vadd.f32 %v2703_v4, %v2566_v51  ;;  %v3222_v51 = vld [vmem:[#allocation2 + $0x80] sm:$0xff] }
 0x359   : > { %v2518_v59 = vpop.f32.mrf.mxu0  ;;  %v2959_v24 = vpop.f32.mrf.mxu2 }
 0x35a   : > { %v8491_v16 = vadd.f32 %v2957_v55, %v2756_v12 }
 0x35b   : > { %v2261_v34 = vpop.f32.mrf.mxu3 }
 0x35c   : > { %v2708_v32 = vpop.f32.mrf.mxu1  ;;  %6965 = vmatmul.msk.bf16.gmra.mxu0 %vm300_vm1, %v3282_v37  ;;  %v2313_v43 = vadd.f32 %v2261_v34, %v8261_v31 }
 0x35e   : > { %v2567_v8 = vadd.f32 %v2515_v56, %v2313_v43  ;;  %6999 = vmatmul.msk.bf16.gmra.mxu2 %vm300_vm1, %v3726_v62  ;;  %v3283_v56 = vpack.c.bf16 %v3222_v51, %v3221_v1  ;;  %v3223_v51 = vld [vmem:[#allocation2 + $0x90] sm:$0xff] }
 0x35f   : > { %6982 = vmatmul.msk.bf16.gmra.mxu1 %vm300_vm1, %v8268_v36  ;;  %v3667_v36 = vld [vmem:[#allocation2 + $0x81] sm:$0xff] }
 0x360   : > { %6948 = vmatmul.msk.bf16.gmra.mxu3 %vm300_vm1, %v8495_v28  ;;  %v2757_v4 = vadd.f32 %v2705_v20, %v2567_v8  ;;  %v3727_v34 = vpack.c.bf16 %v3667_v36, %v3666_v40  ;;  %v8509_v8 = vpack.c.bf16 %v2809_v38, %v2808_v0  ;;  %v3668_v36 = vld [vmem:[#allocation2 + $0x91] sm:$0xff] }
 0x361   : > { %v2520_v45 = vpop.f32.mrf.mxu0  ;;  %v2962_v55 = vpop.f32.mrf.mxu2  ;;  %v2810_v0 = vld [vmem:[#allocation3 + $0x7a] sm:$0xff]  ;;  %v2811_v38 = vld [vmem:[#allocation3 + $0x82] sm:$0xff] }
 0x362   : > { %v8502_v22 = vadd.f32 %v2959_v24, %v2757_v4 }
 0x363   : > { %v2264_v14 = vpop.f32.mrf.mxu3 }
 0x364   : > { %v2710_v6 = vpop.f32.mrf.mxu1  ;;  %v2314_v31 = vadd.f32 %v2264_v14, %v8264_v60 }
 0x366   : > { %v2568_v63 = vadd.f32 %v2518_v59, %v2314_v31 }
 0x368   : > { %v2758_v37 = vadd.f32 %v2708_v32, %v2568_v63  ;;  %v3224_v63 = vld [vmem:[#allocation2 + $0x98] sm:$0xff] }
 0x369   : > { %v2523_v12 = vpop.f32.mrf.mxu0  ;;  %v2964_v62 = vpop.f32.mrf.mxu2 }
 0x36a   : > { %v8505_v20 = vadd.f32 %v2962_v55, %v2758_v37 }
 0x36b   : > { %v2266_v43 = vpop.f32.mrf.mxu3 }
 0x36c   : > { %v2713_v24 = vpop.f32.mrf.mxu1  ;;  %6966 = vmatmul.msk.bf16.gmra.mxu0 %vm300_vm1, %v3283_v56  ;;  %v2315_v60 = vadd.f32 %v2266_v43, %v8276_v23 }
 0x36e   : > { %v2569_v59 = vadd.f32 %v2520_v45, %v2315_v60  ;;  %7000 = vmatmul.msk.bf16.gmra.mxu2 %vm300_vm1, %v3727_v34  ;;  %v3284_v45 = vpack.c.bf16 %v3224_v63, %v3223_v51  ;;  %v3225_v63 = vld [vmem:[#allocation2 + $0xa8] sm:$0xff] }
 0x36f   : > { %6983 = vmatmul.msk.bf16.gmra.mxu1 %vm300_vm1, %v8283_v50  ;;  %v3669_v50 = vld [vmem:[#allocation2 + $0x99] sm:$0xff] }
 0x370   : > { %6949 = vmatmul.msk.bf16.gmra.mxu3 %vm300_vm1, %v8509_v8  ;;  %v2759_v32 = vadd.f32 %v2710_v6, %v2569_v59  ;;  %v3728_v43 = vpack.c.bf16 %v3669_v50, %v3668_v36  ;;  %v8523_v59 = vpack.c.bf16 %v2811_v38, %v2810_v0  ;;  %v3670_v50 = vld [vmem:[#allocation2 + $0xa9] sm:$0xff] }
 0x371   : > { %v2525_v4 = vpop.f32.mrf.mxu0  ;;  %v2967_v55 = vpop.f32.mrf.mxu2  ;;  %v2812_v0 = vld [vmem:[#allocation3 + $0x92] sm:$0xff]  ;;  %v2813_v38 = vld [vmem:[#allocation3 + $0x9a] sm:$0xff] }
 0x372   : > { %v8516_v14 = vadd.f32 %v2964_v62, %v2759_v32 }
 0x373   : > { %v2269_v1 = vpop.f32.mrf.mxu3 }
 0x374   : > { %v2715_v31 = vpop.f32.mrf.mxu1  ;;  %v2316_v23 = vadd.f32 %v2269_v1, %v8279_v9 }
 0x376   : > { %v2570_v40 = vadd.f32 %v2523_v12, %v2316_v23 }
 0x378   : > { %v2760_v56 = vadd.f32 %v2713_v24, %v2570_v40  ;;  %v3226_v40 = vld [vmem:[#allocation2 + $0xb0] sm:$0xff] }
 0x379   : > { %v2528_v37 = vpop.f32.mrf.mxu0  ;;  %v2969_v34 = vpop.f32.mrf.mxu2 }
 0x37a   : > { %v8519_v6 = vadd.f32 %v2967_v55, %v2760_v56 }
 0x37b   : > { %v2271_v60 = vpop.f32.mrf.mxu3 }
 0x37c   : > { %v2718_v62 = vpop.f32.mrf.mxu1  ;;  %6967 = vmatmul.msk.bf16.gmra.mxu0 %vm300_vm1, %v3284_v45  ;;  %v2317_v9 = vadd.f32 %v2271_v60, %v8291_v46 }
 0x37e   : > { %v2571_v12 = vadd.f32 %v2525_v4, %v2317_v9  ;;  %7001 = vmatmul.msk.bf16.gmra.mxu2 %vm300_vm1, %v3728_v43  ;;  %v3285_v4 = vpack.c.bf16 %v3226_v40, %v3225_v63  ;;  %v3227_v40 = vld [vmem:[#allocation2 + $0xc0] sm:$0xff] }
 0x37f   : > { %6984 = vmatmul.msk.bf16.gmra.mxu1 %vm300_vm1, %v8298_v57  ;;  %v3671_v57 = vld [vmem:[#allocation2 + $0xb1] sm:$0xff] }
 0x380   : > { %6950 = vmatmul.msk.bf16.gmra.mxu3 %vm300_vm1, %v8523_v59  ;;  %v2761_v24 = vadd.f32 %v2715_v31, %v2571_v12  ;;  %v3729_v60 = vpack.c.bf16 %v3671_v57, %v3670_v50  ;;  %v8537_v12 = vpack.c.bf16 %v2813_v38, %v2812_v0  ;;  %v3672_v57 = vld [vmem:[#allocation2 + $0xc1] sm:$0xff] }
 0x381   : > { %v2530_v32 = vpop.f32.mrf.mxu0  ;;  %v2972_v55 = vpop.f32.mrf.mxu2  ;;  %v2814_v0 = vld [vmem:[#allocation3 + $0xaa] sm:$0xff]  ;;  %v2815_v38 = vld [vmem:[#allocation3 + $0xb2] sm:$0xff] }
 0x382   : > { %v8530_v1 = vadd.f32 %v2969_v34, %v2761_v24 }
 0x383   : > { %v2274_v51 = vpop.f32.mrf.mxu3 }
 0x384   : > { %v2720_v23 = vpop.f32.mrf.mxu1  ;;  %v2318_v46 = vadd.f32 %v2274_v51, %v8294_v5 }
 0x386   : > { %v2572_v36 = vadd.f32 %v2528_v37, %v2318_v46 }
 0x388   : > { %v2762_v45 = vadd.f32 %v2718_v62, %v2572_v36  ;;  %v3228_v36 = vld [vmem:[#allocation2 + $0xc8] sm:$0xff] }
 0x389   : > { %v2533_v56 = vpop.f32.mrf.mxu0  ;;  %v2974_v43 = vpop.f32.mrf.mxu2 }
 0x38a   : > { %v8533_v31 = vadd.f32 %v2972_v55, %v2762_v45 }
 0x38b   : > { %v2276_v9 = vpop.f32.mrf.mxu3 }
 0x38c   : > { %v2723_v34 = vpop.f32.mrf.mxu1  ;;  %6968 = vmatmul.msk.bf16.gmra.mxu0 %vm300_vm1, %v3285_v4  ;;  %v2319_v5 = vadd.f32 %v2276_v9, %v8305_v54 }
 0x38e   : > { %v2573_v37 = vadd.f32 %v2530_v32, %v2319_v5  ;;  %7002 = vmatmul.msk.bf16.gmra.mxu2 %vm300_vm1, %v3729_v60  ;;  %v3286_v32 = vpack.c.bf16 %v3228_v36, %v3227_v40  ;;  %v9801_v36 = vld [vmem:[#allocation5_spill] sm:$0xff] }
 0x38f   : > { %6985 = vmatmul.msk.bf16.gmra.mxu1 %vm300_vm1, %v8312_v52  ;;  %v3673_v52 = vld [vmem:[#allocation2 + $0xc9] sm:$0xff] }
 0x390   : > { %6951 = vmatmul.msk.bf16.gmra.mxu3 %vm300_vm1, %v8537_v12  ;;  %v2763_v62 = vadd.f32 %v2720_v23, %v2573_v37  ;;  %v3730_v9 = vpack.c.bf16 %v3673_v52, %v3672_v57  ;;  %v8551_v37 = vpack.c.bf16 %v2815_v38, %v2814_v0  ;;  %v3230_v57 = vld [vmem:[#allocation2 + $0xe0] sm:$0xff]  ;;  %v2816_v38 = vld [vmem:[#allocation3 + $0xc2] sm:$0xff] }
 0x391   : > { %v2535_v24 = vpop.f32.mrf.mxu0  ;;  %v2977_v55 = vpop.f32.mrf.mxu2 }
 0x392   : > { %v8544_v51 = vadd.f32 %v2974_v43, %v2763_v62 }
 0x393   : > { %v2279_v63 = vpop.f32.mrf.mxu3 }
 0x394   : > { %v2725_v46 = vpop.f32.mrf.mxu1  ;;  %v2320_v54 = vadd.f32 %v2279_v63, %v8308_v33 }
 0x396   : > { %v2574_v50 = vadd.f32 %v2533_v56, %v2320_v54 }
 0x398   : > { %v2764_v4 = vadd.f32 %v2723_v34, %v2574_v50  ;;  %v3229_v50 = vld [vmem:[#allocation2 + $0xd8] sm:$0xff] }
 0x399   : > { %v2538_v45 = vpop.f32.mrf.mxu0  ;;  %v2979_v60 = vpop.f32.mrf.mxu2 }
 0x39a   : > { %v8547_v23 = vadd.f32 %v2977_v55, %v2764_v4 }
 0x39b   : > { %v2281_v5 = vpop.f32.mrf.mxu3 }
 0x39c   : > { %v2728_v43 = vpop.f32.mrf.mxu1  ;;  %6969 = vmatmul.msk.bf16.gmra.mxu0 %vm300_vm1, %v3286_v32  ;;  %v2321_v33 = vadd.f32 %v2281_v5, %v8319_v2  ;;  %v3674_v32 = vld [vmem:[#allocation2 + $0xd9] sm:$0xff] }
 0x39e   : > { %v2575_v56 = vadd.f32 %v2535_v24, %v2321_v33  ;;  %7003 = vmatmul.msk.bf16.gmra.mxu2 %vm300_vm1, %v3730_v9  ;;  %v3287_v24 = vpack.c.bf16 %v3230_v57, %v3229_v50  ;;  %v2817_v9 = vld [vmem:[#allocation3 + $0xca] sm:$0xff] }
 0x39f   : > { %6986 = vmatmul.msk.bf16.gmra.mxu1 %vm300_vm1, %v8326_v11  ;;  %v3675_v11 = vld [vmem:[#allocation2 + $0xe1] sm:$0xff] }
 0x3a0   : > { %6952 = vmatmul.msk.bf16.gmra.mxu3 %vm300_vm1, %v8551_v37  ;;  %v2765_v34 = vadd.f32 %v2725_v46, %v2575_v56  ;;  %v3731_v33 = vpack.c.bf16 %v3675_v11, %v3674_v32  ;;  %v7064_v32 = vld [vmem:[%s9749_s5 + $0x2] sm:$0x3] }
 0x3a1   : > { %v2540_v62 = vpop.f32.mrf.mxu0  ;;  %v2982_v55 = vpop.f32.mrf.mxu2 }
 0x3a2   : > { %v8558_v63 = vadd.f32 %v2979_v60, %v2765_v34  ;;  %v9803_v34 = vld [vmem:[#allocation6_spill] sm:$0xff] }
 0x3a3   : > { %v2284_v40 = vpop.f32.mrf.mxu3 }
 0x3a4   : > { %v2730_v54 = vpop.f32.mrf.mxu1  ;;  %v2322_v2 = vadd.f32 %v2284_v40, %v9801_v36  ;;  %v8565_v36 = vpack.c.bf16 %v2817_v9, %v2816_v38  ;;  %v3676_v38 = vld [vmem:[#allocation2 + $0xf1] sm:$0xff] }
 0x3a6   : > { %v2576_v52 = vadd.f32 %v2538_v45, %v2322_v2 }
 0x3a8   : > { %v2766_v4 = vadd.f32 %v2728_v43, %v2576_v52 }
 0x3a9   : > { %v2543_v0 = vpop.f32.mrf.mxu0  ;;  %v2984_v5 = vpop.f32.mrf.mxu2 }
 0x3aa   : > { %v8561_v46 = vadd.f32 %v2982_v55, %v2766_v4 }
 0x3ab   : > { %v2286_v56 = vpop.f32.mrf.mxu3 }
 0x3ac   : > { %9802 = vst [vmem:[#allocation10_spill] sm:$0xff] %v8561_v46  ;;  %v2733_v60 = vpop.f32.mrf.mxu1  ;;  %6970 = vmatmul.msk.bf16.gmra.mxu0 %vm300_vm1, %v3287_v24  ;;  %v2323_v40 = vadd.f32 %v2286_v56, %v9803_v34  ;;  %v3232_v24 = vld [vmem:[#allocation2 + $0xf8] sm:$0xff]  ;;  %v2818_v56 = vld [vmem:[#allocation3 + $0xda] sm:$0xff] }
 0x3ad   : > { %v2819_v34 = vld [vmem:[#allocation3 + $0xe2] sm:$0xff] }
 0x3ae   : > { %v2577_v45 = vadd.f32 %v2540_v62, %v2323_v40  ;;  %7004 = vmatmul.msk.bf16.gmra.mxu2 %vm300_vm1, %v3731_v33  ;;  %v3231_v62 = vld [vmem:[#allocation2 + $0xf0] sm:$0xff] }
 0x3af   : > { %6987 = vmatmul.msk.bf16.gmra.mxu1 %vm300_vm1, %v8344_v10  ;;  %v4796_v10 = vsel %vm761_vm0, %v7064_v32, 0  ;;  %v3288_v9 = vpack.c.bf16 %v3232_v24, %v3231_v62  ;;  %v3234_v24 = vld [vmem:[#allocation2 + $0x110] sm:$0xff] }
 0x3b0   : > { %6953 = vmatmul.msk.bf16.gmra.mxu3 %vm300_vm1, %v8565_v36  ;;  %v2767_v43 = vadd.f32 %v2730_v54, %v2577_v45  ;;  %4805 = vmatpush.bf16.msra.mxu2 %v4796_v10  ;;  %v3677_v54 = vld [vmem:[#allocation2 + $0xf9] sm:$0xff] }
 0x3b1   : > { %v2545_v55 = vpop.f32.mrf.mxu0  ;;  %v2987_v2 = vpop.f32.mrf.mxu2 }
 0x3b2   : > { %v8572_v50 = vadd.f32 %v2984_v5, %v2767_v43  ;;  %v3732_v43 = vpack.c.bf16 %v3677_v54, %v3676_v38  ;;  %v3678_v38 = vld [vmem:[#allocation2 + $0x109] sm:$0xff] }
 0x3b3   : > { %v2289_v52 = vpop.f32.mrf.mxu3 }
 0x3b4   : > { %9804 = vst [vmem:[#allocation11_spill] sm:$0xff] %v8572_v50  ;;  %v2735_v57 = vpop.f32.mrf.mxu1  ;;  %v2324_v11 = vadd.f32 %v2289_v52, %v8340_v61  ;;  %v8583_v52 = vpack.c.bf16 %v2819_v34, %v2818_v56  ;;  %v2821_v56 = vld [vmem:[#allocation3 + $0xfa] sm:$0xff] }
 0x3b6   : > { %v2578_v4 = vadd.f32 %v2543_v0, %v2324_v11 }
 0x3b8   : > { %v2768_v33 = vadd.f32 %v2733_v60, %v2578_v4 }
 0x3b9   : > { %v3358_v5 = vpop.f32.mrf.mxu0  ;;  %v2989_v40 = vpop.f32.mrf.mxu2 }
 0x3ba   : > { %v8579_v45 = vadd.f32 %v2987_v2, %v2768_v33  ;;  %v2820_v33 = vld [vmem:[#allocation3 + $0xf2] sm:$0xff] }
 0x3bb   : > { %v2291_v46 = vpop.f32.mrf.mxu3 }
 0x3bc   : > { %v3548_v50 = vpop.f32.mrf.mxu1  ;;  %6971 = vmatmul.msk.bf16.gmra.mxu0 %vm300_vm1, %v3288_v9  ;;  %v2325_v61 = vadd.f32 %v2291_v46, %v8351_v21  ;;  %v3233_v46 = vld [vmem:[#allocation2 + $0x108] sm:$0xff] }
 0x3be   : > { %v2579_v0 = vadd.f32 %v2545_v55, %v2325_v61  ;;  %7005 = vmatmul.msk.bf16.gmra.mxu2 %vm300_vm1, %v3732_v43  ;;  %v3289_v55 = vpack.c.bf16 %v3234_v24, %v3233_v46  ;;  %v3235_v24 = vld [vmem:[#allocation2 + $0x120] sm:$0xff] }
 0x3bf   : > { %6988 = vmatmul.msk.bf16.gmra.mxu1 %vm300_vm1, %v8358_v47  ;;  %v3679_v47 = vld [vmem:[#allocation2 + $0x111] sm:$0xff] }
 0x3c0   : > { %6954 = vmatmul.msk.bf16.gmra.mxu3 %vm300_vm1, %v8583_v52  ;;  %v2769_v60 = vadd.f32 %v2735_v57, %v2579_v0  ;;  %v3733_v43 = vpack.c.bf16 %v3679_v47, %v3678_v38  ;;  %v8597_v0 = vpack.c.bf16 %v2821_v56, %v2820_v33  ;;  %v3680_v47 = vld [vmem:[#allocation2 + $0x121] sm:$0xff] }
 0x3c1   : > { %v3360_v2 = vpop.f32.mrf.mxu0  ;;  %v3802_v32 = vpop.f32.mrf.mxu2  ;;  %v2822_v33 = vld [vmem:[#allocation3 + $0x10a] sm:$0xff]  ;;  %v2823_v56 = vld [vmem:[#allocation3 + $0x112] sm:$0xff] }
 0x3c2   : > { %v8590_v11 = vadd.f32 %v2989_v40, %v2769_v60 }
 0x3c3   : > { %v3102_v62 = vpop.f32.mrf.mxu3 }
 0x3c4   : > { %v3550_v10 = vpop.f32.mrf.mxu1  ;;  %v3182_v21 = vadd.f32 %v3102_v62, %v8354_v44 }
 0x3c6   : > { %v3438_v4 = vadd.f32 %v3358_v5, %v3182_v21 }
 0x3c8   : > { %v3628_v54 = vadd.f32 %v3548_v50, %v3438_v4  ;;  %v3236_v4 = vld [vmem:[#allocation2 + $0x128] sm:$0xff] }
 0x3c9   : > { %v3363_v9 = vpop.f32.mrf.mxu0  ;;  %v3804_v34 = vpop.f32.mrf.mxu2 }
 0x3ca   : > { %v8593_v57 = vadd.f32 %v3802_v32, %v3628_v54 }
 0x3cb   : > { %v3104_v61 = vpop.f32.mrf.mxu3 }
 0x3cc   : > { %v3553_v40 = vpop.f32.mrf.mxu1  ;;  %6972 = vmatmul.msk.bf16.gmra.mxu0 %vm300_vm1, %v3289_v55  ;;  %v3183_v44 = vadd.f32 %v3104_v61, %v8365_v17 }
 0x3ce   : > { %v3439_v5 = vadd.f32 %v3360_v2, %v3183_v44  ;;  %7006 = vmatmul.msk.bf16.gmra.mxu2 %vm300_vm1, %v3733_v43  ;;  %v3290_v2 = vpack.c.bf16 %v3236_v4, %v3235_v24  ;;  %v3237_v4 = vld [vmem:[#allocation2 + $0x138] sm:$0xff] }
 0x3cf   : > { %6989 = vmatmul.msk.bf16.gmra.mxu1 %vm300_vm1, %v8372_v7  ;;  %v3681_v7 = vld [vmem:[#allocation2 + $0x129] sm:$0xff] }
 0x3d0   : > { %6955 = vmatmul.msk.bf16.gmra.mxu3 %vm300_vm1, %v8597_v0  ;;  %v3629_v50 = vadd.f32 %v3550_v10, %v3439_v5  ;;  %v3734_v61 = vpack.c.bf16 %v3681_v7, %v3680_v47  ;;  %v8611_v5 = vpack.c.bf16 %v2823_v56, %v2822_v33  ;;  %v3682_v7 = vld [vmem:[#allocation2 + $0x139] sm:$0xff] }
 0x3d1   : > { %v3365_v60 = vpop.f32.mrf.mxu0  ;;  %v3807_v32 = vpop.f32.mrf.mxu2  ;;  %v2824_v33 = vld [vmem:[#allocation3 + $0x122] sm:$0xff]  ;;  %v2825_v56 = vld [vmem:[#allocation3 + $0x12a] sm:$0xff] }
 0x3d2   : > { %v8604_v62 = vadd.f32 %v3804_v34, %v3629_v50 }
 0x3d3   : > { %v3107_v46 = vpop.f32.mrf.mxu3 }
 0x3d4   : > { %v3555_v21 = vpop.f32.mrf.mxu1  ;;  %v3184_v17 = vadd.f32 %v3107_v46, %v8368_v53 }
 0x3d6   : > { %v3440_v38 = vadd.f32 %v3363_v9, %v3184_v17 }
 0x3d8   : > { %v3630_v55 = vadd.f32 %v3553_v40, %v3440_v38  ;;  %v3238_v38 = vld [vmem:[#allocation2 + $0x140] sm:$0xff] }
 0x3d9   : > { %v3368_v54 = vpop.f32.mrf.mxu0  ;;  %v3809_v43 = vpop.f32.mrf.mxu2 }
 0x3da   : > { %v8607_v10 = vadd.f32 %v3807_v32, %v3630_v55 }
 0x3db   : > { %v3109_v44 = vpop.f32.mrf.mxu3 }
 0x3dc   : > { %v3558_v34 = vpop.f32.mrf.mxu1  ;;  %6973 = vmatmul.msk.bf16.gmra.mxu0 %vm300_vm1, %v3290_v2  ;;  %v3185_v53 = vadd.f32 %v3109_v44, %v8379_v26 }
 0x3de   : > { %v3441_v9 = vadd.f32 %v3365_v60, %v3185_v53  ;;  %7007 = vmatmul.msk.bf16.gmra.mxu2 %vm300_vm1, %v3734_v61  ;;  %v3291_v60 = vpack.c.bf16 %v3238_v38, %v3237_v4 }
 0x3df   : > { %6990 = vmatmul.msk.bf16.gmra.mxu1 %vm300_vm1, %v8386_v29  ;;  %v3683_v29 = vld [vmem:[#allocation2 + $0x141] sm:$0xff] }
 0x3e0   : > { %6956 = vmatmul.msk.bf16.gmra.mxu3 %vm300_vm1, %v8611_v5  ;;  %v3631_v40 = vadd.f32 %v3555_v21, %v3441_v9  ;;  %v3735_v44 = vpack.c.bf16 %v3683_v29, %v3682_v7  ;;  %v8625_v9 = vpack.c.bf16 %v2825_v56, %v2824_v33  ;;  %v3239_v7 = vld [vmem:[#allocation2 + $0x150] sm:$0xff]  ;;  %v3240_v29 = vld [vmem:[#allocation2 + $0x158] sm:$0xff] }
 0x3e1   : > { %v3370_v50 = vpop.f32.mrf.mxu0  ;;  %v3812_v32 = vpop.f32.mrf.mxu2  ;;  %v3685_v33 = vld [vmem:[#allocation2 + $0x159] sm:$0xff] }
 0x3e2   : > { %v8618_v46 = vadd.f32 %v3809_v43, %v3631_v40 }
 0x3e3   : > { %v3112_v24 = vpop.f32.mrf.mxu3 }
 0x3e4   : > { %v3560_v17 = vpop.f32.mrf.mxu1  ;;  %v3186_v26 = vadd.f32 %v3112_v24, %v8382_v25 }
 0x3e6   : > { %v3442_v47 = vadd.f32 %v3368_v54, %v3186_v26  ;;  %v9805_v54 = vld [vmem:[#allocation7_spill] sm:$0xff] }
 0x3e8   : > { %v3632_v2 = vadd.f32 %v3558_v34, %v3442_v47  ;;  %v9807_v47 = vld [vmem:[#allocation9_spill] sm:$0xff] }
 0x3e9   : > { %v3373_v55 = vpop.f32.mrf.mxu0  ;;  %v3814_v61 = vpop.f32.mrf.mxu2 }
 0x3ea   : > { %v8621_v21 = vadd.f32 %v3812_v32, %v3632_v2  ;;  %v3684_v2 = vld [vmem:[#allocation2 + $0x151] sm:$0xff] }
 0x3eb   : > { %v3114_v53 = vpop.f32.mrf.mxu3 }
 0x3ec   : > { %v3563_v43 = vpop.f32.mrf.mxu1  ;;  %6974 = vmatmul.msk.bf16.gmra.mxu0 %vm300_vm1, %v3291_v60  ;;  %v3187_v25 = vadd.f32 %v3114_v53, %v8393_v27  ;;  %v2826_v53 = vld [vmem:[#allocation3 + $0x13a] sm:$0xff] }
 0x3ee   : > { %v3443_v40 = vadd.f32 %v3370_v50, %v3187_v25  ;;  %7008 = vmatmul.msk.bf16.gmra.mxu2 %vm300_vm1, %v3735_v44  ;;  %v3292_v50 = vpack.c.bf16 %v3240_v29, %v3239_v7  ;;  %v2827_v25 = vld [vmem:[#allocation3 + $0x142] sm:$0xff] }
 0x3ef   : > { %6991 = vmatmul.msk.bf16.gmra.mxu1 %vm300_vm1, %v9805_v54 }
 0x3f0   : > { %6957 = vmatmul.msk.bf16.gmra.mxu3 %vm300_vm1, %v8625_v9  ;;  %v3633_v34 = vadd.f32 %v3560_v17, %v3443_v40  ;;  %v3736_v40 = vpack.c.bf16 %v3685_v33, %v3684_v2  ;;  %v3241_v2 = vld [vmem:[#allocation2 + $0x168] sm:$0xff]  ;;  %v3242_v33 = vld [vmem:[#allocation2 + $0x170] sm:$0xff] }
 0x3f1   : > { %v3375_v32 = vpop.f32.mrf.mxu0  ;;  %v3817_v24 = vpop.f32.mrf.mxu2 }
 0x3f2   : > { %v8632_v26 = vadd.f32 %v3814_v61, %v3633_v34 }
 0x3f3   : > { %v3117_v38 = vpop.f32.mrf.mxu3 }
 0x3f4   : > { %9806 = vst [vmem:[#allocation13_spill] sm:$0xff] %v8632_v26  ;;  %v3565_v4 = vpop.f32.mrf.mxu1  ;;  %v3188_v27 = vadd.f32 %v3117_v38, %v9807_v47  ;;  %v9808_v26 = vld [vmem:[#allocation8_spill] sm:$0xff]  ;;  %v8639_v47 = vpack.c.bf16 %v2827_v25, %v2826_v53 }
 0x3f6   : > { %v3444_v60 = vadd.f32 %v3373_v55, %v3188_v27 }
 0x3f8   : > { %v3634_v56 = vadd.f32 %v3563_v43, %v3444_v60 }
 0x3f9   : > { %v3378_v44 = vpop.f32.mrf.mxu0  ;;  %v3819_v54 = vpop.f32.mrf.mxu2 }
 0x3fa   : > { %v8635_v17 = vadd.f32 %v3817_v24, %v3634_v56  ;;  %v3686_v56 = vld [vmem:[#allocation2 + $0x169] sm:$0xff] }
 0x3fb   : > { %v3119_v34 = vpop.f32.mrf.mxu3 }
 0x3fc   : > { %v3568_v61 = vpop.f32.mrf.mxu1  ;;  %6975 = vmatmul.msk.bf16.gmra.mxu0 %vm300_vm1, %v3292_v50  ;;  %v3189_v38 = vadd.f32 %v3119_v34, %v9808_v26  ;;  %v2829_v34 = vld [vmem:[#allocation3 + $0x15a] sm:$0xff] }
 0x3fe   : > { %v3445_v55 = vadd.f32 %v3375_v32, %v3189_v38  ;;  %7009 = vmatmul.msk.bf16.gmra.mxu2 %vm300_vm1, %v3736_v40  ;;  %v3293_v32 = vpack.c.bf16 %v3242_v33, %v3241_v2  ;;  %v2828_v40 = vld [vmem:[#allocation3 + $0x152] sm:$0xff] }
 0x3ff   : > { %6992 = vmatmul.msk.bf16.gmra.mxu1 %vm300_vm1, %v8417_v42  ;;  %v3687_v42 = vld [vmem:[#allocation2 + $0x171] sm:$0xff] }
 0x400   : > { %6958 = vmatmul.msk.bf16.gmra.mxu3 %vm300_vm1, %v8639_v47  ;;  %v3635_v43 = vadd.f32 %v3565_v4, %v3445_v55 }
 0x401   : > { %v3380_v24 = vpop.f32.mrf.mxu0  ;;  %v3822_v27 = vpop.f32.mrf.mxu2 }
 0x402   : > { %v8646_v7 = vadd.f32 %v3819_v54, %v3635_v43  ;;  %v3737_v54 = vpack.c.bf16 %v3687_v42, %v3686_v56  ;;  %v3244_v56 = vld [vmem:[#allocation2 + $0x188] sm:$0xff] }
 0x403   : > { %v3122_v60 = vpop.f32.mrf.mxu3 }
 0x404   : > { %v3570_v29 = vpop.f32.mrf.mxu1  ;;  %v3190_v26 = vadd.f32 %v3122_v60, %v8413_v13  ;;  %v8655_v60 = vpack.c.bf16 %v2829_v34, %v2828_v40  ;;  %v2830_v34 = vld [vmem:[#allocation3 + $0x16a] sm:$0xff] }
 0x406   : > { %v3446_v50 = vadd.f32 %v3378_v44, %v3190_v26 }
 0x408   : > { %v3636_v53 = vadd.f32 %v3568_v61, %v3446_v50 }
 0x409   : > { %v3383_v25 = vpop.f32.mrf.mxu0  ;;  %v8649_v38 = vpop.f32.mrf.mxu2 }
 0x40a   : > { %9809 = vst [vmem:[#allocation14_spill] sm:$0xff] %v8649_v38  ;;  %v8651_v4 = vadd.f32 %v3822_v27, %v3636_v53  ;;  %v3689_v53 = vld [vmem:[#allocation2 + $0x189] sm:$0xff] }
 0x40b   : > { %v3124_v43 = vpop.f32.mrf.mxu3 }
 0x40c   : > { %v3573_v55 = vpop.f32.mrf.mxu1  ;;  %6976 = vmatmul.msk.bf16.gmra.mxu0 %vm300_vm1, %v3293_v32  ;;  %v3191_v13 = vadd.f32 %v3124_v43, %v8424_v15  ;;  %v3243_v15 = vld [vmem:[#allocation2 + $0x180] sm:$0xff] }
 0x40d   : > { %v3688_v32 = vld [vmem:[#allocation2 + $0x181] sm:$0xff] }
 0x40e   : > { %v3447_v44 = vadd.f32 %v3380_v24, %v3191_v13  ;;  %7010 = vmatmul.msk.bf16.gmra.mxu2 %vm300_vm1, %v3737_v54  ;;  %v2831_v54 = vld [vmem:[#allocation3 + $0x172] sm:$0xff]  ;;  %v3738_v13 = vpack.c.bf16 %v3689_v53, %v3688_v32 }
 0x40f   : > { %6993 = vmatmul.msk.bf16.gmra.mxu1 %vm300_vm1, %v8431_v35  ;;  %v3294_v35 = vpack.c.bf16 %v3244_v56, %v3243_v15  ;;  %v3246_v32 = vld [vmem:[#allocation2 + $0x1a0] sm:$0xff] }
 0x410   : > { %6959 = vmatmul.msk.bf16.gmra.mxu3 %vm300_vm1, %v8655_v60  ;;  %v8662_v61 = vadd.f32 %v3570_v29, %v3447_v44 }
 0x411   : > { %v3385_v27 = vpop.f32.mrf.mxu0  ;;  %v3827_v26 = vpop.f32.mrf.mxu2 }
 0x412   : > { %9810 = vst [vmem:[#allocation15_spill] sm:$0xff] %v8662_v61  ;;  %v8671_v61 = vpack.c.bf16 %v2831_v54, %v2830_v34 }
 0x413   : > { %v3127_v33 = vpop.f32.mrf.mxu3 }
 0x414   : > { %v3575_v2 = vpop.f32.mrf.mxu1  ;;  %v3192_v50 = vadd.f32 %v3127_v33, %v8427_v49  ;;  %v9813_v49 = vld [vmem:[#allocation12_spill] sm:$0xff] }
 0x416   : > { %v3448_v42 = vadd.f32 %v3383_v25, %v3192_v50 }
 0x418   : > { %v3638_v24 = vadd.f32 %v3573_v55, %v3448_v42 }
 0x419   : > { %v3388_v40 = vpop.f32.mrf.mxu0  ;;  %v8665_v43 = vpop.f32.mrf.mxu2 }
 0x41a   : > { %9811 = vst [vmem:[#allocation5_spill] sm:$0xff] %v8665_v43  ;;  %v8667_v29 = vadd.f32 %v3827_v26, %v3638_v24  ;;  %v3279_v24 = vld [vmem:[#allocation3 + $0x1a0] sm:$0xff] }
 0x41b   : > { %v3129_v38 = vpop.f32.mrf.mxu3 }
 0x41c   : > { %9812 = vst [vmem:[#allocation6_spill] sm:$0xff] %v8667_v29  ;;  %v3578_v44 = vpop.f32.mrf.mxu1  ;;  %6977 = vmatmul.msk.bf16.gmra.mxu0 %vm300_vm1, %v3294_v35  ;;  %v3193_v33 = vadd.f32 %v3129_v38, %v9813_v49  ;;  %v3245_v38 = vld [vmem:[#allocation2 + $0x198] sm:$0xff]  ;;  %v3278_v35 = vld [vmem:[#allocation3 + $0x198] sm:$0xff] }
 0x41d   : > { %v3295_v34 = vpack.c.bf16 %v3246_v32, %v3245_v38  ;;  %v2832_v49 = vld [vmem:[#allocation3 + $0x182] sm:$0xff] }
 0x41e   : > { %v3449_v25 = vadd.f32 %v3385_v27, %v3193_v33  ;;  %7011 = vmatmul.msk.bf16.gmra.mxu2 %vm300_vm1, %v3738_v13  ;;  %v3691_v27 = vld [vmem:[#allocation2 + $0x1a1] sm:$0xff] }
 0x41f   : > { %6994 = vmatmul.msk.bf16.gmra.mxu1 %vm300_vm1, %v8449_v19  ;;  %v3690_v19 = vld [vmem:[#allocation2 + $0x199] sm:$0xff] }
 0x420   : > { %6960 = vmatmul.msk.bf16.gmra.mxu3 %vm300_vm1, %v8671_v61  ;;  %v8678_v55 = vadd.f32 %v3575_v2, %v3449_v25  ;;  %v2833_v33 = vld [vmem:[#allocation3 + $0x18a] sm:$0xff]  ;;  %v3485_v25 = vpack.c.bf16 %v3279_v24, %v3278_v35  ;;  %v4104_v24 = vld [vmem:[#allocation2 + $0x32] sm:$0xff] }
 0x421   : > { %v3390_v26 = vpop.f32.mrf.mxu0  ;;  %v3832_v50 = vpop.f32.mrf.mxu2 }
 0x422   : > { %9814 = vst [vmem:[#allocation7_spill] sm:$0xff] %v8678_v55  ;;  %v3739_v55 = vpack.c.bf16 %v3691_v27, %v3690_v19 }
 0x423   : > { %v3132_v56 = vpop.f32.mrf.mxu3 }
 0x424   : > { %v3580_v15 = vpop.f32.mrf.mxu1  ;;  %v3194_v42 = vadd.f32 %v3132_v56, %v8445_v18  ;;  %v8687_v56 = vpack.c.bf16 %v2833_v33, %v2832_v49  ;;  %v3693_v49 = vld [vmem:[#allocation3 + $0x39] sm:$0xff] }
 0x426   : > { %v3450_v53 = vadd.f32 %v3388_v40, %v3194_v42 }
 0x428   : > { %v3640_v54 = vadd.f32 %v3578_v44, %v3450_v53 }
 0x429   : > { %v3393_v13 = vpop.f32.mrf.mxu0  ;;  %v8681_v2 = vpop.f32.mrf.mxu2 }
 0x42a   : > { %v8683_v43 = vadd.f32 %v3832_v50, %v3640_v54 }
 0x42b   : > { %v3134_v18 = vpop.f32.mrf.mxu3 }
 0x42c   : > { %v3583_v29 = vpop.f32.mrf.mxu1  ;;  %6978 = vmatmul.msk.bf16.gmra.mxu0 %vm300_vm1, %v3295_v34  ;;  %v3195_v40 = vadd.f32 %v3134_v18, %v8463_v48  ;;  %v4105_v48 = vld [vmem:[#allocation2 + $0x3a] sm:$0xff] }
 0x42d   : > { %v4168_v27 = vpack.c.bf16 %v4105_v48, %v4104_v24  ;;  %v4106_v24 = vld [vmem:[#allocation2 + $0x4a] sm:$0xff]  ;;  %v4107_v48 = vld [vmem:[#allocation2 + $0x52] sm:$0xff] }
 0x42e   : > { %v3451_v44 = vadd.f32 %v3390_v26, %v3195_v40  ;;  %7012 = vmatmul.msk.bf16.gmra.mxu2 %vm300_vm1, %v3739_v55  ;;  %v3692_v26 = vld [vmem:[#allocation3 + $0x31] sm:$0xff] }
 0x42f   : > { %6995 = vmatmul.msk.bf16.gmra.mxu1 %vm300_vm1, %v3485_v25  ;;  %v3914_v40 = vpack.c.bf16 %v3693_v49, %v3692_v26  ;;  %v3694_v26 = vld [vmem:[#allocation3 + $0x49] sm:$0xff]  ;;  %v3695_v49 = vld [vmem:[#allocation3 + $0x51] sm:$0xff] }
 0x430   : > { %6961 = vmatmul.msk.bf16.gmra.mxu3 %vm300_vm1, %v8687_v56  ;;  %v8693_v42 = vadd.f32 %v3580_v15, %v3451_v44 }
 0x431   : > { %v3395_v50 = vpop.f32.mrf.mxu0  ;;  %v3837_v38 = vpop.f32.mrf.mxu2 }
 0x433   : > { %v3137_v53 = vpop.f32.mrf.mxu3 }
 0x434   : > { %v3585_v32 = vpop.f32.mrf.mxu1  ;;  %v3196_v35 = vadd.f32 %v3137_v53, %v8466_v41 }
 0x436   : > { %v3452_v19 = vadd.f32 %v3393_v13, %v3196_v35 }
 0x438   : > { %v3642_v34 = vadd.f32 %v3583_v29, %v3452_v19 }
 0x439   : > { %v3398_v54 = vpop.f32.mrf.mxu0  ;;  %v8696_v55 = vpop.f32.mrf.mxu2 }
 0x43a   : > { %v8698_v33 = vadd.f32 %v3837_v38, %v3642_v34 }
 0x43b   : > { %v3139_v25 = vpop.f32.mrf.mxu3 }
 0x43c   : > { %v3588_v15 = vpop.f32.mrf.mxu1  ;;  %7031 = vmatmul.msk.bf16.vlgmr.msra.gmra.mxu0 %vm300_vm1, %v4168_v27  ;;  %v3197_v18 = vadd.f32 %v3139_v25, %v8474_v39  ;;  %v4169_v27 = vpack.c.bf16 %v4107_v48, %v4106_v24  ;;  %v4108_v24 = vld [vmem:[#allocation2 + $0x62] sm:$0xff]  ;;  %v4109_v48 = vld [vmem:[#allocation2 + $0x6a] sm:$0xff] }
 0x43e   : > { %v3453_v41 = vadd.f32 %v3395_v50, %v3197_v18 }
 0x43f   : > { %7048 = vmatmul.msk.bf16.vlgmr.msra.gmra.mxu1 %vm300_vm1, %v8481_v30 }
 0x440   : > { %7014 = vmatmul.msk.bf16.vlgmr.msra.gmra.mxu3 %vm300_vm1, %v3914_v40  ;;  %v8705_v29 = vadd.f32 %v3585_v32, %v3453_v41  ;;  %v3915_v40 = vpack.c.bf16 %v3695_v49, %v3694_v26  ;;  %v3696_v26 = vld [vmem:[#allocation3 + $0x61] sm:$0xff]  ;;  %v3697_v49 = vld [vmem:[#allocation3 + $0x69] sm:$0xff] }
 0x441   : > { %v3400_v13 = vpop.f32.mrf.mxu0  ;;  %v3842_v44 = vpop.f32.mrf.mxu2 }
 0x443   : > { %v3142_v38 = vpop.f32.mrf.mxu3 }
 0x444   : > { %v3590_v53 = vpop.f32.mrf.mxu1  ;;  %v3198_v35 = vadd.f32 %v3142_v38, %v8477_v3 }
 0x446   : > { %v3454_v19 = vadd.f32 %v3398_v54, %v3198_v35 }
 0x448   : > { %v3644_v39 = vadd.f32 %v3588_v15, %v3454_v19 }
 0x449   : > { %v3403_v34 = vpop.f32.mrf.mxu0  ;;  %v8708_v30 = vpop.f32.mrf.mxu2 }
 0x44a   : > { %v8710_v50 = vadd.f32 %v3842_v44, %v3644_v39 }
 0x44b   : > { %v3144_v25 = vpop.f32.mrf.mxu3 }
 0x44c   : > { %v3593_v32 = vpop.f32.mrf.mxu1  ;;  %7032 = vmatmul.msk.bf16.gmra.mxu0 %vm300_vm1, %v4169_v27  ;;  %v3199_v18 = vadd.f32 %v3144_v25, %v8488_v58  ;;  %v4170_v27 = vpack.c.bf16 %v4109_v48, %v4108_v24  ;;  %v4110_v24 = vld [vmem:[#allocation2 + $0x7a] sm:$0xff]  ;;  %v4111_v48 = vld [vmem:[#allocation2 + $0x82] sm:$0xff] }
 0x44e   : > { %v3455_v3 = vadd.f32 %v3400_v13, %v3199_v18 }
 0x44f   : > { %7049 = vmatmul.msk.bf16.gmra.mxu1 %vm300_vm1, %v8495_v28 }
 0x450   : > { %7015 = vmatmul.msk.bf16.gmra.mxu3 %vm300_vm1, %v3915_v40  ;;  %v8717_v54 = vadd.f32 %v3590_v53, %v3455_v3  ;;  %v3916_v40 = vpack.c.bf16 %v3697_v49, %v3696_v26  ;;  %v3698_v26 = vld [vmem:[#allocation3 + $0x79] sm:$0xff]  ;;  %v3699_v49 = vld [vmem:[#allocation3 + $0x81] sm:$0xff] }
 0x451   : > { %v3405_v15 = vpop.f32.mrf.mxu0  ;;  %v3847_v41 = vpop.f32.mrf.mxu2 }
 0x453   : > { %v3147_v44 = vpop.f32.mrf.mxu3 }
 0x454   : > { %v3595_v38 = vpop.f32.mrf.mxu1  ;;  %v3200_v35 = vadd.f32 %v3147_v44, %v8491_v16 }
 0x456   : > { %v3456_v19 = vadd.f32 %v3403_v34, %v3200_v35 }
 0x458   : > { %v3646_v58 = vadd.f32 %v3593_v32, %v3456_v19 }
 0x459   : > { %v3408_v39 = vpop.f32.mrf.mxu0  ;;  %v8720_v28 = vpop.f32.mrf.mxu2 }
 0x45a   : > { %v8722_v13 = vadd.f32 %v3847_v41, %v3646_v58 }
 0x45b   : > { %v3149_v25 = vpop.f32.mrf.mxu3 }
 0x45c   : > { %v3598_v53 = vpop.f32.mrf.mxu1  ;;  %7033 = vmatmul.msk.bf16.gmra.mxu0 %vm300_vm1, %v4170_v27  ;;  %v3201_v18 = vadd.f32 %v3149_v25, %v8502_v22  ;;  %v4171_v27 = vpack.c.bf16 %v4111_v48, %v4110_v24  ;;  %v4112_v24 = vld [vmem:[#allocation2 + $0x92] sm:$0xff]  ;;  %v4113_v48 = vld [vmem:[#allocation2 + $0x9a] sm:$0xff] }
 0x45e   : > { %v3457_v16 = vadd.f32 %v3405_v15, %v3201_v18 }
 0x45f   : > { %7050 = vmatmul.msk.bf16.gmra.mxu1 %vm300_vm1, %v8509_v8 }
 0x460   : > { %7016 = vmatmul.msk.bf16.gmra.mxu3 %vm300_vm1, %v3916_v40  ;;  %v8729_v34 = vadd.f32 %v3595_v38, %v3457_v16  ;;  %v3917_v40 = vpack.c.bf16 %v3699_v49, %v3698_v26  ;;  %v3700_v26 = vld [vmem:[#allocation3 + $0x91] sm:$0xff]  ;;  %v3701_v49 = vld [vmem:[#allocation3 + $0x99] sm:$0xff] }
 0x461   : > { %v3410_v32 = vpop.f32.mrf.mxu0  ;;  %v3852_v3 = vpop.f32.mrf.mxu2 }
 0x463   : > { %v3152_v41 = vpop.f32.mrf.mxu3 }
 0x464   : > { %v3600_v44 = vpop.f32.mrf.mxu1  ;;  %v3202_v35 = vadd.f32 %v3152_v41, %v8505_v20 }
 0x466   : > { %v3458_v19 = vadd.f32 %v3408_v39, %v3202_v35 }
 0x468   : > { %v3648_v22 = vadd.f32 %v3598_v53, %v3458_v19 }
 0x469   : > { %v3413_v58 = vpop.f32.mrf.mxu0  ;;  %v8732_v8 = vpop.f32.mrf.mxu2 }
 0x46a   : > { %v8734_v15 = vadd.f32 %v3852_v3, %v3648_v22 }
 0x46b   : > { %v3154_v25 = vpop.f32.mrf.mxu3 }
 0x46c   : > { %v3603_v38 = vpop.f32.mrf.mxu1  ;;  %7034 = vmatmul.msk.bf16.gmra.mxu0 %vm300_vm1, %v4171_v27  ;;  %v3203_v18 = vadd.f32 %v3154_v25, %v8516_v14  ;;  %v4172_v27 = vpack.c.bf16 %v4113_v48, %v4112_v24  ;;  %v4114_v24 = vld [vmem:[#allocation2 + $0xaa] sm:$0xff]  ;;  %v4115_v48 = vld [vmem:[#allocation2 + $0xb2] sm:$0xff] }
 0x46e   : > { %v3459_v20 = vadd.f32 %v3410_v32, %v3203_v18 }
 0x46f   : > { %7051 = vmatmul.msk.bf16.gmra.mxu1 %vm300_vm1, %v8523_v59 }
 0x470   : > { %7017 = vmatmul.msk.bf16.gmra.mxu3 %vm300_vm1, %v3917_v40  ;;  %v8741_v39 = vadd.f32 %v3600_v44, %v3459_v20  ;;  %v3918_v40 = vpack.c.bf16 %v3701_v49, %v3700_v26  ;;  %v3702_v26 = vld [vmem:[#allocation3 + $0xa9] sm:$0xff]  ;;  %v3703_v49 = vld [vmem:[#allocation3 + $0xb1] sm:$0xff] }
 0x471   : > { %v3415_v53 = vpop.f32.mrf.mxu0  ;;  %v3857_v16 = vpop.f32.mrf.mxu2 }
 0x473   : > { %v3157_v3 = vpop.f32.mrf.mxu3 }
 0x474   : > { %v3605_v41 = vpop.f32.mrf.mxu1  ;;  %v3204_v35 = vadd.f32 %v3157_v3, %v8519_v6 }
 0x476   : > { %v3460_v19 = vadd.f32 %v3413_v58, %v3204_v35 }
 0x478   : > { %v3650_v14 = vadd.f32 %v3603_v38, %v3460_v19 }
 0x479   : > { %v3418_v22 = vpop.f32.mrf.mxu0  ;;  %v8744_v59 = vpop.f32.mrf.mxu2 }
 0x47a   : > { %v8746_v32 = vadd.f32 %v3857_v16, %v3650_v14 }
 0x47b   : > { %v3159_v25 = vpop.f32.mrf.mxu3 }
 0x47c   : > { %v3608_v44 = vpop.f32.mrf.mxu1  ;;  %7035 = vmatmul.msk.bf16.gmra.mxu0 %vm300_vm1, %v4172_v27  ;;  %v3205_v18 = vadd.f32 %v3159_v25, %v8530_v1  ;;  %v4173_v27 = vpack.c.bf16 %v4115_v48, %v4114_v24  ;;  %v4116_v24 = vld [vmem:[#allocation2 + $0xc2] sm:$0xff]  ;;  %v4117_v48 = vld [vmem:[#allocation2 + $0xca] sm:$0xff] }
 0x47e   : > { %v3461_v6 = vadd.f32 %v3415_v53, %v3205_v18 }
 0x47f   : > { %7052 = vmatmul.msk.bf16.gmra.mxu1 %vm300_vm1, %v8537_v12 }
 0x480   : > { %7018 = vmatmul.msk.bf16.gmra.mxu3 %vm300_vm1, %v3918_v40  ;;  %v8753_v58 = vadd.f32 %v3605_v41, %v3461_v6  ;;  %v3919_v40 = vpack.c.bf16 %v3703_v49, %v3702_v26  ;;  %v3704_v26 = vld [vmem:[#allocation3 + $0xc1] sm:$0xff]  ;;  %v3705_v49 = vld [vmem:[#allocation3 + $0xc9] sm:$0xff] }
 0x481   : > { %v3420_v38 = vpop.f32.mrf.mxu0  ;;  %v3862_v20 = vpop.f32.mrf.mxu2 }
 0x483   : > { %v3162_v16 = vpop.f32.mrf.mxu3 }
 0x484   : > { %v3610_v3 = vpop.f32.mrf.mxu1  ;;  %v3206_v35 = vadd.f32 %v3162_v16, %v8533_v31 }
 0x486   : > { %v3462_v19 = vadd.f32 %v3418_v22, %v3206_v35 }
 0x488   : > { %v3652_v1 = vadd.f32 %v3608_v44, %v3462_v19 }
 0x489   : > { %v3423_v14 = vpop.f32.mrf.mxu0  ;;  %v8756_v12 = vpop.f32.mrf.mxu2 }
 0x48a   : > { %v8758_v53 = vadd.f32 %v3862_v20, %v3652_v1 }
 0x48b   : > { %v3164_v25 = vpop.f32.mrf.mxu3 }
 0x48c   : > { %v3613_v41 = vpop.f32.mrf.mxu1  ;;  %7036 = vmatmul.msk.bf16.gmra.mxu0 %vm300_vm1, %v4173_v27  ;;  %v3207_v18 = vadd.f32 %v3164_v25, %v8544_v51  ;;  %v4174_v27 = vpack.c.bf16 %v4117_v48, %v4116_v24  ;;  %v4118_v48 = vld [vmem:[#allocation2 + $0xda] sm:$0xff] }
 0x48e   : > { %v3463_v31 = vadd.f32 %v3420_v38, %v3207_v18 }
 0x48f   : > { %7053 = vmatmul.msk.bf16.gmra.mxu1 %vm300_vm1, %v8551_v37 }
 0x490   : > { %7019 = vmatmul.msk.bf16.gmra.mxu3 %vm300_vm1, %v3919_v40  ;;  %v8765_v22 = vadd.f32 %v3610_v3, %v3463_v31  ;;  %v3920_v40 = vpack.c.bf16 %v3705_v49, %v3704_v26  ;;  %v3706_v49 = vld [vmem:[#allocation3 + $0xd9] sm:$0xff] }
 0x491   : > { %v3425_v44 = vpop.f32.mrf.mxu0  ;;  %v3867_v6 = vpop.f32.mrf.mxu2 }
 0x493   : > { %v3167_v20 = vpop.f32.mrf.mxu3 }
 0x494   : > { %v3615_v16 = vpop.f32.mrf.mxu1  ;;  %v3208_v35 = vadd.f32 %v3167_v20, %v8547_v23 }
 0x496   : > { %v3464_v19 = vadd.f32 %v3423_v14, %v3208_v35  ;;  %v9817_v35 = vld [vmem:[#allocation10_spill] sm:$0xff] }
 0x498   : > { %v3654_v51 = vadd.f32 %v3613_v41, %v3464_v19  ;;  %v4119_v19 = vld [vmem:[#allocation2 + $0xe2] sm:$0xff] }
 0x499   : > { %v3428_v1 = vpop.f32.mrf.mxu0  ;;  %v8768_v37 = vpop.f32.mrf.mxu2 }
 0x49a   : > { %9815 = vst [vmem:[#allocation9_spill] sm:$0xff] %v8768_v37  ;;  %v8770_v38 = vadd.f32 %v3867_v6, %v3654_v51  ;;  %v4175_v51 = vpack.c.bf16 %v4119_v19, %v4118_v48 }
 0x49b   : > { %v3169_v25 = vpop.f32.mrf.mxu3 }
 0x49c   : > { %v3618_v3 = vpop.f32.mrf.mxu1  ;;  %7037 = vmatmul.msk.bf16.gmra.mxu0 %vm300_vm1, %v4174_v27  ;;  %v3209_v18 = vadd.f32 %v3169_v25, %v8558_v63  ;;  %v3707_v25 = vld [vmem:[#allocation3 + $0xe1] sm:$0xff] }
 0x49d   : > { %v3921_v37 = vpack.c.bf16 %v3707_v25, %v3706_v49  ;;  %v7097_v49 = vld [vmem:[%s9749_s5 + $0x4] sm:$0x3] }
 0x49e   : > { %v3465_v23 = vadd.f32 %v3425_v44, %v3209_v18  ;;  %v5126_v25 = vsel %vm761_vm0, %v7097_v49, 0  ;;  %v4122_v49 = vld [vmem:[#allocation2 + $0x10a] sm:$0xff] }
 0x49f   : > { %7054 = vmatmul.msk.bf16.gmra.mxu1 %vm300_vm1, %v8565_v36  ;;  %5135 = vmatpush.bf16.msrb.mxu0 %v5126_v25 }
 0x4a0   : > { %7020 = vmatmul.msk.bf16.gmra.mxu3 %vm300_vm1, %v3920_v40  ;;  %v8777_v14 = vadd.f32 %v3615_v16, %v3465_v23  ;;  %v4697_v16 = vld [vmem:[#allocation4 + $0x1] sm:$0xff] }
 0x4a1   : > { %v3430_v41 = vpop.f32.mrf.mxu0  ;;  %v3872_v31 = vpop.f32.mrf.mxu2  ;;  %v9818_v40 = vld [vmem:[#allocation11_spill] sm:$0xff] }
 0x4a2   : > { %9816 = vst [vmem:[#allocation8_spill] sm:$0xff] %v8777_v14  ;;  %v4698_v14 = vld [vmem:[#allocation4 + $0x9] sm:$0xff] }
 0x4a3   : > { %v3172_v6 = vpop.f32.mrf.mxu3 }
 0x4a4   : > { %v3620_v20 = vpop.f32.mrf.mxu1  ;;  %v3210_v24 = vadd.f32 %v3172_v6, %v9817_v35  ;;  %v4729_v35 = vpack.c.bf16 %v4698_v14, %v4697_v16 }
 0x4a6   : > { %v3466_v27 = vadd.f32 %v3428_v1, %v3210_v24  ;;  %7065 = vmatmul.msk.bf16.vlgmr.msra.gmra.mxu2 %vm300_vm1, %v4729_v35 }
 0x4a8   : > { %v3656_v63 = vadd.f32 %v3618_v3, %v3466_v27  ;;  %v4696_v3 = vld [vmem:[%s9749_s5] sm:$0x3] }
 0x4a9   : > { %v3433_v26 = vpop.f32.mrf.mxu0  ;;  %v8784_v6 = vpop.f32.mrf.mxu2 }
 0x4aa   : > { %v8780_v36 = vadd.f32 %v3872_v31, %v3656_v63  ;;  %v4936_v31 = vsel %vm761_vm0, %v4696_v3, 0  ;;  %v7131_v63 = vld [vmem:[%s9749_s5 + $0x8] sm:$0x3] }
 0x4ab   : > { %v3174_v18 = vpop.f32.mrf.mxu3  ;;  %4945 = vmatpush.bf16.msrb.mxu3 %v4936_v31 }
 0x4ac   : > { %v3623_v44 = vpop.f32.mrf.mxu1  ;;  %7038 = vmatmul.msk.bf16.gmra.mxu0 %vm300_vm1, %v4175_v51  ;;  %v3211_v23 = vadd.f32 %v3174_v18, %v9818_v40  ;;  %v3708_v40 = vld [vmem:[#allocation3 + $0xf1] sm:$0xff] }
 0x4ae   : > { %v3467_v1 = vadd.f32 %v3430_v41, %v3211_v23  ;;  %v4121_v41 = vld [vmem:[#allocation2 + $0xfa] sm:$0xff] }
 0x4af   : > { %7055 = vmatmul.msk.bf16.gmra.mxu1 %vm300_vm1, %v8583_v52  ;;  %v4120_v52 = vld [vmem:[#allocation2 + $0xf2] sm:$0xff] }
 0x4b0   : > { %7021 = vmatmul.msk.bf16.gmra.mxu3 %vm300_vm1, %v3921_v37  ;;  %v8794_v24 = vadd.f32 %v3620_v20, %v3467_v1  ;;  %v5570_v20 = vsel %vm761_vm0, %v7131_v63, 0  ;;  %v4176_v18 = vpack.c.bf16 %v4121_v41, %v4120_v52 }
 0x4b1   : > { %v3435_v48 = vpop.f32.mrf.mxu0  ;;  %v3877_v37 = vpop.f32.mrf.mxu2  ;;  %5579 = vmatpush.bf16.msrb.mxu2 %v5570_v20 }
 0x4b3   : > { %v3177_v14 = vpop.f32.mrf.mxu3 }
 0x4b4   : > { %v3625_v19 = vpop.f32.mrf.mxu1  ;;  %v3212_v27 = vadd.f32 %v3177_v14, %v8579_v45 }
 0x4b6   : > { %v3468_v51 = vadd.f32 %v3433_v26, %v3212_v27  ;;  %v3709_v26 = vld [vmem:[#allocation3 + $0xf9] sm:$0xff] }
 0x4b7   : > { %v3922_v31 = vpack.c.bf16 %v3709_v26, %v3708_v40 }
 0x4b8   : > { %v3658_v16 = vadd.f32 %v3623_v44, %v3468_v51  ;;  %v7114_v44 = vld [vmem:[%s9749_s5 + $0x6] sm:$0x3] }
 0x4b9   : > { %v4246_v45 = vpop.f32.mrf.mxu0  ;;  %v5348_v27 = vsel %vm761_vm0, %v7114_v44, 0 }
 0x4ba   : > { %v8805_v23 = vadd.f32 %v3877_v37, %v3658_v16  ;;  %5357 = vmatpush.bf16.msrb.mxu1 %v5348_v27  ;;  %v4123_v37 = vld [vmem:[#allocation2 + $0x112] sm:$0xff] }
 0x4bb   : > { %v3179_v1 = vpop.f32.mrf.mxu3  ;;  %v4177_v25 = vpack.c.bf16 %v4123_v37, %v4122_v49  ;;  %v3710_v16 = vld [vmem:[#allocation3 + $0x109] sm:$0xff]  ;;  %v4124_v37 = vld [vmem:[#allocation2 + $0x122] sm:$0xff] }
 0x4bc   : > { %v4436_v35 = vpop.f32.mrf.mxu1  ;;  %7039 = vmatmul.msk.bf16.gmra.mxu0 %vm300_vm1, %v4176_v18  ;;  %v3213_v3 = vadd.f32 %v3179_v1, %v8590_v11 }
 0x4be   : > { %v3469_v14 = vadd.f32 %v3435_v48, %v3213_v3  ;;  %v8822_v48 = vld [vmem:[%s9748_s4] ss:$0 sm:$0xff] }
 0x4bf   : > { %7056 = vmatmul.msk.bf16.gmra.mxu1 %vm300_vm1, %v8597_v0 }
 0x4c0   : > { %7022 = vmatmul.msk.bf16.gmra.mxu3 %vm300_vm1, %v3922_v31  ;;  %v8816_v52 = vadd.f32 %v3625_v19, %v3469_v14  ;;  %v3711_v19 = vld [vmem:[#allocation3 + $0x111] sm:$0xff] }
 0x4c1   : > { %v4248_v41 = vpop.f32.mrf.mxu0 }
 0x4c3   : > { %v3992_v63 = vpop.f32.mrf.mxu3 }
 0x4c4   : > { %v4438_v51 = vpop.f32.mrf.mxu1  ;;  %v4072_v11 = vadd.f32 %v3992_v63, %v8593_v57 }
 0x4c6   : > { %v4326_v0 = vadd.f32 %v4246_v45, %v4072_v11  ;;  %v3923_v45 = vpack.c.bf16 %v3711_v19, %v3710_v16 }
 0x4c8   : > { %v4516_v20 = vadd.f32 %v4436_v35, %v4326_v0 }
 0x4c9   : > { %v4251_v18 = vpop.f32.mrf.mxu0 }
 0x4ca   : > { %v4552_v40 = vadd.f32 %v8822_v48, %v4516_v20 }
 0x4cb   : > { %v3994_v1 = vpop.f32.mrf.mxu3 }
 0x4cc   : > { %v4441_v26 = vpop.f32.mrf.mxu1  ;;  %v4584_v3 = vmax.f32 %v4552_v40, 0.0  ;;  %7040 = vmatmul.msk.bf16.gmra.mxu0 %vm300_vm1, %v4177_v25  ;;  %v4073_v57 = vadd.f32 %v3994_v1, %v8604_v62  ;;  %v4125_v62 = vld [vmem:[#allocation2 + $0x12a] sm:$0xff] }
 0x4cd   : > { %v4178_v25 = vpack.c.bf16 %v4125_v62, %v4124_v37  ;;  %v4126_v37 = vld [vmem:[#allocation2 + $0x13a] sm:$0xff]  ;;  %v4127_v62 = vld [vmem:[#allocation2 + $0x142] sm:$0xff] }
 0x4ce   : > { %4616 = vst.msk [vmem:[#allocation4 + $0x19] sm:$0xff] %vm300_vm1, %v4584_v3  ;;  %v4327_v35 = vadd.f32 %v4248_v41, %v4073_v57  ;;  %v3712_v41 = vld [vmem:[#allocation3 + $0x121] sm:$0xff] }
 0x4cf   : > { %7057 = vmatmul.msk.bf16.gmra.mxu1 %vm300_vm1, %v8611_v5 }
 0x4d0   : > { %v4517_v31 = vadd.f32 %v4438_v51, %v4327_v35  ;;  %7023 = vmatmul.msk.bf16.gmra.mxu3 %vm300_vm1, %v3923_v45  ;;  %v3713_v51 = vld [vmem:[#allocation3 + $0x129] sm:$0xff] }
 0x4d1   : > { %v4253_v14 = vpop.f32.mrf.mxu0 }
 0x4d2   : > { %v4553_v44 = vadd.f32 %v8822_v48, %v4517_v31 }
 0x4d3   : > { %v3997_v63 = vpop.f32.mrf.mxu3 }
 0x4d4   : > { %v4443_v27 = vpop.f32.mrf.mxu1  ;;  %v4585_v11 = vmax.f32 %v4553_v44, 0.0  ;;  %v4074_v49 = vadd.f32 %v3997_v63, %v8607_v10  ;;  %v3924_v10 = vpack.c.bf16 %v3713_v51, %v3712_v41 }
 0x4d5   : > { %v4699_v57 = vld [vmem:[#allocation4 + $0x19] sm:$0xff] }
 0x4d6   : > { %4617 = vst.msk [vmem:[#allocation4 + $0x21] sm:$0xff] %vm300_vm1, %v4585_v11  ;;  %v4328_v0 = vadd.f32 %v4251_v18, %v4074_v49 }
 0x4d8   : > { %v4518_v20 = vadd.f32 %v4441_v26, %v4328_v0  ;;  %v4179_v0 = vpack.c.bf16 %v4127_v62, %v4126_v37  ;;  %v4129_v37 = vld [vmem:[#allocation2 + $0x15a] sm:$0xff] }
 0x4d9   : > { %v4256_v5 = vpop.f32.mrf.mxu0 }
 0x4da   : > { %v4554_v16 = vadd.f32 %v8822_v48, %v4518_v20  ;;  %v3714_v20 = vld [vmem:[#allocation3 + $0x139] sm:$0xff] }
 0x4db   : > { %v3999_v40 = vpop.f32.mrf.mxu3 }
 0x4dc   : > { %v4446_v19 = vpop.f32.mrf.mxu1  ;;  %v4586_v1 = vmax.f32 %v4554_v16, 0.0  ;;  %7041 = vmatmul.msk.bf16.gmra.mxu0 %vm300_vm1, %v4178_v25  ;;  %v4075_v3 = vadd.f32 %v3999_v40, %v8618_v46  ;;  %v3715_v25 = vld [vmem:[#allocation3 + $0x141] sm:$0xff] }
 0x4dd   : > { %v4700_v45 = vld [vmem:[#allocation4 + $0x21] sm:$0xff] }
 0x4de   : > { %4618 = vst.msk [vmem:[#allocation4 + $0x31] sm:$0xff] %vm300_vm1, %v4586_v1  ;;  %v4329_v18 = vadd.f32 %v4253_v14, %v4075_v3  ;;  %v4730_v26 = vpack.c.bf16 %v4700_v45, %v4699_v57  ;;  %v9819_v1 = vld [vmem:[#allocation13_spill] sm:$0xff] }
 0x4df   : > { %7058 = vmatmul.msk.bf16.gmra.mxu1 %vm300_vm1, %v8625_v9 }
 0x4e0   : > { %v4519_v35 = vadd.f32 %v4443_v27, %v4329_v18  ;;  %7024 = vmatmul.msk.bf16.gmra.mxu3 %vm300_vm1, %v3924_v10  ;;  %7066 = vmatmul.msk.bf16.gmra.mxu2 %vm300_vm1, %v4730_v26 }
 0x4e1   : > { %v4258_v31 = vpop.f32.mrf.mxu0 }
 0x4e2   : > { %v4555_v44 = vadd.f32 %v8822_v48, %v4519_v35 }
 0x4e3   : > { %v4002_v46 = vpop.f32.mrf.mxu3 }
 0x4e4   : > { %v4448_v63 = vpop.f32.mrf.mxu1  ;;  %v4587_v11 = vmax.f32 %v4555_v44, 0.0  ;;  %v4076_v49 = vadd.f32 %v4002_v46, %v8621_v21  ;;  %v3925_v21 = vpack.c.bf16 %v3715_v25, %v3714_v20 }
 0x4e5   : > { %v4701_v10 = vld [vmem:[#allocation4 + $0x31] sm:$0xff] }
 0x4e6   : > { %4619 = vst.msk [vmem:[#allocation4 + $0x39] sm:$0xff] %vm300_vm1, %v4587_v11  ;;  %v4330_v9 = vadd.f32 %v4256_v5, %v4076_v49  ;;  %v4128_v49 = vld [vmem:[#allocation2 + $0x152] sm:$0xff] }
 0x4e7   : > { %v4180_v62 = vpack.c.bf16 %v4129_v37, %v4128_v49  ;;  %v9820_v49 = vld [vmem:[#allocation15_spill] sm:$0xff]  ;;  %v9821_v37 = vld [vmem:[#allocation14_spill] sm:$0xff] }
 0x4e8   : > { %v4520_v14 = vadd.f32 %v4446_v19, %v4330_v9  ;;  %v3716_v9 = vld [vmem:[#allocation3 + $0x151] sm:$0xff] }
 0x4e9   : > { %v4261_v27 = vpop.f32.mrf.mxu0 }
 0x4ea   : > { %v4556_v41 = vadd.f32 %v8822_v48, %v4520_v14  ;;  %v3717_v14 = vld [vmem:[#allocation3 + $0x159] sm:$0xff] }
 0x4eb   : > { %v4004_v16 = vpop.f32.mrf.mxu3 }
 0x4ec   : > { %v4451_v51 = vpop.f32.mrf.mxu1  ;;  %v4588_v40 = vmax.f32 %v4556_v41, 0.0  ;;  %7042 = vmatmul.msk.bf16.gmra.mxu0 %vm300_vm1, %v4179_v0  ;;  %v4077_v3 = vadd.f32 %v4004_v16, %v9819_v1 }
 0x4ed   : > { %v4702_v57 = vld [vmem:[#allocation4 + $0x39] sm:$0xff] }
 0x4ee   : > { %4620 = vst.msk [vmem:[#allocation4 + $0x49] sm:$0xff] %vm300_vm1, %v4588_v40  ;;  %v4331_v5 = vadd.f32 %v4258_v31, %v4077_v3  ;;  %v4731_v19 = vpack.c.bf16 %v4702_v57, %v4701_v10 }
 0x4ef   : > { %7059 = vmatmul.msk.bf16.gmra.mxu1 %vm300_vm1, %v8639_v47 }
 0x4f0   : > { %v4521_v45 = vadd.f32 %v4448_v63, %v4331_v5  ;;  %7025 = vmatmul.msk.bf16.gmra.mxu3 %vm300_vm1, %v3925_v21  ;;  %7067 = vmatmul.msk.bf16.gmra.mxu2 %vm300_vm1, %v4731_v19 }
 0x4f1   : > { %v4263_v18 = vpop.f32.mrf.mxu0 }
 0x4f2   : > { %v4557_v26 = vadd.f32 %v8822_v48, %v4521_v45  ;;  %v4130_v45 = vld [vmem:[#allocation2 + $0x16a] sm:$0xff] }
 0x4f3   : > { %v4007_v44 = vpop.f32.mrf.mxu3 }
 0x4f4   : > { %v4453_v35 = vpop.f32.mrf.mxu1  ;;  %v4589_v46 = vmax.f32 %v4557_v26, 0.0  ;;  %v4078_v11 = vadd.f32 %v4007_v44, %v8635_v17  ;;  %v3926_v17 = vpack.c.bf16 %v3717_v14, %v3716_v9  ;;  %v4131_v26 = vld [vmem:[#allocation2 + $0x172] sm:$0xff] }
 0x4f5   : > { %v4703_v40 = vld [vmem:[#allocation4 + $0x49] sm:$0xff]  ;;  %v4181_v44 = vpack.c.bf16 %v4131_v26, %v4130_v45  ;;  %v3720_v45 = vld [vmem:[#allocation3 + $0x181] sm:$0xff]  ;;  %v3721_v26 = vld [vmem:[#allocation3 + $0x189] sm:$0xff] }
 0x4f6   : > { %4621 = vst.msk [vmem:[#allocation4 + $0x51] sm:$0xff] %vm300_vm1, %v4589_v46  ;;  %v4332_v47 = vadd.f32 %v4261_v27, %v4078_v11  ;;  %v3718_v46 = vld [vmem:[#allocation3 + $0x169] sm:$0xff]  ;;  %v3719_v11 = vld [vmem:[#allocation3 + $0x171] sm:$0xff] }
 0x4f8   : > { %v4522_v31 = vadd.f32 %v4451_v51, %v4332_v47  ;;  %v3891_v47 = vadd.f32 %v9821_v37, %v9820_v49 }
 0x4f9   : > { %v4266_v63 = vpop.f32.mrf.mxu0 }
 0x4fa   : > { %v4558_v0 = vadd.f32 %v8822_v48, %v4522_v31 }
 0x4fb   : > { %v4009_v25 = vpop.f32.mrf.mxu3 }
 0x4fc   : > { %v4456_v20 = vpop.f32.mrf.mxu1  ;;  %v4590_v41 = vmax.f32 %v4558_v0, 0.0  ;;  %7043 = vmatmul.msk.bf16.gmra.mxu0 %vm300_vm1, %v4180_v62  ;;  %v4079_v16 = vadd.f32 %v4009_v25, %v8646_v7  ;;  %v3927_v0 = vpack.c.bf16 %v3719_v11, %v3718_v46 }
 0x4fd   : > { %v4704_v1 = vld [vmem:[#allocation4 + $0x51] sm:$0xff] }
 0x4fe   : > { %4622 = vst.msk [vmem:[#allocation4 + $0x61] sm:$0xff] %vm300_vm1, %v4590_v41  ;;  %v4333_v27 = vadd.f32 %v4263_v18, %v4079_v16  ;;  %v4732_v51 = vpack.c.bf16 %v4704_v1, %v4703_v40 }
 0x4ff   : > { %7060 = vmatmul.msk.bf16.gmra.mxu1 %vm300_vm1, %v8655_v60 }
 0x500   : > { %v4523_v3 = vadd.f32 %v4453_v35, %v4333_v27  ;;  %7026 = vmatmul.msk.bf16.gmra.mxu3 %vm300_vm1, %v3926_v17  ;;  %7068 = vmatmul.msk.bf16.gmra.mxu2 %vm300_vm1, %v4732_v51 }
 0x501   : > { %v4268_v21 = vpop.f32.mrf.mxu0 }
 0x502   : > { %v4559_v10 = vadd.f32 %v8822_v48, %v4523_v3  ;;  %v9822_v3 = vld [vmem:[#allocation6_spill] sm:$0xff] }
 0x503   : > { %v4012_v7 = vpop.f32.mrf.mxu3 }
 0x504   : > { %v4458_v57 = vpop.f32.mrf.mxu1  ;;  %v4591_v5 = vmax.f32 %v4559_v10, 0.0  ;;  %v4080_v19 = vadd.f32 %v4012_v7, %v8651_v4  ;;  %v4132_v7 = vld [vmem:[#allocation2 + $0x182] sm:$0xff] }
 0x505   : > { %v4705_v25 = vld [vmem:[#allocation4 + $0x61] sm:$0xff] }
 0x506   : > { %4623 = vst.msk [vmem:[#allocation4 + $0x69] sm:$0xff] %vm300_vm1, %v4591_v5  ;;  %v4334_v60 = vadd.f32 %v4266_v63, %v4080_v19  ;;  %v4133_v5 = vld [vmem:[#allocation2 + $0x18a] sm:$0xff] }
 0x508   : > { %v4524_v18 = vadd.f32 %v4456_v20, %v4334_v60  ;;  %v9823_v60 = vld [vmem:[#allocation7_spill] sm:$0xff] }
 0x509   : > { %v4271_v35 = vpop.f32.mrf.mxu0 }
 0x50a   : > { %v4560_v31 = vadd.f32 %v8822_v48, %v4524_v18  ;;  %v9824_v18 = vld [vmem:[#allocation5_spill] sm:$0xff] }
 0x50b   : > { %v4014_v9 = vpop.f32.mrf.mxu3 }
 0x50c   : > { %v4461_v62 = vpop.f32.mrf.mxu1  ;;  %v4592_v14 = vmax.f32 %v4560_v31, 0.0  ;;  %7044 = vmatmul.msk.bf16.gmra.mxu0 %vm300_vm1, %v4181_v44  ;;  %v4081_v4 = vadd.f32 %v4014_v9, %v3891_v47  ;;  %v3893_v44 = vadd.f32 %v9824_v18, %v9823_v60  ;;  %v3928_v31 = vpack.c.bf16 %v3721_v26, %v3720_v45 }
 0x50d   : > { %v4706_v41 = vld [vmem:[#allocation4 + $0x69] sm:$0xff] }
 0x50e   : > { %4624 = vst.msk [vmem:[#allocation4 + $0x79] sm:$0xff] %vm300_vm1, %v4592_v14  ;;  %v4335_v63 = vadd.f32 %v4268_v21, %v4081_v4  ;;  %v8874_v20 = vpack.c.bf16 %v4706_v41, %v4705_v25 }
 0x50f   : > { %7061 = vmatmul.msk.bf16.gmra.mxu1 %vm300_vm1, %v8671_v61 }
 0x510   : > { %v4525_v16 = vadd.f32 %v4458_v57, %v4335_v63  ;;  %7027 = vmatmul.msk.bf16.gmra.mxu3 %vm300_vm1, %v3927_v0  ;;  %7069 = vmatmul.msk.bf16.gmra.mxu2 %vm300_vm1, %v8874_v20  ;;  %v4182_v57 = vpack.c.bf16 %v4133_v5, %v4132_v7  ;;  %v3722_v5 = vld [vmem:[#allocation3 + $0x199] sm:$0xff] }
 0x511   : > { %v4273_v17 = vpop.f32.mrf.mxu0 }
 0x512   : > { %v4561_v40 = vadd.f32 %v8822_v48, %v4525_v16 }
 0x513   : > { %v4017_v27 = vpop.f32.mrf.mxu3 }
 0x514   : > { %v4463_v1 = vpop.f32.mrf.mxu1  ;;  %v4593_v51 = vmax.f32 %v4561_v40, 0.0  ;;  %v4082_v10 = vadd.f32 %v4017_v27, %v9822_v3  ;;  %v4134_v27 = vld [vmem:[#allocation2 + $0x19a] sm:$0xff] }
 0x515   : > { %v4707_v9 = vld [vmem:[#allocation4 + $0x79] sm:$0xff] }
 0x516   : > { %4625 = vst.msk [vmem:[#allocation4 + $0x81] sm:$0xff] %vm300_vm1, %v4593_v51  ;;  %v4336_v61 = vadd.f32 %v4271_v35, %v4082_v10  ;;  %v4135_v51 = vld [vmem:[#allocation2 + $0x1a2] sm:$0xff] }
 0x517   : > { %v4183_v10 = vpack.c.bf16 %v4135_v51, %v4134_v27  ;;  %v4649_v27 = vld [vmem:[#allocation4 + $0x8] sm:$0xff]  ;;  %v3897_v51 = vadd.f32 %v8696_v55, %v8705_v29 }
 0x518   : > { %v4526_v21 = vadd.f32 %v4461_v62, %v4336_v61  ;;  %v3723_v61 = vld [vmem:[#allocation3 + $0x1a1] sm:$0xff] }
 0x519   : > { %v4276_v19 = vpop.f32.mrf.mxu0 }
 0x51a   : > { %v4562_v46 = vadd.f32 %v8822_v48, %v4526_v21  ;;  %v3895_v21 = vadd.f32 %v8681_v2, %v8693_v42 }
 0x51b   : > { %v4019_v49 = vpop.f32.mrf.mxu3 }
 0x51c   : > { %v4466_v11 = vpop.f32.mrf.mxu1  ;;  %v4594_v37 = vmax.f32 %v4562_v46, 0.0  ;;  %7045 = vmatmul.msk.bf16.gmra.mxu0 %vm300_vm1, %v4182_v57  ;;  %v4083_v47 = vadd.f32 %v4019_v49, %v3893_v44 }
 0x51d   : > { %v4708_v14 = vld [vmem:[#allocation4 + $0x81] sm:$0xff] }
 0x51e   : > { %4626 = vst.msk [vmem:[#allocation4 + $0x91] sm:$0xff] %vm300_vm1, %v4594_v37  ;;  %v4337_v35 = vadd.f32 %v4273_v17, %v4083_v47  ;;  %v8889_v62 = vpack.c.bf16 %v4708_v14, %v4707_v9  ;;  %v4166_v17 = vld [vmem:[#allocation3 + $0x19a] sm:$0xff] }
 0x51f   : > { %7062 = vmatmul.msk.bf16.gmra.mxu1 %vm300_vm1, %v8687_v56 }
 0x520   : > { %v4527_v4 = vadd.f32 %v4463_v1, %v4337_v35  ;;  %7028 = vmatmul.msk.bf16.gmra.mxu3 %vm300_vm1, %v3928_v31  ;;  %7070 = vmatmul.msk.bf16.gmra.mxu2 %vm300_vm1, %v8889_v62  ;;  %v4167_v1 = vld [vmem:[#allocation3 + $0x1a2] sm:$0xff]  ;;  %v5027_v35 = vld [vmem:[#allocation4 + $0x2] sm:$0xff] }
 0x521   : > { %v4278_v0 = vpop.f32.mrf.mxu0  ;;  %v4373_v45 = vpack.c.bf16 %v4167_v1, %v4166_v17  ;;  %v5249_v1 = vld [vmem:[#allocation4 + $0x18] sm:$0xff] }
 0x522   : > { %v4563_v25 = vadd.f32 %v8822_v48, %v4527_v4  ;;  %v5028_v4 = vld [vmem:[#allocation4 + $0xa] sm:$0xff] }
 0x523   : > { %v4022_v63 = vpop.f32.mrf.mxu3 }
 0x524   : > { %v4468_v41 = vpop.f32.mrf.mxu1  ;;  %v4595_v16 = vmax.f32 %v4563_v25, 0.0  ;;  %v4084_v40 = vadd.f32 %v4022_v63, %v8683_v43 }
 0x525   : > { %v4709_v44 = vld [vmem:[#allocation4 + $0x91] sm:$0xff] }
 0x526   : > { %4627 = vst.msk [vmem:[#allocation4 + $0x99] sm:$0xff] %vm300_vm1, %v4595_v16  ;;  %v4338_v56 = vadd.f32 %v4276_v19, %v4084_v40  ;;  %v3929_v19 = vpack.c.bf16 %v3723_v61, %v3722_v5  ;;  %v5250_v16 = vld [vmem:[#allocation4 + $0x20] sm:$0xff] }
 0x527   : > { %v4648_v40 = vld [vmem:[#allocation4] sm:$0xff] }
 0x528   : > { %v4528_v3 = vadd.f32 %v4466_v11, %v4338_v56 }
 0x529   : > { %v4281_v7 = vpop.f32.mrf.mxu0 }
 0x52a   : > { %v4564_v57 = vadd.f32 %v8822_v48, %v4528_v3 }
 0x52b   : > { %v4024_v43 = vpop.f32.mrf.mxu3 }
 0x52c   : > { %v4471_v26 = vpop.f32.mrf.mxu1  ;;  %v4596_v60 = vmax.f32 %v4564_v57, 0.0  ;;  %7046 = vmatmul.msk.bf16.gmra.mxu0 %vm300_vm1, %v4183_v10  ;;  %v4085_v18 = vadd.f32 %v4024_v43, %v3895_v21  ;;  %v5281_v10 = vpack.c.bf16 %v5250_v16, %v5249_v1 }
 0x52d   : > { %v4710_v46 = vld [vmem:[#allocation4 + $0x99] sm:$0xff] }
 0x52e   : > { %4628 = vst.msk [vmem:[#allocation4 + $0xa9] sm:$0xff] %vm300_vm1, %v4596_v60  ;;  %v4339_v11 = vadd.f32 %v4278_v0, %v4085_v18  ;;  %v8903_v49 = vpack.c.bf16 %v4710_v46, %v4709_v44  ;;  %v5029_v46 = vld [vmem:[#allocation4 + $0x1a] sm:$0xff] }
 0x52f   : > { %7063 = vmatmul.msk.bf16.gmra.mxu1 %vm300_vm1, %v4373_v45 }
 0x530   : > { %v4529_v2 = vadd.f32 %v4468_v41, %v4339_v11  ;;  %7029 = vmatmul.msk.bf16.gmra.mxu3 %vm300_vm1, %v3929_v19  ;;  %7071 = vmatmul.msk.bf16.gmra.mxu2 %vm300_vm1, %v8903_v49  ;;  %v5059_v41 = vpack.c.bf16 %v5028_v4, %v5027_v35  ;;  %v5030_v11 = vld [vmem:[#allocation4 + $0x22] sm:$0xff]  ;;  %v5251_v4 = vld [vmem:[#allocation4 + $0x30] sm:$0xff] }
 0x531   : > { %v4283_v42 = vpop.f32.mrf.mxu0 }
 0x532   : > { %v4565_v37 = vadd.f32 %v8822_v48, %v4529_v2 }
 0x533   : > { %v4027_v31 = vpop.f32.mrf.mxu3 }
 0x534   : > { %v4473_v47 = vpop.f32.mrf.mxu1  ;;  %v4597_v9 = vmax.f32 %v4565_v37, 0.0  ;;  %v4086_v14 = vadd.f32 %v4027_v31, %v8698_v33  ;;  %v5252_v37 = vld [vmem:[#allocation4 + $0x38] sm:$0xff]  ;;  %v8927_v31 = vpop.f32.mrf.mxu2 }
 0x535   : > { %v4711_v61 = vld [vmem:[#allocation4 + $0xa9] sm:$0xff] }
 0x536   : > { %4629 = vst.msk [vmem:[#allocation4 + $0xb1] sm:$0xff] %vm300_vm1, %v4597_v9  ;;  %v4340_v0 = vadd.f32 %v4281_v7, %v4086_v14  ;;  %v4680_v7 = vpack.c.bf16 %v4649_v27, %v4648_v40  ;;  %v8930_v14 = vpack.c.bf16 %v5030_v11, %v5029_v46 }
 0x538   : > { %v4530_v25 = vadd.f32 %v4471_v26, %v4340_v0 }
 0x539   : > { %v4286_v63 = vpop.f32.mrf.mxu0 }
 0x53a   : > { %v4566_v56 = vadd.f32 %v8822_v48, %v4530_v25  ;;  %v8934_v25 = vpack.c.bf16 %v5252_v37, %v5251_v4 }
 0x53b   : > { %v4029_v3 = vpop.f32.mrf.mxu3 }
 0x53c   : > { %v4476_v17 = vpop.f32.mrf.mxu1  ;;  %v4598_v33 = vmax.f32 %v4566_v56, 0.0  ;;  %7098 = vmatmul.msk.bf16.vlgmr.msrb.gmra.mxu0 %vm300_vm1, %v5059_v41  ;;  %v4087_v5 = vadd.f32 %v4029_v3, %v3897_v51  ;;  %v8945_v56 = vpop.f32.mrf.mxu2 }
 0x53d   : > { %v4712_v21 = vld [vmem:[#allocation4 + $0xb1] sm:$0xff] }
 0x53e   : > { %4630 = vst.msk [vmem:[#allocation4 + $0xc1] sm:$0xff] %vm300_vm1, %v4598_v33  ;;  %v4341_v57 = vadd.f32 %v4283_v42, %v4087_v5  ;;  %v8917_v45 = vpack.c.bf16 %v4712_v21, %v4711_v61  ;;  %v5032_v61 = vld [vmem:[#allocation4 + $0x3a] sm:$0xff] }
 0x53f   : > { %7115 = vmatmul.msk.bf16.vlgmr.msrb.gmra.mxu1 %vm300_vm1, %v5281_v10 }
 0x540   : > { %v4531_v55 = vadd.f32 %v4473_v47, %v4341_v57  ;;  %7072 = vmatmul.msk.bf16.gmra.mxu2 %vm300_vm1, %v8917_v45  ;;  %7081 = vmatmul.msk.bf16.vlgmr.msrb.gmra.mxu3 %vm300_vm1, %v4680_v7  ;;  %v3899_v47 = vadd.f32 %v8708_v30, %v8717_v54  ;;  %v5031_v7 = vld [vmem:[#allocation4 + $0x32] sm:$0xff] }
 0x541   : > { %v4288_v29 = vpop.f32.mrf.mxu0 }
 0x542   : > { %v4567_v26 = vadd.f32 %v8822_v48, %v4531_v55  ;;  %v5254_v55 = vld [vmem:[#allocation4 + $0x50] sm:$0xff] }
 0x543   : > { %v4032_v60 = vpop.f32.mrf.mxu3 }
 0x544   : > { %v4478_v43 = vpop.f32.mrf.mxu1  ;;  %v4599_v18 = vmax.f32 %v4567_v26, 0.0  ;;  %v4088_v19 = vadd.f32 %v4032_v60, %v8710_v50  ;;  %v8952_v26 = vpack.c.bf16 %v5032_v61, %v5031_v7  ;;  %v5253_v60 = vld [vmem:[#allocation4 + $0x48] sm:$0xff] }
 0x546   : > { %4631 = vst.msk [vmem:[#allocation4 + $0xc9] sm:$0xff] %vm300_vm1, %v4599_v18  ;;  %v4342_v44 = vadd.f32 %v4286_v63, %v4088_v19  ;;  %v4713_v63 = vld [vmem:[#allocation4 + $0xc1] sm:$0xff] }
 0x548   : > { %v4532_v2 = vadd.f32 %v4476_v17, %v4342_v44  ;;  %v8958_v44 = vpack.c.bf16 %v5254_v55, %v5253_v60 }
 0x549   : > { %v4291_v42 = vpop.f32.mrf.mxu0 }
 0x54a   : > { %v4568_v9 = vadd.f32 %v8822_v48, %v4532_v2 }
 0x54b   : > { %v4034_v50 = vpop.f32.mrf.mxu3 }
 0x54c   : > { %v4481_v35 = vpop.f32.mrf.mxu1  ;;  %v4600_v0 = vmax.f32 %v4568_v9, 0.0  ;;  %7099 = vmatmul.msk.bf16.gmra.mxu0 %vm300_vm1, %v8930_v14  ;;  %v4089_v41 = vadd.f32 %v4034_v50, %v3899_v47 }
 0x54d   : > { %v4714_v16 = vld [vmem:[#allocation4 + $0xc9] sm:$0xff] }
 0x54e   : > { %4632 = vst.msk [vmem:[#allocation4 + $0xd9] sm:$0xff] %vm300_vm1, %v4600_v0  ;;  %v4343_v30 = vadd.f32 %v4288_v29, %v4089_v41  ;;  %v8939_v54 = vpack.c.bf16 %v4714_v16, %v4713_v63  ;;  %v5033_v63 = vld [vmem:[#allocation4 + $0x4a] sm:$0xff]  ;;  %v5034_v16 = vld [vmem:[#allocation4 + $0x52] sm:$0xff] }
 0x54f   : > { %7116 = vmatmul.msk.bf16.gmra.mxu1 %vm300_vm1, %v8934_v25 }
 0x550   : > { %v4533_v40 = vadd.f32 %v4478_v43, %v4343_v30  ;;  %7073 = vmatmul.msk.bf16.gmra.mxu2 %vm300_vm1, %v8939_v54  ;;  %7082 = vmatmul.msk.bf16.gmra.mxu3 %vm300_vm1, %v5281_v10  ;;  %v3901_v10 = vadd.f32 %v8720_v28, %v8729_v34 }
 0x551   : > { %v4293_v27 = vpop.f32.mrf.mxu0 }
 0x552   : > { %v4569_v51 = vadd.f32 %v8822_v48, %v4533_v40 }
 0x553   : > { %v4037_v1 = vpop.f32.mrf.mxu3 }
 0x554   : > { %v4483_v17 = vpop.f32.mrf.mxu1  ;;  %v4601_v3 = vmax.f32 %v4569_v51, 0.0  ;;  %v4090_v33 = vadd.f32 %v4037_v1, %v8722_v13  ;;  %v8954_v13 = vpop.f32.mrf.mxu2  ;;  %v3903_v51 = vadd.f32 %v8732_v8, %v8741_v39  ;;  %v8977_v1 = vpack.c.bf16 %v5034_v16, %v5033_v63  ;;  %v5257_v63 = vld [vmem:[#allocation4 + $0x78] sm:$0xff] }
 0x555   : > { %v4715_v11 = vld [vmem:[#allocation4 + $0xd9] sm:$0xff] }
 0x556   : > { %4633 = vst.msk [vmem:[#allocation4 + $0xe1] sm:$0xff] %vm300_vm1, %v4601_v3  ;;  %v4344_v5 = vadd.f32 %v4291_v42, %v4090_v33  ;;  %v5255_v33 = vld [vmem:[#allocation4 + $0x60] sm:$0xff] }
 0x558   : > { %v4534_v21 = vadd.f32 %v4481_v35, %v4344_v5 }
 0x559   : > { %v4296_v57 = vpop.f32.mrf.mxu0 }
 0x55a   : > { %v4570_v29 = vadd.f32 %v8822_v48, %v4534_v21 }
 0x55b   : > { %v4039_v18 = vpop.f32.mrf.mxu3 }
 0x55c   : > { %v4486_v43 = vpop.f32.mrf.mxu1  ;;  %v4602_v19 = vmax.f32 %v4570_v29, 0.0  ;;  %7100 = vmatmul.msk.bf16.gmra.mxu0 %vm300_vm1, %v8952_v26  ;;  %v4091_v46 = vadd.f32 %v4039_v18, %v3901_v10 }
 0x55d   : > { %v4716_v2 = vld [vmem:[#allocation4 + $0xe1] sm:$0xff] }
 0x55e   : > { %4634 = vst.msk [vmem:[#allocation4 + $0xf1] sm:$0xff] %vm300_vm1, %v4602_v19  ;;  %v4345_v28 = vadd.f32 %v4293_v27, %v4091_v46  ;;  %v8963_v34 = vpack.c.bf16 %v4716_v2, %v4715_v11  ;;  %v5256_v27 = vld [vmem:[#allocation4 + $0x68] sm:$0xff] }
 0x55f   : > { %7117 = vmatmul.msk.bf16.gmra.mxu1 %vm300_vm1, %v8958_v44  ;;  %v8981_v7 = vpack.c.bf16 %v5256_v27, %v5255_v33 }
 0x560   : > { %v4535_v42 = vadd.f32 %v4483_v17, %v4345_v28  ;;  %7074 = vmatmul.msk.bf16.gmra.mxu2 %vm300_vm1, %v8963_v34  ;;  %7083 = vmatmul.msk.bf16.gmra.mxu3 %vm300_vm1, %v8934_v25  ;;  %v5035_v28 = vld [vmem:[#allocation4 + $0x62] sm:$0xff] }
 0x561   : > { %v4298_v37 = vpop.f32.mrf.mxu0 }
 0x562   : > { %v4571_v47 = vadd.f32 %v8822_v48, %v4535_v42  ;;  %v5036_v42 = vld [vmem:[#allocation4 + $0x6a] sm:$0xff] }
 0x563   : > { %v4042_v35 = vpop.f32.mrf.mxu3  ;;  %v8971_v0 = vpop.f32.mrf.mxu2 }
 0x564   : > { %v4488_v9 = vpop.f32.mrf.mxu1  ;;  %v4603_v4 = vmax.f32 %v4571_v47, 0.0  ;;  %v4092_v50 = vadd.f32 %v4042_v35, %v8734_v15  ;;  %v3905_v35 = vadd.f32 %v8744_v59, %v8753_v58 }
 0x566   : > { %4635 = vst.msk [vmem:[#allocation4 + $0xf9] sm:$0xff] %vm300_vm1, %v4603_v4  ;;  %v4346_v41 = vadd.f32 %v4296_v57, %v4092_v50  ;;  %v4717_v57 = vld [vmem:[#allocation4 + $0xf1] sm:$0xff]  ;;  %v9002_v50 = vpack.c.bf16 %v5036_v42, %v5035_v28 }
 0x568   : > { %v4536_v30 = vadd.f32 %v4486_v43, %v4346_v41 }
 0x569   : > { %v4301_v40 = vpop.f32.mrf.mxu0 }
 0x56a   : > { %v4572_v17 = vadd.f32 %v8822_v48, %v4536_v30 }
 0x56b   : > { %v4044_v15 = vpop.f32.mrf.mxu3  ;;  %v8983_v21 = vpop.f32.mrf.mxu2 }
 0x56c   : > { %v4491_v3 = vpop.f32.mrf.mxu1  ;;  %v4604_v5 = vmax.f32 %v4572_v17, 0.0  ;;  %7101 = vmatmul.msk.bf16.gmra.mxu0 %vm300_vm1, %v8977_v1  ;;  %v4093_v61 = vadd.f32 %v4044_v15, %v3903_v51 }
 0x56d   : > { %v4718_v55 = vld [vmem:[#allocation4 + $0xf9] sm:$0xff] }
 0x56e   : > { %4636 = vst.msk [vmem:[#allocation4 + $0x109] sm:$0xff] %vm300_vm1, %v4604_v5  ;;  %v4347_v8 = vadd.f32 %v4298_v37, %v4093_v61  ;;  %v8988_v39 = vpack.c.bf16 %v4718_v55, %v4717_v57 }
 0x56f   : > { %7118 = vmatmul.msk.bf16.gmra.mxu1 %vm300_vm1, %v8981_v7 }
 0x570   : > { %v4537_v10 = vadd.f32 %v4488_v9, %v4347_v8  ;;  %7075 = vmatmul.msk.bf16.gmra.mxu2 %vm300_vm1, %v8988_v39  ;;  %7084 = vmatmul.msk.bf16.gmra.mxu3 %vm300_vm1, %v8958_v44  ;;  %v5258_v9 = vld [vmem:[#allocation4 + $0x80] sm:$0xff] }
 0x571   : > { %v4303_v29 = vpop.f32.mrf.mxu0  ;;  %v9006_v30 = vpack.c.bf16 %v5258_v9, %v5257_v63 }
 0x572   : > { %v4573_v43 = vadd.f32 %v8822_v48, %v4537_v10 }
 0x573   : > { %v4047_v18 = vpop.f32.mrf.mxu3  ;;  %v8996_v11 = vpop.f32.mrf.mxu2 }
 0x574   : > { %v4493_v60 = vpop.f32.mrf.mxu1  ;;  %v4605_v19 = vmax.f32 %v4573_v43, 0.0  ;;  %v4094_v46 = vadd.f32 %v4047_v18, %v8746_v32  ;;  %v5038_v43 = vld [vmem:[#allocation4 + $0x82] sm:$0xff] }
 0x575   : > { %v4719_v51 = vld [vmem:[#allocation4 + $0x109] sm:$0xff] }
 0x576   : > { %4637 = vst.msk [vmem:[#allocation4 + $0x111] sm:$0xff] %vm300_vm1, %v4605_v19  ;;  %v4348_v2 = vadd.f32 %v4301_v40, %v4094_v46  ;;  %v5260_v19 = vld [vmem:[#allocation4 + $0x98] sm:$0xff]  ;;  %v3907_v46 = vadd.f32 %v8756_v12, %v8765_v22 }
 0x578   : > { %v4538_v37 = vadd.f32 %v4491_v3, %v4348_v2 }
 0x579   : > { %v4306_v47 = vpop.f32.mrf.mxu0 }
 0x57a   : > { %v4574_v4 = vadd.f32 %v8822_v48, %v4538_v37  ;;  %v5259_v37 = vld [vmem:[#allocation4 + $0x90] sm:$0xff] }
 0x57b   : > { %v4049_v32 = vpop.f32.mrf.mxu3  ;;  %v9008_v27 = vpop.f32.mrf.mxu2 }
 0x57c   : > { %v4496_v41 = vpop.f32.mrf.mxu1  ;;  %v4606_v16 = vmax.f32 %v4574_v4, 0.0  ;;  %7102 = vmatmul.msk.bf16.gmra.mxu0 %vm300_vm1, %v9002_v50  ;;  %v4095_v40 = vadd.f32 %v4049_v32, %v3905_v35 }
 0x57d   : > { %v4720_v17 = vld [vmem:[#allocation4 + $0x111] sm:$0xff] }
 0x57e   : > { %4638 = vst.msk [vmem:[#allocation4 + $0x121] sm:$0xff] %vm300_vm1, %v4606_v16  ;;  %v4349_v59 = vadd.f32 %v4303_v29, %v4095_v40  ;;  %v9013_v58 = vpack.c.bf16 %v4720_v17, %v4719_v51  ;;  %v5037_v29 = vld [vmem:[#allocation4 + $0x7a] sm:$0xff] }
 0x57f   : > { %7119 = vmatmul.msk.bf16.gmra.mxu1 %vm300_vm1, %v9006_v30  ;;  %v9027_v28 = vpack.c.bf16 %v5038_v43, %v5037_v29  ;;  %v9825_v29 = vld [vmem:[#allocation8_spill] sm:$0xff]  ;;  %v9826_v43 = vld [vmem:[#allocation9_spill] sm:$0xff] }
 0x580   : > { %v4539_v3 = vadd.f32 %v4493_v60, %v4349_v59  ;;  %7076 = vmatmul.msk.bf16.gmra.mxu2 %vm300_vm1, %v9013_v58  ;;  %7085 = vmatmul.msk.bf16.gmra.mxu3 %vm300_vm1, %v8981_v7 }
 0x581   : > { %v4308_v33 = vpop.f32.mrf.mxu0 }
 0x582   : > { %v4575_v15 = vadd.f32 %v8822_v48, %v4539_v3 }
 0x583   : > { %v4052_v61 = vpop.f32.mrf.mxu3  ;;  %v9021_v8 = vpop.f32.mrf.mxu2 }
 0x584   : > { %v4498_v5 = vpop.f32.mrf.mxu1  ;;  %v4607_v57 = vmax.f32 %v4575_v15, 0.0  ;;  %v4096_v55 = vadd.f32 %v4052_v61, %v8758_v53  ;;  %v5040_v61 = vld [vmem:[#allocation4 + $0x9a] sm:$0xff] }
 0x586   : > { %4639 = vst.msk [vmem:[#allocation4 + $0x129] sm:$0xff] %vm300_vm1, %v4607_v57  ;;  %v4350_v10 = vadd.f32 %v4306_v47, %v4096_v55  ;;  %v9031_v47 = vpack.c.bf16 %v5260_v19, %v5259_v37  ;;  %v5261_v37 = vld [vmem:[#allocation4 + $0xa8] sm:$0xff] }
 0x588   : > { %v4540_v60 = vadd.f32 %v4496_v41, %v4350_v10  ;;  %v4721_v41 = vld [vmem:[#allocation4 + $0x121] sm:$0xff]  ;;  %v5262_v10 = vld [vmem:[#allocation4 + $0xb0] sm:$0xff] }
 0x589   : > { %v4311_v18 = vpop.f32.mrf.mxu0 }
 0x58a   : > { %v4576_v2 = vadd.f32 %v8822_v48, %v4540_v60  ;;  %v3909_v60 = vadd.f32 %v9826_v43, %v9825_v29  ;;  %v5264_v43 = vld [vmem:[#allocation4 + $0xc8] sm:$0xff] }
 0x58b   : > { %v4054_v53 = vpop.f32.mrf.mxu3  ;;  %v9033_v4 = vpop.f32.mrf.mxu2 }
 0x58c   : > { %v4501_v42 = vpop.f32.mrf.mxu1  ;;  %v4608_v9 = vmax.f32 %v4576_v2, 0.0  ;;  %7103 = vmatmul.msk.bf16.gmra.mxu0 %vm300_vm1, %v9027_v28  ;;  %v4097_v35 = vadd.f32 %v4054_v53, %v3907_v46 }
 0x58d   : > { %v4722_v63 = vld [vmem:[#allocation4 + $0x129] sm:$0xff] }
 0x58e   : > { %4640 = vst.msk [vmem:[#allocation4 + $0x139] sm:$0xff] %vm300_vm1, %v4608_v9  ;;  %v4351_v12 = vadd.f32 %v4308_v33, %v4097_v35  ;;  %v9038_v22 = vpack.c.bf16 %v4722_v63, %v4721_v41 }
 0x58f   : > { %7120 = vmatmul.msk.bf16.gmra.mxu1 %vm300_vm1, %v9031_v47 }
 0x590   : > { %v4541_v32 = vadd.f32 %v4498_v5, %v4351_v12  ;;  %7077 = vmatmul.msk.bf16.gmra.mxu2 %vm300_vm1, %v9038_v22  ;;  %7086 = vmatmul.msk.bf16.gmra.mxu3 %vm300_vm1, %v9006_v30  ;;  %v5039_v5 = vld [vmem:[#allocation4 + $0x92] sm:$0xff] }
 0x591   : > { %v4313_v16 = vpop.f32.mrf.mxu0  ;;  %v9052_v46 = vpack.c.bf16 %v5040_v61, %v5039_v5 }
 0x592   : > { %v4577_v40 = vadd.f32 %v8822_v48, %v4541_v32 }
 0x593   : > { %v4057_v17 = vpop.f32.mrf.mxu3  ;;  %v9046_v15 = vpop.f32.mrf.mxu2  ;;  %9827 = vst [vmem:[#allocation12_spill] sm:$0xff] %v9052_v46 }
 0x594   : > { %v4503_v51 = vpop.f32.mrf.mxu1  ;;  %v4609_v59 = vmax.f32 %v4577_v40, 0.0  ;;  %v4098_v3 = vadd.f32 %v4057_v17, %v8770_v38 }
 0x595   : > { %v4723_v35 = vld [vmem:[#allocation4 + $0x139] sm:$0xff] }
 0x596   : > { %4641 = vst.msk [vmem:[#allocation4 + $0x141] sm:$0xff] %vm300_vm1, %v4609_v59  ;;  %v4352_v33 = vadd.f32 %v4311_v18, %v4098_v3  ;;  %v9056_v18 = vpack.c.bf16 %v5262_v10, %v5261_v37 }
 0x598   : > { %v4542_v57 = vadd.f32 %v4501_v42, %v4352_v33 }
 0x599   : > { %v4316_v55 = vpop.f32.mrf.mxu0 }
 0x59a   : > { %v4578_v19 = vadd.f32 %v8822_v48, %v4542_v57  ;;  %v5042_v57 = vld [vmem:[#allocation4 + $0xb2] sm:$0xff] }
 0x59b   : > { %v4059_v38 = vpop.f32.mrf.mxu3  ;;  %v9058_v42 = vpop.f32.mrf.mxu2 }
 0x59c   : > { %v4506_v2 = vpop.f32.mrf.mxu1  ;;  %v4610_v53 = vmax.f32 %v4578_v19, 0.0  ;;  %7104 = vmatmul.msk.bf16.gmra.mxu0 %vm300_vm1, %v9052_v46  ;;  %v4099_v9 = vadd.f32 %v4059_v38, %v3909_v60  ;;  %v3911_v60 = vadd.f32 %v8784_v6, %v8794_v24 }
 0x59d   : > { %v4724_v41 = vld [vmem:[#allocation4 + $0x141] sm:$0xff] }
 0x59e   : > { %4642 = vst.msk [vmem:[#allocation4 + $0x151] sm:$0xff] %vm300_vm1, %v4610_v53  ;;  %v4353_v63 = vadd.f32 %v4313_v16, %v4099_v9  ;;  %v9063_v12 = vpack.c.bf16 %v4724_v41, %v4723_v35  ;;  %v5263_v53 = vld [vmem:[#allocation4 + $0xc0] sm:$0xff] }
 0x59f   : > { %7121 = vmatmul.msk.bf16.gmra.mxu1 %vm300_vm1, %v9056_v18 }
 0x5a0   : > { %v4543_v32 = vadd.f32 %v4503_v51, %v4353_v63  ;;  %7078 = vmatmul.msk.bf16.gmra.mxu2 %vm300_vm1, %v9063_v12  ;;  %7087 = vmatmul.msk.bf16.gmra.mxu3 %vm300_vm1, %v9031_v47  ;;  %v5041_v51 = vld [vmem:[#allocation4 + $0xaa] sm:$0xff] }
 0x5a1   : > { %v4318_v40 = vpop.f32.mrf.mxu0  ;;  %v9077_v37 = vpack.c.bf16 %v5042_v57, %v5041_v51  ;;  %v7199_v51 = vld [vmem:[%s9749_s5 + $0x10] sm:$0x3] }
 0x5a2   : > { %v4579_v17 = vadd.f32 %v8822_v48, %v4543_v32  ;;  %v7148_v32 = vld [vmem:[%s9749_s5 + $0xa] sm:$0x3] }
 0x5a3   : > { %v4062_v3 = vpop.f32.mrf.mxu3  ;;  %v9071_v61 = vpop.f32.mrf.mxu2  ;;  %9828 = vst [vmem:[#allocation10_spill] sm:$0xff] %v9077_v37 }
 0x5a4   : > { %v4508_v59 = vpop.f32.mrf.mxu1  ;;  %v4611_v33 = vmax.f32 %v4579_v17, 0.0  ;;  %v4100_v5 = vadd.f32 %v4062_v3, %v8780_v36  ;;  %v5792_v17 = vsel %vm761_vm0, %v7148_v32, 0  ;;  %v3913_v32 = vadd.f32 %v8927_v31, %v8816_v52 }
 0x5a5   : > { %v4725_v41 = vld [vmem:[#allocation4 + $0x151] sm:$0xff]  ;;  %5801 = vmatpush.bf16.msra.mxu3 %v5792_v17 }
 0x5a6   : > { %4643 = vst.msk [vmem:[#allocation4 + $0x159] sm:$0xff] %vm300_vm1, %v4611_v33  ;;  %v4354_v16 = vadd.f32 %v4316_v55, %v4100_v5  ;;  %v9081_v55 = vpack.c.bf16 %v5264_v43, %v5263_v53 }
 0x5a8   : > { %v4544_v10 = vadd.f32 %v4506_v2, %v4354_v16  ;;  %9829 = vst [vmem:[#allocation11_spill] sm:$0xff] %v9081_v55 }
 0x5a9   : > { %v4321_v29 = vpop.f32.mrf.mxu0 }
 0x5aa   : > { %v4580_v19 = vadd.f32 %v8822_v48, %v4544_v10 }
 0x5ab   : > { %v4064_v36 = vpop.f32.mrf.mxu3  ;;  %v9083_v2 = vpop.f32.mrf.mxu2 }
 0x5ac   : > { %v4511_v38 = vpop.f32.mrf.mxu1  ;;  %v4612_v9 = vmax.f32 %v4580_v19, 0.0  ;;  %7105 = vmatmul.msk.bf16.gmra.mxu0 %vm300_vm1, %v9077_v37  ;;  %v4101_v35 = vadd.f32 %v4064_v36, %v3911_v60  ;;  %v6459_v60 = vsel %vm761_vm0, %v7199_v51, 0  ;;  %v7182_v36 = vld [vmem:[%s9749_s5 + $0xe] sm:$0x3] }
 0x5ad   : > { %v4726_v63 = vld [vmem:[#allocation4 + $0x159] sm:$0xff]  ;;  %6468 = vmatpush.bf16.msra.mxu2 %v6459_v60 }
 0x5ae   : > { %4644 = vst.msk [vmem:[#allocation4 + $0x169] sm:$0xff] %vm300_vm1, %v4612_v9  ;;  %v4355_v6 = vadd.f32 %v4318_v40, %v4101_v35  ;;  %v9088_v24 = vpack.c.bf16 %v4726_v63, %v4725_v41  ;;  %v5043_v9 = vld [vmem:[#allocation4 + $0xc2] sm:$0xff]  ;;  %v5044_v35 = vld [vmem:[#allocation4 + $0xca] sm:$0xff]  ;;  %v6237_v41 = vsel %vm761_vm0, %v7182_v36, 0 }
 0x5af   : > { %7122 = vmatmul.msk.bf16.gmra.mxu1 %vm300_vm1, %v9081_v55 }
 0x5b0   : > { %9830 = vst [vmem:[#allocation13_spill] sm:$0xff] %v9088_v24  ;;  %v4545_v3 = vadd.f32 %v4508_v59, %v4355_v6  ;;  %7079 = vmatmul.msk.bf16.gmra.mxu2 %vm300_vm1, %v9088_v24  ;;  %7088 = vmatmul.msk.bf16.gmra.mxu3 %vm300_vm1, %v9056_v18  ;;  %v7165_v59 = vld [vmem:[%s9749_s5 + $0xc] sm:$0x3]  ;;  %v5266_v6 = vld [vmem:[#allocation4 + $0xe0] sm:$0xff]  ;;  %v5273_v24 = vld [vmem:[#allocation4 + $0x138] sm:$0xff] }
 0x5b1   : > { %v4323_v33 = vpop.f32.mrf.mxu0  ;;  %v6015_v19 = vsel %vm761_vm0, %v7165_v59, 0  ;;  %6246 = vmatpush.bf16.msra.mxu1 %v6237_v41 }
 0x5b2   : > { %v4581_v5 = vadd.f32 %v8822_v48, %v4545_v3  ;;  %6024 = vmatpush.bf16.msra.mxu0 %v6015_v19  ;;  %v9118_v3 = vpack.c.bf16 %v5044_v35, %v5043_v9 }
 0x5b3   : > { %v4067_v16 = vpop.f32.mrf.mxu3  ;;  %v9106_v43 = vpop.f32.mrf.mxu2 }
 0x5b4   : > { %v4513_v40 = vpop.f32.mrf.mxu1  ;;  %v4613_v57 = vmax.f32 %v4581_v5, 0.0  ;;  %v4102_v10 = vadd.f32 %v4067_v16, %v8805_v23  ;;  %9831 = vst [vmem:[#allocation15_spill] sm:$0xff] %v9118_v3  ;;  %v5265_v5 = vld [vmem:[#allocation4 + $0xd8] sm:$0xff] }
 0x5b5   : > { %v9122_v59 = vpack.c.bf16 %v5266_v6, %v5265_v5  ;;  %v5045_v6 = vld [vmem:[#allocation4 + $0xda] sm:$0xff] }
 0x5b6   : > { %4645 = vst.msk [vmem:[#allocation4 + $0x171] sm:$0xff] %vm300_vm1, %v4613_v57  ;;  %v4356_v53 = vadd.f32 %v4321_v29, %v4102_v10  ;;  %v4727_v10 = vld [vmem:[#allocation4 + $0x169] sm:$0xff] }
 0x5b7   : > { %9832 = vst [vmem:[#allocation14_spill] sm:$0xff] %v9122_v59 }
 0x5b8   : > { %v4546_v23 = vadd.f32 %v4511_v38, %v4356_v53  ;;  %v7393_v53 = vld [vmem:[%s9748_s4] ss:$0 sm:$0xff] }
 0x5b9   : > { %v5137_v63 = vpop.f32.mrf.mxu0 }
 0x5ba   : > { %v4582_v17 = vadd.f32 %v8822_v48, %v4546_v23 }
 0x5bb   : > { %v4069_v16 = vpop.f32.mrf.mxu3  ;;  %v9124_v57 = vpop.f32.mrf.mxu2 }
 0x5bc   : > { %v5359_v29 = vpop.f32.mrf.mxu1  ;;  %v4614_v51 = vmax.f32 %v4582_v17, 0.0  ;;  %7106 = vmatmul.msk.bf16.gmra.mxu0 %vm300_vm1, %v9118_v3  ;;  %v4103_v38 = vadd.f32 %v4069_v16, %v3913_v32  ;;  %v5046_v32 = vld [vmem:[#allocation4 + $0xe2] sm:$0xff]  ;;  %v5268_v16 = vld [vmem:[#allocation4 + $0xf8] sm:$0xff] }
 0x5bd   : > { %v4728_v60 = vld [vmem:[#allocation4 + $0x171] sm:$0xff] }
 0x5be   : > { %4646 = vst.msk [vmem:[#allocation4 + $0x181] sm:$0xff] %vm300_vm1, %v4614_v51  ;;  %v4357_v52 = vadd.f32 %v4323_v33, %v4103_v38  ;;  %v9129_v48 = vpack.c.bf16 %v4728_v60, %v4727_v10  ;;  %v9144_v51 = vpack.c.bf16 %v5046_v32, %v5045_v6  ;;  %v5267_v10 = vld [vmem:[#allocation4 + $0xf0] sm:$0xff] }
 0x5bf   : > { %7123 = vmatmul.msk.bf16.gmra.mxu1 %vm300_vm1, %v9122_v59 }
 0x5c0   : > { %9833 = vst [vmem:[#allocation6_spill] sm:$0xff] %v9129_v48  ;;  %v4547_v31 = vadd.f32 %v4513_v40, %v4357_v52  ;;  %7080 = vmatmul.msk.bf16.gmra.mxu2 %vm300_vm1, %v9129_v48  ;;  %7089 = vmatmul.msk.bf16.gmra.mxu3 %vm300_vm1, %v9081_v55  ;;  %v5472_v52 = vld [vmem:[#allocation4 + $0x21] sm:$0xff] }
 0x5c1   : > { %v5139_v19 = vpop.f32.mrf.mxu0  ;;  %9834 = vst [vmem:[#allocation7_spill] sm:$0xff] %v9144_v51  ;;  %v5271_v48 = vld [vmem:[#allocation4 + $0x120] sm:$0xff] }
 0x5c2   : > { %v4583_v36 = vadd.f32 %v7393_v53, %v4547_v31  ;;  %v9148_v31 = vpack.c.bf16 %v5268_v16, %v5267_v10  ;;  %v5471_v53 = vld [vmem:[#allocation4 + $0x19] sm:$0xff] }
 0x5c3   : > { %v4947_v35 = vpop.f32.mrf.mxu3  ;;  %v9138_v23 = vpop.f32.mrf.mxu2  ;;  %v5047_v16 = vld [vmem:[#allocation4 + $0xf2] sm:$0xff]  ;;  %v5048_v10 = vld [vmem:[#allocation4 + $0xfa] sm:$0xff] }
 0x5c4   : > { %v5361_v9 = vpop.f32.mrf.mxu1  ;;  %v4615_v41 = vmax.f32 %v4583_v36, 0.0  ;;  %v4948_v33 = vadd.f32 %v4947_v35, %v8945_v56  ;;  %9835 = vst [vmem:[#allocation5_spill] sm:$0xff] %v9148_v31  ;;  %v5503_v36 = vpack.c.bf16 %v5472_v52, %v5471_v53  ;;  %v5270_v52 = vld [vmem:[#allocation4 + $0x110] sm:$0xff] }
 0x5c6   : > { %4647 = vst.msk [vmem:[#allocation4 + $0x189] sm:$0xff] %vm300_vm1, %v4615_v41  ;;  %v5217_v40 = vadd.f32 %v5137_v63, %v4948_v33 }
 0x5c8   : > { %v9142_v17 = vadd.f32 %v5359_v29, %v5217_v40 }
 0x5c9   : > { %v5142_v5 = vpop.f32.mrf.mxu0 }
 0x5cb   : > { %v4949_v60 = vpop.f32.mrf.mxu3  ;;  %v9150_v56 = vpop.f32.mrf.mxu2 }
 0x5cc   : > { %v5364_v38 = vpop.f32.mrf.mxu1  ;;  %7107 = vmatmul.msk.bf16.gmra.mxu0 %vm300_vm1, %v9144_v51  ;;  %v4950_v63 = vadd.f32 %v4949_v60, %v8954_v13 }
 0x5ce   : > { %v5218_v29 = vadd.f32 %v5139_v19, %v4950_v63  ;;  %v9165_v63 = vpack.c.bf16 %v5048_v10, %v5047_v16 }
 0x5cf   : > { %7124 = vmatmul.msk.bf16.gmra.mxu1 %vm300_vm1, %v9148_v31 }
 0x5d0   : > { %7090 = vmatmul.msk.bf16.gmra.mxu3 %vm300_vm1, %v9122_v59  ;;  %7132 = vmatmul.msk.bf16.vlgmr.msrb.gmra.mxu2 %vm300_vm1, %v5503_v36  ;;  %v9158_v35 = vadd.f32 %v5361_v9, %v5218_v29  ;;  %9836 = vst [vmem:[#allocation8_spill] sm:$0xff] %v9165_v63  ;;  %v5269_v36 = vld [vmem:[#allocation4 + $0x108] sm:$0xff]  ;;  %v5474_v29 = vld [vmem:[#allocation4 + $0x39] sm:$0xff] }
 0x5d1   : > { %v5144_v41 = vpop.f32.mrf.mxu0  ;;  %v9169_v51 = vpack.c.bf16 %v5270_v52, %v5269_v36 }
 0x5d3   : > { %v4952_v40 = vpop.f32.mrf.mxu3  ;;  %v9160_v6 = vpop.f32.mrf.mxu2  ;;  %9837 = vst [vmem:[#allocation9_spill] sm:$0xff] %v9169_v51 }
 0x5d4   : > { %v5366_v33 = vpop.f32.mrf.mxu1  ;;  %v4953_v13 = vadd.f32 %v4952_v40, %v8971_v0 }
 0x5d6   : > { %v5219_v32 = vadd.f32 %v5142_v5, %v4953_v13  ;;  %v5473_v5 = vld [vmem:[#allocation4 + $0x31] sm:$0xff] }
 0x5d7   : > { %v9176_v40 = vpack.c.bf16 %v5474_v29, %v5473_v5  ;;  %v5272_v5 = vld [vmem:[#allocation4 + $0x128] sm:$0xff] }
 0x5d8   : > { %v9163_v60 = vadd.f32 %v5364_v38, %v5219_v32  ;;  %v9193_v59 = vpack.c.bf16 %v5272_v5, %v5271_v48 }
 0x5d9   : > { %v5147_v19 = vpop.f32.mrf.mxu0 }
 0x5da   : > { %9839 = vst [vmem:[#allocation17_spill] sm:$0xff] %v9193_v59 }
 0x5db   : > { %v4954_v9 = vpop.f32.mrf.mxu3  ;;  %v9171_v3 = vpop.f32.mrf.mxu2 }
 0x5dc   : > { %v5369_v53 = vpop.f32.mrf.mxu1  ;;  %7108 = vmatmul.msk.bf16.gmra.mxu0 %vm300_vm1, %v9165_v63  ;;  %v4955_v0 = vadd.f32 %v4954_v9, %v8983_v21  ;;  %v5049_v9 = vld [vmem:[#allocation4 + $0x10a] sm:$0xff] }
 0x5de   : > { %v5220_v38 = vadd.f32 %v5144_v41, %v4955_v0  ;;  %v5050_v41 = vld [vmem:[#allocation4 + $0x112] sm:$0xff] }
 0x5df   : > { %7125 = vmatmul.msk.bf16.gmra.mxu1 %vm300_vm1, %v9169_v51  ;;  %v9189_v63 = vpack.c.bf16 %v5050_v41, %v5049_v9 }
 0x5e0   : > { %7091 = vmatmul.msk.bf16.gmra.mxu3 %vm300_vm1, %v9148_v31  ;;  %7133 = vmatmul.msk.bf16.gmra.mxu2 %vm300_vm1, %v9176_v40  ;;  %v9182_v13 = vadd.f32 %v5366_v33, %v5220_v38  ;;  %v5476_v38 = vld [vmem:[#allocation4 + $0x51] sm:$0xff] }
 0x5e1   : > { %v5149_v32 = vpop.f32.mrf.mxu0  ;;  %9838 = vst [vmem:[#allocation16_spill] sm:$0xff] %v9189_v63 }
 0x5e3   : > { %v4957_v10 = vpop.f32.mrf.mxu3  ;;  %v9184_v52 = vpop.f32.mrf.mxu2 }
 0x5e4   : > { %v5371_v16 = vpop.f32.mrf.mxu1  ;;  %v4958_v21 = vadd.f32 %v4957_v10, %v8996_v11 }
 0x5e6   : > { %v5221_v36 = vadd.f32 %v5147_v19, %v4958_v21  ;;  %v5475_v19 = vld [vmem:[#allocation4 + $0x49] sm:$0xff] }
 0x5e7   : > { %v9200_v10 = vpack.c.bf16 %v5476_v38, %v5475_v19  ;;  %v5274_v19 = vld [vmem:[#allocation4 + $0x140] sm:$0xff] }
 0x5e8   : > { %v9187_v29 = vadd.f32 %v5369_v53, %v5221_v36 }
 0x5e9   : > { %v5152_v0 = vpop.f32.mrf.mxu0 }
 0x5eb   : > { %v4959_v33 = vpop.f32.mrf.mxu3  ;;  %v9195_v37 = vpop.f32.mrf.mxu2 }
 0x5ec   : > { %v5374_v31 = vpop.f32.mrf.mxu1  ;;  %7109 = vmatmul.msk.bf16.gmra.mxu0 %vm300_vm1, %v9189_v63  ;;  %v4960_v11 = vadd.f32 %v4959_v33, %v9008_v27  ;;  %v5051_v33 = vld [vmem:[#allocation4 + $0x122] sm:$0xff] }
 0x5ee   : > { %v5222_v53 = vadd.f32 %v5149_v32, %v4960_v11  ;;  %v5052_v32 = vld [vmem:[#allocation4 + $0x12a] sm:$0xff] }
 0x5ef   : > { %7126 = vmatmul.msk.bf16.gmra.mxu1 %vm300_vm1, %v9193_v59  ;;  %v9213_v63 = vpack.c.bf16 %v5052_v32, %v5051_v33  ;;  %v5053_v32 = vld [vmem:[#allocation4 + $0x13a] sm:$0xff] }
 0x5f0   : > { %7092 = vmatmul.msk.bf16.gmra.mxu3 %vm300_vm1, %v9169_v51  ;;  %7134 = vmatmul.msk.bf16.gmra.mxu2 %vm300_vm1, %v9200_v10  ;;  %v9206_v21 = vadd.f32 %v5371_v16, %v5222_v53  ;;  %v9217_v53 = vpack.c.bf16 %v5274_v19, %v5273_v24  ;;  %v5054_v19 = vld [vmem:[#allocation4 + $0x142] sm:$0xff] }
 0x5f1   : > { %v5154_v48 = vpop.f32.mrf.mxu0  ;;  %9840 = vst [vmem:[#allocation18_spill] sm:$0xff] %v9213_v63 }
 0x5f2   : > { %9841 = vst [vmem:[#allocation19_spill] sm:$0xff] %v9217_v53 }
 0x5f3   : > { %v4962_v9 = vpop.f32.mrf.mxu3  ;;  %v9208_v41 = vpop.f32.mrf.mxu2 }
 0x5f4   : > { %v5376_v36 = vpop.f32.mrf.mxu1  ;;  %v4963_v27 = vadd.f32 %v4962_v9, %v9021_v8 }
 0x5f6   : > { %v5223_v5 = vadd.f32 %v5152_v0, %v4963_v27 }
 0x5f8   : > { %v9211_v38 = vadd.f32 %v5374_v31, %v5223_v5 }
 0x5f9   : > { %v5157_v11 = vpop.f32.mrf.mxu0 }
 0x5fb   : > { %v4964_v16 = vpop.f32.mrf.mxu3  ;;  %v9219_v55 = vpop.f32.mrf.mxu2 }
 0x5fc   : > { %v5379_v51 = vpop.f32.mrf.mxu1  ;;  %7110 = vmatmul.msk.bf16.gmra.mxu0 %vm300_vm1, %v9213_v63  ;;  %v4965_v8 = vadd.f32 %v4964_v16, %v9033_v4  ;;  %v9235_v63 = vpack.c.bf16 %v5054_v19, %v5053_v32 }
 0x5fe   : > { %v5224_v31 = vadd.f32 %v5154_v48, %v4965_v8  ;;  %v5276_v8 = vld [vmem:[#allocation4 + $0x158] sm:$0xff]  ;;  %9842 = vst [vmem:[#allocation20_spill] sm:$0xff] %v9235_v63 }
 0x5ff   : > { %7127 = vmatmul.msk.bf16.gmra.mxu1 %vm300_vm1, %v9217_v53 }
 0x600   : > { %7093 = vmatmul.msk.bf16.gmra.mxu3 %vm300_vm1, %v9193_v59  ;;  %7135 = vmatmul.msk.bf16.gmra.mxu2 %vm300_vm1, %v8874_v20  ;;  %v9228_v0 = vadd.f32 %v5376_v36, %v5224_v31  ;;  %v5275_v20 = vld [vmem:[#allocation4 + $0x150] sm:$0xff] }
 0x601   : > { %v5159_v9 = vpop.f32.mrf.mxu0  ;;  %v9239_v31 = vpack.c.bf16 %v5276_v8, %v5275_v20  ;;  %v5055_v8 = vld [vmem:[#allocation4 + $0x152] sm:$0xff]  ;;  %v5056_v20 = vld [vmem:[#allocation4 + $0x15a] sm:$0xff] }
 0x603   : > { %v4967_v24 = vpop.f32.mrf.mxu3  ;;  %v9230_v5 = vpop.f32.mrf.mxu2  ;;  %9843 = vst [vmem:[#allocation21_spill] sm:$0xff] %v9239_v31 }
 0x604   : > { %v5381_v27 = vpop.f32.mrf.mxu1  ;;  %v4968_v33 = vadd.f32 %v4967_v24, %v9046_v15 }
 0x606   : > { %v5225_v4 = vadd.f32 %v5157_v11, %v4968_v33 }
 0x608   : > { %v9233_v16 = vadd.f32 %v5379_v51, %v5225_v4 }
 0x609   : > { %v5162_v48 = vpop.f32.mrf.mxu0 }
 0x60b   : > { %v4969_v36 = vpop.f32.mrf.mxu3  ;;  %v9241_v46 = vpop.f32.mrf.mxu2 }
 0x60c   : > { %v5384_v59 = vpop.f32.mrf.mxu1  ;;  %7111 = vmatmul.msk.bf16.gmra.mxu0 %vm300_vm1, %v9235_v63  ;;  %v4970_v15 = vadd.f32 %v4969_v36, %v9058_v42  ;;  %v9257_v63 = vpack.c.bf16 %v5056_v20, %v5055_v8 }
 0x60e   : > { %v5226_v51 = vadd.f32 %v5159_v9, %v4970_v15  ;;  %v5278_v15 = vld [vmem:[#allocation4 + $0x170] sm:$0xff]  ;;  %9845 = vst [vmem:[#allocation23_spill] sm:$0xff] %v9257_v63 }
 0x60f   : > { %7128 = vmatmul.msk.bf16.gmra.mxu1 %vm300_vm1, %v9239_v31 }
 0x610   : > { %7094 = vmatmul.msk.bf16.gmra.mxu3 %vm300_vm1, %v9217_v53  ;;  %7136 = vmatmul.msk.bf16.gmra.mxu2 %vm300_vm1, %v8889_v62  ;;  %v9250_v11 = vadd.f32 %v5381_v27, %v5226_v51  ;;  %v5277_v62 = vld [vmem:[#allocation4 + $0x168] sm:$0xff] }
 0x611   : > { %v5164_v24 = vpop.f32.mrf.mxu0  ;;  %v9261_v51 = vpack.c.bf16 %v5278_v15, %v5277_v62  ;;  %v5057_v15 = vld [vmem:[#allocation4 + $0x16a] sm:$0xff]  ;;  %v5058_v62 = vld [vmem:[#allocation4 + $0x172] sm:$0xff] }
 0x612   : > { %9844 = vst [vmem:[#allocation22_spill] sm:$0xff] %v9250_v11 }
 0x613   : > { %v4972_v4 = vpop.f32.mrf.mxu3  ;;  %v9252_v32 = vpop.f32.mrf.mxu2 }
 0x614   : > { %v5386_v33 = vpop.f32.mrf.mxu1  ;;  %v4973_v19 = vadd.f32 %v4972_v4, %v9071_v61 }
 0x616   : > { %v5227_v42 = vadd.f32 %v5162_v48, %v4973_v19 }
 0x618   : > { %v9255_v36 = vadd.f32 %v5384_v59, %v5227_v42 }
 0x619   : > { %v5167_v9 = vpop.f32.mrf.mxu0 }
 0x61b   : > { %v4974_v27 = vpop.f32.mrf.mxu3  ;;  %v9263_v11 = vpop.f32.mrf.mxu2 }
 0x61c   : > { %v5389_v53 = vpop.f32.mrf.mxu1  ;;  %7112 = vmatmul.msk.bf16.gmra.mxu0 %vm300_vm1, %v9257_v63  ;;  %v4975_v61 = vadd.f32 %v4974_v27, %v9083_v2  ;;  %v9279_v63 = vpack.c.bf16 %v5058_v62, %v5057_v15 }
 0x61e   : > { %v5228_v59 = vadd.f32 %v5164_v24, %v4975_v61  ;;  %v5280_v61 = vld [vmem:[#allocation4 + $0x188] sm:$0xff] }
 0x61f   : > { %7129 = vmatmul.msk.bf16.gmra.mxu1 %vm300_vm1, %v9261_v51 }
 0x620   : > { %7095 = vmatmul.msk.bf16.gmra.mxu3 %vm300_vm1, %v9239_v31  ;;  %7137 = vmatmul.msk.bf16.gmra.mxu2 %vm300_vm1, %v8903_v49  ;;  %v9272_v48 = vadd.f32 %v5386_v33, %v5228_v59  ;;  %v5279_v49 = vld [vmem:[#allocation4 + $0x180] sm:$0xff] }
 0x621   : > { %v5169_v4 = vpop.f32.mrf.mxu0  ;;  %v9283_v59 = vpack.c.bf16 %v5280_v61, %v5279_v49 }
 0x622   : > { %9846 = vst [vmem:[#allocation24_spill] sm:$0xff] %v9272_v48 }
 0x623   : > { %v4977_v42 = vpop.f32.mrf.mxu3  ;;  %v9274_v8 = vpop.f32.mrf.mxu2 }
 0x624   : > { %v5391_v19 = vpop.f32.mrf.mxu1  ;;  %v4978_v20 = vadd.f32 %v4977_v42, %v9106_v43 }
 0x626   : > { %v5229_v2 = vadd.f32 %v5167_v9, %v4978_v20 }
 0x628   : > { %v9277_v27 = vadd.f32 %v5389_v53, %v5229_v2 }
 0x629   : > { %v5172_v24 = vpop.f32.mrf.mxu0 }
 0x62b   : > { %v4979_v33 = vpop.f32.mrf.mxu3  ;;  %v9285_v48 = vpop.f32.mrf.mxu2 }
 0x62c   : > { %v5394_v31 = vpop.f32.mrf.mxu1  ;;  %7113 = vmatmul.msk.bf16.gmra.mxu0 %vm300_vm1, %v9279_v63  ;;  %v4980_v43 = vadd.f32 %v4979_v33, %v9124_v57 }
 0x62e   : > { %v5230_v53 = vadd.f32 %v5169_v4, %v4980_v43 }
 0x62f   : > { %7130 = vmatmul.msk.bf16.gmra.mxu1 %vm300_vm1, %v9283_v59 }
 0x630   : > { %7096 = vmatmul.msk.bf16.gmra.mxu3 %vm300_vm1, %v9261_v51  ;;  %7138 = vmatmul.msk.bf16.gmra.mxu2 %vm300_vm1, %v8917_v45  ;;  %v9294_v9 = vadd.f32 %v5391_v19, %v5230_v53 }
 0x631   : > { %v5174_v42 = vpop.f32.mrf.mxu0 }
 0x633   : > { %v4982_v2 = vpop.f32.mrf.mxu3  ;;  %v9296_v15 = vpop.f32.mrf.mxu2 }
 0x634   : > { %v5396_v20 = vpop.f32.mrf.mxu1  ;;  %v4983_v62 = vadd.f32 %v4982_v2, %v9138_v23 }
 0x636   : > { %v5231_v57 = vadd.f32 %v5172_v24, %v4983_v62 }
 0x638   : > { %v9299_v61 = vadd.f32 %v5394_v31, %v5231_v57 }
 0x639   : > { %v5177_v49 = vpop.f32.mrf.mxu0 }
 0x63b   : > { %v4984_v33 = vpop.f32.mrf.mxu3  ;;  %v9303_v43 = vpop.f32.mrf.mxu2 }
 0x63c   : > { %v5399_v4 = vpop.f32.mrf.mxu1  ;;  %7166 = vmatmul.msk.bf16.vlgmr.msra.gmra.mxu0 %vm300_vm1, %v8934_v25  ;;  %v4985_v45 = vadd.f32 %v4984_v33, %v9150_v56 }
 0x63e   : > { %v5232_v19 = vadd.f32 %v5174_v42, %v4985_v45 }
 0x63f   : > { %7183 = vmatmul.msk.bf16.vlgmr.msra.gmra.mxu1 %vm300_vm1, %v9176_v40 }
 0x640   : > { %7139 = vmatmul.msk.bf16.gmra.mxu2 %vm300_vm1, %v8939_v54  ;;  %7149 = vmatmul.msk.bf16.vlgmr.msra.gmra.mxu3 %vm300_vm1, %v8930_v14  ;;  %v9312_v23 = vadd.f32 %v5396_v20, %v5232_v19 }
 0x641   : > { %v5179_v31 = vpop.f32.mrf.mxu0 }
 0x643   : > { %v4987_v53 = vpop.f32.mrf.mxu3  ;;  %v9314_v25 = vpop.f32.mrf.mxu2 }
 0x644   : > { %v5401_v24 = vpop.f32.mrf.mxu1  ;;  %v4988_v2 = vadd.f32 %v4987_v53, %v9160_v6  ;;  %v6143_v53 = vld [vmem:[#allocation4 + $0x69] sm:$0xff] }
 0x646   : > { %v5233_v56 = vadd.f32 %v5177_v49, %v4988_v2  ;;  %v6142_v2 = vld [vmem:[#allocation4 + $0x61] sm:$0xff] }
 0x648   : > { %v9317_v62 = vadd.f32 %v5399_v4, %v5233_v56 }
 0x649   : > { %v5182_v40 = vpop.f32.mrf.mxu0 }
 0x64b   : > { %v4989_v57 = vpop.f32.mrf.mxu3  ;;  %v9321_v54 = vpop.f32.mrf.mxu2 }
 0x64c   : > { %v5404_v42 = vpop.f32.mrf.mxu1  ;;  %7167 = vmatmul.msk.bf16.gmra.mxu0 %vm300_vm1, %v8958_v44  ;;  %v4990_v14 = vadd.f32 %v4989_v57, %v9171_v3 }
 0x64e   : > { %v5234_v20 = vadd.f32 %v5179_v31, %v4990_v14 }
 0x64f   : > { %7184 = vmatmul.msk.bf16.gmra.mxu1 %vm300_vm1, %v9200_v10 }
 0x650   : > { %7140 = vmatmul.msk.bf16.gmra.mxu2 %vm300_vm1, %v8963_v34  ;;  %7150 = vmatmul.msk.bf16.gmra.mxu3 %vm300_vm1, %v8952_v26  ;;  %v9330_v6 = vadd.f32 %v5401_v24, %v5234_v20  ;;  %v6172_v26 = vpack.c.bf16 %v6143_v53, %v6142_v2 }
 0x651   : > { %v5184_v49 = vpop.f32.mrf.mxu0 }
 0x653   : > { %v4992_v33 = vpop.f32.mrf.mxu3  ;;  %v5581_v45 = vpop.f32.mrf.mxu2 }
 0x654   : > { %v5406_v4 = vpop.f32.mrf.mxu1  ;;  %v4993_v44 = vadd.f32 %v4992_v33, %v9184_v52  ;;  %v9334_v3 = vadd.f32 %v5581_v45, %v9142_v17  ;;  %v6145_v45 = vld [vmem:[#allocation4 + $0x81] sm:$0xff] }
 0x656   : > { %v5235_v19 = vadd.f32 %v5182_v40, %v4993_v44 }
 0x658   : > { %v9336_v10 = vadd.f32 %v5404_v42, %v5235_v19  ;;  %v6144_v19 = vld [vmem:[#allocation4 + $0x79] sm:$0xff] }
 0x659   : > { %v5187_v31 = vpop.f32.mrf.mxu0 }
 0x65b   : > { %v4994_v56 = vpop.f32.mrf.mxu3  ;;  %v5583_v57 = vpop.f32.mrf.mxu2 }
 0x65c   : > { %v5409_v34 = vpop.f32.mrf.mxu1  ;;  %7168 = vmatmul.msk.bf16.gmra.mxu0 %vm300_vm1, %v8981_v7  ;;  %v4995_v24 = vadd.f32 %v4994_v56, %v9195_v37  ;;  %v9342_v52 = vadd.f32 %v5583_v57, %v9158_v35 }
 0x65e   : > { %v5236_v17 = vadd.f32 %v5184_v49, %v4995_v24 }
 0x65f   : > { %7185 = vmatmul.msk.bf16.gmra.mxu1 %vm300_vm1, %v6172_v26 }
 0x660   : > { %7141 = vmatmul.msk.bf16.gmra.mxu2 %vm300_vm1, %v8988_v39  ;;  %7151 = vmatmul.msk.bf16.gmra.mxu3 %vm300_vm1, %v8977_v1  ;;  %v9349_v40 = vadd.f32 %v5406_v4, %v5236_v17  ;;  %v6173_v1 = vpack.c.bf16 %v6145_v45, %v6144_v19 }
 0x661   : > { %v5189_v42 = vpop.f32.mrf.mxu0 }
 0x663   : > { %v4997_v14 = vpop.f32.mrf.mxu3  ;;  %v5586_v20 = vpop.f32.mrf.mxu2 }
 0x664   : > { %v5411_v7 = vpop.f32.mrf.mxu1  ;;  %v4998_v37 = vadd.f32 %v4997_v14, %v9208_v41  ;;  %v9353_v35 = vadd.f32 %v5586_v20, %v9163_v60  ;;  %v6146_v14 = vld [vmem:[#allocation4 + $0x91] sm:$0xff] }
 0x666   : > { %v5237_v33 = vadd.f32 %v5187_v31, %v4998_v37 }
 0x668   : > { %v9355_v44 = vadd.f32 %v5409_v34, %v5237_v33 }
 0x669   : > { %v5192_v49 = vpop.f32.mrf.mxu0 }
 0x66b   : > { %v4999_v53 = vpop.f32.mrf.mxu3  ;;  %v5588_v2 = vpop.f32.mrf.mxu2 }
 0x66c   : > { %v5414_v39 = vpop.f32.mrf.mxu1  ;;  %7169 = vmatmul.msk.bf16.gmra.mxu0 %vm300_vm1, %v9006_v30  ;;  %v5000_v4 = vadd.f32 %v4999_v53, %v9219_v55  ;;  %v9361_v41 = vadd.f32 %v5588_v2, %v9182_v13  ;;  %v6148_v2 = vld [vmem:[#allocation4 + $0xa9] sm:$0xff] }
 0x66e   : > { %v5238_v60 = vadd.f32 %v5189_v42, %v5000_v4  ;;  %v6147_v42 = vld [vmem:[#allocation4 + $0x99] sm:$0xff]  ;;  %v6149_v4 = vld [vmem:[#allocation4 + $0xb1] sm:$0xff] }
 0x66f   : > { %7186 = vmatmul.msk.bf16.gmra.mxu1 %vm300_vm1, %v6173_v1 }
 0x670   : > { %7142 = vmatmul.msk.bf16.gmra.mxu2 %vm300_vm1, %v9013_v58  ;;  %7152 = vmatmul.msk.bf16.gmra.mxu3 %vm300_vm1, %v9002_v50  ;;  %v9368_v31 = vadd.f32 %v5411_v7, %v5238_v60  ;;  %v6174_v50 = vpack.c.bf16 %v6147_v42, %v6146_v14 }
 0x671   : > { %v5194_v34 = vpop.f32.mrf.mxu0 }
 0x673   : > { %v5002_v56 = vpop.f32.mrf.mxu3  ;;  %v5591_v26 = vpop.f32.mrf.mxu2 }
 0x674   : > { %v5416_v30 = vpop.f32.mrf.mxu1  ;;  %v5003_v55 = vadd.f32 %v5002_v56, %v9230_v5  ;;  %v9372_v13 = vadd.f32 %v5591_v26, %v9187_v29  ;;  %v9847_v56 = vld [vmem:[#allocation12_spill] sm:$0xff] }
 0x676   : > { %v5239_v24 = vadd.f32 %v5192_v49, %v5003_v55 }
 0x678   : > { %v9374_v57 = vadd.f32 %v5414_v39, %v5239_v24 }
 0x679   : > { %v5197_v17 = vpop.f32.mrf.mxu0 }
 0x67b   : > { %v5004_v37 = vpop.f32.mrf.mxu3  ;;  %v5593_v20 = vpop.f32.mrf.mxu2 }
 0x67c   : > { %v5419_v58 = vpop.f32.mrf.mxu1  ;;  %7170 = vmatmul.msk.bf16.gmra.mxu0 %vm300_vm1, %v9031_v47  ;;  %v5005_v7 = vadd.f32 %v5004_v37, %v9241_v46  ;;  %v9380_v5 = vadd.f32 %v5593_v20, %v9206_v21  ;;  %v6151_v37 = vld [vmem:[#allocation4 + $0xc9] sm:$0xff]  ;;  %v9848_v20 = vld [vmem:[#allocation11_spill] sm:$0xff] }
 0x67e   : > { %v5240_v29 = vadd.f32 %v5194_v34, %v5005_v7 }
 0x67f   : > { %7187 = vmatmul.msk.bf16.gmra.mxu1 %vm300_vm1, %v6174_v50  ;;  %v6150_v50 = vld [vmem:[#allocation4 + $0xc1] sm:$0xff] }
 0x680   : > { %7143 = vmatmul.msk.bf16.gmra.mxu2 %vm300_vm1, %v9038_v22  ;;  %7153 = vmatmul.msk.bf16.gmra.mxu3 %vm300_vm1, %v9027_v28  ;;  %v9387_v33 = vadd.f32 %v5416_v30, %v5240_v29  ;;  %v6175_v28 = vpack.c.bf16 %v6149_v4, %v6148_v2  ;;  %v6176_v29 = vpack.c.bf16 %v6151_v37, %v6150_v50 }
 0x681   : > { %v5199_v49 = vpop.f32.mrf.mxu0 }
 0x683   : > { %v5007_v45 = vpop.f32.mrf.mxu3  ;;  %v5596_v39 = vpop.f32.mrf.mxu2 }
 0x684   : > { %v5421_v47 = vpop.f32.mrf.mxu1  ;;  %v5008_v46 = vadd.f32 %v5007_v45, %v9252_v32  ;;  %v9391_v21 = vadd.f32 %v5596_v39, %v9211_v38  ;;  %v9851_v39 = vld [vmem:[#allocation10_spill] sm:$0xff] }
 0x686   : > { %v5241_v19 = vadd.f32 %v5197_v17, %v5008_v46  ;;  %v9850_v46 = vld [vmem:[#allocation13_spill] sm:$0xff] }
 0x688   : > { %v9393_v53 = vadd.f32 %v5419_v58, %v5241_v19 }
 0x689   : > { %v5202_v1 = vpop.f32.mrf.mxu0 }
 0x68b   : > { %v5009_v60 = vpop.f32.mrf.mxu3  ;;  %v5598_v30 = vpop.f32.mrf.mxu2 }
 0x68c   : > { %v5424_v22 = vpop.f32.mrf.mxu1  ;;  %7171 = vmatmul.msk.bf16.gmra.mxu0 %vm300_vm1, %v9056_v18  ;;  %v5010_v34 = vadd.f32 %v5009_v60, %v9263_v11  ;;  %v9399_v32 = vadd.f32 %v5598_v30, %v9228_v0 }
 0x68e   : > { %v5242_v38 = vadd.f32 %v5199_v49, %v5010_v34 }
 0x68f   : > { %7188 = vmatmul.msk.bf16.gmra.mxu1 %vm300_vm1, %v6175_v28 }
 0x690   : > { %7144 = vmatmul.msk.bf16.gmra.mxu2 %vm300_vm1, %v9063_v12  ;;  %7154 = vmatmul.msk.bf16.gmra.mxu3 %vm300_vm1, %v9847_v56  ;;  %v9406_v55 = vadd.f32 %v5421_v47, %v5242_v38  ;;  %v6153_v38 = vld [vmem:[#allocation4 + $0xe1] sm:$0xff] }
 0x691   : > { %v5204_v26 = vpop.f32.mrf.mxu0 }
 0x693   : > { %v5012_v24 = vpop.f32.mrf.mxu3  ;;  %v5601_v17 = vpop.f32.mrf.mxu2 }
 0x694   : > { %v5426_v18 = vpop.f32.mrf.mxu1  ;;  %v5013_v11 = vadd.f32 %v5012_v24, %v9274_v8  ;;  %v9410_v0 = vadd.f32 %v5601_v17, %v9233_v16  ;;  %v9849_v8 = vld [vmem:[#allocation22_spill] sm:$0xff] }
 0x696   : > { %v5243_v42 = vadd.f32 %v5202_v1, %v5013_v11  ;;  %v9852_v11 = vld [vmem:[#allocation14_spill] sm:$0xff] }
 0x698   : > { %v9412_v58 = vadd.f32 %v5424_v22, %v5243_v42 }
 0x699   : > { %v5207_v14 = vpop.f32.mrf.mxu0 }
 0x69b   : > { %v5014_v7 = vpop.f32.mrf.mxu3  ;;  %v5603_v47 = vpop.f32.mrf.mxu2 }
 0x69c   : > { %v5429_v12 = vpop.f32.mrf.mxu1  ;;  %7172 = vmatmul.msk.bf16.gmra.mxu0 %vm300_vm1, %v9848_v20  ;;  %v5015_v49 = vadd.f32 %v5014_v7, %v9285_v48  ;;  %v9418_v45 = vadd.f32 %v5603_v47, %v9849_v8 }
 0x69e   : > { %v5244_v16 = vadd.f32 %v5204_v26, %v5015_v49  ;;  %v6152_v26 = vld [vmem:[#allocation4 + $0xd9] sm:$0xff] }
 0x69f   : > { %7189 = vmatmul.msk.bf16.gmra.mxu1 %vm300_vm1, %v6176_v29 }
 0x6a0   : > { %7145 = vmatmul.msk.bf16.gmra.mxu2 %vm300_vm1, %v9850_v46  ;;  %7155 = vmatmul.msk.bf16.gmra.mxu3 %vm300_vm1, %v9851_v39  ;;  %v9425_v19 = vadd.f32 %v5426_v18, %v5244_v16  ;;  %v6177_v18 = vpack.c.bf16 %v6153_v38, %v6152_v26  ;;  %v6155_v39 = vld [vmem:[#allocation4 + $0xf9] sm:$0xff] }
 0x6a1   : > { %v5209_v1 = vpop.f32.mrf.mxu0 }
 0x6a3   : > { %v5017_v22 = vpop.f32.mrf.mxu3  ;;  %v5606_v2 = vpop.f32.mrf.mxu2 }
 0x6a4   : > { %v5431_v4 = vpop.f32.mrf.mxu1  ;;  %v5018_v48 = vadd.f32 %v5017_v22, %v9296_v15  ;;  %v9429_v60 = vadd.f32 %v5606_v2, %v9255_v36  ;;  %v9853_v15 = vld [vmem:[#allocation24_spill] sm:$0xff]  ;;  %v6154_v22 = vld [vmem:[#allocation4 + $0xf1] sm:$0xff] }
 0x6a5   : > { %v5502_v2 = vld [vmem:[#allocation4 + $0x189] sm:$0xff] }
 0x6a6   : > { %v5245_v28 = vadd.f32 %v5207_v14, %v5018_v48  ;;  %v9854_v14 = vld [vmem:[#allocation6_spill] sm:$0xff] }
 0x6a8   : > { %v9431_v34 = vadd.f32 %v5429_v12, %v5245_v28  ;;  %v9855_v12 = vld [vmem:[#allocation15_spill] sm:$0xff]  ;;  %v6178_v28 = vpack.c.bf16 %v6155_v39, %v6154_v22 }
 0x6a9   : > { %v5212_v30 = vpop.f32.mrf.mxu0 }
 0x6ab   : > { %v5019_v24 = vpop.f32.mrf.mxu3  ;;  %v5608_v42 = vpop.f32.mrf.mxu2 }
 0x6ac   : > { %v5434_v56 = vpop.f32.mrf.mxu1  ;;  %7173 = vmatmul.msk.bf16.gmra.mxu0 %vm300_vm1, %v9852_v11  ;;  %v5020_v17 = vadd.f32 %v5019_v24, %v9303_v43  ;;  %v9437_v37 = vadd.f32 %v5608_v42, %v9853_v15  ;;  %v9857_v24 = vld [vmem:[#allocation7_spill] sm:$0xff] }
 0x6ae   : > { %v5246_v36 = vadd.f32 %v5209_v1, %v5020_v17 }
 0x6af   : > { %7190 = vmatmul.msk.bf16.gmra.mxu1 %vm300_vm1, %v6177_v18 }
 0x6b0   : > { %7146 = vmatmul.msk.bf16.gmra.mxu2 %vm300_vm1, %v9854_v14  ;;  %7156 = vmatmul.msk.bf16.gmra.mxu3 %vm300_vm1, %v9855_v12  ;;  %v9444_v50 = vadd.f32 %v5431_v4, %v5246_v36  ;;  %v9856_v4 = vld [vmem:[#allocation5_spill] sm:$0xff] }
 0x6b1   : > { %v5214_v7 = vpop.f32.mrf.mxu0  ;;  %v6157_v12 = vld [vmem:[#allocation4 + $0x111] sm:$0xff] }
 0x6b3   : > { %v5022_v29 = vpop.f32.mrf.mxu3  ;;  %v5611_v49 = vpop.f32.mrf.mxu2 }
 0x6b4   : > { %v5436_v20 = vpop.f32.mrf.mxu1  ;;  %v5023_v43 = vadd.f32 %v5022_v29, %v9314_v25  ;;  %v9448_v47 = vadd.f32 %v5611_v49, %v9277_v27  ;;  %v5501_v27 = vld [vmem:[#allocation4 + $0x181] sm:$0xff]  ;;  %v6156_v29 = vld [vmem:[#allocation4 + $0x109] sm:$0xff]  ;;  %v6360_v49 = vld [vmem:[#allocation4 + $0x32] sm:$0xff] }
 0x6b5   : > { %v6179_v39 = vpack.c.bf16 %v6157_v12, %v6156_v29  ;;  %v9860_v12 = vld [vmem:[#allocation17_spill] sm:$0xff] }
 0x6b6   : > { %v5247_v8 = vadd.f32 %v5212_v30, %v5023_v43 }
 0x6b8   : > { %v9450_v16 = vadd.f32 %v5434_v56, %v5247_v8  ;;  %v9459_v56 = vpack.c.bf16 %v5502_v2, %v5501_v27  ;;  %v6361_v8 = vld [vmem:[#allocation4 + $0x3a] sm:$0xff]  ;;  %v9859_v2 = vld [vmem:[#allocation8_spill] sm:$0xff] }
 0x6b9   : > { %v6026_v46 = vpop.f32.mrf.mxu0 }
 0x6bb   : > { %v5024_v48 = vpop.f32.mrf.mxu3  ;;  %v5613_v25 = vpop.f32.mrf.mxu2 }
 0x6bc   : > { %v6248_v1 = vpop.f32.mrf.mxu1  ;;  %7174 = vmatmul.msk.bf16.gmra.mxu0 %vm300_vm1, %v9856_v4  ;;  %v5025_v38 = vadd.f32 %v5024_v48, %v9321_v54  ;;  %v9456_v26 = vadd.f32 %v5613_v25, %v9294_v9 }
 0x6be   : > { %v5248_v30 = vadd.f32 %v5214_v7, %v5025_v38 }
 0x6bf   : > { %7191 = vmatmul.msk.bf16.gmra.mxu1 %vm300_vm1, %v6178_v28 }
 0x6c0   : > { %7147 = vmatmul.msk.bf16.gmra.mxu2 %vm300_vm1, %v9459_v56  ;;  %7157 = vmatmul.msk.bf16.gmra.mxu3 %vm300_vm1, %v9857_v24  ;;  %v9465_v11 = vadd.f32 %v5436_v20, %v5248_v30  ;;  %v9858_v20 = vld [vmem:[#allocation9_spill] sm:$0xff] }
 0x6c1   : > { %v6028_v18 = vpop.f32.mrf.mxu0 }
 0x6c3   : > { %v5803_v17 = vpop.f32.mrf.mxu3  ;;  %v5616_v42 = vpop.f32.mrf.mxu2 }
 0x6c4   : > { %v6250_v54 = vpop.f32.mrf.mxu1  ;;  %v5883_v9 = vadd.f32 %v5803_v17, %v9334_v3  ;;  %v9469_v15 = vadd.f32 %v5616_v42, %v9299_v61  ;;  %v6158_v17 = vld [vmem:[#allocation4 + $0x121] sm:$0xff] }
 0x6c6   : > { %v6106_v36 = vadd.f32 %v6026_v46, %v5883_v9  ;;  %v6362_v9 = vld [vmem:[#allocation4 + $0x4a] sm:$0xff] }
 0x6c8   : > { %v9471_v14 = vadd.f32 %v6248_v1, %v6106_v36  ;;  %v6392_v1 = vpack.c.bf16 %v6361_v8, %v6360_v49  ;;  %v6363_v36 = vld [vmem:[#allocation4 + $0x52] sm:$0xff]  ;;  %v9861_v8 = vld [vmem:[#allocation16_spill] sm:$0xff] }
 0x6c9   : > { %v6031_v7 = vpop.f32.mrf.mxu0 }
 0x6cb   : > { %v5805_v43 = vpop.f32.mrf.mxu3  ;;  %v5618_v22 = vpop.f32.mrf.mxu2 }
 0x6cc   : > { %7175 = vmatmul.msk.bf16.gmra.mxu0 %vm300_vm1, %v9858_v20  ;;  %v5884_v48 = vadd.f32 %v5805_v43, %v9342_v52  ;;  %v6253_v3 = vpop.f32.mrf.mxu1  ;;  %v9477_v61 = vadd.f32 %v5618_v22, %v9312_v23 }
 0x6ce   : > { %v6107_v46 = vadd.f32 %v6028_v18, %v5884_v48  ;;  %v6159_v18 = vld [vmem:[#allocation4 + $0x129] sm:$0xff] }
 0x6cf   : > { %7192 = vmatmul.msk.bf16.gmra.mxu1 %vm300_vm1, %v6179_v39 }
 0x6d0   : > { %7158 = vmatmul.msk.bf16.gmra.mxu3 %vm300_vm1, %v9859_v2  ;;  %7200 = vmatmul.msk.bf16.vlgmr.msra.gmra.mxu2 %vm300_vm1, %v6392_v1  ;;  %v9483_v4 = vadd.f32 %v6250_v54, %v6107_v46  ;;  %v6180_v54 = vpack.c.bf16 %v6159_v18, %v6158_v17  ;;  %v6161_v2 = vld [vmem:[#allocation4 + $0x141] sm:$0xff] }
 0x6d1   : > { %v6033_v52 = vpop.f32.mrf.mxu0 }
 0x6d3   : > { %v5808_v28 = vpop.f32.mrf.mxu3  ;;  %v5621_v38 = vpop.f32.mrf.mxu2 }
 0x6d4   : > { %v5885_v25 = vadd.f32 %v5808_v28, %v9353_v35  ;;  %v9487_v27 = vadd.f32 %v5621_v38, %v9317_v62  ;;  %v6255_v30 = vpop.f32.mrf.mxu1  ;;  %v6160_v38 = vld [vmem:[#allocation4 + $0x139] sm:$0xff] }
 0x6d5   : > { %v6181_v18 = vpack.c.bf16 %v6161_v2, %v6160_v38 }
 0x6d6   : > { %v6108_v23 = vadd.f32 %v6031_v7, %v5885_v25  ;;  %v6393_v7 = vpack.c.bf16 %v6363_v36, %v6362_v9  ;;  %v9863_v36 = vld [vmem:[#allocation18_spill] sm:$0xff] }
 0x6d8   : > { %v9489_v24 = vadd.f32 %v6253_v3, %v6108_v23  ;;  %v6365_v23 = vld [vmem:[#allocation4 + $0x6a] sm:$0xff] }
 0x6d9   : > { %v6036_v49 = vpop.f32.mrf.mxu0 }
 0x6db   : > { %v5810_v42 = vpop.f32.mrf.mxu3  ;;  %v5623_v29 = vpop.f32.mrf.mxu2 }
 0x6dc   : > { %7176 = vmatmul.msk.bf16.gmra.mxu0 %vm300_vm1, %v9860_v12  ;;  %v5886_v35 = vadd.f32 %v5810_v42, %v9361_v41  ;;  %v9495_v43 = vadd.f32 %v5623_v29, %v9330_v6  ;;  %v6258_v39 = vpop.f32.mrf.mxu1 }
 0x6de   : > { %v6109_v62 = vadd.f32 %v6033_v52, %v5886_v35  ;;  %v6364_v52 = vld [vmem:[#allocation4 + $0x62] sm:$0xff] }
 0x6df   : > { %7193 = vmatmul.msk.bf16.gmra.mxu1 %vm300_vm1, %v6180_v54  ;;  %v6394_v9 = vpack.c.bf16 %v6365_v23, %v6364_v52  ;;  %v9865_v23 = vld [vmem:[#allocation20_spill] sm:$0xff] }
 0x6e0   : > { %7159 = vmatmul.msk.bf16.gmra.mxu3 %vm300_vm1, %v9861_v8  ;;  %7201 = vmatmul.msk.bf16.gmra.mxu2 %vm300_vm1, %v6393_v7  ;;  %v9501_v20 = vadd.f32 %v6255_v30, %v6109_v62  ;;  %v9862_v30 = vld [vmem:[#allocation19_spill] sm:$0xff] }
 0x6e1   : > { %v6038_v1 = vpop.f32.mrf.mxu0  ;;  %v6163_v8 = vld [vmem:[#allocation4 + $0x159] sm:$0xff] }
 0x6e3   : > { %v5813_v22 = vpop.f32.mrf.mxu3  ;;  %v5626_v48 = vpop.f32.mrf.mxu2 }
 0x6e4   : > { %v5887_v41 = vadd.f32 %v5813_v22, %v9372_v13  ;;  %v9505_v6 = vadd.f32 %v5626_v48, %v9336_v10  ;;  %v6260_v28 = vpop.f32.mrf.mxu1  ;;  %v6366_v48 = vld [vmem:[#allocation4 + $0x7a] sm:$0xff] }
 0x6e6   : > { %v6110_v3 = vadd.f32 %v6036_v49, %v5887_v41  ;;  %v6367_v41 = vld [vmem:[#allocation4 + $0x82] sm:$0xff] }
 0x6e8   : > { %v9507_v46 = vadd.f32 %v6258_v39, %v6110_v3  ;;  %v6162_v39 = vld [vmem:[#allocation4 + $0x151] sm:$0xff] }
 0x6e9   : > { %v6041_v54 = vpop.f32.mrf.mxu0  ;;  %v9864_v3 = vld [vmem:[#allocation21_spill] sm:$0xff] }
 0x6eb   : > { %v5815_v25 = vpop.f32.mrf.mxu3  ;;  %v5628_v17 = vpop.f32.mrf.mxu2 }
 0x6ec   : > { %7177 = vmatmul.msk.bf16.gmra.mxu0 %vm300_vm1, %v9862_v30  ;;  %v5888_v13 = vadd.f32 %v5815_v25, %v9380_v5  ;;  %v9513_v10 = vadd.f32 %v5628_v17, %v9349_v40  ;;  %v6263_v5 = vpop.f32.mrf.mxu1  ;;  %v6395_v25 = vpack.c.bf16 %v6367_v41, %v6366_v48  ;;  %v5947_v48 = vld [vmem:[#allocation4 + $0x1a0] sm:$0xff] }
 0x6ed   : > { %v6169_v41 = vld [vmem:[#allocation4 + $0x1a1] sm:$0xff] }
 0x6ee   : > { %v6111_v42 = vadd.f32 %v6038_v1, %v5888_v13  ;;  %v6182_v1 = vpack.c.bf16 %v6163_v8, %v6162_v39  ;;  %v6164_v13 = vld [vmem:[#allocation4 + $0x169] sm:$0xff] }
 0x6ef   : > { %7194 = vmatmul.msk.bf16.gmra.mxu1 %vm300_vm1, %v6181_v18 }
 0x6f0   : > { %7160 = vmatmul.msk.bf16.gmra.mxu3 %vm300_vm1, %v9863_v36  ;;  %7202 = vmatmul.msk.bf16.gmra.mxu2 %vm300_vm1, %v6394_v9  ;;  %v9519_v12 = vadd.f32 %v6260_v28, %v6111_v42  ;;  %v6369_v42 = vld [vmem:[#allocation4 + $0x9a] sm:$0xff] }
 0x6f3   : > { %v5818_v29 = vpop.f32.mrf.mxu3  ;;  %v5631_v35 = vpop.f32.mrf.mxu2 }
 0x6f4   : > { %v5889_v62 = vadd.f32 %v5818_v29, %v9391_v21  ;;  %v9523_v40 = vadd.f32 %v5631_v35, %v9355_v44  ;;  %v6043_v21 = vpop.f32.mrf.mxu0  ;;  %v6265_v52 = vpop.f32.mrf.mxu1  ;;  %v9866_v35 = vld [vmem:[#allocation23_spill] sm:$0xff] }
 0x6f6   : > { %v6112_v7 = vadd.f32 %v6041_v54, %v5889_v62 }
 0x6f8   : > { %v9525_v49 = vadd.f32 %v6263_v5, %v6112_v7  ;;  %v6370_v5 = vld [vmem:[#allocation4 + $0xaa] sm:$0xff]  ;;  %v6371_v7 = vld [vmem:[#allocation4 + $0xb2] sm:$0xff] }
 0x6f9   : > { %v6397_v8 = vpack.c.bf16 %v6371_v7, %v6370_v5 }
 0x6fb   : > { %v5820_v22 = vpop.f32.mrf.mxu3  ;;  %v5633_v2 = vpop.f32.mrf.mxu2 }
 0x6fc   : > { %7178 = vmatmul.msk.bf16.gmra.mxu0 %vm300_vm1, %v9864_v3  ;;  %v5890_v28 = vadd.f32 %v5820_v22, %v9399_v32  ;;  %v9531_v38 = vadd.f32 %v5633_v2, %v9368_v31  ;;  %v6165_v32 = vld [vmem:[#allocation4 + $0x171] sm:$0xff]  ;;  %v5723_v2 = vld [vmem:[#allocation4 + $0x182] sm:$0xff] }
 0x6fd   : > { %v6368_v31 = vld [vmem:[#allocation4 + $0x92] sm:$0xff]  ;;  %v6183_v9 = vpack.c.bf16 %v6165_v32, %v6164_v13 }
 0x6fe   : > { %v6113_v44 = vadd.f32 %v6043_v21, %v5890_v28  ;;  %v6396_v29 = vpack.c.bf16 %v6369_v42, %v6368_v31  ;;  %v5946_v22 = vld [vmem:[#allocation4 + $0x198] sm:$0xff]  ;;  %v5724_v28 = vld [vmem:[#allocation4 + $0x18a] sm:$0xff] }
 0x6ff   : > { %7195 = vmatmul.msk.bf16.gmra.mxu1 %vm300_vm1, %v6182_v1  ;;  %v5963_v3 = vpack.c.bf16 %v5947_v48, %v5946_v22 }
 0x700   : > { %7161 = vmatmul.msk.bf16.gmra.mxu3 %vm300_vm1, %v9865_v23  ;;  %7203 = vmatmul.msk.bf16.gmra.mxu2 %vm300_vm1, %v6395_v25  ;;  %v9537_v30 = vadd.f32 %v6265_v52, %v6113_v44  ;;  %v9571_v44 = vpack.c.bf16 %v5724_v28, %v5723_v2  ;;  %v6374_v23 = vld [vmem:[#allocation4 + $0xda] sm:$0xff] }
 0x703   : > { %v5636_v18 = vpop.f32.mrf.mxu2  ;;  %v5823_v7 = vpop.f32.mrf.mxu3 }
 0x704   : > { %v9540_v17 = vadd.f32 %v5636_v18, %v9374_v57  ;;  %v6375_v18 = vld [vmem:[#allocation4 + $0xe2] sm:$0xff] }
 0x705   : > { %v6399_v13 = vpack.c.bf16 %v6375_v18, %v6374_v23 }
 0x70b   : > { %v5638_v36 = vpop.f32.mrf.mxu2 }
 0x70c   : > { %7179 = vmatmul.msk.bf16.gmra.mxu0 %vm300_vm1, %v9261_v51  ;;  %v9545_v54 = vadd.f32 %v5638_v36, %v9387_v33  ;;  %v6377_v36 = vld [vmem:[#allocation4 + $0xfa] sm:$0xff] }
 0x70f   : > { %7196 = vmatmul.msk.bf16.gmra.mxu1 %vm300_vm1, %v6183_v9  ;;  %v6376_v9 = vld [vmem:[#allocation4 + $0xf2] sm:$0xff] }
 0x710   : > { %7162 = vmatmul.msk.bf16.gmra.mxu3 %vm300_vm1, %v9866_v35  ;;  %7204 = vmatmul.msk.bf16.gmra.mxu2 %vm300_vm1, %v6396_v29  ;;  %v6400_v35 = vpack.c.bf16 %v6377_v36, %v6376_v9 }
 0x713   : > { %v5641_v57 = vpop.f32.mrf.mxu2 }
 0x714   : > { %v9552_v62 = vadd.f32 %v5641_v57, %v9393_v53 }
 0x71b   : > { %v5643_v51 = vpop.f32.mrf.mxu2 }
 0x71c   : > { %7180 = vmatmul.msk.bf16.gmra.mxu0 %vm300_vm1, %v9283_v59  ;;  %v9557_v33 = vadd.f32 %v5643_v51, %v9406_v55  ;;  %v6168_v59 = vld [vmem:[#allocation4 + $0x199] sm:$0xff]  ;;  %v6372_v55 = vld [vmem:[#allocation4 + $0xc2] sm:$0xff]  ;;  %v6378_v51 = vld [vmem:[#allocation4 + $0x10a] sm:$0xff] }
 0x71d   : > { %v6185_v1 = vpack.c.bf16 %v6169_v41, %v6168_v59  ;;  %v6046_v59 = vpop.f32.mrf.mxu0 }
 0x71f   : > { %7197 = vmatmul.msk.bf16.gmra.mxu1 %vm300_vm1, %v9459_v56  ;;  %v6373_v56 = vld [vmem:[#allocation4 + $0xca] sm:$0xff] }
 0x720   : > { %7163 = vmatmul.msk.bf16.gmra.mxu3 %vm300_vm1, %v9279_v63  ;;  %7205 = vmatmul.msk.bf16.gmra.mxu2 %vm300_vm1, %v6397_v8  ;;  %v6379_v8 = vld [vmem:[#allocation4 + $0x112] sm:$0xff] }
 0x723   : > { %v5646_v53 = vpop.f32.mrf.mxu2 }
 0x724   : > { %v9565_v39 = vadd.f32 %v5646_v53, %v9412_v58  ;;  %v6398_v58 = vpack.c.bf16 %v6373_v56, %v6372_v55  ;;  %v5825_v55 = vpop.f32.mrf.mxu3 }
 0x72b   : > { %v5648_v21 = vpop.f32.mrf.mxu2 }
 0x72c   : > { %7181 = vmatmul.msk.bf16.gmra.mxu0 %vm300_vm1, %v5963_v3  ;;  %v9569_v63 = vadd.f32 %v5648_v21, %v9425_v19  ;;  %v6268_v3 = vpop.f32.mrf.mxu1  ;;  %v6048_v21 = vpop.f32.mrf.mxu0 }
 0x72f   : > { %7198 = vmatmul.msk.bf16.gmra.mxu1 %vm300_vm1, %v6185_v1 }
 0x730   : > { %7164 = vmatmul.msk.bf16.gmra.mxu3 %vm300_vm1, %v9571_v44  ;;  %7206 = vmatmul.msk.bf16.gmra.mxu2 %vm300_vm1, %v6398_v58  ;;  %v6381_v58 = vld [vmem:[#allocation4 + $0x12a] sm:$0xff] }
 0x733   : > { %v5651_v25 = vpop.f32.mrf.mxu2 }
 0x734   : > { %v9578_v52 = vadd.f32 %v5651_v25, %v9431_v34  ;;  %v6270_v23 = vpop.f32.mrf.mxu1  ;;  %v6051_v9 = vpop.f32.mrf.mxu0 }
 0x73b   : > { %v5653_v32 = vpop.f32.mrf.mxu2 }
 0x73c   : > { %v9581_v19 = vadd.f32 %v5653_v32, %v9444_v50  ;;  %v9594_v50 = vld [vmem:[%s9750_s6] ss:$0 sm:$0xff]  ;;  %v5828_v32 = vpop.f32.mrf.mxu3 }
 0x740   : > { %7207 = vmatmul.msk.bf16.gmra.mxu2 %vm300_vm1, %v6399_v13 }
 0x743   : > { %v5656_v31 = vpop.f32.mrf.mxu2 }
 0x744   : > { %v9585_v42 = vadd.f32 %v5656_v31, %v9450_v16 }
 0x74b   : > { %v5658_v29 = vpop.f32.mrf.mxu2 }
 0x74c   : > { %v9588_v34 = vadd.f32 %v5658_v29, %v9465_v11 }
 0x750   : > { %7208 = vmatmul.msk.bf16.gmra.mxu2 %vm300_vm1, %v6400_v35  ;;  %v9621_v35 = vpop.f32.mrf.mxu1 }
 0x753   : > { %v6470_v57 = vpop.f32.mrf.mxu2 }
 0x754   : > { %v6550_v5 = vadd.f32 %v6470_v57, %v9471_v14  ;;  %v6401_v14 = vpack.c.bf16 %v6379_v8, %v6378_v51 }
 0x756   : > { %v6586_v16 = vadd.f32 %v9594_v50, %v6550_v5  ;;  %v5830_v5 = vpop.f32.mrf.mxu3 }
 0x758   : > { %v6618_v11 = vmax.f32 %v6586_v16, 0.0  ;;  %v6382_v16 = vld [vmem:[#allocation4 + $0x13a] sm:$0xff] }
 0x75a   : > { %6650 = vst.msk [vmem:[%s9602_s10] sm:$0xff] %vm300_vm1, %v6618_v11  ;;  %v6383_v11 = vld [vmem:[#allocation4 + $0x142] sm:$0xff] }
 0x75b   : > { %v6472_v53 = vpop.f32.mrf.mxu2 }
 0x75c   : > { %v6551_v22 = vadd.f32 %v6472_v53, %v9483_v4  ;;  %v6380_v4 = vld [vmem:[#allocation4 + $0x122] sm:$0xff]  ;;  %v6053_v53 = vpop.f32.mrf.mxu0 }
 0x75d   : > { %v6402_v13 = vpack.c.bf16 %v6381_v58, %v6380_v4 }
 0x75e   : > { %v6587_v48 = vadd.f32 %v9594_v50, %v6551_v22  ;;  %v6403_v22 = vpack.c.bf16 %v6383_v11, %v6382_v16 }
 0x760   : > { %7209 = vmatmul.msk.bf16.gmra.mxu2 %vm300_vm1, %v6401_v14  ;;  %v6619_v41 = vmax.f32 %v6587_v48, 0.0 }
 0x762   : > { %6651 = vst.msk [vmem:[%s9602_s10 + $0x8] sm:$0xff] %vm300_vm1, %v6619_v41  ;;  %v5833_v41 = vpop.f32.mrf.mxu3 }
 0x763   : > { %v6475_v1 = vpop.f32.mrf.mxu2 }
 0x764   : > { %v6552_v2 = vadd.f32 %v6475_v1, %v9489_v24 }
 0x766   : > { %v6588_v28 = vadd.f32 %v9594_v50, %v6552_v2 }
 0x768   : > { %v6620_v56 = vmax.f32 %v6588_v28, 0.0 }
 0x76a   : > { %6652 = vst.msk [vmem:[%s9602_s10 + $0x10] sm:$0xff] %vm300_vm1, %v6620_v56  ;;  %v6056_v56 = vpop.f32.mrf.mxu0 }
 0x76b   : > { %v6477_v25 = vpop.f32.mrf.mxu2 }
 0x76c   : > { %v6553_v18 = vadd.f32 %v6477_v25, %v9501_v20  ;;  %v6384_v25 = vld [vmem:[#allocation4 + $0x152] sm:$0xff] }
 0x76e   : > { %v6589_v31 = vadd.f32 %v9594_v50, %v6553_v18  ;;  %v6385_v18 = vld [vmem:[#allocation4 + $0x15a] sm:$0xff] }
 0x770   : > { %7210 = vmatmul.msk.bf16.gmra.mxu2 %vm300_vm1, %v6402_v13  ;;  %v6621_v24 = vmax.f32 %v6589_v31, 0.0  ;;  %v5835_v13 = vpop.f32.mrf.mxu3 }
 0x772   : > { %6653 = vst.msk [vmem:[%s9602_s10 + $0x18] sm:$0xff] %vm300_vm1, %v6621_v24 }
 0x773   : > { %v6480_v36 = vpop.f32.mrf.mxu2 }
 0x774   : > { %v6554_v29 = vadd.f32 %v6480_v36, %v9507_v46  ;;  %v6275_v46 = vpop.f32.mrf.mxu1  ;;  %v6404_v36 = vpack.c.bf16 %v6385_v18, %v6384_v25 }
 0x776   : > { %v6590_v57 = vadd.f32 %v9594_v50, %v6554_v29 }
 0x778   : > { %v6622_v20 = vmax.f32 %v6590_v57, 0.0 }
 0x77a   : > { %6654 = vst.msk [vmem:[%s9602_s10 + $0x20] sm:$0xff] %vm300_vm1, %v6622_v20  ;;  %v6058_v20 = vpop.f32.mrf.mxu0 }
 0x77b   : > { %v6482_v51 = vpop.f32.mrf.mxu2 }
 0x77c   : > { %v6555_v8 = vadd.f32 %v6482_v51, %v9519_v12  ;;  %v5891_v12 = vadd.f32 %v5823_v7, %v9410_v0  ;;  %v6278_v58 = vpop.f32.mrf.mxu1  ;;  %v5892_v0 = vadd.f32 %v5825_v55, %v9418_v45 }
 0x77e   : > { %v6591_v14 = vadd.f32 %v9594_v50, %v6555_v8  ;;  %v6114_v29 = vadd.f32 %v6046_v59, %v5891_v12  ;;  %v5838_v8 = vpop.f32.mrf.mxu3 }
 0x780   : > { %7211 = vmatmul.msk.bf16.gmra.mxu2 %vm300_vm1, %v6403_v22  ;;  %v6623_v48 = vmax.f32 %v6591_v14, 0.0  ;;  %v6336_v7 = vadd.f32 %v6268_v3, %v6114_v29  ;;  %v6115_v22 = vadd.f32 %v6048_v21, %v5892_v0  ;;  %v5893_v14 = vadd.f32 %v5828_v32, %v9429_v60 }
 0x781   : > { %v5894_v60 = vadd.f32 %v5830_v5, %v9437_v37  ;;  %v5895_v0 = vadd.f32 %v5833_v41, %v9448_v47 }
 0x782   : > { %6655 = vst.msk [vmem:[%s9602_s10 + $0x28] sm:$0xff] %vm300_vm1, %v6623_v48  ;;  %v6337_v48 = vadd.f32 %v6270_v23, %v6115_v22  ;;  %v6061_v45 = vpop.f32.mrf.mxu0  ;;  %v5896_v22 = vadd.f32 %v5835_v13, %v9456_v26 }
 0x783   : > { %v6485_v1 = vpop.f32.mrf.mxu2 }
 0x784   : > { %v6556_v2 = vadd.f32 %v6485_v1, %v9525_v49  ;;  %v6280_v11 = vpop.f32.mrf.mxu1  ;;  %v6386_v1 = vld [vmem:[#allocation4 + $0x16a] sm:$0xff] }
 0x786   : > { %v6592_v28 = vadd.f32 %v9594_v50, %v6556_v2  ;;  %v6387_v2 = vld [vmem:[#allocation4 + $0x172] sm:$0xff]  ;;  %v5840_v21 = vpop.f32.mrf.mxu3 }
 0x787   : > { %v6405_v3 = vpack.c.bf16 %v6387_v2, %v6386_v1  ;;  %v6390_v1 = vld [vmem:[#allocation4 + $0x19a] sm:$0xff]  ;;  %v6391_v2 = vld [vmem:[#allocation4 + $0x1a2] sm:$0xff] }
 0x788   : > { %v6624_v4 = vmax.f32 %v6592_v28, 0.0 }
 0x78a   : > { %6656 = vst.msk [vmem:[%s9602_s10 + $0x30] sm:$0xff] %vm300_vm1, %v6624_v4  ;;  %v6116_v4 = vadd.f32 %v6051_v9, %v5893_v14  ;;  %v6119_v14 = vadd.f32 %v6058_v20, %v5896_v22 }
 0x78b   : > { %v6487_v31 = vpop.f32.mrf.mxu2 }
 0x78c   : > { %v6557_v24 = vadd.f32 %v6487_v31, %v9537_v30  ;;  %v6283_v12 = vpop.f32.mrf.mxu1  ;;  %v6338_v23 = vadd.f32 %v9621_v35, %v6116_v4  ;;  %v6341_v26 = vadd.f32 %v6280_v11, %v6119_v14 }
 0x78e   : > { %v6593_v49 = vadd.f32 %v9594_v50, %v6557_v24  ;;  %v6063_v24 = vpop.f32.mrf.mxu0 }
 0x790   : > { %7212 = vmatmul.msk.bf16.gmra.mxu2 %vm300_vm1, %v6404_v36  ;;  %v6625_v57 = vmax.f32 %v6593_v49, 0.0  ;;  %v6117_v36 = vadd.f32 %v6053_v53, %v5894_v60  ;;  %v5898_v60 = vadd.f32 %v5840_v21, %v9477_v61 }
 0x792   : > { %6657 = vst.msk [vmem:[%s9602_s10 + $0x38] sm:$0xff] %vm300_vm1, %v6625_v57  ;;  %v5843_v57 = vpop.f32.mrf.mxu3 }
 0x793   : > { %v6490_v16 = vpop.f32.mrf.mxu2 }
 0x794   : > { %v6558_v51 = vadd.f32 %v6490_v16, %v6336_v7  ;;  %v6285_v29 = vpop.f32.mrf.mxu1  ;;  %v6339_v7 = vadd.f32 %v6275_v46, %v6117_v36  ;;  %v6118_v16 = vadd.f32 %v6056_v56, %v5895_v0 }
 0x796   : > { %v6594_v30 = vadd.f32 %v9594_v50, %v6558_v51  ;;  %v6066_v51 = vpop.f32.mrf.mxu0  ;;  %v6340_v47 = vadd.f32 %v6278_v58, %v6118_v16 }
 0x798   : > { %v6626_v59 = vmax.f32 %v6594_v30, 0.0 }
 0x79a   : > { %6658 = vst.msk [vmem:[%s9602_s10 + $0x40] sm:$0xff] %vm300_vm1, %v6626_v59  ;;  %v5845_v41 = vpop.f32.mrf.mxu3 }
 0x79b   : > { %v6492_v55 = vpop.f32.mrf.mxu2 }
 0x79c   : > { %v6559_v28 = vadd.f32 %v6492_v55, %v6337_v48  ;;  %v6288_v30 = vpop.f32.mrf.mxu1 }
 0x79e   : > { %v6595_v25 = vadd.f32 %v9594_v50, %v6559_v28  ;;  %v6068_v55 = vpop.f32.mrf.mxu0  ;;  %v6407_v28 = vpack.c.bf16 %v6391_v2, %v6390_v1 }
 0x7a0   : > { %7213 = vmatmul.msk.bf16.gmra.mxu2 %vm300_vm1, %v6405_v3  ;;  %v6627_v18 = vmax.f32 %v6595_v25, 0.0 }
 0x7a2   : > { %6659 = vst.msk [vmem:[%s9602_s10 + $0x48] sm:$0xff] %vm300_vm1, %v6627_v18  ;;  %v5848_v4 = vpop.f32.mrf.mxu3 }
 0x7a3   : > { %v6495_v32 = vpop.f32.mrf.mxu2 }
 0x7a4   : > { %v6560_v31 = vadd.f32 %v6495_v32, %v6338_v23  ;;  %v6290_v3 = vpop.f32.mrf.mxu1  ;;  %v6121_v32 = vadd.f32 %v6063_v24, %v5898_v60 }
 0x7a6   : > { %v6596_v9 = vadd.f32 %v9594_v50, %v6560_v31  ;;  %v6343_v0 = vadd.f32 %v6285_v29, %v6121_v32 }
 0x7a8   : > { %v6628_v49 = vmax.f32 %v6596_v9, 0.0 }
 0x7aa   : > { %6660 = vst.msk [vmem:[%s9602_s10 + $0x50] sm:$0xff] %vm300_vm1, %v6628_v49  ;;  %v5899_v49 = vadd.f32 %v5843_v57, %v9487_v27 }
 0x7ab   : > { %v6497_v37 = vpop.f32.mrf.mxu2 }
 0x7ac   : > { %v6561_v5 = vadd.f32 %v6497_v37, %v6339_v7  ;;  %v6293_v31 = vpop.f32.mrf.mxu1  ;;  %v6122_v37 = vadd.f32 %v6066_v51, %v5899_v49  ;;  %v5901_v51 = vadd.f32 %v5848_v4, %v9505_v6 }
 0x7ae   : > { %v6597_v35 = vadd.f32 %v9594_v50, %v6561_v5 }
 0x7b0   : > { %7214 = vmatmul.msk.bf16.gmra.mxu2 %vm300_vm1, %v9571_v44  ;;  %v6629_v53 = vmax.f32 %v6597_v35, 0.0  ;;  %v5897_v44 = vadd.f32 %v5838_v8, %v9469_v15  ;;  %v6071_v8 = vpop.f32.mrf.mxu0  ;;  %v5900_v35 = vadd.f32 %v5845_v41, %v9495_v43 }
 0x7b1   : > { %v6124_v41 = vadd.f32 %v6071_v8, %v5901_v51 }
 0x7b2   : > { %6661 = vst.msk [vmem:[%s9602_s10 + $0x58] sm:$0xff] %vm300_vm1, %v6629_v53  ;;  %v6120_v25 = vadd.f32 %v6061_v45, %v5897_v44  ;;  %v5850_v45 = vpop.f32.mrf.mxu3  ;;  %v6344_v53 = vadd.f32 %v6288_v30, %v6122_v37  ;;  %v6123_v57 = vadd.f32 %v6068_v55, %v5900_v35 }
 0x7b3   : > { %v6500_v59 = vpop.f32.mrf.mxu2  ;;  %v5902_v55 = vadd.f32 %v5850_v45, %v9513_v10  ;;  %v6346_v44 = vadd.f32 %v6293_v31, %v6124_v41 }
 0x7b4   : > { %v6562_v46 = vadd.f32 %v6500_v59, %v6340_v47  ;;  %v6342_v15 = vadd.f32 %v6283_v12, %v6120_v25  ;;  %v6295_v5 = vpop.f32.mrf.mxu1  ;;  %v6345_v14 = vadd.f32 %v6290_v3, %v6123_v57 }
 0x7b6   : > { %v6598_v56 = vadd.f32 %v9594_v50, %v6562_v46 }
 0x7b8   : > { %v6630_v48 = vmax.f32 %v6598_v56, 0.0  ;;  %v6073_v21 = vpop.f32.mrf.mxu0 }
 0x7b9   : > { %v6125_v3 = vadd.f32 %v6073_v21, %v5902_v55 }
 0x7ba   : > { %6662 = vst.msk [vmem:[%s9602_s10 + $0x60] sm:$0xff] %vm300_vm1, %v6630_v48  ;;  %v5853_v16 = vpop.f32.mrf.mxu3 }
 0x7bb   : > { %v6502_v13 = vpop.f32.mrf.mxu2  ;;  %v5903_v25 = vadd.f32 %v5853_v16, %v9523_v40 }
 0x7bc   : > { %v6563_v58 = vadd.f32 %v6502_v13, %v6341_v26  ;;  %v6298_v46 = vpop.f32.mrf.mxu1 }
 0x7be   : > { %v6599_v20 = vadd.f32 %v9594_v50, %v6563_v58 }
 0x7c0   : > { %7215 = vmatmul.msk.bf16.gmra.mxu2 %vm300_vm1, %v6407_v28  ;;  %v6631_v18 = vmax.f32 %v6599_v20, 0.0  ;;  %v6076_v47 = vpop.f32.mrf.mxu0  ;;  %v6347_v20 = vadd.f32 %v6295_v5, %v6125_v3 }
 0x7c2   : > { %6663 = vst.msk [vmem:[%s9602_s10 + $0x68] sm:$0xff] %vm300_vm1, %v6631_v18  ;;  %v5855_v56 = vpop.f32.mrf.mxu3 }
 0x7c3   : > { %v6505_v23 = vpop.f32.mrf.mxu2  ;;  %v5904_v31 = vadd.f32 %v5855_v56, %v9531_v38 }
 0x7c4   : > { %v6564_v11 = vadd.f32 %v6505_v23, %v6342_v15  ;;  %v6300_v6 = vpop.f32.mrf.mxu1  ;;  %v6126_v15 = vadd.f32 %v6076_v47, %v5903_v25 }
 0x7c6   : > { %v6600_v36 = vadd.f32 %v9594_v50, %v6564_v11 }
 0x7c8   : > { %v6632_v9 = vmax.f32 %v6600_v36, 0.0  ;;  %v6078_v2 = vpop.f32.mrf.mxu0  ;;  %v6348_v36 = vadd.f32 %v6298_v46, %v6126_v15 }
 0x7c9   : > { %v6127_v49 = vadd.f32 %v6078_v2, %v5904_v31 }
 0x7ca   : > { %6664 = vst.msk [vmem:[%s9602_s10 + $0x70] sm:$0xff] %vm300_vm1, %v6632_v9  ;;  %v5858_v28 = vpop.f32.mrf.mxu3 }
 0x7cb   : > { %v6507_v7 = vpop.f32.mrf.mxu2  ;;  %v5905_v37 = vadd.f32 %v5858_v28, %v9540_v17 }
 0x7cc   : > { %v6565_v61 = vadd.f32 %v6507_v7, %v6343_v0  ;;  %v6303_v8 = vpop.f32.mrf.mxu1 }
 0x7ce   : > { %v6601_v12 = vadd.f32 %v9594_v50, %v6565_v61 }
 0x7d0   : > { %v6633_v24 = vmax.f32 %v6601_v12, 0.0  ;;  %v6081_v18 = vpop.f32.mrf.mxu0  ;;  %v6349_v12 = vadd.f32 %v6300_v6, %v6127_v49 }
 0x7d2   : > { %6665 = vst.msk [vmem:[%s9602_s10 + $0x78] sm:$0xff] %vm300_vm1, %v6633_v24  ;;  %v5860_v11 = vpop.f32.mrf.mxu3  ;;  %v6128_v24 = vadd.f32 %v6081_v18, %v5905_v37 }
 0x7d3   : > { %v6510_v22 = vpop.f32.mrf.mxu2 }
 0x7d4   : > { %v6566_v27 = vadd.f32 %v6510_v22, %v6344_v53  ;;  %v6305_v7 = vpop.f32.mrf.mxu1  ;;  %v6350_v57 = vadd.f32 %v6303_v8, %v6128_v24 }
 0x7d6   : > { %v6602_v29 = vadd.f32 %v9594_v50, %v6566_v27  ;;  %v5906_v27 = vadd.f32 %v5860_v11, %v9545_v54 }
 0x7d8   : > { %v6634_v59 = vmax.f32 %v6602_v29, 0.0  ;;  %v6083_v9 = vpop.f32.mrf.mxu0 }
 0x7da   : > { %6666 = vst.msk [vmem:[%s9602_s10 + $0x80] sm:$0xff] %vm300_vm1, %v6634_v59  ;;  %v5863_v21 = vpop.f32.mrf.mxu3  ;;  %v6129_v59 = vadd.f32 %v6083_v9, %v5906_v27 }
 0x7db   : > { %v6512_v48 = vpop.f32.mrf.mxu2  ;;  %v5907_v56 = vadd.f32 %v5863_v21, %v9552_v62 }
 0x7dc   : > { %v6567_v43 = vadd.f32 %v6512_v48, %v6345_v14  ;;  %v6308_v22 = vpop.f32.mrf.mxu1  ;;  %v6351_v48 = vadd.f32 %v6305_v7, %v6129_v59 }
 0x7de   : > { %v6603_v30 = vadd.f32 %v9594_v50, %v6567_v43 }
 0x7e0   : > { %v6635_v1 = vmax.f32 %v6603_v30, 0.0  ;;  %v6086_v35 = vpop.f32.mrf.mxu0 }
 0x7e2   : > { %6667 = vst.msk [vmem:[%s9602_s10 + $0x88] sm:$0xff] %vm300_vm1, %v6635_v1  ;;  %v5865_v29 = vpop.f32.mrf.mxu3  ;;  %v6130_v1 = vadd.f32 %v6086_v35, %v5907_v56 }
 0x7e3   : > { %v6515_v26 = vpop.f32.mrf.mxu2 }
 0x7e4   : > { %v6568_v13 = vadd.f32 %v6515_v26, %v6346_v44  ;;  %v6310_v41 = vpop.f32.mrf.mxu1  ;;  %v5908_v44 = vadd.f32 %v5865_v29, %v9557_v33  ;;  %v6352_v26 = vadd.f32 %v6308_v22, %v6130_v1 }
 0x7e6   : > { %v6604_v58 = vadd.f32 %v9594_v50, %v6568_v13 }
 0x7e8   : > { %v6636_v4 = vmax.f32 %v6604_v58, 0.0  ;;  %v6088_v14 = vpop.f32.mrf.mxu0 }
 0x7e9   : > { %v6131_v3 = vadd.f32 %v6088_v14, %v5908_v44 }
 0x7ea   : > { %6668 = vst.msk [vmem:[%s9602_s10 + $0x90] sm:$0xff] %vm300_vm1, %v6636_v4  ;;  %v5868_v30 = vpop.f32.mrf.mxu3 }
 0x7eb   : > { %v6517_v60 = vpop.f32.mrf.mxu2  ;;  %v6353_v18 = vadd.f32 %v6310_v41, %v6131_v3 }
 0x7ec   : > { %v6569_v10 = vadd.f32 %v6517_v60, %v6347_v20  ;;  %v6313_v28 = vpop.f32.mrf.mxu1  ;;  %v5909_v20 = vadd.f32 %v5868_v30, %v9565_v39 }
 0x7ee   : > { %v6605_v23 = vadd.f32 %v9594_v50, %v6569_v10 }
 0x7f0   : > { %v6637_v32 = vmax.f32 %v6605_v23, 0.0  ;;  %v6091_v6 = vpop.f32.mrf.mxu0 }
 0x7f1   : > { %v6132_v15 = vadd.f32 %v6091_v6, %v5909_v20 }
 0x7f2   : > { %6669 = vst.msk [vmem:[%s9602_s10 + $0x98] sm:$0xff] %vm300_vm1, %v6637_v32  ;;  %v5870_v4 = vpop.f32.mrf.mxu3 }
 0x7f3   : > { %v6520_v45 = vpop.f32.mrf.mxu2  ;;  %v5910_v31 = vadd.f32 %v5870_v4, %v9569_v63 }
 0x7f4   : > { %v6570_v40 = vadd.f32 %v6520_v45, %v6348_v36  ;;  %v6315_v23 = vpop.f32.mrf.mxu1  ;;  %v6354_v36 = vadd.f32 %v6313_v28, %v6132_v15 }
 0x7f6   : > { %v6606_v0 = vadd.f32 %v9594_v50, %v6570_v40 }
 0x7f8   : > { %v6638_v61 = vmax.f32 %v6606_v0, 0.0  ;;  %v6093_v10 = vpop.f32.mrf.mxu0 }
 0x7f9   : > { %v6133_v40 = vadd.f32 %v6093_v10, %v5910_v31 }
 0x7fa   : > { %6670 = vst.msk [vmem:[%s9602_s10 + $0xa0] sm:$0xff] %vm300_vm1, %v6638_v61  ;;  %v5873_v32 = vpop.f32.mrf.mxu3 }
 0x7fb   : > { %v6522_v5 = vpop.f32.mrf.mxu2  ;;  %v5911_v61 = vadd.f32 %v5873_v32, %v9578_v52  ;;  %v6355_v21 = vadd.f32 %v6315_v23, %v6133_v40 }
 0x7fc   : > { %v6571_v38 = vadd.f32 %v6522_v5, %v6349_v12  ;;  %v6318_v7 = vpop.f32.mrf.mxu1 }
 0x7fe   : > { %v6607_v16 = vadd.f32 %v9594_v50, %v6571_v38 }
 0x800   : > { %v6639_v53 = vmax.f32 %v6607_v16, 0.0  ;;  %v6096_v49 = vpop.f32.mrf.mxu0 }
 0x801   : > { %v6134_v5 = vadd.f32 %v6096_v49, %v5911_v61 }
 0x802   : > { %6671 = vst.msk [vmem:[%s9602_s10 + $0xa8] sm:$0xff] %vm300_vm1, %v6639_v53  ;;  %v5875_v37 = vpop.f32.mrf.mxu3 }
 0x803   : > { %v6525_v47 = vpop.f32.mrf.mxu2  ;;  %v5912_v35 = vadd.f32 %v5875_v37, %v9581_v19  ;;  %v6356_v53 = vadd.f32 %v6318_v7, %v6134_v5 }
 0x804   : > { %v6572_v17 = vadd.f32 %v6525_v47, %v6350_v57  ;;  %v6320_v52 = vpop.f32.mrf.mxu1 }
 0x806   : > { %v6608_v51 = vadd.f32 %v9594_v50, %v6572_v17 }
 0x808   : > { %v6640_v46 = vmax.f32 %v6608_v51, 0.0  ;;  %v6098_v16 = vpop.f32.mrf.mxu0 }
 0x809   : > { %v6135_v29 = vadd.f32 %v6098_v16, %v5912_v35 }
 0x80a   : > { %6672 = vst.msk [vmem:[%s9602_s10 + $0xb0] sm:$0xff] %vm300_vm1, %v6640_v46  ;;  %v5878_v57 = vpop.f32.mrf.mxu3 }
 0x80b   : > { %v6527_v43 = vpop.f32.mrf.mxu2  ;;  %v5913_v51 = vadd.f32 %v5878_v57, %v9585_v42  ;;  %v6357_v46 = vadd.f32 %v6320_v52, %v6135_v29 }
 0x80c   : > { %v6573_v54 = vadd.f32 %v6527_v43, %v6351_v48  ;;  %v6323_v56 = vpop.f32.mrf.mxu1 }
 0x80e   : > { %v6609_v2 = vadd.f32 %v9594_v50, %v6573_v54 }
 0x810   : > { %v6641_v55 = vmax.f32 %v6609_v2, 0.0  ;;  %v6101_v59 = vpop.f32.mrf.mxu0 }
 0x811   : > { %v6136_v48 = vadd.f32 %v6101_v59, %v5913_v51 }
 0x812   : > { %6673 = vst.msk [vmem:[%s9602_s10 + $0xb8] sm:$0xff] %vm300_vm1, %v6641_v55  ;;  %v5880_v41 = vpop.f32.mrf.mxu3 }
 0x813   : > { %v6530_v13 = vpop.f32.mrf.mxu2  ;;  %v6358_v30 = vadd.f32 %v6323_v56, %v6136_v48  ;;  %v5914_v1 = vadd.f32 %v5880_v41, %v9588_v34 }
 0x814   : > { %v6574_v62 = vadd.f32 %v6530_v13, %v6352_v26  ;;  %v6325_v6 = vpop.f32.mrf.mxu1 }
 0x816   : > { %v6610_v58 = vadd.f32 %v9594_v50, %v6574_v62 }
 0x818   : > { %v6642_v25 = vmax.f32 %v6610_v58, 0.0  ;;  %v6103_v2 = vpop.f32.mrf.mxu0 }
 0x819   : > { %v6137_v44 = vadd.f32 %v6103_v2, %v5914_v1 }
 0x81a   : > { %6674 = vst.msk [vmem:[%s9602_s10 + $0xc0] sm:$0xff] %vm300_vm1, %v6642_v25 }
 0x81b   : > { %v6532_v60 = vpop.f32.mrf.mxu2  ;;  %v6359_v62 = vadd.f32 %v6325_v6, %v6137_v44 }
 0x81c   : > { %v6575_v33 = vadd.f32 %v6532_v60, %v6353_v18 }
 0x81e   : > { %v6611_v8 = vadd.f32 %v9594_v50, %v6575_v33 }
 0x820   : > { %v6643_v11 = vmax.f32 %v6611_v8, 0.0 }
 0x822   : > { %6675 = vst.msk [vmem:[%s9602_s10 + $0xc8] sm:$0xff] %vm300_vm1, %v6643_v11 }
 0x823   : > { %v6535_v45 = vpop.f32.mrf.mxu2 }
 0x824   : > { %v6576_v39 = vadd.f32 %v6535_v45, %v6354_v36 }
 0x826   : > { %v6612_v9 = vadd.f32 %v9594_v50, %v6576_v39 }
 0x828   : > { %v6644_v0 = vmax.f32 %v6612_v9, 0.0 }
 0x82a   : > { %6676 = vst.msk [vmem:[%s9602_s10 + $0xd0] sm:$0xff] %vm300_vm1, %v6644_v0 }
 0x82b   : > { %v6537_v12 = vpop.f32.mrf.mxu2 }
 0x82c   : > { %v6577_v63 = vadd.f32 %v6537_v12, %v6355_v21 }
 0x82e   : > { %v6613_v38 = vadd.f32 %v9594_v50, %v6577_v63 }
 0x830   : > { %v6645_v24 = vmax.f32 %v6613_v38, 0.0 }
 0x832   : > { %6677 = vst.msk [vmem:[%s9602_s10 + $0xd8] sm:$0xff] %vm300_vm1, %v6645_v24 }
 0x833   : > { %v6540_v22 = vpop.f32.mrf.mxu2 }
 0x834   : > { %v6578_v27 = vadd.f32 %v6540_v22, %v6356_v53 }
 0x836   : > { %v6614_v47 = vadd.f32 %v9594_v50, %v6578_v27 }
 0x838   : > { %v6646_v17 = vmax.f32 %v6614_v47, 0.0 }
 0x83a   : > { %6678 = vst.msk [vmem:[%s9602_s10 + $0xe0] sm:$0xff] %vm300_vm1, %v6646_v17 }
 0x83b   : > { %v6542_v14 = vpop.f32.mrf.mxu2 }
 0x83c   : > { %v6579_v19 = vadd.f32 %v6542_v14, %v6357_v46 }
 0x83e   : > { %v6615_v43 = vadd.f32 %v9594_v50, %v6579_v19 }
 0x840   : > { %v6647_v54 = vmax.f32 %v6615_v43, 0.0 }
 0x842   : > { %6679 = vst.msk [vmem:[%s9602_s10 + $0xe8] sm:$0xff] %vm300_vm1, %v6647_v54 }
 0x843   : > { %v6545_v42 = vpop.f32.mrf.mxu2 }
 0x844   : > { %v6580_v55 = vadd.f32 %v6545_v42, %v6358_v30 }
 0x846   : > { %v6616_v26 = vadd.f32 %v9594_v50, %v6580_v55 }
 0x848   : > { %v6648_v13 = vmax.f32 %v6616_v26, 0.0 }
 0x84a   : > { %6680 = vst.msk [vmem:[%s9602_s10 + $0xf0] sm:$0xff] %vm300_vm1, %v6648_v13 }
 0x84b   : > { %v6547_v28 = vpop.f32.mrf.mxu2 }
 0x84c   : > { %v6581_v3 = vadd.f32 %v6547_v28, %v6359_v62 }
 0x84e   : > { %v6617_v58 = vadd.f32 %v9594_v50, %v6581_v3 }
 0x850   : > { %v6649_v4 = vmax.f32 %v6617_v58, 0.0 }
 0x852   : > { %6681 = vst.msk [vmem:[%s9602_s10 + $0xf8] sm:$0xff] %vm300_vm1, %v6649_v4 }
 0x853 PF: > { %s17_s24 = sadd.s32 1, %s7400_s24  }
 0x854   : > { %p14_p4 = scmp.ge.s32.totalorder %s17_s24, 4  }
 0x856   :  { %16 = sbr.rel (!%p14_p4) target bundleno = 1 (0x1), region = 114 }

</bundles_post_ra>
